<compile_context>
chip_gen: v6e
topology: v6e:2x2x1
jax: 0.10.0
libtpu: 0.0.40
codegen_flags: <defaults>
</compile_context>

<pallas_src>
import functools

import jax
import jax.numpy as jnp
from jax.experimental import pallas as pl
from jax.experimental.pallas import tpu as pltpu

_VMEM_LIMIT = 32 * 1024 * 1024   # safe on v5e/v6e (128 MiB) and v7x (64 MiB)


# ------------------------------ fused kernel --------------------------------

def _seqnet_kernel(x_ref, w1_ref, b1_ref, w2_ref, b2_ref, w3_ref, b3_ref,
                   w4_ref, b4_ref, out_ref, p1_ref, y1_ref, p2_ref, flat_ref,
                   *, tb):
    """Whole SeqNet forward for one batch tile of `tb` samples.

    x_ref  : (2, 10, 6, 10*tb)  = (h_phase, h_pos, w_phase*3 + c, (w_pos, n))
             normalized, zero-padded (pad=2) conv1 input, even/odd phase split
             along both spatial axes so every stride-2 tap read is unit-stride.
    out_ref: (10, tb) logits for this tile.
    Scratch:
      p1_ref  : (8, 75, 8*tb)    conv1 im2col patches, per output row.
      y1_ref  : (10, 2, 16, 5*tb) conv1 output, zero-padded (pad=1) and
                                  w-phase-split, ready for conv2 tap reads.
      p2_ref  : (256, 4*tb)      conv2 im2col patches for one output row.
      flat_ref: (512, tb)        the PyTorch Flatten() activation (order
                                  matched by fc1 weight packing).
    """
    f32 = jnp.float32

    # ---------------- conv1: 3 -> 16, k5, s2, p2 (in-kernel im2col) ---------
    # Build the (oh, K=75, (ow, n)) patch block with 25 static slice copies.
    for ki in range(5):
        for kj in range(5):
            t = ki * 5 + kj
            src = x_ref[ki % 2,
                        ki // 2:ki // 2 + 8,
                        3 * (kj % 2):3 * (kj % 2) + 3,
                        (kj // 2) * tb:(kj // 2 + 8) * tb]      # (8, 3, 8*tb)
            p1_ref[:, 3 * t:3 * t + 3, :] = src

    # conv2 input buffer: zero once (covers its pad ring), then scatter rows.
    y1_ref[...] = jnp.zeros_like(y1_ref)

    w1 = w1_ref[...]
    b1 = b1_ref[...]
    for oh in range(8):
        row = jnp.dot(w1, p1_ref[oh], preferred_element_type=f32) + b1
        row = jnp.maximum(row, 0.0)                              # (16, 8*tb)
        # Scatter into the padded, w-phase-split conv2 input:
        #   y1pad column j = ow + 1  ->  phase j % 2, position j // 2.
        for ow in range(8):
            j = ow + 1
            y1_ref[oh + 1, j % 2, :, (j // 2) * tb:(j // 2 + 1) * tb] = (
                row[:, ow * tb:(ow + 1) * tb])

    # ---------------- conv2: 16 -> 32, k4, s2, p1 ---------------------------
    w2 = w2_ref[...]
    b2 = b2_ref[...]
    for oh2 in range(4):
        for ki in range(4):
            for kj in range(4):
                t2 = ki * 4 + kj
                p2_ref[16 * t2:16 * t2 + 16, :] = y1_ref[
                    2 * oh2 + ki, kj % 2, :,
                    (kj // 2) * tb:(kj // 2 + 4) * tb]           # (16, 4*tb)
        row2 = jnp.dot(w2, p2_ref[...], preferred_element_type=f32) + b2
        row2 = jnp.maximum(row2, 0.0)                            # (32, 4*tb)
        # Write straight into the flatten buffer (order (oh2, ow2, c); fc1's
        # weight columns are permuted at pack time to match).
        for ow2 in range(4):
            pos = oh2 * 4 + ow2
            flat_ref[pos * 32:(pos + 1) * 32, :] = (
                row2[:, ow2 * tb:(ow2 + 1) * tb])

    # ---------------- fc1(512->100) + ReLU + fc2(100->10), all in VMEM ------
    h = jnp.dot(w3_ref[...], flat_ref[...], preferred_element_type=f32)
    h = jnp.maximum(h + b3_ref[...], 0.0)                        # (100, tb)
    out = jnp.dot(w4_ref[...], h, preferred_element_type=f32) + b4_ref[...]
    out_ref[...] = out                                           # (10, tb)


# ------------------------------ parameters ----------------------------------

def init_params(key):
    ks = jax.random.split(key, 8)
    return {
        "conv1_w": 0.10 * jax.random.normal(ks[0], (16, 3, 5, 5), jnp.float32),
        "conv1_b": 0.10 * jax.random.normal(ks[1], (16,), jnp.float32),
        "conv2_w": 0.10 * jax.random.normal(ks[2], (32, 16, 4, 4), jnp.float32),
        "conv2_b": 0.10 * jax.random.normal(ks[3], (32,), jnp.float32),
        "fc1_w": 0.05 * jax.random.normal(ks[4], (100, 32 * 4 * 4), jnp.float32),
        "fc1_b": 0.05 * jax.random.normal(ks[5], (100,), jnp.float32),
        "fc2_w": 0.05 * jax.random.normal(ks[6], (10, 100), jnp.float32),
        "fc2_b": 0.05 * jax.random.normal(ks[7], (10,), jnp.float32),
        "mean": jnp.array([0.485, 0.456, 0.406], jnp.float32),
        "sigma": jnp.array([0.225, 0.225, 0.225], jnp.float32),
    }


def pack_params(raw, *, skip_norm=False):
    """Pre-pack weights once into the kernel's GEMM layouts (all f32).

    Conv weights -> (Cout, ki*kw + ... , c) row order matching the in-kernel
    patch construction; fc1's K axis is permuted from PyTorch's (c, oh, ow)
    flatten order to the kernel's (oh, ow, c) order, so no transpose is needed
    between conv2 and the FC stack."""
    if skip_norm:
        mean = jnp.zeros_like(raw["mean"])
        inv_sigma = jnp.ones_like(raw["sigma"])
    else:
        mean = raw["mean"]
        inv_sigma = 1.0 / raw["sigma"]
    return {
        "mean": mean,
        "inv_sigma": inv_sigma,
        # (16, 75), columns ordered (ki, kj, c)
        "w1": raw["conv1_w"].transpose(0, 2, 3, 1).reshape(16, 75),
        "b1": raw["conv1_b"].reshape(-1, 1),
        # (32, 256), columns ordered (ki, kj, c)
        "w2": raw["conv2_w"].transpose(0, 2, 3, 1).reshape(32, 256),
        "b2": raw["conv2_b"].reshape(-1, 1),
        # (100, 512), columns permuted (c, oh, ow) -> (oh, ow, c)
        "w3": raw["fc1_w"].reshape(100, 32, 4, 4).transpose(0, 2, 3, 1)
                           .reshape(100, 512),
        "b3": raw["fc1_b"].reshape(-1, 1),
        "w4": raw["fc2_w"],                                     # (10, 100)
        "b4": raw["fc2_b"].reshape(-1, 1),
    }


# ------------------------------ forward pass ---------------------------------

def seqnet_forward(pp, x):
    """SeqNet.forward on NCHW f32 input x -> (N, 10) logits."""
    n = x.shape[0]
    # Batch tile: cap at 128 (VMEM ~6 MiB/tile) and keep >= 2 grid steps
    # whenever N >= 2 so v7x's two TensorCores both get work.
    tb = max(1, min(128, (n + 1) // 2))
    nt = pl.cdiv(n, tb)
    npad = nt * tb

    # --- one cheap XLA layout pass over the input (fused transpose + normalize
    # + zero-pad + even/odd phase split); same byte count as the raw input ---
    xc = jnp.transpose(x, (1, 2, 3, 0))                           # (3,16,16,N)
    xc = (xc - pp["mean"].reshape(3, 1, 1, 1)) * pp["inv_sigma"].reshape(3, 1, 1, 1)
    if npad != n:
        xc = jnp.pad(xc, ((0, 0), (0, 0), (0, 0), (0, npad - n)))
    xp = jnp.pad(xc, ((0, 0), (2, 2), (2, 2), (0, 0)))            # (3,20,20,Np)
    # (c, hq, hp, wq, wp, nt, tb) -> (nt, hp, hq, wp, c, wq, tb)
    xp = xp.reshape(3, 10, 2, 10, 2, nt, tb).transpose(5, 2, 1, 4, 0, 3, 6)
    x_prep = xp.reshape(nt, 2, 10, 6, 10 * tb)                    # (wp,c) merged

    kernel = functools.partial(_seqnet_kernel, tb=tb)

    flops_per_sample = 2 * (16 * 75 * 64 + 32 * 256 * 16 + 100 * 512 + 10 * 100)
    weight_bytes = 4 * (16 * 75 + 16 + 32 * 256 + 32 + 100 * 512 + 100
                        + 10 * 100 + 10)
    cost = pl.CostEstimate(
        flops=int(flops_per_sample * npad),
        transcendentals=0,
        bytes_accessed=int(npad * (2 * 10 * 6 * 10 * 4 + 10 * 4) + weight_bytes))

    out = pl.pallas_call(
        kernel,
        out_shape=jax.ShapeDtypeStruct((nt, 10, tb), jnp.float32),
        grid=(nt,),
        in_specs=[
            # one batch tile of the phase-split input per grid step
            pl.BlockSpec((None, 2, 10, 6, 10 * tb),
                         lambda i: (i, 0, 0, 0, 0)),
            # weights / biases: VMEM-resident (constant index_map)
            pl.BlockSpec((16, 75), lambda i: (0, 0)),
            pl.BlockSpec((16, 1), lambda i: (0, 0)),
            pl.BlockSpec((32, 256), lambda i: (0, 0)),
            pl.BlockSpec((32, 1), lambda i: (0, 0)),
            pl.BlockSpec((100, 512), lambda i: (0, 0)),
            pl.BlockSpec((100, 1), lambda i: (0, 0)),
            pl.BlockSpec((10, 100), lambda i: (0, 0)),
            pl.BlockSpec((10, 1), lambda i: (0, 0)),
        ],
        out_specs=pl.BlockSpec((None, 10, tb), lambda i: (i, 0, 0)),
        scratch_shapes=[
            pltpu.VMEM((8, 75, 8 * tb), jnp.float32),     # conv1 patches
            pltpu.VMEM((10, 2, 16, 5 * tb), jnp.float32), # padded phase-split y1
            pltpu.VMEM((256, 4 * tb), jnp.float32),       # conv2 patches (1 row)
            pltpu.VMEM((512, tb), jnp.float32),           # flatten activation
        ],
        compiler_params=pltpu.CompilerParams(
            dimension_semantics=("parallel",),
            vmem_limit_bytes=_VMEM_LIMIT),
        cost_estimate=cost,
    )(x_prep, pp["w1"], pp["b1"], pp["w2"], pp["b2"],
      pp["w3"], pp["b3"], pp["w4"], pp["b4"])

    # (nt, 10, tb) -> (N, 10); tiny, one XLA pass.
    return out.transpose(0, 2, 1).reshape(npad, 10)[:n]


# ------------------------------ reference (pure JAX) -------------------------

def seqnet_reference(raw, x):
    hp = jax.lax.Precision.HIGHEST
    xn = (x - raw["mean"].reshape(1, 3, 1, 1)) / raw["sigma"].reshape(1, 3, 1, 1)
    y = jax.lax.conv_general_dilated(
        xn, raw["conv1_w"], (2, 2), ((2, 2), (2, 2)),
        dimension_numbers=("NCHW", "OIHW", "NCHW"), precision=hp)
    y = jax.nn.relu(y + raw["conv1_b"].reshape(1, -1, 1, 1))
    y = jax.lax.conv_general_dilated(
        y, raw["conv2_w"], (2, 2), ((1, 1), (1, 1)),
        dimension_numbers=("NCHW", "OIHW", "NCHW"), precision=hp)
    y = jax.nn.relu(y + raw["conv2_b"].reshape(1, -1, 1, 1))
    y = y.reshape(y.shape[0], -1)
    y = jax.nn.relu(jnp.matmul(y, raw["fc1_w"].T, precision=hp) + raw["fc1_b"])
    return jnp.matmul(y, raw["fc2_w"].T, precision=hp) + raw["fc2_b"]


if __name__ == "__main__":
    key = jax.random.PRNGKey(0)
    pkey, xkey = jax.random.split(key)
    raw = init_params(pkey)
    params = pack_params(raw, skip_norm=False)
    x = jax.random.normal(xkey, (2, 3, 16, 16), jnp.float32)      # NCHW

    fwd = jax.jit(seqnet_forward)
    out = jax.block_until_ready(fwd(params, x))
    assert out.shape == (2, 10), out.shape
    assert bool(jnp.all(jnp.isfinite(out)))

    ref = seqnet_reference(raw, x)
    err = float(jnp.max(jnp.abs(out - ref)))
    assert err < 1e-2, f"max |pallas - reference| = {err}"
    print("KERNEL_OK")
</pallas_src>

<mosaic_0001>
module attributes {stable_mosaic.version = 11 : i64} {
  func.func @_seqnet_kernel(%arg0: i32, %arg1: memref<1x2x10x6x10xf32, #tpu.memory_space<vmem>>, %arg2: memref<16x75xf32, #tpu.memory_space<vmem>>, %arg3: memref<16x1xf32, #tpu.memory_space<vmem>>, %arg4: memref<32x256xf32, #tpu.memory_space<vmem>>, %arg5: memref<32x1xf32, #tpu.memory_space<vmem>>, %arg6: memref<100x512xf32, #tpu.memory_space<vmem>>, %arg7: memref<100x1xf32, #tpu.memory_space<vmem>>, %arg8: memref<10x100xf32, #tpu.memory_space<vmem>>, %arg9: memref<10x1xf32, #tpu.memory_space<vmem>>, %arg10: memref<1x10x1xf32, #tpu.memory_space<vmem>>, %arg11: memref<8x75x8xf32, #tpu.memory_space<vmem>>, %arg12: memref<10x2x16x5xf32, #tpu.memory_space<vmem>>, %arg13: memref<256x4xf32, #tpu.memory_space<vmem>>, %arg14: memref<512x1xf32, #tpu.memory_space<vmem>>) attributes {dimension_semantics = [#tpu.dimension_semantics<parallel>], iteration_bounds = array<i64: 2>, scalar_prefetch = 0 : i64, scratch_operands = 4 : i64, tpu.core_type = #tpu.core_type<tc>, window_params = [{transform_indices = @transform_0, window_bounds = array<i64: 1, 2, 10, 6, 10>}, {pipeline_mode = #tpu.pipeline_mode<synchronous>, transform_indices = @transform_1, window_bounds = array<i64: 16, 75>}, {pipeline_mode = #tpu.pipeline_mode<synchronous>, transform_indices = @transform_2, window_bounds = array<i64: 16, 1>}, {pipeline_mode = #tpu.pipeline_mode<synchronous>, transform_indices = @transform_3, window_bounds = array<i64: 32, 256>}, {pipeline_mode = #tpu.pipeline_mode<synchronous>, transform_indices = @transform_4, window_bounds = array<i64: 32, 1>}, {pipeline_mode = #tpu.pipeline_mode<synchronous>, transform_indices = @transform_5, window_bounds = array<i64: 100, 512>}, {pipeline_mode = #tpu.pipeline_mode<synchronous>, transform_indices = @transform_6, window_bounds = array<i64: 100, 1>}, {pipeline_mode = #tpu.pipeline_mode<synchronous>, transform_indices = @transform_7, window_bounds = array<i64: 10, 100>}, {pipeline_mode = #tpu.pipeline_mode<synchronous>, transform_indices = @transform_8, window_bounds = array<i64: 10, 1>}, {transform_indices = @transform_9, window_bounds = array<i64: 1, 10, 1>}]} {
    %c0 = arith.constant 0 : index
    %c0_0 = arith.constant 0 : index
    %c0_1 = arith.constant 0 : index
    %c0_2 = arith.constant 0 : index
    %c0_3 = arith.constant 0 : index
    %0 = vector.load %arg1[%c0, %c0_0, %c0_1, %c0_2, %c0_3] : memref<1x2x10x6x10xf32, #tpu.memory_space<vmem>>, vector<1x1x8x3x8xf32>
    %1 = vector.shape_cast %0 : vector<1x1x8x3x8xf32> to vector<8x3x8xf32>
    %c0_4 = arith.constant 0 : index
    %c0_5 = arith.constant 0 : index
    %c0_6 = arith.constant 0 : index
    %2 = vector.load %arg11[%c0_4, %c0_5, %c0_6] : memref<8x75x8xf32, #tpu.memory_space<vmem>>, vector<8x3x8xf32>
    tpu.vector_store %arg11[%c0_4, %c0_5, %c0_6], %1 {strides = array<i32>} : memref<8x75x8xf32, #tpu.memory_space<vmem>>, vector<8x3x8xf32>,
    %c0_7 = arith.constant 0 : index
    %c0_8 = arith.constant 0 : index
    %c0_9 = arith.constant 0 : index
    %c3 = arith.constant 3 : index
    %c0_10 = arith.constant 0 : index
    %3 = vector.load %arg1[%c0_7, %c0_8, %c0_9, %c3, %c0_10] : memref<1x2x10x6x10xf32, #tpu.memory_space<vmem>>, vector<1x1x8x3x8xf32>
    %4 = vector.shape_cast %3 : vector<1x1x8x3x8xf32> to vector<8x3x8xf32>
    %c0_11 = arith.constant 0 : index
    %c3_12 = arith.constant 3 : index
    %c0_13 = arith.constant 0 : index
    %5 = vector.load %arg11[%c0_11, %c3_12, %c0_13] : memref<8x75x8xf32, #tpu.memory_space<vmem>>, vector<8x3x8xf32>
    tpu.vector_store %arg11[%c0_11, %c3_12, %c0_13], %4 {strides = array<i32>} : memref<8x75x8xf32, #tpu.memory_space<vmem>>, vector<8x3x8xf32>,
    %c0_14 = arith.constant 0 : index
    %c0_15 = arith.constant 0 : index
    %c0_16 = arith.constant 0 : index
    %c0_17 = arith.constant 0 : index
    %c1 = arith.constant 1 : index
    %6 = vector.load %arg1[%c0_14, %c0_15, %c0_16, %c0_17, %c1] : memref<1x2x10x6x10xf32, #tpu.memory_space<vmem>>, vector<1x1x8x3x8xf32>
    %7 = vector.shape_cast %6 : vector<1x1x8x3x8xf32> to vector<8x3x8xf32>
    %c0_18 = arith.constant 0 : index
    %c6 = arith.constant 6 : index
    %c0_19 = arith.constant 0 : index
    %8 = vector.load %arg11[%c0_18, %c6, %c0_19] : memref<8x75x8xf32, #tpu.memory_space<vmem>>, vector<8x3x8xf32>
    tpu.vector_store %arg11[%c0_18, %c6, %c0_19], %7 {strides = array<i32>} : memref<8x75x8xf32, #tpu.memory_space<vmem>>, vector<8x3x8xf32>,
    %c0_20 = arith.constant 0 : index
    %c0_21 = arith.constant 0 : index
    %c0_22 = arith.constant 0 : index
    %c3_23 = arith.constant 3 : index
    %c1_24 = arith.constant 1 : index
    %9 = vector.load %arg1[%c0_20, %c0_21, %c0_22, %c3_23, %c1_24] : memref<1x2x10x6x10xf32, #tpu.memory_space<vmem>>, vector<1x1x8x3x8xf32>
    %10 = vector.shape_cast %9 : vector<1x1x8x3x8xf32> to vector<8x3x8xf32>
    %c0_25 = arith.constant 0 : index
    %c9 = arith.constant 9 : index
    %c0_26 = arith.constant 0 : index
    %11 = vector.load %arg11[%c0_25, %c9, %c0_26] : memref<8x75x8xf32, #tpu.memory_space<vmem>>, vector<8x3x8xf32>
    tpu.vector_store %arg11[%c0_25, %c9, %c0_26], %10 {strides = array<i32>} : memref<8x75x8xf32, #tpu.memory_space<vmem>>, vector<8x3x8xf32>,
    %c0_27 = arith.constant 0 : index
    %c0_28 = arith.constant 0 : index
    %c0_29 = arith.constant 0 : index
    %c0_30 = arith.constant 0 : index
    %c2 = arith.constant 2 : index
    %12 = vector.load %arg1[%c0_27, %c0_28, %c0_29, %c0_30, %c2] : memref<1x2x10x6x10xf32, #tpu.memory_space<vmem>>, vector<1x1x8x3x8xf32>
    %13 = vector.shape_cast %12 : vector<1x1x8x3x8xf32> to vector<8x3x8xf32>
    %c0_31 = arith.constant 0 : index
    %c12 = arith.constant 12 : index
    %c0_32 = arith.constant 0 : index
    %14 = vector.load %arg11[%c0_31, %c12, %c0_32] : memref<8x75x8xf32, #tpu.memory_space<vmem>>, vector<8x3x8xf32>
    tpu.vector_store %arg11[%c0_31, %c12, %c0_32], %13 {strides = array<i32>} : memref<8x75x8xf32, #tpu.memory_space<vmem>>, vector<8x3x8xf32>,
    %c0_33 = arith.constant 0 : index
    %c1_34 = arith.constant 1 : index
    %c0_35 = arith.constant 0 : index
    %c0_36 = arith.constant 0 : index
    %c0_37 = arith.constant 0 : index
    %15 = vector.load %arg1[%c0_33, %c1_34, %c0_35, %c0_36, %c0_37] : memref<1x2x10x6x10xf32, #tpu.memory_space<vmem>>, vector<1x1x8x3x8xf32>
    %16 = vector.shape_cast %15 : vector<1x1x8x3x8xf32> to vector<8x3x8xf32>
    %c0_38 = arith.constant 0 : index
    %c15 = arith.constant 15 : index
    %c0_39 = arith.constant 0 : index
    %17 = vector.load %arg11[%c0_38, %c15, %c0_39] : memref<8x75x8xf32, #tpu.memory_space<vmem>>, vector<8x3x8xf32>
    tpu.vector_store %arg11[%c0_38, %c15, %c0_39], %16 {strides = array<i32>} : memref<8x75x8xf32, #tpu.memory_space<vmem>>, vector<8x3x8xf32>,
    %c0_40 = arith.constant 0 : index
    %c1_41 = arith.constant 1 : index
    %c0_42 = arith.constant 0 : index
    %c3_43 = arith.constant 3 : index
    %c0_44 = arith.constant 0 : index
    %18 = vector.load %arg1[%c0_40, %c1_41, %c0_42, %c3_43, %c0_44] : memref<1x2x10x6x10xf32, #tpu.memory_space<vmem>>, vector<1x1x8x3x8xf32>
    %19 = vector.shape_cast %18 : vector<1x1x8x3x8xf32> to vector<8x3x8xf32>
    %c0_45 = arith.constant 0 : index
    %c18 = arith.constant 18 : index
    %c0_46 = arith.constant 0 : index
    %20 = vector.load %arg11[%c0_45, %c18, %c0_46] : memref<8x75x8xf32, #tpu.memory_space<vmem>>, vector<8x3x8xf32>
    tpu.vector_store %arg11[%c0_45, %c18, %c0_46], %19 {strides = array<i32>} : memref<8x75x8xf32, #tpu.memory_space<vmem>>, vector<8x3x8xf32>,
    %c0_47 = arith.constant 0 : index
    %c1_48 = arith.constant 1 : index
    %c0_49 = arith.constant 0 : index
    %c0_50 = arith.constant 0 : index
    %c1_51 = arith.constant 1 : index
    %21 = vector.load %arg1[%c0_47, %c1_48, %c0_49, %c0_50, %c1_51] : memref<1x2x10x6x10xf32, #tpu.memory_space<vmem>>, vector<1x1x8x3x8xf32>
    %22 = vector.shape_cast %21 : vector<1x1x8x3x8xf32> to vector<8x3x8xf32>
    %c0_52 = arith.constant 0 : index
    %c21 = arith.constant 21 : index
    %c0_53 = arith.constant 0 : index
    %23 = vector.load %arg11[%c0_52, %c21, %c0_53] : memref<8x75x8xf32, #tpu.memory_space<vmem>>, vector<8x3x8xf32>
    tpu.vector_store %arg11[%c0_52, %c21, %c0_53], %22 {strides = array<i32>} : memref<8x75x8xf32, #tpu.memory_space<vmem>>, vector<8x3x8xf32>,
    %c0_54 = arith.constant 0 : index
    %c1_55 = arith.constant 1 : index
    %c0_56 = arith.constant 0 : index
    %c3_57 = arith.constant 3 : index
    %c1_58 = arith.constant 1 : index
    %24 = vector.load %arg1[%c0_54, %c1_55, %c0_56, %c3_57, %c1_58] : memref<1x2x10x6x10xf32, #tpu.memory_space<vmem>>, vector<1x1x8x3x8xf32>
    %25 = vector.shape_cast %24 : vector<1x1x8x3x8xf32> to vector<8x3x8xf32>
    %c0_59 = arith.constant 0 : index
    %c24 = arith.constant 24 : index
    %c0_60 = arith.constant 0 : index
    %26 = vector.load %arg11[%c0_59, %c24, %c0_60] : memref<8x75x8xf32, #tpu.memory_space<vmem>>, vector<8x3x8xf32>
    tpu.vector_store %arg11[%c0_59, %c24, %c0_60], %25 {strides = array<i32>} : memref<8x75x8xf32, #tpu.memory_space<vmem>>, vector<8x3x8xf32>,
    %c0_61 = arith.constant 0 : index
    %c1_62 = arith.constant 1 : index
    %c0_63 = arith.constant 0 : index
    %c0_64 = arith.constant 0 : index
    %c2_65 = arith.constant 2 : index
    %27 = vector.load %arg1[%c0_61, %c1_62, %c0_63, %c0_64, %c2_65] : memref<1x2x10x6x10xf32, #tpu.memory_space<vmem>>, vector<1x1x8x3x8xf32>
    %28 = vector.shape_cast %27 : vector<1x1x8x3x8xf32> to vector<8x3x8xf32>
    %c0_66 = arith.constant 0 : index
    %c27 = arith.constant 27 : index
    %c0_67 = arith.constant 0 : index
    %29 = vector.load %arg11[%c0_66, %c27, %c0_67] : memref<8x75x8xf32, #tpu.memory_space<vmem>>, vector<8x3x8xf32>
    tpu.vector_store %arg11[%c0_66, %c27, %c0_67], %28 {strides = array<i32>} : memref<8x75x8xf32, #tpu.memory_space<vmem>>, vector<8x3x8xf32>,
    %c0_68 = arith.constant 0 : index
    %c0_69 = arith.constant 0 : index
    %c1_70 = arith.constant 1 : index
    %c0_71 = arith.constant 0 : index
    %c0_72 = arith.constant 0 : index
    %30 = vector.load %arg1[%c0_68, %c0_69, %c1_70, %c0_71, %c0_72] : memref<1x2x10x6x10xf32, #tpu.memory_space<vmem>>, vector<1x1x8x3x8xf32>
    %31 = vector.shape_cast %30 : vector<1x1x8x3x8xf32> to vector<8x3x8xf32>
    %c0_73 = arith.constant 0 : index
    %c30 = arith.constant 30 : index
    %c0_74 = arith.constant 0 : index
    %32 = vector.load %arg11[%c0_73, %c30, %c0_74] : memref<8x75x8xf32, #tpu.memory_space<vmem>>, vector<8x3x8xf32>
    tpu.vector_store %arg11[%c0_73, %c30, %c0_74], %31 {strides = array<i32>} : memref<8x75x8xf32, #tpu.memory_space<vmem>>, vector<8x3x8xf32>,
    %c0_75 = arith.constant 0 : index
    %c0_76 = arith.constant 0 : index
    %c1_77 = arith.constant 1 : index
    %c3_78 = arith.constant 3 : index
    %c0_79 = arith.constant 0 : index
    %33 = vector.load %arg1[%c0_75, %c0_76, %c1_77, %c3_78, %c0_79] : memref<1x2x10x6x10xf32, #tpu.memory_space<vmem>>, vector<1x1x8x3x8xf32>
    %34 = vector.shape_cast %33 : vector<1x1x8x3x8xf32> to vector<8x3x8xf32>
    %c0_80 = arith.constant 0 : index
    %c33 = arith.constant 33 : index
    %c0_81 = arith.constant 0 : index
    %35 = vector.load %arg11[%c0_80, %c33, %c0_81] : memref<8x75x8xf32, #tpu.memory_space<vmem>>, vector<8x3x8xf32>
    tpu.vector_store %arg11[%c0_80, %c33, %c0_81], %34 {strides = array<i32>} : memref<8x75x8xf32, #tpu.memory_space<vmem>>, vector<8x3x8xf32>,
    %c0_82 = arith.constant 0 : index
    %c0_83 = arith.constant 0 : index
    %c1_84 = arith.constant 1 : index
    %c0_85 = arith.constant 0 : index
    %c1_86 = arith.constant 1 : index
    %36 = vector.load %arg1[%c0_82, %c0_83, %c1_84, %c0_85, %c1_86] : memref<1x2x10x6x10xf32, #tpu.memory_space<vmem>>, vector<1x1x8x3x8xf32>
    %37 = vector.shape_cast %36 : vector<1x1x8x3x8xf32> to vector<8x3x8xf32>
    %c0_87 = arith.constant 0 : index
    %c36 = arith.constant 36 : index
    %c0_88 = arith.constant 0 : index
    %38 = vector.load %arg11[%c0_87, %c36, %c0_88] : memref<8x75x8xf32, #tpu.memory_space<vmem>>, vector<8x3x8xf32>
    tpu.vector_store %arg11[%c0_87, %c36, %c0_88], %37 {strides = array<i32>} : memref<8x75x8xf32, #tpu.memory_space<vmem>>, vector<8x3x8xf32>,
    %c0_89 = arith.constant 0 : index
    %c0_90 = arith.constant 0 : index
    %c1_91 = arith.constant 1 : index
    %c3_92 = arith.constant 3 : index
    %c1_93 = arith.constant 1 : index
    %39 = vector.load %arg1[%c0_89, %c0_90, %c1_91, %c3_92, %c1_93] : memref<1x2x10x6x10xf32, #tpu.memory_space<vmem>>, vector<1x1x8x3x8xf32>
    %40 = vector.shape_cast %39 : vector<1x1x8x3x8xf32> to vector<8x3x8xf32>
    %c0_94 = arith.constant 0 : index
    %c39 = arith.constant 39 : index
    %c0_95 = arith.constant 0 : index
    %41 = vector.load %arg11[%c0_94, %c39, %c0_95] : memref<8x75x8xf32, #tpu.memory_space<vmem>>, vector<8x3x8xf32>
    tpu.vector_store %arg11[%c0_94, %c39, %c0_95], %40 {strides = array<i32>} : memref<8x75x8xf32, #tpu.memory_space<vmem>>, vector<8x3x8xf32>,
    %c0_96 = arith.constant 0 : index
    %c0_97 = arith.constant 0 : index
    %c1_98 = arith.constant 1 : index
    %c0_99 = arith.constant 0 : index
    %c2_100 = arith.constant 2 : index
    %42 = vector.load %arg1[%c0_96, %c0_97, %c1_98, %c0_99, %c2_100] : memref<1x2x10x6x10xf32, #tpu.memory_space<vmem>>, vector<1x1x8x3x8xf32>
    %43 = vector.shape_cast %42 : vector<1x1x8x3x8xf32> to vector<8x3x8xf32>
    %c0_101 = arith.constant 0 : index
    %c42 = arith.constant 42 : index
    %c0_102 = arith.constant 0 : index
    %44 = vector.load %arg11[%c0_101, %c42, %c0_102] : memref<8x75x8xf32, #tpu.memory_space<vmem>>, vector<8x3x8xf32>
    tpu.vector_store %arg11[%c0_101, %c42, %c0_102], %43 {strides = array<i32>} : memref<8x75x8xf32, #tpu.memory_space<vmem>>, vector<8x3x8xf32>,
    %c0_103 = arith.constant 0 : index
    %c1_104 = arith.constant 1 : index
    %c1_105 = arith.constant 1 : index
    %c0_106 = arith.constant 0 : index
    %c0_107 = arith.constant 0 : index
    %45 = vector.load %arg1[%c0_103, %c1_104, %c1_105, %c0_106, %c0_107] : memref<1x2x10x6x10xf32, #tpu.memory_space<vmem>>, vector<1x1x8x3x8xf32>
    %46 = vector.shape_cast %45 : vector<1x1x8x3x8xf32> to vector<8x3x8xf32>
    %c0_108 = arith.constant 0 : index
    %c45 = arith.constant 45 : index
    %c0_109 = arith.constant 0 : index
    %47 = vector.load %arg11[%c0_108, %c45, %c0_109] : memref<8x75x8xf32, #tpu.memory_space<vmem>>, vector<8x3x8xf32>
    tpu.vector_store %arg11[%c0_108, %c45, %c0_109], %46 {strides = array<i32>} : memref<8x75x8xf32, #tpu.memory_space<vmem>>, vector<8x3x8xf32>,
    %c0_110 = arith.constant 0 : index
    %c1_111 = arith.constant 1 : index
    %c1_112 = arith.constant 1 : index
    %c3_113 = arith.constant 3 : index
    %c0_114 = arith.constant 0 : index
    %48 = vector.load %arg1[%c0_110, %c1_111, %c1_112, %c3_113, %c0_114] : memref<1x2x10x6x10xf32, #tpu.memory_space<vmem>>, vector<1x1x8x3x8xf32>
    %49 = vector.shape_cast %48 : vector<1x1x8x3x8xf32> to vector<8x3x8xf32>
    %c0_115 = arith.constant 0 : index
    %c48 = arith.constant 48 : index
    %c0_116 = arith.constant 0 : index
    %50 = vector.load %arg11[%c0_115, %c48, %c0_116] : memref<8x75x8xf32, #tpu.memory_space<vmem>>, vector<8x3x8xf32>
    tpu.vector_store %arg11[%c0_115, %c48, %c0_116], %49 {strides = array<i32>} : memref<8x75x8xf32, #tpu.memory_space<vmem>>, vector<8x3x8xf32>,
    %c0_117 = arith.constant 0 : index
    %c1_118 = arith.constant 1 : index
    %c1_119 = arith.constant 1 : index
    %c0_120 = arith.constant 0 : index
    %c1_121 = arith.constant 1 : index
    %51 = vector.load %arg1[%c0_117, %c1_118, %c1_119, %c0_120, %c1_121] : memref<1x2x10x6x10xf32, #tpu.memory_space<vmem>>, vector<1x1x8x3x8xf32>
    %52 = vector.shape_cast %51 : vector<1x1x8x3x8xf32> to vector<8x3x8xf32>
    %c0_122 = arith.constant 0 : index
    %c51 = arith.constant 51 : index
    %c0_123 = arith.constant 0 : index
    %53 = vector.load %arg11[%c0_122, %c51, %c0_123] : memref<8x75x8xf32, #tpu.memory_space<vmem>>, vector<8x3x8xf32>
    tpu.vector_store %arg11[%c0_122, %c51, %c0_123], %52 {strides = array<i32>} : memref<8x75x8xf32, #tpu.memory_space<vmem>>, vector<8x3x8xf32>,
    %c0_124 = arith.constant 0 : index
    %c1_125 = arith.constant 1 : index
    %c1_126 = arith.constant 1 : index
    %c3_127 = arith.constant 3 : index
    %c1_128 = arith.constant 1 : index
    %54 = vector.load %arg1[%c0_124, %c1_125, %c1_126, %c3_127, %c1_128] : memref<1x2x10x6x10xf32, #tpu.memory_space<vmem>>, vector<1x1x8x3x8xf32>
    %55 = vector.shape_cast %54 : vector<1x1x8x3x8xf32> to vector<8x3x8xf32>
    %c0_129 = arith.constant 0 : index
    %c54 = arith.constant 54 : index
    %c0_130 = arith.constant 0 : index
    %56 = vector.load %arg11[%c0_129, %c54, %c0_130] : memref<8x75x8xf32, #tpu.memory_space<vmem>>, vector<8x3x8xf32>
    tpu.vector_store %arg11[%c0_129, %c54, %c0_130], %55 {strides = array<i32>} : memref<8x75x8xf32, #tpu.memory_space<vmem>>, vector<8x3x8xf32>,
    %c0_131 = arith.constant 0 : index
    %c1_132 = arith.constant 1 : index
    %c1_133 = arith.constant 1 : index
    %c0_134 = arith.constant 0 : index
    %c2_135 = arith.constant 2 : index
    %57 = vector.load %arg1[%c0_131, %c1_132, %c1_133, %c0_134, %c2_135] : memref<1x2x10x6x10xf32, #tpu.memory_space<vmem>>, vector<1x1x8x3x8xf32>
    %58 = vector.shape_cast %57 : vector<1x1x8x3x8xf32> to vector<8x3x8xf32>
    %c0_136 = arith.constant 0 : index
    %c57 = arith.constant 57 : index
    %c0_137 = arith.constant 0 : index
    %59 = vector.load %arg11[%c0_136, %c57, %c0_137] : memref<8x75x8xf32, #tpu.memory_space<vmem>>, vector<8x3x8xf32>
    tpu.vector_store %arg11[%c0_136, %c57, %c0_137], %58 {strides = array<i32>} : memref<8x75x8xf32, #tpu.memory_space<vmem>>, vector<8x3x8xf32>,
    %c0_138 = arith.constant 0 : index
    %c0_139 = arith.constant 0 : index
    %c2_140 = arith.constant 2 : index
    %c0_141 = arith.constant 0 : index
    %c0_142 = arith.constant 0 : index
    %60 = vector.load %arg1[%c0_138, %c0_139, %c2_140, %c0_141, %c0_142] : memref<1x2x10x6x10xf32, #tpu.memory_space<vmem>>, vector<1x1x8x3x8xf32>
    %61 = vector.shape_cast %60 : vector<1x1x8x3x8xf32> to vector<8x3x8xf32>
    %c0_143 = arith.constant 0 : index
    %c60 = arith.constant 60 : index
    %c0_144 = arith.constant 0 : index
    %62 = vector.load %arg11[%c0_143, %c60, %c0_144] : memref<8x75x8xf32, #tpu.memory_space<vmem>>, vector<8x3x8xf32>
    tpu.vector_store %arg11[%c0_143, %c60, %c0_144], %61 {strides = array<i32>} : memref<8x75x8xf32, #tpu.memory_space<vmem>>, vector<8x3x8xf32>,
    %c0_145 = arith.constant 0 : index
    %c0_146 = arith.constant 0 : index
    %c2_147 = arith.constant 2 : index
    %c3_148 = arith.constant 3 : index
    %c0_149 = arith.constant 0 : index
    %63 = vector.load %arg1[%c0_145, %c0_146, %c2_147, %c3_148, %c0_149] : memref<1x2x10x6x10xf32, #tpu.memory_space<vmem>>, vector<1x1x8x3x8xf32>
    %64 = vector.shape_cast %63 : vector<1x1x8x3x8xf32> to vector<8x3x8xf32>
    %c0_150 = arith.constant 0 : index
    %c63 = arith.constant 63 : index
    %c0_151 = arith.constant 0 : index
    %65 = vector.load %arg11[%c0_150, %c63, %c0_151] : memref<8x75x8xf32, #tpu.memory_space<vmem>>, vector<8x3x8xf32>
    tpu.vector_store %arg11[%c0_150, %c63, %c0_151], %64 {strides = array<i32>} : memref<8x75x8xf32, #tpu.memory_space<vmem>>, vector<8x3x8xf32>,
    %c0_152 = arith.constant 0 : index
    %c0_153 = arith.constant 0 : index
    %c2_154 = arith.constant 2 : index
    %c0_155 = arith.constant 0 : index
    %c1_156 = arith.constant 1 : index
    %66 = vector.load %arg1[%c0_152, %c0_153, %c2_154, %c0_155, %c1_156] : memref<1x2x10x6x10xf32, #tpu.memory_space<vmem>>, vector<1x1x8x3x8xf32>
    %67 = vector.shape_cast %66 : vector<1x1x8x3x8xf32> to vector<8x3x8xf32>
    %c0_157 = arith.constant 0 : index
    %c66 = arith.constant 66 : index
    %c0_158 = arith.constant 0 : index
    %68 = vector.load %arg11[%c0_157, %c66, %c0_158] : memref<8x75x8xf32, #tpu.memory_space<vmem>>, vector<8x3x8xf32>
    tpu.vector_store %arg11[%c0_157, %c66, %c0_158], %67 {strides = array<i32>} : memref<8x75x8xf32, #tpu.memory_space<vmem>>, vector<8x3x8xf32>,
    %c0_159 = arith.constant 0 : index
    %c0_160 = arith.constant 0 : index
    %c2_161 = arith.constant 2 : index
    %c3_162 = arith.constant 3 : index
    %c1_163 = arith.constant 1 : index
    %69 = vector.load %arg1[%c0_159, %c0_160, %c2_161, %c3_162, %c1_163] : memref<1x2x10x6x10xf32, #tpu.memory_space<vmem>>, vector<1x1x8x3x8xf32>
    %70 = vector.shape_cast %69 : vector<1x1x8x3x8xf32> to vector<8x3x8xf32>
    %c0_164 = arith.constant 0 : index
    %c69 = arith.constant 69 : index
    %c0_165 = arith.constant 0 : index
    %71 = vector.load %arg11[%c0_164, %c69, %c0_165] : memref<8x75x8xf32, #tpu.memory_space<vmem>>, vector<8x3x8xf32>
    tpu.vector_store %arg11[%c0_164, %c69, %c0_165], %70 {strides = array<i32>} : memref<8x75x8xf32, #tpu.memory_space<vmem>>, vector<8x3x8xf32>,
    %c0_166 = arith.constant 0 : index
    %c0_167 = arith.constant 0 : index
    %c2_168 = arith.constant 2 : index
    %c0_169 = arith.constant 0 : index
    %c2_170 = arith.constant 2 : index
    %72 = vector.load %arg1[%c0_166, %c0_167, %c2_168, %c0_169, %c2_170] : memref<1x2x10x6x10xf32, #tpu.memory_space<vmem>>, vector<1x1x8x3x8xf32>
    %73 = vector.shape_cast %72 : vector<1x1x8x3x8xf32> to vector<8x3x8xf32>
    %c0_171 = arith.constant 0 : index
    %c72 = arith.constant 72 : index
    %c0_172 = arith.constant 0 : index
    %74 = vector.load %arg11[%c0_171, %c72, %c0_172] : memref<8x75x8xf32, #tpu.memory_space<vmem>>, vector<8x3x8xf32>
    tpu.vector_store %arg11[%c0_171, %c72, %c0_172], %73 {strides = array<i32>} : memref<8x75x8xf32, #tpu.memory_space<vmem>>, vector<8x3x8xf32>,
    %cst = arith.constant 0.000000e+00 : f32
    %75 = vector.broadcast %cst : f32 to vector<10x2x16x5xf32>
    %c0_173 = arith.constant 0 : index
    %c0_174 = arith.constant 0 : index
    %c0_175 = arith.constant 0 : index
    %c0_176 = arith.constant 0 : index
    %76 = vector.load %arg12[%c0_173, %c0_174, %c0_175, %c0_176] : memref<10x2x16x5xf32, #tpu.memory_space<vmem>>, vector<10x2x16x5xf32>
    tpu.vector_store %arg12[%c0_173, %c0_174, %c0_175, %c0_176], %75 {strides = array<i32>} : memref<10x2x16x5xf32, #tpu.memory_space<vmem>>, vector<10x2x16x5xf32>,
    %c0_177 = arith.constant 0 : index
    %c0_178 = arith.constant 0 : index
    %77 = vector.load %arg2[%c0_177, %c0_178] : memref<16x75xf32, #tpu.memory_space<vmem>>, vector<16x75xf32>
    %c0_179 = arith.constant 0 : index
    %c0_180 = arith.constant 0 : index
    %78 = vector.load %arg3[%c0_179, %c0_180] : memref<16x1xf32, #tpu.memory_space<vmem>>, vector<16x1xf32>
    %c0_181 = arith.constant 0 : index
    %c0_182 = arith.constant 0 : index
    %c0_183 = arith.constant 0 : index
    %79 = vector.load %arg11[%c0_181, %c0_182, %c0_183] : memref<8x75x8xf32, #tpu.memory_space<vmem>>, vector<1x75x8xf32>
    %80 = vector.shape_cast %79 : vector<1x75x8xf32> to vector<75x8xf32>
    %cst_184 = arith.constant dense<0.000000e+00> : vector<16x8xf32>
    %81 = tpu.matmul %77, %80, %cst_184 {dimension_numbers = #tpu.dot_dimension_numbers<[1], [0], [0], [1], [0, 0, 1, 1], [], []>} : vector<16x75xf32>, vector<75x8xf32>, vector<16x8xf32> -> vector<16x8xf32>
    %82 = vector.broadcast %78 : vector<16x1xf32> to vector<16x8xf32>
    %83 = arith.addf %81, %82 : vector<16x8xf32>
    %cst_185 = arith.constant 0.000000e+00 : f32
    %84 = vector.broadcast %cst_185 : f32 to vector<16x8xf32>
    %85 = arith.maximumf %83, %84 : vector<16x8xf32>
    %86 = vector.extract_strided_slice %85 {offsets = [0, 0], sizes = [16, 1], strides = [1, 1]} : vector<16x8xf32> to vector<16x1xf32>
    %c1_186 = arith.constant 1 : index
    %c1_187 = arith.constant 1 : index
    %c0_188 = arith.constant 0 : index
    %c0_189 = arith.constant 0 : index
    %87 = vector.load %arg12[%c1_186, %c1_187, %c0_188, %c0_189] : memref<10x2x16x5xf32, #tpu.memory_space<vmem>>, vector<1x1x16x1xf32>
    %88 = vector.shape_cast %87 : vector<1x1x16x1xf32> to vector<16x1xf32>
    %89 = vector.shape_cast %86 : vector<16x1xf32> to vector<1x1x16x1xf32>
    tpu.vector_store %arg12[%c1_186, %c1_187, %c0_188, %c0_189], %89 {strides = array<i32>} : memref<10x2x16x5xf32, #tpu.memory_space<vmem>>, vector<1x1x16x1xf32>,
    %90 = vector.extract_strided_slice %85 {offsets = [0, 1], sizes = [16, 1], strides = [1, 1]} : vector<16x8xf32> to vector<16x1xf32>
    %c1_190 = arith.constant 1 : index
    %c0_191 = arith.constant 0 : index
    %c0_192 = arith.constant 0 : index
    %c1_193 = arith.constant 1 : index
    %91 = vector.load %arg12[%c1_190, %c0_191, %c0_192, %c1_193] : memref<10x2x16x5xf32, #tpu.memory_space<vmem>>, vector<1x1x16x1xf32>
    %92 = vector.shape_cast %91 : vector<1x1x16x1xf32> to vector<16x1xf32>
    %93 = vector.shape_cast %90 : vector<16x1xf32> to vector<1x1x16x1xf32>
    tpu.vector_store %arg12[%c1_190, %c0_191, %c0_192, %c1_193], %93 {strides = array<i32>} : memref<10x2x16x5xf32, #tpu.memory_space<vmem>>, vector<1x1x16x1xf32>,
    %94 = vector.extract_strided_slice %85 {offsets = [0, 2], sizes = [16, 1], strides = [1, 1]} : vector<16x8xf32> to vector<16x1xf32>
    %c1_194 = arith.constant 1 : index
    %c1_195 = arith.constant 1 : index
    %c0_196 = arith.constant 0 : index
    %c1_197 = arith.constant 1 : index
    %95 = vector.load %arg12[%c1_194, %c1_195, %c0_196, %c1_197] : memref<10x2x16x5xf32, #tpu.memory_space<vmem>>, vector<1x1x16x1xf32>
    %96 = vector.shape_cast %95 : vector<1x1x16x1xf32> to vector<16x1xf32>
    %97 = vector.shape_cast %94 : vector<16x1xf32> to vector<1x1x16x1xf32>
    tpu.vector_store %arg12[%c1_194, %c1_195, %c0_196, %c1_197], %97 {strides = array<i32>} : memref<10x2x16x5xf32, #tpu.memory_space<vmem>>, vector<1x1x16x1xf32>,
    %98 = vector.extract_strided_slice %85 {offsets = [0, 3], sizes = [16, 1], strides = [1, 1]} : vector<16x8xf32> to vector<16x1xf32>
    %c1_198 = arith.constant 1 : index
    %c0_199 = arith.constant 0 : index
    %c0_200 = arith.constant 0 : index
    %c2_201 = arith.constant 2 : index
    %99 = vector.load %arg12[%c1_198, %c0_199, %c0_200, %c2_201] : memref<10x2x16x5xf32, #tpu.memory_space<vmem>>, vector<1x1x16x1xf32>
    %100 = vector.shape_cast %99 : vector<1x1x16x1xf32> to vector<16x1xf32>
    %101 = vector.shape_cast %98 : vector<16x1xf32> to vector<1x1x16x1xf32>
    tpu.vector_store %arg12[%c1_198, %c0_199, %c0_200, %c2_201], %101 {strides = array<i32>} : memref<10x2x16x5xf32, #tpu.memory_space<vmem>>, vector<1x1x16x1xf32>,
    %102 = vector.extract_strided_slice %85 {offsets = [0, 4], sizes = [16, 1], strides = [1, 1]} : vector<16x8xf32> to vector<16x1xf32>
    %c1_202 = arith.constant 1 : index
    %c1_203 = arith.constant 1 : index
    %c0_204 = arith.constant 0 : index
    %c2_205 = arith.constant 2 : index
    %103 = vector.load %arg12[%c1_202, %c1_203, %c0_204, %c2_205] : memref<10x2x16x5xf32, #tpu.memory_space<vmem>>, vector<1x1x16x1xf32>
    %104 = vector.shape_cast %103 : vector<1x1x16x1xf32> to vector<16x1xf32>
    %105 = vector.shape_cast %102 : vector<16x1xf32> to vector<1x1x16x1xf32>
    tpu.vector_store %arg12[%c1_202, %c1_203, %c0_204, %c2_205], %105 {strides = array<i32>} : memref<10x2x16x5xf32, #tpu.memory_space<vmem>>, vector<1x1x16x1xf32>,
    %106 = vector.extract_strided_slice %85 {offsets = [0, 5], sizes = [16, 1], strides = [1, 1]} : vector<16x8xf32> to vector<16x1xf32>
    %c1_206 = arith.constant 1 : index
    %c0_207 = arith.constant 0 : index
    %c0_208 = arith.constant 0 : index
    %c3_209 = arith.constant 3 : index
    %107 = vector.load %arg12[%c1_206, %c0_207, %c0_208, %c3_209] : memref<10x2x16x5xf32, #tpu.memory_space<vmem>>, vector<1x1x16x1xf32>
    %108 = vector.shape_cast %107 : vector<1x1x16x1xf32> to vector<16x1xf32>
    %109 = vector.shape_cast %106 : vector<16x1xf32> to vector<1x1x16x1xf32>
    tpu.vector_store %arg12[%c1_206, %c0_207, %c0_208, %c3_209], %109 {strides = array<i32>} : memref<10x2x16x5xf32, #tpu.memory_space<vmem>>, vector<1x1x16x1xf32>,
    %110 = vector.extract_strided_slice %85 {offsets = [0, 6], sizes = [16, 1], strides = [1, 1]} : vector<16x8xf32> to vector<16x1xf32>
    %c1_210 = arith.constant 1 : index
    %c1_211 = arith.constant 1 : index
    %c0_212 = arith.constant 0 : index
    %c3_213 = arith.constant 3 : index
    %111 = vector.load %arg12[%c1_210, %c1_211, %c0_212, %c3_213] : memref<10x2x16x5xf32, #tpu.memory_space<vmem>>, vector<1x1x16x1xf32>
    %112 = vector.shape_cast %111 : vector<1x1x16x1xf32> to vector<16x1xf32>
    %113 = vector.shape_cast %110 : vector<16x1xf32> to vector<1x1x16x1xf32>
    tpu.vector_store %arg12[%c1_210, %c1_211, %c0_212, %c3_213], %113 {strides = array<i32>} : memref<10x2x16x5xf32, #tpu.memory_space<vmem>>, vector<1x1x16x1xf32>,
    %114 = vector.extract_strided_slice %85 {offsets = [0, 7], sizes = [16, 1], strides = [1, 1]} : vector<16x8xf32> to vector<16x1xf32>
    %c1_214 = arith.constant 1 : index
    %c0_215 = arith.constant 0 : index
    %c0_216 = arith.constant 0 : index
    %c4 = arith.constant 4 : index
    %115 = vector.load %arg12[%c1_214, %c0_215, %c0_216, %c4] : memref<10x2x16x5xf32, #tpu.memory_space<vmem>>, vector<1x1x16x1xf32>
    %116 = vector.shape_cast %115 : vector<1x1x16x1xf32> to vector<16x1xf32>
    %117 = vector.shape_cast %114 : vector<16x1xf32> to vector<1x1x16x1xf32>
    tpu.vector_store %arg12[%c1_214, %c0_215, %c0_216, %c4], %117 {strides = array<i32>} : memref<10x2x16x5xf32, #tpu.memory_space<vmem>>, vector<1x1x16x1xf32>,
    %c1_217 = arith.constant 1 : index
    %c0_218 = arith.constant 0 : index
    %c0_219 = arith.constant 0 : index
    %118 = vector.load %arg11[%c1_217, %c0_218, %c0_219] : memref<8x75x8xf32, #tpu.memory_space<vmem>>, vector<1x75x8xf32>
    %119 = vector.shape_cast %118 : vector<1x75x8xf32> to vector<75x8xf32>
    %cst_220 = arith.constant dense<0.000000e+00> : vector<16x8xf32>
    %120 = tpu.matmul %77, %119, %cst_220 {dimension_numbers = #tpu.dot_dimension_numbers<[1], [0], [0], [1], [0, 0, 1, 1], [], []>} : vector<16x75xf32>, vector<75x8xf32>, vector<16x8xf32> -> vector<16x8xf32>
    %121 = vector.broadcast %78 : vector<16x1xf32> to vector<16x8xf32>
    %122 = arith.addf %120, %121 : vector<16x8xf32>
    %cst_221 = arith.constant 0.000000e+00 : f32
    %123 = vector.broadcast %cst_221 : f32 to vector<16x8xf32>
    %124 = arith.maximumf %122, %123 : vector<16x8xf32>
    %125 = vector.extract_strided_slice %124 {offsets = [0, 0], sizes = [16, 1], strides = [1, 1]} : vector<16x8xf32> to vector<16x1xf32>
    %c2_222 = arith.constant 2 : index
    %c1_223 = arith.constant 1 : index
    %c0_224 = arith.constant 0 : index
    %c0_225 = arith.constant 0 : index
    %126 = vector.load %arg12[%c2_222, %c1_223, %c0_224, %c0_225] : memref<10x2x16x5xf32, #tpu.memory_space<vmem>>, vector<1x1x16x1xf32>
    %127 = vector.shape_cast %126 : vector<1x1x16x1xf32> to vector<16x1xf32>
    %128 = vector.shape_cast %125 : vector<16x1xf32> to vector<1x1x16x1xf32>
    tpu.vector_store %arg12[%c2_222, %c1_223, %c0_224, %c0_225], %128 {strides = array<i32>} : memref<10x2x16x5xf32, #tpu.memory_space<vmem>>, vector<1x1x16x1xf32>,
    %129 = vector.extract_strided_slice %124 {offsets = [0, 1], sizes = [16, 1], strides = [1, 1]} : vector<16x8xf32> to vector<16x1xf32>
    %c2_226 = arith.constant 2 : index
    %c0_227 = arith.constant 0 : index
    %c0_228 = arith.constant 0 : index
    %c1_229 = arith.constant 1 : index
    %130 = vector.load %arg12[%c2_226, %c0_227, %c0_228, %c1_229] : memref<10x2x16x5xf32, #tpu.memory_space<vmem>>, vector<1x1x16x1xf32>
    %131 = vector.shape_cast %130 : vector<1x1x16x1xf32> to vector<16x1xf32>
    %132 = vector.shape_cast %129 : vector<16x1xf32> to vector<1x1x16x1xf32>
    tpu.vector_store %arg12[%c2_226, %c0_227, %c0_228, %c1_229], %132 {strides = array<i32>} : memref<10x2x16x5xf32, #tpu.memory_space<vmem>>, vector<1x1x16x1xf32>,
    %133 = vector.extract_strided_slice %124 {offsets = [0, 2], sizes = [16, 1], strides = [1, 1]} : vector<16x8xf32> to vector<16x1xf32>
    %c2_230 = arith.constant 2 : index
    %c1_231 = arith.constant 1 : index
    %c0_232 = arith.constant 0 : index
    %c1_233 = arith.constant 1 : index
    %134 = vector.load %arg12[%c2_230, %c1_231, %c0_232, %c1_233] : memref<10x2x16x5xf32, #tpu.memory_space<vmem>>, vector<1x1x16x1xf32>
    %135 = vector.shape_cast %134 : vector<1x1x16x1xf32> to vector<16x1xf32>
    %136 = vector.shape_cast %133 : vector<16x1xf32> to vector<1x1x16x1xf32>
    tpu.vector_store %arg12[%c2_230, %c1_231, %c0_232, %c1_233], %136 {strides = array<i32>} : memref<10x2x16x5xf32, #tpu.memory_space<vmem>>, vector<1x1x16x1xf32>,
    %137 = vector.extract_strided_slice %124 {offsets = [0, 3], sizes = [16, 1], strides = [1, 1]} : vector<16x8xf32> to vector<16x1xf32>
    %c2_234 = arith.constant 2 : index
    %c0_235 = arith.constant 0 : index
    %c0_236 = arith.constant 0 : index
    %c2_237 = arith.constant 2 : index
    %138 = vector.load %arg12[%c2_234, %c0_235, %c0_236, %c2_237] : memref<10x2x16x5xf32, #tpu.memory_space<vmem>>, vector<1x1x16x1xf32>
    %139 = vector.shape_cast %138 : vector<1x1x16x1xf32> to vector<16x1xf32>
    %140 = vector.shape_cast %137 : vector<16x1xf32> to vector<1x1x16x1xf32>
    tpu.vector_store %arg12[%c2_234, %c0_235, %c0_236, %c2_237], %140 {strides = array<i32>} : memref<10x2x16x5xf32, #tpu.memory_space<vmem>>, vector<1x1x16x1xf32>,
    %141 = vector.extract_strided_slice %124 {offsets = [0, 4], sizes = [16, 1], strides = [1, 1]} : vector<16x8xf32> to vector<16x1xf32>
    %c2_238 = arith.constant 2 : index
    %c1_239 = arith.constant 1 : index
    %c0_240 = arith.constant 0 : index
    %c2_241 = arith.constant 2 : index
    %142 = vector.load %arg12[%c2_238, %c1_239, %c0_240, %c2_241] : memref<10x2x16x5xf32, #tpu.memory_space<vmem>>, vector<1x1x16x1xf32>
    %143 = vector.shape_cast %142 : vector<1x1x16x1xf32> to vector<16x1xf32>
    %144 = vector.shape_cast %141 : vector<16x1xf32> to vector<1x1x16x1xf32>
    tpu.vector_store %arg12[%c2_238, %c1_239, %c0_240, %c2_241], %144 {strides = array<i32>} : memref<10x2x16x5xf32, #tpu.memory_space<vmem>>, vector<1x1x16x1xf32>,
    %145 = vector.extract_strided_slice %124 {offsets = [0, 5], sizes = [16, 1], strides = [1, 1]} : vector<16x8xf32> to vector<16x1xf32>
    %c2_242 = arith.constant 2 : index
    %c0_243 = arith.constant 0 : index
    %c0_244 = arith.constant 0 : index
    %c3_245 = arith.constant 3 : index
    %146 = vector.load %arg12[%c2_242, %c0_243, %c0_244, %c3_245] : memref<10x2x16x5xf32, #tpu.memory_space<vmem>>, vector<1x1x16x1xf32>
    %147 = vector.shape_cast %146 : vector<1x1x16x1xf32> to vector<16x1xf32>
    %148 = vector.shape_cast %145 : vector<16x1xf32> to vector<1x1x16x1xf32>
    tpu.vector_store %arg12[%c2_242, %c0_243, %c0_244, %c3_245], %148 {strides = array<i32>} : memref<10x2x16x5xf32, #tpu.memory_space<vmem>>, vector<1x1x16x1xf32>,
    %149 = vector.extract_strided_slice %124 {offsets = [0, 6], sizes = [16, 1], strides = [1, 1]} : vector<16x8xf32> to vector<16x1xf32>
    %c2_246 = arith.constant 2 : index
    %c1_247 = arith.constant 1 : index
    %c0_248 = arith.constant 0 : index
    %c3_249 = arith.constant 3 : index
    %150 = vector.load %arg12[%c2_246, %c1_247, %c0_248, %c3_249] : memref<10x2x16x5xf32, #tpu.memory_space<vmem>>, vector<1x1x16x1xf32>
    %151 = vector.shape_cast %150 : vector<1x1x16x1xf32> to vector<16x1xf32>
    %152 = vector.shape_cast %149 : vector<16x1xf32> to vector<1x1x16x1xf32>
    tpu.vector_store %arg12[%c2_246, %c1_247, %c0_248, %c3_249], %152 {strides = array<i32>} : memref<10x2x16x5xf32, #tpu.memory_space<vmem>>, vector<1x1x16x1xf32>,
    %153 = vector.extract_strided_slice %124 {offsets = [0, 7], sizes = [16, 1], strides = [1, 1]} : vector<16x8xf32> to vector<16x1xf32>
    %c2_250 = arith.constant 2 : index
    %c0_251 = arith.constant 0 : index
    %c0_252 = arith.constant 0 : index
    %c4_253 = arith.constant 4 : index
    %154 = vector.load %arg12[%c2_250, %c0_251, %c0_252, %c4_253] : memref<10x2x16x5xf32, #tpu.memory_space<vmem>>, vector<1x1x16x1xf32>
    %155 = vector.shape_cast %154 : vector<1x1x16x1xf32> to vector<16x1xf32>
    %156 = vector.shape_cast %153 : vector<16x1xf32> to vector<1x1x16x1xf32>
    tpu.vector_store %arg12[%c2_250, %c0_251, %c0_252, %c4_253], %156 {strides = array<i32>} : memref<10x2x16x5xf32, #tpu.memory_space<vmem>>, vector<1x1x16x1xf32>,
    %c2_254 = arith.constant 2 : index
    %c0_255 = arith.constant 0 : index
    %c0_256 = arith.constant 0 : index
    %157 = vector.load %arg11[%c2_254, %c0_255, %c0_256] : memref<8x75x8xf32, #tpu.memory_space<vmem>>, vector<1x75x8xf32>
    %158 = vector.shape_cast %157 : vector<1x75x8xf32> to vector<75x8xf32>
    %cst_257 = arith.constant dense<0.000000e+00> : vector<16x8xf32>
    %159 = tpu.matmul %77, %158, %cst_257 {dimension_numbers = #tpu.dot_dimension_numbers<[1], [0], [0], [1], [0, 0, 1, 1], [], []>} : vector<16x75xf32>, vector<75x8xf32>, vector<16x8xf32> -> vector<16x8xf32>
    %160 = vector.broadcast %78 : vector<16x1xf32> to vector<16x8xf32>
    %161 = arith.addf %159, %160 : vector<16x8xf32>
    %cst_258 = arith.constant 0.000000e+00 : f32
    %162 = vector.broadcast %cst_258 : f32 to vector<16x8xf32>
    %163 = arith.maximumf %161, %162 : vector<16x8xf32>
    %164 = vector.extract_strided_slice %163 {offsets = [0, 0], sizes = [16, 1], strides = [1, 1]} : vector<16x8xf32> to vector<16x1xf32>
    %c3_259 = arith.constant 3 : index
    %c1_260 = arith.constant 1 : index
    %c0_261 = arith.constant 0 : index
    %c0_262 = arith.constant 0 : index
    %165 = vector.load %arg12[%c3_259, %c1_260, %c0_261, %c0_262] : memref<10x2x16x5xf32, #tpu.memory_space<vmem>>, vector<1x1x16x1xf32>
    %166 = vector.shape_cast %165 : vector<1x1x16x1xf32> to vector<16x1xf32>
    %167 = vector.shape_cast %164 : vector<16x1xf32> to vector<1x1x16x1xf32>
    tpu.vector_store %arg12[%c3_259, %c1_260, %c0_261, %c0_262], %167 {strides = array<i32>} : memref<10x2x16x5xf32, #tpu.memory_space<vmem>>, vector<1x1x16x1xf32>,
    %168 = vector.extract_strided_slice %163 {offsets = [0, 1], sizes = [16, 1], strides = [1, 1]} : vector<16x8xf32> to vector<16x1xf32>
    %c3_263 = arith.constant 3 : index
    %c0_264 = arith.constant 0 : index
    %c0_265 = arith.constant 0 : index
    %c1_266 = arith.constant 1 : index
    %169 = vector.load %arg12[%c3_263, %c0_264, %c0_265, %c1_266] : memref<10x2x16x5xf32, #tpu.memory_space<vmem>>, vector<1x1x16x1xf32>
    %170 = vector.shape_cast %169 : vector<1x1x16x1xf32> to vector<16x1xf32>
    %171 = vector.shape_cast %168 : vector<16x1xf32> to vector<1x1x16x1xf32>
    tpu.vector_store %arg12[%c3_263, %c0_264, %c0_265, %c1_266], %171 {strides = array<i32>} : memref<10x2x16x5xf32, #tpu.memory_space<vmem>>, vector<1x1x16x1xf32>,
    %172 = vector.extract_strided_slice %163 {offsets = [0, 2], sizes = [16, 1], strides = [1, 1]} : vector<16x8xf32> to vector<16x1xf32>
    %c3_267 = arith.constant 3 : index
    %c1_268 = arith.constant 1 : index
    %c0_269 = arith.constant 0 : index
    %c1_270 = arith.constant 1 : index
    %173 = vector.load %arg12[%c3_267, %c1_268, %c0_269, %c1_270] : memref<10x2x16x5xf32, #tpu.memory_space<vmem>>, vector<1x1x16x1xf32>
    %174 = vector.shape_cast %173 : vector<1x1x16x1xf32> to vector<16x1xf32>
    %175 = vector.shape_cast %172 : vector<16x1xf32> to vector<1x1x16x1xf32>
    tpu.vector_store %arg12[%c3_267, %c1_268, %c0_269, %c1_270], %175 {strides = array<i32>} : memref<10x2x16x5xf32, #tpu.memory_space<vmem>>, vector<1x1x16x1xf32>,
    %176 = vector.extract_strided_slice %163 {offsets = [0, 3], sizes = [16, 1], strides = [1, 1]} : vector<16x8xf32> to vector<16x1xf32>
    %c3_271 = arith.constant 3 : index
    %c0_272 = arith.constant 0 : index
    %c0_273 = arith.constant 0 : index
    %c2_274 = arith.constant 2 : index
    %177 = vector.load %arg12[%c3_271, %c0_272, %c0_273, %c2_274] : memref<10x2x16x5xf32, #tpu.memory_space<vmem>>, vector<1x1x16x1xf32>
    %178 = vector.shape_cast %177 : vector<1x1x16x1xf32> to vector<16x1xf32>
    %179 = vector.shape_cast %176 : vector<16x1xf32> to vector<1x1x16x1xf32>
    tpu.vector_store %arg12[%c3_271, %c0_272, %c0_273, %c2_274], %179 {strides = array<i32>} : memref<10x2x16x5xf32, #tpu.memory_space<vmem>>, vector<1x1x16x1xf32>,
    %180 = vector.extract_strided_slice %163 {offsets = [0, 4], sizes = [16, 1], strides = [1, 1]} : vector<16x8xf32> to vector<16x1xf32>
    %c3_275 = arith.constant 3 : index
    %c1_276 = arith.constant 1 : index
    %c0_277 = arith.constant 0 : index
    %c2_278 = arith.constant 2 : index
    %181 = vector.load %arg12[%c3_275, %c1_276, %c0_277, %c2_278] : memref<10x2x16x5xf32, #tpu.memory_space<vmem>>, vector<1x1x16x1xf32>
    %182 = vector.shape_cast %181 : vector<1x1x16x1xf32> to vector<16x1xf32>
    %183 = vector.shape_cast %180 : vector<16x1xf32> to vector<1x1x16x1xf32>
    tpu.vector_store %arg12[%c3_275, %c1_276, %c0_277, %c2_278], %183 {strides = array<i32>} : memref<10x2x16x5xf32, #tpu.memory_space<vmem>>, vector<1x1x16x1xf32>,
    %184 = vector.extract_strided_slice %163 {offsets = [0, 5], sizes = [16, 1], strides = [1, 1]} : vector<16x8xf32> to vector<16x1xf32>
    %c3_279 = arith.constant 3 : index
    %c0_280 = arith.constant 0 : index
    %c0_281 = arith.constant 0 : index
    %c3_282 = arith.constant 3 : index
    %185 = vector.load %arg12[%c3_279, %c0_280, %c0_281, %c3_282] : memref<10x2x16x5xf32, #tpu.memory_space<vmem>>, vector<1x1x16x1xf32>
    %186 = vector.shape_cast %185 : vector<1x1x16x1xf32> to vector<16x1xf32>
    %187 = vector.shape_cast %184 : vector<16x1xf32> to vector<1x1x16x1xf32>
    tpu.vector_store %arg12[%c3_279, %c0_280, %c0_281, %c3_282], %187 {strides = array<i32>} : memref<10x2x16x5xf32, #tpu.memory_space<vmem>>, vector<1x1x16x1xf32>,
    %188 = vector.extract_strided_slice %163 {offsets = [0, 6], sizes = [16, 1], strides = [1, 1]} : vector<16x8xf32> to vector<16x1xf32>
    %c3_283 = arith.constant 3 : index
    %c1_284 = arith.constant 1 : index
    %c0_285 = arith.constant 0 : index
    %c3_286 = arith.constant 3 : index
    %189 = vector.load %arg12[%c3_283, %c1_284, %c0_285, %c3_286] : memref<10x2x16x5xf32, #tpu.memory_space<vmem>>, vector<1x1x16x1xf32>
    %190 = vector.shape_cast %189 : vector<1x1x16x1xf32> to vector<16x1xf32>
    %191 = vector.shape_cast %188 : vector<16x1xf32> to vector<1x1x16x1xf32>
    tpu.vector_store %arg12[%c3_283, %c1_284, %c0_285, %c3_286], %191 {strides = array<i32>} : memref<10x2x16x5xf32, #tpu.memory_space<vmem>>, vector<1x1x16x1xf32>,
    %192 = vector.extract_strided_slice %163 {offsets = [0, 7], sizes = [16, 1], strides = [1, 1]} : vector<16x8xf32> to vector<16x1xf32>
    %c3_287 = arith.constant 3 : index
    %c0_288 = arith.constant 0 : index
    %c0_289 = arith.constant 0 : index
    %c4_290 = arith.constant 4 : index
    %193 = vector.load %arg12[%c3_287, %c0_288, %c0_289, %c4_290] : memref<10x2x16x5xf32, #tpu.memory_space<vmem>>, vector<1x1x16x1xf32>
    %194 = vector.shape_cast %193 : vector<1x1x16x1xf32> to vector<16x1xf32>
    %195 = vector.shape_cast %192 : vector<16x1xf32> to vector<1x1x16x1xf32>
    tpu.vector_store %arg12[%c3_287, %c0_288, %c0_289, %c4_290], %195 {strides = array<i32>} : memref<10x2x16x5xf32, #tpu.memory_space<vmem>>, vector<1x1x16x1xf32>,
    %c3_291 = arith.constant 3 : index
    %c0_292 = arith.constant 0 : index
    %c0_293 = arith.constant 0 : index
    %196 = vector.load %arg11[%c3_291, %c0_292, %c0_293] : memref<8x75x8xf32, #tpu.memory_space<vmem>>, vector<1x75x8xf32>
    %197 = vector.shape_cast %196 : vector<1x75x8xf32> to vector<75x8xf32>
    %cst_294 = arith.constant dense<0.000000e+00> : vector<16x8xf32>
    %198 = tpu.matmul %77, %197, %cst_294 {dimension_numbers = #tpu.dot_dimension_numbers<[1], [0], [0], [1], [0, 0, 1, 1], [], []>} : vector<16x75xf32>, vector<75x8xf32>, vector<16x8xf32> -> vector<16x8xf32>
    %199 = vector.broadcast %78 : vector<16x1xf32> to vector<16x8xf32>
    %200 = arith.addf %198, %199 : vector<16x8xf32>
    %cst_295 = arith.constant 0.000000e+00 : f32
    %201 = vector.broadcast %cst_295 : f32 to vector<16x8xf32>
    %202 = arith.maximumf %200, %201 : vector<16x8xf32>
    %203 = vector.extract_strided_slice %202 {offsets = [0, 0], sizes = [16, 1], strides = [1, 1]} : vector<16x8xf32> to vector<16x1xf32>
    %c4_296 = arith.constant 4 : index
    %c1_297 = arith.constant 1 : index
    %c0_298 = arith.constant 0 : index
    %c0_299 = arith.constant 0 : index
    %204 = vector.load %arg12[%c4_296, %c1_297, %c0_298, %c0_299] : memref<10x2x16x5xf32, #tpu.memory_space<vmem>>, vector<1x1x16x1xf32>
    %205 = vector.shape_cast %204 : vector<1x1x16x1xf32> to vector<16x1xf32>
    %206 = vector.shape_cast %203 : vector<16x1xf32> to vector<1x1x16x1xf32>
    tpu.vector_store %arg12[%c4_296, %c1_297, %c0_298, %c0_299], %206 {strides = array<i32>} : memref<10x2x16x5xf32, #tpu.memory_space<vmem>>, vector<1x1x16x1xf32>,
    %207 = vector.extract_strided_slice %202 {offsets = [0, 1], sizes = [16, 1], strides = [1, 1]} : vector<16x8xf32> to vector<16x1xf32>
    %c4_300 = arith.constant 4 : index
    %c0_301 = arith.constant 0 : index
    %c0_302 = arith.constant 0 : index
    %c1_303 = arith.constant 1 : index
    %208 = vector.load %arg12[%c4_300, %c0_301, %c0_302, %c1_303] : memref<10x2x16x5xf32, #tpu.memory_space<vmem>>, vector<1x1x16x1xf32>
    %209 = vector.shape_cast %208 : vector<1x1x16x1xf32> to vector<16x1xf32>
    %210 = vector.shape_cast %207 : vector<16x1xf32> to vector<1x1x16x1xf32>
    tpu.vector_store %arg12[%c4_300, %c0_301, %c0_302, %c1_303], %210 {strides = array<i32>} : memref<10x2x16x5xf32, #tpu.memory_space<vmem>>, vector<1x1x16x1xf32>,
    %211 = vector.extract_strided_slice %202 {offsets = [0, 2], sizes = [16, 1], strides = [1, 1]} : vector<16x8xf32> to vector<16x1xf32>
    %c4_304 = arith.constant 4 : index
    %c1_305 = arith.constant 1 : index
    %c0_306 = arith.constant 0 : index
    %c1_307 = arith.constant 1 : index
    %212 = vector.load %arg12[%c4_304, %c1_305, %c0_306, %c1_307] : memref<10x2x16x5xf32, #tpu.memory_space<vmem>>, vector<1x1x16x1xf32>
    %213 = vector.shape_cast %212 : vector<1x1x16x1xf32> to vector<16x1xf32>
    %214 = vector.shape_cast %211 : vector<16x1xf32> to vector<1x1x16x1xf32>
    tpu.vector_store %arg12[%c4_304, %c1_305, %c0_306, %c1_307], %214 {strides = array<i32>} : memref<10x2x16x5xf32, #tpu.memory_space<vmem>>, vector<1x1x16x1xf32>,
    %215 = vector.extract_strided_slice %202 {offsets = [0, 3], sizes = [16, 1], strides = [1, 1]} : vector<16x8xf32> to vector<16x1xf32>
    %c4_308 = arith.constant 4 : index
    %c0_309 = arith.constant 0 : index
    %c0_310 = arith.constant 0 : index
    %c2_311 = arith.constant 2 : index
    %216 = vector.load %arg12[%c4_308, %c0_309, %c0_310, %c2_311] : memref<10x2x16x5xf32, #tpu.memory_space<vmem>>, vector<1x1x16x1xf32>
    %217 = vector.shape_cast %216 : vector<1x1x16x1xf32> to vector<16x1xf32>
    %218 = vector.shape_cast %215 : vector<16x1xf32> to vector<1x1x16x1xf32>
    tpu.vector_store %arg12[%c4_308, %c0_309, %c0_310, %c2_311], %218 {strides = array<i32>} : memref<10x2x16x5xf32, #tpu.memory_space<vmem>>, vector<1x1x16x1xf32>,
    %219 = vector.extract_strided_slice %202 {offsets = [0, 4], sizes = [16, 1], strides = [1, 1]} : vector<16x8xf32> to vector<16x1xf32>
    %c4_312 = arith.constant 4 : index
    %c1_313 = arith.constant 1 : index
    %c0_314 = arith.constant 0 : index
    %c2_315 = arith.constant 2 : index
    %220 = vector.load %arg12[%c4_312, %c1_313, %c0_314, %c2_315] : memref<10x2x16x5xf32, #tpu.memory_space<vmem>>, vector<1x1x16x1xf32>
    %221 = vector.shape_cast %220 : vector<1x1x16x1xf32> to vector<16x1xf32>
    %222 = vector.shape_cast %219 : vector<16x1xf32> to vector<1x1x16x1xf32>
    tpu.vector_store %arg12[%c4_312, %c1_313, %c0_314, %c2_315], %222 {strides = array<i32>} : memref<10x2x16x5xf32, #tpu.memory_space<vmem>>, vector<1x1x16x1xf32>,
    %223 = vector.extract_strided_slice %202 {offsets = [0, 5], sizes = [16, 1], strides = [1, 1]} : vector<16x8xf32> to vector<16x1xf32>
    %c4_316 = arith.constant 4 : index
    %c0_317 = arith.constant 0 : index
    %c0_318 = arith.constant 0 : index
    %c3_319 = arith.constant 3 : index
    %224 = vector.load %arg12[%c4_316, %c0_317, %c0_318, %c3_319] : memref<10x2x16x5xf32, #tpu.memory_space<vmem>>, vector<1x1x16x1xf32>
    %225 = vector.shape_cast %224 : vector<1x1x16x1xf32> to vector<16x1xf32>
    %226 = vector.shape_cast %223 : vector<16x1xf32> to vector<1x1x16x1xf32>
    tpu.vector_store %arg12[%c4_316, %c0_317, %c0_318, %c3_319], %226 {strides = array<i32>} : memref<10x2x16x5xf32, #tpu.memory_space<vmem>>, vector<1x1x16x1xf32>,
    %227 = vector.extract_strided_slice %202 {offsets = [0, 6], sizes = [16, 1], strides = [1, 1]} : vector<16x8xf32> to vector<16x1xf32>
    %c4_320 = arith.constant 4 : index
    %c1_321 = arith.constant 1 : index
    %c0_322 = arith.constant 0 : index
    %c3_323 = arith.constant 3 : index
    %228 = vector.load %arg12[%c4_320, %c1_321, %c0_322, %c3_323] : memref<10x2x16x5xf32, #tpu.memory_space<vmem>>, vector<1x1x16x1xf32>
    %229 = vector.shape_cast %228 : vector<1x1x16x1xf32> to vector<16x1xf32>
    %230 = vector.shape_cast %227 : vector<16x1xf32> to vector<1x1x16x1xf32>
    tpu.vector_store %arg12[%c4_320, %c1_321, %c0_322, %c3_323], %230 {strides = array<i32>} : memref<10x2x16x5xf32, #tpu.memory_space<vmem>>, vector<1x1x16x1xf32>,
    %231 = vector.extract_strided_slice %202 {offsets = [0, 7], sizes = [16, 1], strides = [1, 1]} : vector<16x8xf32> to vector<16x1xf32>
    %c4_324 = arith.constant 4 : index
    %c0_325 = arith.constant 0 : index
    %c0_326 = arith.constant 0 : index
    %c4_327 = arith.constant 4 : index
    %232 = vector.load %arg12[%c4_324, %c0_325, %c0_326, %c4_327] : memref<10x2x16x5xf32, #tpu.memory_space<vmem>>, vector<1x1x16x1xf32>
    %233 = vector.shape_cast %232 : vector<1x1x16x1xf32> to vector<16x1xf32>
    %234 = vector.shape_cast %231 : vector<16x1xf32> to vector<1x1x16x1xf32>
    tpu.vector_store %arg12[%c4_324, %c0_325, %c0_326, %c4_327], %234 {strides = array<i32>} : memref<10x2x16x5xf32, #tpu.memory_space<vmem>>, vector<1x1x16x1xf32>,
    %c4_328 = arith.constant 4 : index
    %c0_329 = arith.constant 0 : index
    %c0_330 = arith.constant 0 : index
    %235 = vector.load %arg11[%c4_328, %c0_329, %c0_330] : memref<8x75x8xf32, #tpu.memory_space<vmem>>, vector<1x75x8xf32>
    %236 = vector.shape_cast %235 : vector<1x75x8xf32> to vector<75x8xf32>
    %cst_331 = arith.constant dense<0.000000e+00> : vector<16x8xf32>
    %237 = tpu.matmul %77, %236, %cst_331 {dimension_numbers = #tpu.dot_dimension_numbers<[1], [0], [0], [1], [0, 0, 1, 1], [], []>} : vector<16x75xf32>, vector<75x8xf32>, vector<16x8xf32> -> vector<16x8xf32>
    %238 = vector.broadcast %78 : vector<16x1xf32> to vector<16x8xf32>
    %239 = arith.addf %237, %238 : vector<16x8xf32>
    %cst_332 = arith.constant 0.000000e+00 : f32
    %240 = vector.broadcast %cst_332 : f32 to vector<16x8xf32>
    %241 = arith.maximumf %239, %240 : vector<16x8xf32>
    %242 = vector.extract_strided_slice %241 {offsets = [0, 0], sizes = [16, 1], strides = [1, 1]} : vector<16x8xf32> to vector<16x1xf32>
    %c5 = arith.constant 5 : index
    %c1_333 = arith.constant 1 : index
    %c0_334 = arith.constant 0 : index
    %c0_335 = arith.constant 0 : index
    %243 = vector.load %arg12[%c5, %c1_333, %c0_334, %c0_335] : memref<10x2x16x5xf32, #tpu.memory_space<vmem>>, vector<1x1x16x1xf32>
    %244 = vector.shape_cast %243 : vector<1x1x16x1xf32> to vector<16x1xf32>
    %245 = vector.shape_cast %242 : vector<16x1xf32> to vector<1x1x16x1xf32>
    tpu.vector_store %arg12[%c5, %c1_333, %c0_334, %c0_335], %245 {strides = array<i32>} : memref<10x2x16x5xf32, #tpu.memory_space<vmem>>, vector<1x1x16x1xf32>,
    %246 = vector.extract_strided_slice %241 {offsets = [0, 1], sizes = [16, 1], strides = [1, 1]} : vector<16x8xf32> to vector<16x1xf32>
    %c5_336 = arith.constant 5 : index
    %c0_337 = arith.constant 0 : index
    %c0_338 = arith.constant 0 : index
    %c1_339 = arith.constant 1 : index
    %247 = vector.load %arg12[%c5_336, %c0_337, %c0_338, %c1_339] : memref<10x2x16x5xf32, #tpu.memory_space<vmem>>, vector<1x1x16x1xf32>
    %248 = vector.shape_cast %247 : vector<1x1x16x1xf32> to vector<16x1xf32>
    %249 = vector.shape_cast %246 : vector<16x1xf32> to vector<1x1x16x1xf32>
    tpu.vector_store %arg12[%c5_336, %c0_337, %c0_338, %c1_339], %249 {strides = array<i32>} : memref<10x2x16x5xf32, #tpu.memory_space<vmem>>, vector<1x1x16x1xf32>,
    %250 = vector.extract_strided_slice %241 {offsets = [0, 2], sizes = [16, 1], strides = [1, 1]} : vector<16x8xf32> to vector<16x1xf32>
    %c5_340 = arith.constant 5 : index
    %c1_341 = arith.constant 1 : index
    %c0_342 = arith.constant 0 : index
    %c1_343 = arith.constant 1 : index
    %251 = vector.load %arg12[%c5_340, %c1_341, %c0_342, %c1_343] : memref<10x2x16x5xf32, #tpu.memory_space<vmem>>, vector<1x1x16x1xf32>
    %252 = vector.shape_cast %251 : vector<1x1x16x1xf32> to vector<16x1xf32>
    %253 = vector.shape_cast %250 : vector<16x1xf32> to vector<1x1x16x1xf32>
    tpu.vector_store %arg12[%c5_340, %c1_341, %c0_342, %c1_343], %253 {strides = array<i32>} : memref<10x2x16x5xf32, #tpu.memory_space<vmem>>, vector<1x1x16x1xf32>,
    %254 = vector.extract_strided_slice %241 {offsets = [0, 3], sizes = [16, 1], strides = [1, 1]} : vector<16x8xf32> to vector<16x1xf32>
    %c5_344 = arith.constant 5 : index
    %c0_345 = arith.constant 0 : index
    %c0_346 = arith.constant 0 : index
    %c2_347 = arith.constant 2 : index
    %255 = vector.load %arg12[%c5_344, %c0_345, %c0_346, %c2_347] : memref<10x2x16x5xf32, #tpu.memory_space<vmem>>, vector<1x1x16x1xf32>
    %256 = vector.shape_cast %255 : vector<1x1x16x1xf32> to vector<16x1xf32>
    %257 = vector.shape_cast %254 : vector<16x1xf32> to vector<1x1x16x1xf32>
    tpu.vector_store %arg12[%c5_344, %c0_345, %c0_346, %c2_347], %257 {strides = array<i32>} : memref<10x2x16x5xf32, #tpu.memory_space<vmem>>, vector<1x1x16x1xf32>,
    %258 = vector.extract_strided_slice %241 {offsets = [0, 4], sizes = [16, 1], strides = [1, 1]} : vector<16x8xf32> to vector<16x1xf32>
    %c5_348 = arith.constant 5 : index
    %c1_349 = arith.constant 1 : index
    %c0_350 = arith.constant 0 : index
    %c2_351 = arith.constant 2 : index
    %259 = vector.load %arg12[%c5_348, %c1_349, %c0_350, %c2_351] : memref<10x2x16x5xf32, #tpu.memory_space<vmem>>, vector<1x1x16x1xf32>
    %260 = vector.shape_cast %259 : vector<1x1x16x1xf32> to vector<16x1xf32>
    %261 = vector.shape_cast %258 : vector<16x1xf32> to vector<1x1x16x1xf32>
    tpu.vector_store %arg12[%c5_348, %c1_349, %c0_350, %c2_351], %261 {strides = array<i32>} : memref<10x2x16x5xf32, #tpu.memory_space<vmem>>, vector<1x1x16x1xf32>,
    %262 = vector.extract_strided_slice %241 {offsets = [0, 5], sizes = [16, 1], strides = [1, 1]} : vector<16x8xf32> to vector<16x1xf32>
    %c5_352 = arith.constant 5 : index
    %c0_353 = arith.constant 0 : index
    %c0_354 = arith.constant 0 : index
    %c3_355 = arith.constant 3 : index
    %263 = vector.load %arg12[%c5_352, %c0_353, %c0_354, %c3_355] : memref<10x2x16x5xf32, #tpu.memory_space<vmem>>, vector<1x1x16x1xf32>
    %264 = vector.shape_cast %263 : vector<1x1x16x1xf32> to vector<16x1xf32>
    %265 = vector.shape_cast %262 : vector<16x1xf32> to vector<1x1x16x1xf32>
    tpu.vector_store %arg12[%c5_352, %c0_353, %c0_354, %c3_355], %265 {strides = array<i32>} : memref<10x2x16x5xf32, #tpu.memory_space<vmem>>, vector<1x1x16x1xf32>,
    %266 = vector.extract_strided_slice %241 {offsets = [0, 6], sizes = [16, 1], strides = [1, 1]} : vector<16x8xf32> to vector<16x1xf32>
    %c5_356 = arith.constant 5 : index
    %c1_357 = arith.constant 1 : index
    %c0_358 = arith.constant 0 : index
    %c3_359 = arith.constant 3 : index
    %267 = vector.load %arg12[%c5_356, %c1_357, %c0_358, %c3_359] : memref<10x2x16x5xf32, #tpu.memory_space<vmem>>, vector<1x1x16x1xf32>
    %268 = vector.shape_cast %267 : vector<1x1x16x1xf32> to vector<16x1xf32>
    %269 = vector.shape_cast %266 : vector<16x1xf32> to vector<1x1x16x1xf32>
    tpu.vector_store %arg12[%c5_356, %c1_357, %c0_358, %c3_359], %269 {strides = array<i32>} : memref<10x2x16x5xf32, #tpu.memory_space<vmem>>, vector<1x1x16x1xf32>,
    %270 = vector.extract_strided_slice %241 {offsets = [0, 7], sizes = [16, 1], strides = [1, 1]} : vector<16x8xf32> to vector<16x1xf32>
    %c5_360 = arith.constant 5 : index
    %c0_361 = arith.constant 0 : index
    %c0_362 = arith.constant 0 : index
    %c4_363 = arith.constant 4 : index
    %271 = vector.load %arg12[%c5_360, %c0_361, %c0_362, %c4_363] : memref<10x2x16x5xf32, #tpu.memory_space<vmem>>, vector<1x1x16x1xf32>
    %272 = vector.shape_cast %271 : vector<1x1x16x1xf32> to vector<16x1xf32>
    %273 = vector.shape_cast %270 : vector<16x1xf32> to vector<1x1x16x1xf32>
    tpu.vector_store %arg12[%c5_360, %c0_361, %c0_362, %c4_363], %273 {strides = array<i32>} : memref<10x2x16x5xf32, #tpu.memory_space<vmem>>, vector<1x1x16x1xf32>,
    %c5_364 = arith.constant 5 : index
    %c0_365 = arith.constant 0 : index
    %c0_366 = arith.constant 0 : index
    %274 = vector.load %arg11[%c5_364, %c0_365, %c0_366] : memref<8x75x8xf32, #tpu.memory_space<vmem>>, vector<1x75x8xf32>
    %275 = vector.shape_cast %274 : vector<1x75x8xf32> to vector<75x8xf32>
    %cst_367 = arith.constant dense<0.000000e+00> : vector<16x8xf32>
    %276 = tpu.matmul %77, %275, %cst_367 {dimension_numbers = #tpu.dot_dimension_numbers<[1], [0], [0], [1], [0, 0, 1, 1], [], []>} : vector<16x75xf32>, vector<75x8xf32>, vector<16x8xf32> -> vector<16x8xf32>
    %277 = vector.broadcast %78 : vector<16x1xf32> to vector<16x8xf32>
    %278 = arith.addf %276, %277 : vector<16x8xf32>
    %cst_368 = arith.constant 0.000000e+00 : f32
    %279 = vector.broadcast %cst_368 : f32 to vector<16x8xf32>
    %280 = arith.maximumf %278, %279 : vector<16x8xf32>
    %281 = vector.extract_strided_slice %280 {offsets = [0, 0], sizes = [16, 1], strides = [1, 1]} : vector<16x8xf32> to vector<16x1xf32>
    %c6_369 = arith.constant 6 : index
    %c1_370 = arith.constant 1 : index
    %c0_371 = arith.constant 0 : index
    %c0_372 = arith.constant 0 : index
    %282 = vector.load %arg12[%c6_369, %c1_370, %c0_371, %c0_372] : memref<10x2x16x5xf32, #tpu.memory_space<vmem>>, vector<1x1x16x1xf32>
    %283 = vector.shape_cast %282 : vector<1x1x16x1xf32> to vector<16x1xf32>
    %284 = vector.shape_cast %281 : vector<16x1xf32> to vector<1x1x16x1xf32>
    tpu.vector_store %arg12[%c6_369, %c1_370, %c0_371, %c0_372], %284 {strides = array<i32>} : memref<10x2x16x5xf32, #tpu.memory_space<vmem>>, vector<1x1x16x1xf32>,
    %285 = vector.extract_strided_slice %280 {offsets = [0, 1], sizes = [16, 1], strides = [1, 1]} : vector<16x8xf32> to vector<16x1xf32>
    %c6_373 = arith.constant 6 : index
    %c0_374 = arith.constant 0 : index
    %c0_375 = arith.constant 0 : index
    %c1_376 = arith.constant 1 : index
    %286 = vector.load %arg12[%c6_373, %c0_374, %c0_375, %c1_376] : memref<10x2x16x5xf32, #tpu.memory_space<vmem>>, vector<1x1x16x1xf32>
    %287 = vector.shape_cast %286 : vector<1x1x16x1xf32> to vector<16x1xf32>
    %288 = vector.shape_cast %285 : vector<16x1xf32> to vector<1x1x16x1xf32>
    tpu.vector_store %arg12[%c6_373, %c0_374, %c0_375, %c1_376], %288 {strides = array<i32>} : memref<10x2x16x5xf32, #tpu.memory_space<vmem>>, vector<1x1x16x1xf32>,
    %289 = vector.extract_strided_slice %280 {offsets = [0, 2], sizes = [16, 1], strides = [1, 1]} : vector<16x8xf32> to vector<16x1xf32>
    %c6_377 = arith.constant 6 : index
    %c1_378 = arith.constant 1 : index
    %c0_379 = arith.constant 0 : index
    %c1_380 = arith.constant 1 : index
    %290 = vector.load %arg12[%c6_377, %c1_378, %c0_379, %c1_380] : memref<10x2x16x5xf32, #tpu.memory_space<vmem>>, vector<1x1x16x1xf32>
    %291 = vector.shape_cast %290 : vector<1x1x16x1xf32> to vector<16x1xf32>
    %292 = vector.shape_cast %289 : vector<16x1xf32> to vector<1x1x16x1xf32>
    tpu.vector_store %arg12[%c6_377, %c1_378, %c0_379, %c1_380], %292 {strides = array<i32>} : memref<10x2x16x5xf32, #tpu.memory_space<vmem>>, vector<1x1x16x1xf32>,
    %293 = vector.extract_strided_slice %280 {offsets = [0, 3], sizes = [16, 1], strides = [1, 1]} : vector<16x8xf32> to vector<16x1xf32>
    %c6_381 = arith.constant 6 : index
    %c0_382 = arith.constant 0 : index
    %c0_383 = arith.constant 0 : index
    %c2_384 = arith.constant 2 : index
    %294 = vector.load %arg12[%c6_381, %c0_382, %c0_383, %c2_384] : memref<10x2x16x5xf32, #tpu.memory_space<vmem>>, vector<1x1x16x1xf32>
    %295 = vector.shape_cast %294 : vector<1x1x16x1xf32> to vector<16x1xf32>
    %296 = vector.shape_cast %293 : vector<16x1xf32> to vector<1x1x16x1xf32>
    tpu.vector_store %arg12[%c6_381, %c0_382, %c0_383, %c2_384], %296 {strides = array<i32>} : memref<10x2x16x5xf32, #tpu.memory_space<vmem>>, vector<1x1x16x1xf32>,
    %297 = vector.extract_strided_slice %280 {offsets = [0, 4], sizes = [16, 1], strides = [1, 1]} : vector<16x8xf32> to vector<16x1xf32>
    %c6_385 = arith.constant 6 : index
    %c1_386 = arith.constant 1 : index
    %c0_387 = arith.constant 0 : index
    %c2_388 = arith.constant 2 : index
    %298 = vector.load %arg12[%c6_385, %c1_386, %c0_387, %c2_388] : memref<10x2x16x5xf32, #tpu.memory_space<vmem>>, vector<1x1x16x1xf32>
    %299 = vector.shape_cast %298 : vector<1x1x16x1xf32> to vector<16x1xf32>
    %300 = vector.shape_cast %297 : vector<16x1xf32> to vector<1x1x16x1xf32>
    tpu.vector_store %arg12[%c6_385, %c1_386, %c0_387, %c2_388], %300 {strides = array<i32>} : memref<10x2x16x5xf32, #tpu.memory_space<vmem>>, vector<1x1x16x1xf32>,
    %301 = vector.extract_strided_slice %280 {offsets = [0, 5], sizes = [16, 1], strides = [1, 1]} : vector<16x8xf32> to vector<16x1xf32>
    %c6_389 = arith.constant 6 : index
    %c0_390 = arith.constant 0 : index
    %c0_391 = arith.constant 0 : index
    %c3_392 = arith.constant 3 : index
    %302 = vector.load %arg12[%c6_389, %c0_390, %c0_391, %c3_392] : memref<10x2x16x5xf32, #tpu.memory_space<vmem>>, vector<1x1x16x1xf32>
    %303 = vector.shape_cast %302 : vector<1x1x16x1xf32> to vector<16x1xf32>
    %304 = vector.shape_cast %301 : vector<16x1xf32> to vector<1x1x16x1xf32>
    tpu.vector_store %arg12[%c6_389, %c0_390, %c0_391, %c3_392], %304 {strides = array<i32>} : memref<10x2x16x5xf32, #tpu.memory_space<vmem>>, vector<1x1x16x1xf32>,
    %305 = vector.extract_strided_slice %280 {offsets = [0, 6], sizes = [16, 1], strides = [1, 1]} : vector<16x8xf32> to vector<16x1xf32>
    %c6_393 = arith.constant 6 : index
    %c1_394 = arith.constant 1 : index
    %c0_395 = arith.constant 0 : index
    %c3_396 = arith.constant 3 : index
    %306 = vector.load %arg12[%c6_393, %c1_394, %c0_395, %c3_396] : memref<10x2x16x5xf32, #tpu.memory_space<vmem>>, vector<1x1x16x1xf32>
    %307 = vector.shape_cast %306 : vector<1x1x16x1xf32> to vector<16x1xf32>
    %308 = vector.shape_cast %305 : vector<16x1xf32> to vector<1x1x16x1xf32>
    tpu.vector_store %arg12[%c6_393, %c1_394, %c0_395, %c3_396], %308 {strides = array<i32>} : memref<10x2x16x5xf32, #tpu.memory_space<vmem>>, vector<1x1x16x1xf32>,
    %309 = vector.extract_strided_slice %280 {offsets = [0, 7], sizes = [16, 1], strides = [1, 1]} : vector<16x8xf32> to vector<16x1xf32>
    %c6_397 = arith.constant 6 : index
    %c0_398 = arith.constant 0 : index
    %c0_399 = arith.constant 0 : index
    %c4_400 = arith.constant 4 : index
    %310 = vector.load %arg12[%c6_397, %c0_398, %c0_399, %c4_400] : memref<10x2x16x5xf32, #tpu.memory_space<vmem>>, vector<1x1x16x1xf32>
    %311 = vector.shape_cast %310 : vector<1x1x16x1xf32> to vector<16x1xf32>
    %312 = vector.shape_cast %309 : vector<16x1xf32> to vector<1x1x16x1xf32>
    tpu.vector_store %arg12[%c6_397, %c0_398, %c0_399, %c4_400], %312 {strides = array<i32>} : memref<10x2x16x5xf32, #tpu.memory_space<vmem>>, vector<1x1x16x1xf32>,
    %c6_401 = arith.constant 6 : index
    %c0_402 = arith.constant 0 : index
    %c0_403 = arith.constant 0 : index
    %313 = vector.load %arg11[%c6_401, %c0_402, %c0_403] : memref<8x75x8xf32, #tpu.memory_space<vmem>>, vector<1x75x8xf32>
    %314 = vector.shape_cast %313 : vector<1x75x8xf32> to vector<75x8xf32>
    %cst_404 = arith.constant dense<0.000000e+00> : vector<16x8xf32>
    %315 = tpu.matmul %77, %314, %cst_404 {dimension_numbers = #tpu.dot_dimension_numbers<[1], [0], [0], [1], [0, 0, 1, 1], [], []>} : vector<16x75xf32>, vector<75x8xf32>, vector<16x8xf32> -> vector<16x8xf32>
    %316 = vector.broadcast %78 : vector<16x1xf32> to vector<16x8xf32>
    %317 = arith.addf %315, %316 : vector<16x8xf32>
    %cst_405 = arith.constant 0.000000e+00 : f32
    %318 = vector.broadcast %cst_405 : f32 to vector<16x8xf32>
    %319 = arith.maximumf %317, %318 : vector<16x8xf32>
    %320 = vector.extract_strided_slice %319 {offsets = [0, 0], sizes = [16, 1], strides = [1, 1]} : vector<16x8xf32> to vector<16x1xf32>
    %c7 = arith.constant 7 : index
    %c1_406 = arith.constant 1 : index
    %c0_407 = arith.constant 0 : index
    %c0_408 = arith.constant 0 : index
    %321 = vector.load %arg12[%c7, %c1_406, %c0_407, %c0_408] : memref<10x2x16x5xf32, #tpu.memory_space<vmem>>, vector<1x1x16x1xf32>
    %322 = vector.shape_cast %321 : vector<1x1x16x1xf32> to vector<16x1xf32>
    %323 = vector.shape_cast %320 : vector<16x1xf32> to vector<1x1x16x1xf32>
    tpu.vector_store %arg12[%c7, %c1_406, %c0_407, %c0_408], %323 {strides = array<i32>} : memref<10x2x16x5xf32, #tpu.memory_space<vmem>>, vector<1x1x16x1xf32>,
    %324 = vector.extract_strided_slice %319 {offsets = [0, 1], sizes = [16, 1], strides = [1, 1]} : vector<16x8xf32> to vector<16x1xf32>
    %c7_409 = arith.constant 7 : index
    %c0_410 = arith.constant 0 : index
    %c0_411 = arith.constant 0 : index
    %c1_412 = arith.constant 1 : index
    %325 = vector.load %arg12[%c7_409, %c0_410, %c0_411, %c1_412] : memref<10x2x16x5xf32, #tpu.memory_space<vmem>>, vector<1x1x16x1xf32>
    %326 = vector.shape_cast %325 : vector<1x1x16x1xf32> to vector<16x1xf32>
    %327 = vector.shape_cast %324 : vector<16x1xf32> to vector<1x1x16x1xf32>
    tpu.vector_store %arg12[%c7_409, %c0_410, %c0_411, %c1_412], %327 {strides = array<i32>} : memref<10x2x16x5xf32, #tpu.memory_space<vmem>>, vector<1x1x16x1xf32>,
    %328 = vector.extract_strided_slice %319 {offsets = [0, 2], sizes = [16, 1], strides = [1, 1]} : vector<16x8xf32> to vector<16x1xf32>
    %c7_413 = arith.constant 7 : index
    %c1_414 = arith.constant 1 : index
    %c0_415 = arith.constant 0 : index
    %c1_416 = arith.constant 1 : index
    %329 = vector.load %arg12[%c7_413, %c1_414, %c0_415, %c1_416] : memref<10x2x16x5xf32, #tpu.memory_space<vmem>>, vector<1x1x16x1xf32>
    %330 = vector.shape_cast %329 : vector<1x1x16x1xf32> to vector<16x1xf32>
    %331 = vector.shape_cast %328 : vector<16x1xf32> to vector<1x1x16x1xf32>
    tpu.vector_store %arg12[%c7_413, %c1_414, %c0_415, %c1_416], %331 {strides = array<i32>} : memref<10x2x16x5xf32, #tpu.memory_space<vmem>>, vector<1x1x16x1xf32>,
    %332 = vector.extract_strided_slice %319 {offsets = [0, 3], sizes = [16, 1], strides = [1, 1]} : vector<16x8xf32> to vector<16x1xf32>
    %c7_417 = arith.constant 7 : index
    %c0_418 = arith.constant 0 : index
    %c0_419 = arith.constant 0 : index
    %c2_420 = arith.constant 2 : index
    %333 = vector.load %arg12[%c7_417, %c0_418, %c0_419, %c2_420] : memref<10x2x16x5xf32, #tpu.memory_space<vmem>>, vector<1x1x16x1xf32>
    %334 = vector.shape_cast %333 : vector<1x1x16x1xf32> to vector<16x1xf32>
    %335 = vector.shape_cast %332 : vector<16x1xf32> to vector<1x1x16x1xf32>
    tpu.vector_store %arg12[%c7_417, %c0_418, %c0_419, %c2_420], %335 {strides = array<i32>} : memref<10x2x16x5xf32, #tpu.memory_space<vmem>>, vector<1x1x16x1xf32>,
    %336 = vector.extract_strided_slice %319 {offsets = [0, 4], sizes = [16, 1], strides = [1, 1]} : vector<16x8xf32> to vector<16x1xf32>
    %c7_421 = arith.constant 7 : index
    %c1_422 = arith.constant 1 : index
    %c0_423 = arith.constant 0 : index
    %c2_424 = arith.constant 2 : index
    %337 = vector.load %arg12[%c7_421, %c1_422, %c0_423, %c2_424] : memref<10x2x16x5xf32, #tpu.memory_space<vmem>>, vector<1x1x16x1xf32>
    %338 = vector.shape_cast %337 : vector<1x1x16x1xf32> to vector<16x1xf32>
    %339 = vector.shape_cast %336 : vector<16x1xf32> to vector<1x1x16x1xf32>
    tpu.vector_store %arg12[%c7_421, %c1_422, %c0_423, %c2_424], %339 {strides = array<i32>} : memref<10x2x16x5xf32, #tpu.memory_space<vmem>>, vector<1x1x16x1xf32>,
    %340 = vector.extract_strided_slice %319 {offsets = [0, 5], sizes = [16, 1], strides = [1, 1]} : vector<16x8xf32> to vector<16x1xf32>
    %c7_425 = arith.constant 7 : index
    %c0_426 = arith.constant 0 : index
    %c0_427 = arith.constant 0 : index
    %c3_428 = arith.constant 3 : index
    %341 = vector.load %arg12[%c7_425, %c0_426, %c0_427, %c3_428] : memref<10x2x16x5xf32, #tpu.memory_space<vmem>>, vector<1x1x16x1xf32>
    %342 = vector.shape_cast %341 : vector<1x1x16x1xf32> to vector<16x1xf32>
    %343 = vector.shape_cast %340 : vector<16x1xf32> to vector<1x1x16x1xf32>
    tpu.vector_store %arg12[%c7_425, %c0_426, %c0_427, %c3_428], %343 {strides = array<i32>} : memref<10x2x16x5xf32, #tpu.memory_space<vmem>>, vector<1x1x16x1xf32>,
    %344 = vector.extract_strided_slice %319 {offsets = [0, 6], sizes = [16, 1], strides = [1, 1]} : vector<16x8xf32> to vector<16x1xf32>
    %c7_429 = arith.constant 7 : index
    %c1_430 = arith.constant 1 : index
    %c0_431 = arith.constant 0 : index
    %c3_432 = arith.constant 3 : index
    %345 = vector.load %arg12[%c7_429, %c1_430, %c0_431, %c3_432] : memref<10x2x16x5xf32, #tpu.memory_space<vmem>>, vector<1x1x16x1xf32>
    %346 = vector.shape_cast %345 : vector<1x1x16x1xf32> to vector<16x1xf32>
    %347 = vector.shape_cast %344 : vector<16x1xf32> to vector<1x1x16x1xf32>
    tpu.vector_store %arg12[%c7_429, %c1_430, %c0_431, %c3_432], %347 {strides = array<i32>} : memref<10x2x16x5xf32, #tpu.memory_space<vmem>>, vector<1x1x16x1xf32>,
    %348 = vector.extract_strided_slice %319 {offsets = [0, 7], sizes = [16, 1], strides = [1, 1]} : vector<16x8xf32> to vector<16x1xf32>
    %c7_433 = arith.constant 7 : index
    %c0_434 = arith.constant 0 : index
    %c0_435 = arith.constant 0 : index
    %c4_436 = arith.constant 4 : index
    %349 = vector.load %arg12[%c7_433, %c0_434, %c0_435, %c4_436] : memref<10x2x16x5xf32, #tpu.memory_space<vmem>>, vector<1x1x16x1xf32>
    %350 = vector.shape_cast %349 : vector<1x1x16x1xf32> to vector<16x1xf32>
    %351 = vector.shape_cast %348 : vector<16x1xf32> to vector<1x1x16x1xf32>
    tpu.vector_store %arg12[%c7_433, %c0_434, %c0_435, %c4_436], %351 {strides = array<i32>} : memref<10x2x16x5xf32, #tpu.memory_space<vmem>>, vector<1x1x16x1xf32>,
    %c7_437 = arith.constant 7 : index
    %c0_438 = arith.constant 0 : index
    %c0_439 = arith.constant 0 : index
    %352 = vector.load %arg11[%c7_437, %c0_438, %c0_439] : memref<8x75x8xf32, #tpu.memory_space<vmem>>, vector<1x75x8xf32>
    %353 = vector.shape_cast %352 : vector<1x75x8xf32> to vector<75x8xf32>
    %cst_440 = arith.constant dense<0.000000e+00> : vector<16x8xf32>
    %354 = tpu.matmul %77, %353, %cst_440 {dimension_numbers = #tpu.dot_dimension_numbers<[1], [0], [0], [1], [0, 0, 1, 1], [], []>} : vector<16x75xf32>, vector<75x8xf32>, vector<16x8xf32> -> vector<16x8xf32>
    %355 = vector.broadcast %78 : vector<16x1xf32> to vector<16x8xf32>
    %356 = arith.addf %354, %355 : vector<16x8xf32>
    %cst_441 = arith.constant 0.000000e+00 : f32
    %357 = vector.broadcast %cst_441 : f32 to vector<16x8xf32>
    %358 = arith.maximumf %356, %357 : vector<16x8xf32>
    %359 = vector.extract_strided_slice %358 {offsets = [0, 0], sizes = [16, 1], strides = [1, 1]} : vector<16x8xf32> to vector<16x1xf32>
    %c8 = arith.constant 8 : index
    %c1_442 = arith.constant 1 : index
    %c0_443 = arith.constant 0 : index
    %c0_444 = arith.constant 0 : index
    %360 = vector.load %arg12[%c8, %c1_442, %c0_443, %c0_444] : memref<10x2x16x5xf32, #tpu.memory_space<vmem>>, vector<1x1x16x1xf32>
    %361 = vector.shape_cast %360 : vector<1x1x16x1xf32> to vector<16x1xf32>
    %362 = vector.shape_cast %359 : vector<16x1xf32> to vector<1x1x16x1xf32>
    tpu.vector_store %arg12[%c8, %c1_442, %c0_443, %c0_444], %362 {strides = array<i32>} : memref<10x2x16x5xf32, #tpu.memory_space<vmem>>, vector<1x1x16x1xf32>,
    %363 = vector.extract_strided_slice %358 {offsets = [0, 1], sizes = [16, 1], strides = [1, 1]} : vector<16x8xf32> to vector<16x1xf32>
    %c8_445 = arith.constant 8 : index
    %c0_446 = arith.constant 0 : index
    %c0_447 = arith.constant 0 : index
    %c1_448 = arith.constant 1 : index
    %364 = vector.load %arg12[%c8_445, %c0_446, %c0_447, %c1_448] : memref<10x2x16x5xf32, #tpu.memory_space<vmem>>, vector<1x1x16x1xf32>
    %365 = vector.shape_cast %364 : vector<1x1x16x1xf32> to vector<16x1xf32>
    %366 = vector.shape_cast %363 : vector<16x1xf32> to vector<1x1x16x1xf32>
    tpu.vector_store %arg12[%c8_445, %c0_446, %c0_447, %c1_448], %366 {strides = array<i32>} : memref<10x2x16x5xf32, #tpu.memory_space<vmem>>, vector<1x1x16x1xf32>,
    %367 = vector.extract_strided_slice %358 {offsets = [0, 2], sizes = [16, 1], strides = [1, 1]} : vector<16x8xf32> to vector<16x1xf32>
    %c8_449 = arith.constant 8 : index
    %c1_450 = arith.constant 1 : index
    %c0_451 = arith.constant 0 : index
    %c1_452 = arith.constant 1 : index
    %368 = vector.load %arg12[%c8_449, %c1_450, %c0_451, %c1_452] : memref<10x2x16x5xf32, #tpu.memory_space<vmem>>, vector<1x1x16x1xf32>
    %369 = vector.shape_cast %368 : vector<1x1x16x1xf32> to vector<16x1xf32>
    %370 = vector.shape_cast %367 : vector<16x1xf32> to vector<1x1x16x1xf32>
    tpu.vector_store %arg12[%c8_449, %c1_450, %c0_451, %c1_452], %370 {strides = array<i32>} : memref<10x2x16x5xf32, #tpu.memory_space<vmem>>, vector<1x1x16x1xf32>,
    %371 = vector.extract_strided_slice %358 {offsets = [0, 3], sizes = [16, 1], strides = [1, 1]} : vector<16x8xf32> to vector<16x1xf32>
    %c8_453 = arith.constant 8 : index
    %c0_454 = arith.constant 0 : index
    %c0_455 = arith.constant 0 : index
    %c2_456 = arith.constant 2 : index
    %372 = vector.load %arg12[%c8_453, %c0_454, %c0_455, %c2_456] : memref<10x2x16x5xf32, #tpu.memory_space<vmem>>, vector<1x1x16x1xf32>
    %373 = vector.shape_cast %372 : vector<1x1x16x1xf32> to vector<16x1xf32>
    %374 = vector.shape_cast %371 : vector<16x1xf32> to vector<1x1x16x1xf32>
    tpu.vector_store %arg12[%c8_453, %c0_454, %c0_455, %c2_456], %374 {strides = array<i32>} : memref<10x2x16x5xf32, #tpu.memory_space<vmem>>, vector<1x1x16x1xf32>,
    %375 = vector.extract_strided_slice %358 {offsets = [0, 4], sizes = [16, 1], strides = [1, 1]} : vector<16x8xf32> to vector<16x1xf32>
    %c8_457 = arith.constant 8 : index
    %c1_458 = arith.constant 1 : index
    %c0_459 = arith.constant 0 : index
    %c2_460 = arith.constant 2 : index
    %376 = vector.load %arg12[%c8_457, %c1_458, %c0_459, %c2_460] : memref<10x2x16x5xf32, #tpu.memory_space<vmem>>, vector<1x1x16x1xf32>
    %377 = vector.shape_cast %376 : vector<1x1x16x1xf32> to vector<16x1xf32>
    %378 = vector.shape_cast %375 : vector<16x1xf32> to vector<1x1x16x1xf32>
    tpu.vector_store %arg12[%c8_457, %c1_458, %c0_459, %c2_460], %378 {strides = array<i32>} : memref<10x2x16x5xf32, #tpu.memory_space<vmem>>, vector<1x1x16x1xf32>,
    %379 = vector.extract_strided_slice %358 {offsets = [0, 5], sizes = [16, 1], strides = [1, 1]} : vector<16x8xf32> to vector<16x1xf32>
    %c8_461 = arith.constant 8 : index
    %c0_462 = arith.constant 0 : index
    %c0_463 = arith.constant 0 : index
    %c3_464 = arith.constant 3 : index
    %380 = vector.load %arg12[%c8_461, %c0_462, %c0_463, %c3_464] : memref<10x2x16x5xf32, #tpu.memory_space<vmem>>, vector<1x1x16x1xf32>
    %381 = vector.shape_cast %380 : vector<1x1x16x1xf32> to vector<16x1xf32>
    %382 = vector.shape_cast %379 : vector<16x1xf32> to vector<1x1x16x1xf32>
    tpu.vector_store %arg12[%c8_461, %c0_462, %c0_463, %c3_464], %382 {strides = array<i32>} : memref<10x2x16x5xf32, #tpu.memory_space<vmem>>, vector<1x1x16x1xf32>,
    %383 = vector.extract_strided_slice %358 {offsets = [0, 6], sizes = [16, 1], strides = [1, 1]} : vector<16x8xf32> to vector<16x1xf32>
    %c8_465 = arith.constant 8 : index
    %c1_466 = arith.constant 1 : index
    %c0_467 = arith.constant 0 : index
    %c3_468 = arith.constant 3 : index
    %384 = vector.load %arg12[%c8_465, %c1_466, %c0_467, %c3_468] : memref<10x2x16x5xf32, #tpu.memory_space<vmem>>, vector<1x1x16x1xf32>
    %385 = vector.shape_cast %384 : vector<1x1x16x1xf32> to vector<16x1xf32>
    %386 = vector.shape_cast %383 : vector<16x1xf32> to vector<1x1x16x1xf32>
    tpu.vector_store %arg12[%c8_465, %c1_466, %c0_467, %c3_468], %386 {strides = array<i32>} : memref<10x2x16x5xf32, #tpu.memory_space<vmem>>, vector<1x1x16x1xf32>,
    %387 = vector.extract_strided_slice %358 {offsets = [0, 7], sizes = [16, 1], strides = [1, 1]} : vector<16x8xf32> to vector<16x1xf32>
    %c8_469 = arith.constant 8 : index
    %c0_470 = arith.constant 0 : index
    %c0_471 = arith.constant 0 : index
    %c4_472 = arith.constant 4 : index
    %388 = vector.load %arg12[%c8_469, %c0_470, %c0_471, %c4_472] : memref<10x2x16x5xf32, #tpu.memory_space<vmem>>, vector<1x1x16x1xf32>
    %389 = vector.shape_cast %388 : vector<1x1x16x1xf32> to vector<16x1xf32>
    %390 = vector.shape_cast %387 : vector<16x1xf32> to vector<1x1x16x1xf32>
    tpu.vector_store %arg12[%c8_469, %c0_470, %c0_471, %c4_472], %390 {strides = array<i32>} : memref<10x2x16x5xf32, #tpu.memory_space<vmem>>, vector<1x1x16x1xf32>,
    %c0_473 = arith.constant 0 : index
    %c0_474 = arith.constant 0 : index
    %391 = vector.load %arg4[%c0_473, %c0_474] : memref<32x256xf32, #tpu.memory_space<vmem>>, vector<32x256xf32>
    %c0_475 = arith.constant 0 : index
    %c0_476 = arith.constant 0 : index
    %392 = vector.load %arg5[%c0_475, %c0_476] : memref<32x1xf32, #tpu.memory_space<vmem>>, vector<32x1xf32>
    %c0_477 = arith.constant 0 : index
    %c0_478 = arith.constant 0 : index
    %c0_479 = arith.constant 0 : index
    %c0_480 = arith.constant 0 : index
    %393 = vector.load %arg12[%c0_477, %c0_478, %c0_479, %c0_480] : memref<10x2x16x5xf32, #tpu.memory_space<vmem>>, vector<1x1x16x4xf32>
    %394 = vector.shape_cast %393 : vector<1x1x16x4xf32> to vector<16x4xf32>
    %c0_481 = arith.constant 0 : index
    %c0_482 = arith.constant 0 : index
    %395 = vector.load %arg13[%c0_481, %c0_482] : memref<256x4xf32, #tpu.memory_space<vmem>>, vector<16x4xf32>
    tpu.vector_store %arg13[%c0_481, %c0_482], %394 {strides = array<i32>} : memref<256x4xf32, #tpu.memory_space<vmem>>, vector<16x4xf32>,
    %c0_483 = arith.constant 0 : index
    %c1_484 = arith.constant 1 : index
    %c0_485 = arith.constant 0 : index
    %c0_486 = arith.constant 0 : index
    %396 = vector.load %arg12[%c0_483, %c1_484, %c0_485, %c0_486] : memref<10x2x16x5xf32, #tpu.memory_space<vmem>>, vector<1x1x16x4xf32>
    %397 = vector.shape_cast %396 : vector<1x1x16x4xf32> to vector<16x4xf32>
    %c16 = arith.constant 16 : index
    %c0_487 = arith.constant 0 : index
    %398 = vector.load %arg13[%c16, %c0_487] : memref<256x4xf32, #tpu.memory_space<vmem>>, vector<16x4xf32>
    tpu.vector_store %arg13[%c16, %c0_487], %397 {strides = array<i32>} : memref<256x4xf32, #tpu.memory_space<vmem>>, vector<16x4xf32>,
    %c0_488 = arith.constant 0 : index
    %c0_489 = arith.constant 0 : index
    %c0_490 = arith.constant 0 : index
    %c1_491 = arith.constant 1 : index
    %399 = vector.load %arg12[%c0_488, %c0_489, %c0_490, %c1_491] : memref<10x2x16x5xf32, #tpu.memory_space<vmem>>, vector<1x1x16x4xf32>
    %400 = vector.shape_cast %399 : vector<1x1x16x4xf32> to vector<16x4xf32>
    %c32 = arith.constant 32 : index
    %c0_492 = arith.constant 0 : index
    %401 = vector.load %arg13[%c32, %c0_492] : memref<256x4xf32, #tpu.memory_space<vmem>>, vector<16x4xf32>
    tpu.vector_store %arg13[%c32, %c0_492], %400 {strides = array<i32>} : memref<256x4xf32, #tpu.memory_space<vmem>>, vector<16x4xf32>,
    %c0_493 = arith.constant 0 : index
    %c1_494 = arith.constant 1 : index
    %c0_495 = arith.constant 0 : index
    %c1_496 = arith.constant 1 : index
    %402 = vector.load %arg12[%c0_493, %c1_494, %c0_495, %c1_496] : memref<10x2x16x5xf32, #tpu.memory_space<vmem>>, vector<1x1x16x4xf32>
    %403 = vector.shape_cast %402 : vector<1x1x16x4xf32> to vector<16x4xf32>
    %c48_497 = arith.constant 48 : index
    %c0_498 = arith.constant 0 : index
    %404 = vector.load %arg13[%c48_497, %c0_498] : memref<256x4xf32, #tpu.memory_space<vmem>>, vector<16x4xf32>
    tpu.vector_store %arg13[%c48_497, %c0_498], %403 {strides = array<i32>} : memref<256x4xf32, #tpu.memory_space<vmem>>, vector<16x4xf32>,
    %c1_499 = arith.constant 1 : index
    %c0_500 = arith.constant 0 : index
    %c0_501 = arith.constant 0 : index
    %c0_502 = arith.constant 0 : index
    %405 = vector.load %arg12[%c1_499, %c0_500, %c0_501, %c0_502] : memref<10x2x16x5xf32, #tpu.memory_space<vmem>>, vector<1x1x16x4xf32>
    %406 = vector.shape_cast %405 : vector<1x1x16x4xf32> to vector<16x4xf32>
    %c64 = arith.constant 64 : index
    %c0_503 = arith.constant 0 : index
    %407 = vector.load %arg13[%c64, %c0_503] : memref<256x4xf32, #tpu.memory_space<vmem>>, vector<16x4xf32>
    tpu.vector_store %arg13[%c64, %c0_503], %406 {strides = array<i32>} : memref<256x4xf32, #tpu.memory_space<vmem>>, vector<16x4xf32>,
    %c1_504 = arith.constant 1 : index
    %c1_505 = arith.constant 1 : index
    %c0_506 = arith.constant 0 : index
    %c0_507 = arith.constant 0 : index
    %408 = vector.load %arg12[%c1_504, %c1_505, %c0_506, %c0_507] : memref<10x2x16x5xf32, #tpu.memory_space<vmem>>, vector<1x1x16x4xf32>
    %409 = vector.shape_cast %408 : vector<1x1x16x4xf32> to vector<16x4xf32>
    %c80 = arith.constant 80 : index
    %c0_508 = arith.constant 0 : index
    %410 = vector.load %arg13[%c80, %c0_508] : memref<256x4xf32, #tpu.memory_space<vmem>>, vector<16x4xf32>
    tpu.vector_store %arg13[%c80, %c0_508], %409 {strides = array<i32>} : memref<256x4xf32, #tpu.memory_space<vmem>>, vector<16x4xf32>,
    %c1_509 = arith.constant 1 : index
    %c0_510 = arith.constant 0 : index
    %c0_511 = arith.constant 0 : index
    %c1_512 = arith.constant 1 : index
    %411 = vector.load %arg12[%c1_509, %c0_510, %c0_511, %c1_512] : memref<10x2x16x5xf32, #tpu.memory_space<vmem>>, vector<1x1x16x4xf32>
    %412 = vector.shape_cast %411 : vector<1x1x16x4xf32> to vector<16x4xf32>
    %c96 = arith.constant 96 : index
    %c0_513 = arith.constant 0 : index
    %413 = vector.load %arg13[%c96, %c0_513] : memref<256x4xf32, #tpu.memory_space<vmem>>, vector<16x4xf32>
    tpu.vector_store %arg13[%c96, %c0_513], %412 {strides = array<i32>} : memref<256x4xf32, #tpu.memory_space<vmem>>, vector<16x4xf32>,
    %c1_514 = arith.constant 1 : index
    %c1_515 = arith.constant 1 : index
    %c0_516 = arith.constant 0 : index
    %c1_517 = arith.constant 1 : index
    %414 = vector.load %arg12[%c1_514, %c1_515, %c0_516, %c1_517] : memref<10x2x16x5xf32, #tpu.memory_space<vmem>>, vector<1x1x16x4xf32>
    %415 = vector.shape_cast %414 : vector<1x1x16x4xf32> to vector<16x4xf32>
    %c112 = arith.constant 112 : index
    %c0_518 = arith.constant 0 : index
    %416 = vector.load %arg13[%c112, %c0_518] : memref<256x4xf32, #tpu.memory_space<vmem>>, vector<16x4xf32>
    tpu.vector_store %arg13[%c112, %c0_518], %415 {strides = array<i32>} : memref<256x4xf32, #tpu.memory_space<vmem>>, vector<16x4xf32>,
    %c2_519 = arith.constant 2 : index
    %c0_520 = arith.constant 0 : index
    %c0_521 = arith.constant 0 : index
    %c0_522 = arith.constant 0 : index
    %417 = vector.load %arg12[%c2_519, %c0_520, %c0_521, %c0_522] : memref<10x2x16x5xf32, #tpu.memory_space<vmem>>, vector<1x1x16x4xf32>
    %418 = vector.shape_cast %417 : vector<1x1x16x4xf32> to vector<16x4xf32>
    %c128 = arith.constant 128 : index
    %c0_523 = arith.constant 0 : index
    %419 = vector.load %arg13[%c128, %c0_523] : memref<256x4xf32, #tpu.memory_space<vmem>>, vector<16x4xf32>
    tpu.vector_store %arg13[%c128, %c0_523], %418 {strides = array<i32>} : memref<256x4xf32, #tpu.memory_space<vmem>>, vector<16x4xf32>,
    %c2_524 = arith.constant 2 : index
    %c1_525 = arith.constant 1 : index
    %c0_526 = arith.constant 0 : index
    %c0_527 = arith.constant 0 : index
    %420 = vector.load %arg12[%c2_524, %c1_525, %c0_526, %c0_527] : memref<10x2x16x5xf32, #tpu.memory_space<vmem>>, vector<1x1x16x4xf32>
    %421 = vector.shape_cast %420 : vector<1x1x16x4xf32> to vector<16x4xf32>
    %c144 = arith.constant 144 : index
    %c0_528 = arith.constant 0 : index
    %422 = vector.load %arg13[%c144, %c0_528] : memref<256x4xf32, #tpu.memory_space<vmem>>, vector<16x4xf32>
    tpu.vector_store %arg13[%c144, %c0_528], %421 {strides = array<i32>} : memref<256x4xf32, #tpu.memory_space<vmem>>, vector<16x4xf32>,
    %c2_529 = arith.constant 2 : index
    %c0_530 = arith.constant 0 : index
    %c0_531 = arith.constant 0 : index
    %c1_532 = arith.constant 1 : index
    %423 = vector.load %arg12[%c2_529, %c0_530, %c0_531, %c1_532] : memref<10x2x16x5xf32, #tpu.memory_space<vmem>>, vector<1x1x16x4xf32>
    %424 = vector.shape_cast %423 : vector<1x1x16x4xf32> to vector<16x4xf32>
    %c160 = arith.constant 160 : index
    %c0_533 = arith.constant 0 : index
    %425 = vector.load %arg13[%c160, %c0_533] : memref<256x4xf32, #tpu.memory_space<vmem>>, vector<16x4xf32>
    tpu.vector_store %arg13[%c160, %c0_533], %424 {strides = array<i32>} : memref<256x4xf32, #tpu.memory_space<vmem>>, vector<16x4xf32>,
    %c2_534 = arith.constant 2 : index
    %c1_535 = arith.constant 1 : index
    %c0_536 = arith.constant 0 : index
    %c1_537 = arith.constant 1 : index
    %426 = vector.load %arg12[%c2_534, %c1_535, %c0_536, %c1_537] : memref<10x2x16x5xf32, #tpu.memory_space<vmem>>, vector<1x1x16x4xf32>
    %427 = vector.shape_cast %426 : vector<1x1x16x4xf32> to vector<16x4xf32>
    %c176 = arith.constant 176 : index
    %c0_538 = arith.constant 0 : index
    %428 = vector.load %arg13[%c176, %c0_538] : memref<256x4xf32, #tpu.memory_space<vmem>>, vector<16x4xf32>
    tpu.vector_store %arg13[%c176, %c0_538], %427 {strides = array<i32>} : memref<256x4xf32, #tpu.memory_space<vmem>>, vector<16x4xf32>,
    %c3_539 = arith.constant 3 : index
    %c0_540 = arith.constant 0 : index
    %c0_541 = arith.constant 0 : index
    %c0_542 = arith.constant 0 : index
    %429 = vector.load %arg12[%c3_539, %c0_540, %c0_541, %c0_542] : memref<10x2x16x5xf32, #tpu.memory_space<vmem>>, vector<1x1x16x4xf32>
    %430 = vector.shape_cast %429 : vector<1x1x16x4xf32> to vector<16x4xf32>
    %c192 = arith.constant 192 : index
    %c0_543 = arith.constant 0 : index
    %431 = vector.load %arg13[%c192, %c0_543] : memref<256x4xf32, #tpu.memory_space<vmem>>, vector<16x4xf32>
    tpu.vector_store %arg13[%c192, %c0_543], %430 {strides = array<i32>} : memref<256x4xf32, #tpu.memory_space<vmem>>, vector<16x4xf32>,
    %c3_544 = arith.constant 3 : index
    %c1_545 = arith.constant 1 : index
    %c0_546 = arith.constant 0 : index
    %c0_547 = arith.constant 0 : index
    %432 = vector.load %arg12[%c3_544, %c1_545, %c0_546, %c0_547] : memref<10x2x16x5xf32, #tpu.memory_space<vmem>>, vector<1x1x16x4xf32>
    %433 = vector.shape_cast %432 : vector<1x1x16x4xf32> to vector<16x4xf32>
    %c208 = arith.constant 208 : index
    %c0_548 = arith.constant 0 : index
    %434 = vector.load %arg13[%c208, %c0_548] : memref<256x4xf32, #tpu.memory_space<vmem>>, vector<16x4xf32>
    tpu.vector_store %arg13[%c208, %c0_548], %433 {strides = array<i32>} : memref<256x4xf32, #tpu.memory_space<vmem>>, vector<16x4xf32>,
    %c3_549 = arith.constant 3 : index
    %c0_550 = arith.constant 0 : index
    %c0_551 = arith.constant 0 : index
    %c1_552 = arith.constant 1 : index
    %435 = vector.load %arg12[%c3_549, %c0_550, %c0_551, %c1_552] : memref<10x2x16x5xf32, #tpu.memory_space<vmem>>, vector<1x1x16x4xf32>
    %436 = vector.shape_cast %435 : vector<1x1x16x4xf32> to vector<16x4xf32>
    %c224 = arith.constant 224 : index
    %c0_553 = arith.constant 0 : index
    %437 = vector.load %arg13[%c224, %c0_553] : memref<256x4xf32, #tpu.memory_space<vmem>>, vector<16x4xf32>
    tpu.vector_store %arg13[%c224, %c0_553], %436 {strides = array<i32>} : memref<256x4xf32, #tpu.memory_space<vmem>>, vector<16x4xf32>,
    %c3_554 = arith.constant 3 : index
    %c1_555 = arith.constant 1 : index
    %c0_556 = arith.constant 0 : index
    %c1_557 = arith.constant 1 : index
    %438 = vector.load %arg12[%c3_554, %c1_555, %c0_556, %c1_557] : memref<10x2x16x5xf32, #tpu.memory_space<vmem>>, vector<1x1x16x4xf32>
    %439 = vector.shape_cast %438 : vector<1x1x16x4xf32> to vector<16x4xf32>
    %c240 = arith.constant 240 : index
    %c0_558 = arith.constant 0 : index
    %440 = vector.load %arg13[%c240, %c0_558] : memref<256x4xf32, #tpu.memory_space<vmem>>, vector<16x4xf32>
    tpu.vector_store %arg13[%c240, %c0_558], %439 {strides = array<i32>} : memref<256x4xf32, #tpu.memory_space<vmem>>, vector<16x4xf32>,
    %c0_559 = arith.constant 0 : index
    %c0_560 = arith.constant 0 : index
    %441 = vector.load %arg13[%c0_559, %c0_560] : memref<256x4xf32, #tpu.memory_space<vmem>>, vector<256x4xf32>
    %cst_561 = arith.constant dense<0.000000e+00> : vector<32x4xf32>
    %442 = tpu.matmul %391, %441, %cst_561 {dimension_numbers = #tpu.dot_dimension_numbers<[1], [0], [0], [1], [0, 0, 1, 1], [], []>} : vector<32x256xf32>, vector<256x4xf32>, vector<32x4xf32> -> vector<32x4xf32>
    %443 = vector.broadcast %392 : vector<32x1xf32> to vector<32x4xf32>
    %444 = arith.addf %442, %443 : vector<32x4xf32>
    %cst_562 = arith.constant 0.000000e+00 : f32
    %445 = vector.broadcast %cst_562 : f32 to vector<32x4xf32>
    %446 = arith.maximumf %444, %445 : vector<32x4xf32>
    %447 = vector.extract_strided_slice %446 {offsets = [0, 0], sizes = [32, 1], strides = [1, 1]} : vector<32x4xf32> to vector<32x1xf32>
    %c0_563 = arith.constant 0 : index
    %c0_564 = arith.constant 0 : index
    %448 = vector.load %arg14[%c0_563, %c0_564] : memref<512x1xf32, #tpu.memory_space<vmem>>, vector<32x1xf32>
    tpu.vector_store %arg14[%c0_563, %c0_564], %447 {strides = array<i32>} : memref<512x1xf32, #tpu.memory_space<vmem>>, vector<32x1xf32>,
    %449 = vector.extract_strided_slice %446 {offsets = [0, 1], sizes = [32, 1], strides = [1, 1]} : vector<32x4xf32> to vector<32x1xf32>
    %c32_565 = arith.constant 32 : index
    %c0_566 = arith.constant 0 : index
    %450 = vector.load %arg14[%c32_565, %c0_566] : memref<512x1xf32, #tpu.memory_space<vmem>>, vector<32x1xf32>
    tpu.vector_store %arg14[%c32_565, %c0_566], %449 {strides = array<i32>} : memref<512x1xf32, #tpu.memory_space<vmem>>, vector<32x1xf32>,
    %451 = vector.extract_strided_slice %446 {offsets = [0, 2], sizes = [32, 1], strides = [1, 1]} : vector<32x4xf32> to vector<32x1xf32>
    %c64_567 = arith.constant 64 : index
    %c0_568 = arith.constant 0 : index
    %452 = vector.load %arg14[%c64_567, %c0_568] : memref<512x1xf32, #tpu.memory_space<vmem>>, vector<32x1xf32>
    tpu.vector_store %arg14[%c64_567, %c0_568], %451 {strides = array<i32>} : memref<512x1xf32, #tpu.memory_space<vmem>>, vector<32x1xf32>,
    %453 = vector.extract_strided_slice %446 {offsets = [0, 3], sizes = [32, 1], strides = [1, 1]} : vector<32x4xf32> to vector<32x1xf32>
    %c96_569 = arith.constant 96 : index
    %c0_570 = arith.constant 0 : index
    %454 = vector.load %arg14[%c96_569, %c0_570] : memref<512x1xf32, #tpu.memory_space<vmem>>, vector<32x1xf32>
    tpu.vector_store %arg14[%c96_569, %c0_570], %453 {strides = array<i32>} : memref<512x1xf32, #tpu.memory_space<vmem>>, vector<32x1xf32>,
    %c2_571 = arith.constant 2 : index
    %c0_572 = arith.constant 0 : index
    %c0_573 = arith.constant 0 : index
    %c0_574 = arith.constant 0 : index
    %455 = vector.load %arg12[%c2_571, %c0_572, %c0_573, %c0_574] : memref<10x2x16x5xf32, #tpu.memory_space<vmem>>, vector<1x1x16x4xf32>
    %456 = vector.shape_cast %455 : vector<1x1x16x4xf32> to vector<16x4xf32>
    %c0_575 = arith.constant 0 : index
    %c0_576 = arith.constant 0 : index
    %457 = vector.load %arg13[%c0_575, %c0_576] : memref<256x4xf32, #tpu.memory_space<vmem>>, vector<16x4xf32>
    tpu.vector_store %arg13[%c0_575, %c0_576], %456 {strides = array<i32>} : memref<256x4xf32, #tpu.memory_space<vmem>>, vector<16x4xf32>,
    %c2_577 = arith.constant 2 : index
    %c1_578 = arith.constant 1 : index
    %c0_579 = arith.constant 0 : index
    %c0_580 = arith.constant 0 : index
    %458 = vector.load %arg12[%c2_577, %c1_578, %c0_579, %c0_580] : memref<10x2x16x5xf32, #tpu.memory_space<vmem>>, vector<1x1x16x4xf32>
    %459 = vector.shape_cast %458 : vector<1x1x16x4xf32> to vector<16x4xf32>
    %c16_581 = arith.constant 16 : index
    %c0_582 = arith.constant 0 : index
    %460 = vector.load %arg13[%c16_581, %c0_582] : memref<256x4xf32, #tpu.memory_space<vmem>>, vector<16x4xf32>
    tpu.vector_store %arg13[%c16_581, %c0_582], %459 {strides = array<i32>} : memref<256x4xf32, #tpu.memory_space<vmem>>, vector<16x4xf32>,
    %c2_583 = arith.constant 2 : index
    %c0_584 = arith.constant 0 : index
    %c0_585 = arith.constant 0 : index
    %c1_586 = arith.constant 1 : index
    %461 = vector.load %arg12[%c2_583, %c0_584, %c0_585, %c1_586] : memref<10x2x16x5xf32, #tpu.memory_space<vmem>>, vector<1x1x16x4xf32>
    %462 = vector.shape_cast %461 : vector<1x1x16x4xf32> to vector<16x4xf32>
    %c32_587 = arith.constant 32 : index
    %c0_588 = arith.constant 0 : index
    %463 = vector.load %arg13[%c32_587, %c0_588] : memref<256x4xf32, #tpu.memory_space<vmem>>, vector<16x4xf32>
    tpu.vector_store %arg13[%c32_587, %c0_588], %462 {strides = array<i32>} : memref<256x4xf32, #tpu.memory_space<vmem>>, vector<16x4xf32>,
    %c2_589 = arith.constant 2 : index
    %c1_590 = arith.constant 1 : index
    %c0_591 = arith.constant 0 : index
    %c1_592 = arith.constant 1 : index
    %464 = vector.load %arg12[%c2_589, %c1_590, %c0_591, %c1_592] : memref<10x2x16x5xf32, #tpu.memory_space<vmem>>, vector<1x1x16x4xf32>
    %465 = vector.shape_cast %464 : vector<1x1x16x4xf32> to vector<16x4xf32>
    %c48_593 = arith.constant 48 : index
    %c0_594 = arith.constant 0 : index
    %466 = vector.load %arg13[%c48_593, %c0_594] : memref<256x4xf32, #tpu.memory_space<vmem>>, vector<16x4xf32>
    tpu.vector_store %arg13[%c48_593, %c0_594], %465 {strides = array<i32>} : memref<256x4xf32, #tpu.memory_space<vmem>>, vector<16x4xf32>,
    %c3_595 = arith.constant 3 : index
    %c0_596 = arith.constant 0 : index
    %c0_597 = arith.constant 0 : index
    %c0_598 = arith.constant 0 : index
    %467 = vector.load %arg12[%c3_595, %c0_596, %c0_597, %c0_598] : memref<10x2x16x5xf32, #tpu.memory_space<vmem>>, vector<1x1x16x4xf32>
    %468 = vector.shape_cast %467 : vector<1x1x16x4xf32> to vector<16x4xf32>
    %c64_599 = arith.constant 64 : index
    %c0_600 = arith.constant 0 : index
    %469 = vector.load %arg13[%c64_599, %c0_600] : memref<256x4xf32, #tpu.memory_space<vmem>>, vector<16x4xf32>
    tpu.vector_store %arg13[%c64_599, %c0_600], %468 {strides = array<i32>} : memref<256x4xf32, #tpu.memory_space<vmem>>, vector<16x4xf32>,
    %c3_601 = arith.constant 3 : index
    %c1_602 = arith.constant 1 : index
    %c0_603 = arith.constant 0 : index
    %c0_604 = arith.constant 0 : index
    %470 = vector.load %arg12[%c3_601, %c1_602, %c0_603, %c0_604] : memref<10x2x16x5xf32, #tpu.memory_space<vmem>>, vector<1x1x16x4xf32>
    %471 = vector.shape_cast %470 : vector<1x1x16x4xf32> to vector<16x4xf32>
    %c80_605 = arith.constant 80 : index
    %c0_606 = arith.constant 0 : index
    %472 = vector.load %arg13[%c80_605, %c0_606] : memref<256x4xf32, #tpu.memory_space<vmem>>, vector<16x4xf32>
    tpu.vector_store %arg13[%c80_605, %c0_606], %471 {strides = array<i32>} : memref<256x4xf32, #tpu.memory_space<vmem>>, vector<16x4xf32>,
    %c3_607 = arith.constant 3 : index
    %c0_608 = arith.constant 0 : index
    %c0_609 = arith.constant 0 : index
    %c1_610 = arith.constant 1 : index
    %473 = vector.load %arg12[%c3_607, %c0_608, %c0_609, %c1_610] : memref<10x2x16x5xf32, #tpu.memory_space<vmem>>, vector<1x1x16x4xf32>
    %474 = vector.shape_cast %473 : vector<1x1x16x4xf32> to vector<16x4xf32>
    %c96_611 = arith.constant 96 : index
    %c0_612 = arith.constant 0 : index
    %475 = vector.load %arg13[%c96_611, %c0_612] : memref<256x4xf32, #tpu.memory_space<vmem>>, vector<16x4xf32>
    tpu.vector_store %arg13[%c96_611, %c0_612], %474 {strides = array<i32>} : memref<256x4xf32, #tpu.memory_space<vmem>>, vector<16x4xf32>,
    %c3_613 = arith.constant 3 : index
    %c1_614 = arith.constant 1 : index
    %c0_615 = arith.constant 0 : index
    %c1_616 = arith.constant 1 : index
    %476 = vector.load %arg12[%c3_613, %c1_614, %c0_615, %c1_616] : memref<10x2x16x5xf32, #tpu.memory_space<vmem>>, vector<1x1x16x4xf32>
    %477 = vector.shape_cast %476 : vector<1x1x16x4xf32> to vector<16x4xf32>
    %c112_617 = arith.constant 112 : index
    %c0_618 = arith.constant 0 : index
    %478 = vector.load %arg13[%c112_617, %c0_618] : memref<256x4xf32, #tpu.memory_space<vmem>>, vector<16x4xf32>
    tpu.vector_store %arg13[%c112_617, %c0_618], %477 {strides = array<i32>} : memref<256x4xf32, #tpu.memory_space<vmem>>, vector<16x4xf32>,
    %c4_619 = arith.constant 4 : index
    %c0_620 = arith.constant 0 : index
    %c0_621 = arith.constant 0 : index
    %c0_622 = arith.constant 0 : index
    %479 = vector.load %arg12[%c4_619, %c0_620, %c0_621, %c0_622] : memref<10x2x16x5xf32, #tpu.memory_space<vmem>>, vector<1x1x16x4xf32>
    %480 = vector.shape_cast %479 : vector<1x1x16x4xf32> to vector<16x4xf32>
    %c128_623 = arith.constant 128 : index
    %c0_624 = arith.constant 0 : index
    %481 = vector.load %arg13[%c128_623, %c0_624] : memref<256x4xf32, #tpu.memory_space<vmem>>, vector<16x4xf32>
    tpu.vector_store %arg13[%c128_623, %c0_624], %480 {strides = array<i32>} : memref<256x4xf32, #tpu.memory_space<vmem>>, vector<16x4xf32>,
    %c4_625 = arith.constant 4 : index
    %c1_626 = arith.constant 1 : index
    %c0_627 = arith.constant 0 : index
    %c0_628 = arith.constant 0 : index
    %482 = vector.load %arg12[%c4_625, %c1_626, %c0_627, %c0_628] : memref<10x2x16x5xf32, #tpu.memory_space<vmem>>, vector<1x1x16x4xf32>
    %483 = vector.shape_cast %482 : vector<1x1x16x4xf32> to vector<16x4xf32>
    %c144_629 = arith.constant 144 : index
    %c0_630 = arith.constant 0 : index
    %484 = vector.load %arg13[%c144_629, %c0_630] : memref<256x4xf32, #tpu.memory_space<vmem>>, vector<16x4xf32>
    tpu.vector_store %arg13[%c144_629, %c0_630], %483 {strides = array<i32>} : memref<256x4xf32, #tpu.memory_space<vmem>>, vector<16x4xf32>,
    %c4_631 = arith.constant 4 : index
    %c0_632 = arith.constant 0 : index
    %c0_633 = arith.constant 0 : index
    %c1_634 = arith.constant 1 : index
    %485 = vector.load %arg12[%c4_631, %c0_632, %c0_633, %c1_634] : memref<10x2x16x5xf32, #tpu.memory_space<vmem>>, vector<1x1x16x4xf32>
    %486 = vector.shape_cast %485 : vector<1x1x16x4xf32> to vector<16x4xf32>
    %c160_635 = arith.constant 160 : index
    %c0_636 = arith.constant 0 : index
    %487 = vector.load %arg13[%c160_635, %c0_636] : memref<256x4xf32, #tpu.memory_space<vmem>>, vector<16x4xf32>
    tpu.vector_store %arg13[%c160_635, %c0_636], %486 {strides = array<i32>} : memref<256x4xf32, #tpu.memory_space<vmem>>, vector<16x4xf32>,
    %c4_637 = arith.constant 4 : index
    %c1_638 = arith.constant 1 : index
    %c0_639 = arith.constant 0 : index
    %c1_640 = arith.constant 1 : index
    %488 = vector.load %arg12[%c4_637, %c1_638, %c0_639, %c1_640] : memref<10x2x16x5xf32, #tpu.memory_space<vmem>>, vector<1x1x16x4xf32>
    %489 = vector.shape_cast %488 : vector<1x1x16x4xf32> to vector<16x4xf32>
    %c176_641 = arith.constant 176 : index
    %c0_642 = arith.constant 0 : index
    %490 = vector.load %arg13[%c176_641, %c0_642] : memref<256x4xf32, #tpu.memory_space<vmem>>, vector<16x4xf32>
    tpu.vector_store %arg13[%c176_641, %c0_642], %489 {strides = array<i32>} : memref<256x4xf32, #tpu.memory_space<vmem>>, vector<16x4xf32>,
    %c5_643 = arith.constant 5 : index
    %c0_644 = arith.constant 0 : index
    %c0_645 = arith.constant 0 : index
    %c0_646 = arith.constant 0 : index
    %491 = vector.load %arg12[%c5_643, %c0_644, %c0_645, %c0_646] : memref<10x2x16x5xf32, #tpu.memory_space<vmem>>, vector<1x1x16x4xf32>
    %492 = vector.shape_cast %491 : vector<1x1x16x4xf32> to vector<16x4xf32>
    %c192_647 = arith.constant 192 : index
    %c0_648 = arith.constant 0 : index
    %493 = vector.load %arg13[%c192_647, %c0_648] : memref<256x4xf32, #tpu.memory_space<vmem>>, vector<16x4xf32>
    tpu.vector_store %arg13[%c192_647, %c0_648], %492 {strides = array<i32>} : memref<256x4xf32, #tpu.memory_space<vmem>>, vector<16x4xf32>,
    %c5_649 = arith.constant 5 : index
    %c1_650 = arith.constant 1 : index
    %c0_651 = arith.constant 0 : index
    %c0_652 = arith.constant 0 : index
    %494 = vector.load %arg12[%c5_649, %c1_650, %c0_651, %c0_652] : memref<10x2x16x5xf32, #tpu.memory_space<vmem>>, vector<1x1x16x4xf32>
    %495 = vector.shape_cast %494 : vector<1x1x16x4xf32> to vector<16x4xf32>
    %c208_653 = arith.constant 208 : index
    %c0_654 = arith.constant 0 : index
    %496 = vector.load %arg13[%c208_653, %c0_654] : memref<256x4xf32, #tpu.memory_space<vmem>>, vector<16x4xf32>
    tpu.vector_store %arg13[%c208_653, %c0_654], %495 {strides = array<i32>} : memref<256x4xf32, #tpu.memory_space<vmem>>, vector<16x4xf32>,
    %c5_655 = arith.constant 5 : index
    %c0_656 = arith.constant 0 : index
    %c0_657 = arith.constant 0 : index
    %c1_658 = arith.constant 1 : index
    %497 = vector.load %arg12[%c5_655, %c0_656, %c0_657, %c1_658] : memref<10x2x16x5xf32, #tpu.memory_space<vmem>>, vector<1x1x16x4xf32>
    %498 = vector.shape_cast %497 : vector<1x1x16x4xf32> to vector<16x4xf32>
    %c224_659 = arith.constant 224 : index
    %c0_660 = arith.constant 0 : index
    %499 = vector.load %arg13[%c224_659, %c0_660] : memref<256x4xf32, #tpu.memory_space<vmem>>, vector<16x4xf32>
    tpu.vector_store %arg13[%c224_659, %c0_660], %498 {strides = array<i32>} : memref<256x4xf32, #tpu.memory_space<vmem>>, vector<16x4xf32>,
    %c5_661 = arith.constant 5 : index
    %c1_662 = arith.constant 1 : index
    %c0_663 = arith.constant 0 : index
    %c1_664 = arith.constant 1 : index
    %500 = vector.load %arg12[%c5_661, %c1_662, %c0_663, %c1_664] : memref<10x2x16x5xf32, #tpu.memory_space<vmem>>, vector<1x1x16x4xf32>
    %501 = vector.shape_cast %500 : vector<1x1x16x4xf32> to vector<16x4xf32>
    %c240_665 = arith.constant 240 : index
    %c0_666 = arith.constant 0 : index
    %502 = vector.load %arg13[%c240_665, %c0_666] : memref<256x4xf32, #tpu.memory_space<vmem>>, vector<16x4xf32>
    tpu.vector_store %arg13[%c240_665, %c0_666], %501 {strides = array<i32>} : memref<256x4xf32, #tpu.memory_space<vmem>>, vector<16x4xf32>,
    %c0_667 = arith.constant 0 : index
    %c0_668 = arith.constant 0 : index
    %503 = vector.load %arg13[%c0_667, %c0_668] : memref<256x4xf32, #tpu.memory_space<vmem>>, vector<256x4xf32>
    %cst_669 = arith.constant dense<0.000000e+00> : vector<32x4xf32>
    %504 = tpu.matmul %391, %503, %cst_669 {dimension_numbers = #tpu.dot_dimension_numbers<[1], [0], [0], [1], [0, 0, 1, 1], [], []>} : vector<32x256xf32>, vector<256x4xf32>, vector<32x4xf32> -> vector<32x4xf32>
    %505 = vector.broadcast %392 : vector<32x1xf32> to vector<32x4xf32>
    %506 = arith.addf %504, %505 : vector<32x4xf32>
    %cst_670 = arith.constant 0.000000e+00 : f32
    %507 = vector.broadcast %cst_670 : f32 to vector<32x4xf32>
    %508 = arith.maximumf %506, %507 : vector<32x4xf32>
    %509 = vector.extract_strided_slice %508 {offsets = [0, 0], sizes = [32, 1], strides = [1, 1]} : vector<32x4xf32> to vector<32x1xf32>
    %c128_671 = arith.constant 128 : index
    %c0_672 = arith.constant 0 : index
    %510 = vector.load %arg14[%c128_671, %c0_672] : memref<512x1xf32, #tpu.memory_space<vmem>>, vector<32x1xf32>
    tpu.vector_store %arg14[%c128_671, %c0_672], %509 {strides = array<i32>} : memref<512x1xf32, #tpu.memory_space<vmem>>, vector<32x1xf32>,
    %511 = vector.extract_strided_slice %508 {offsets = [0, 1], sizes = [32, 1], strides = [1, 1]} : vector<32x4xf32> to vector<32x1xf32>
    %c160_673 = arith.constant 160 : index
    %c0_674 = arith.constant 0 : index
    %512 = vector.load %arg14[%c160_673, %c0_674] : memref<512x1xf32, #tpu.memory_space<vmem>>, vector<32x1xf32>
    tpu.vector_store %arg14[%c160_673, %c0_674], %511 {strides = array<i32>} : memref<512x1xf32, #tpu.memory_space<vmem>>, vector<32x1xf32>,
    %513 = vector.extract_strided_slice %508 {offsets = [0, 2], sizes = [32, 1], strides = [1, 1]} : vector<32x4xf32> to vector<32x1xf32>
    %c192_675 = arith.constant 192 : index
    %c0_676 = arith.constant 0 : index
    %514 = vector.load %arg14[%c192_675, %c0_676] : memref<512x1xf32, #tpu.memory_space<vmem>>, vector<32x1xf32>
    tpu.vector_store %arg14[%c192_675, %c0_676], %513 {strides = array<i32>} : memref<512x1xf32, #tpu.memory_space<vmem>>, vector<32x1xf32>,
    %515 = vector.extract_strided_slice %508 {offsets = [0, 3], sizes = [32, 1], strides = [1, 1]} : vector<32x4xf32> to vector<32x1xf32>
    %c224_677 = arith.constant 224 : index
    %c0_678 = arith.constant 0 : index
    %516 = vector.load %arg14[%c224_677, %c0_678] : memref<512x1xf32, #tpu.memory_space<vmem>>, vector<32x1xf32>
    tpu.vector_store %arg14[%c224_677, %c0_678], %515 {strides = array<i32>} : memref<512x1xf32, #tpu.memory_space<vmem>>, vector<32x1xf32>,
    %c4_679 = arith.constant 4 : index
    %c0_680 = arith.constant 0 : index
    %c0_681 = arith.constant 0 : index
    %c0_682 = arith.constant 0 : index
    %517 = vector.load %arg12[%c4_679, %c0_680, %c0_681, %c0_682] : memref<10x2x16x5xf32, #tpu.memory_space<vmem>>, vector<1x1x16x4xf32>
    %518 = vector.shape_cast %517 : vector<1x1x16x4xf32> to vector<16x4xf32>
    %c0_683 = arith.constant 0 : index
    %c0_684 = arith.constant 0 : index
    %519 = vector.load %arg13[%c0_683, %c0_684] : memref<256x4xf32, #tpu.memory_space<vmem>>, vector<16x4xf32>
    tpu.vector_store %arg13[%c0_683, %c0_684], %518 {strides = array<i32>} : memref<256x4xf32, #tpu.memory_space<vmem>>, vector<16x4xf32>,
    %c4_685 = arith.constant 4 : index
    %c1_686 = arith.constant 1 : index
    %c0_687 = arith.constant 0 : index
    %c0_688 = arith.constant 0 : index
    %520 = vector.load %arg12[%c4_685, %c1_686, %c0_687, %c0_688] : memref<10x2x16x5xf32, #tpu.memory_space<vmem>>, vector<1x1x16x4xf32>
    %521 = vector.shape_cast %520 : vector<1x1x16x4xf32> to vector<16x4xf32>
    %c16_689 = arith.constant 16 : index
    %c0_690 = arith.constant 0 : index
    %522 = vector.load %arg13[%c16_689, %c0_690] : memref<256x4xf32, #tpu.memory_space<vmem>>, vector<16x4xf32>
    tpu.vector_store %arg13[%c16_689, %c0_690], %521 {strides = array<i32>} : memref<256x4xf32, #tpu.memory_space<vmem>>, vector<16x4xf32>,
    %c4_691 = arith.constant 4 : index
    %c0_692 = arith.constant 0 : index
    %c0_693 = arith.constant 0 : index
    %c1_694 = arith.constant 1 : index
    %523 = vector.load %arg12[%c4_691, %c0_692, %c0_693, %c1_694] : memref<10x2x16x5xf32, #tpu.memory_space<vmem>>, vector<1x1x16x4xf32>
    %524 = vector.shape_cast %523 : vector<1x1x16x4xf32> to vector<16x4xf32>
    %c32_695 = arith.constant 32 : index
    %c0_696 = arith.constant 0 : index
    %525 = vector.load %arg13[%c32_695, %c0_696] : memref<256x4xf32, #tpu.memory_space<vmem>>, vector<16x4xf32>
    tpu.vector_store %arg13[%c32_695, %c0_696], %524 {strides = array<i32>} : memref<256x4xf32, #tpu.memory_space<vmem>>, vector<16x4xf32>,
    %c4_697 = arith.constant 4 : index
    %c1_698 = arith.constant 1 : index
    %c0_699 = arith.constant 0 : index
    %c1_700 = arith.constant 1 : index
    %526 = vector.load %arg12[%c4_697, %c1_698, %c0_699, %c1_700] : memref<10x2x16x5xf32, #tpu.memory_space<vmem>>, vector<1x1x16x4xf32>
    %527 = vector.shape_cast %526 : vector<1x1x16x4xf32> to vector<16x4xf32>
    %c48_701 = arith.constant 48 : index
    %c0_702 = arith.constant 0 : index
    %528 = vector.load %arg13[%c48_701, %c0_702] : memref<256x4xf32, #tpu.memory_space<vmem>>, vector<16x4xf32>
    tpu.vector_store %arg13[%c48_701, %c0_702], %527 {strides = array<i32>} : memref<256x4xf32, #tpu.memory_space<vmem>>, vector<16x4xf32>,
    %c5_703 = arith.constant 5 : index
    %c0_704 = arith.constant 0 : index
    %c0_705 = arith.constant 0 : index
    %c0_706 = arith.constant 0 : index
    %529 = vector.load %arg12[%c5_703, %c0_704, %c0_705, %c0_706] : memref<10x2x16x5xf32, #tpu.memory_space<vmem>>, vector<1x1x16x4xf32>
    %530 = vector.shape_cast %529 : vector<1x1x16x4xf32> to vector<16x4xf32>
    %c64_707 = arith.constant 64 : index
    %c0_708 = arith.constant 0 : index
    %531 = vector.load %arg13[%c64_707, %c0_708] : memref<256x4xf32, #tpu.memory_space<vmem>>, vector<16x4xf32>
    tpu.vector_store %arg13[%c64_707, %c0_708], %530 {strides = array<i32>} : memref<256x4xf32, #tpu.memory_space<vmem>>, vector<16x4xf32>,
    %c5_709 = arith.constant 5 : index
    %c1_710 = arith.constant 1 : index
    %c0_711 = arith.constant 0 : index
    %c0_712 = arith.constant 0 : index
    %532 = vector.load %arg12[%c5_709, %c1_710, %c0_711, %c0_712] : memref<10x2x16x5xf32, #tpu.memory_space<vmem>>, vector<1x1x16x4xf32>
    %533 = vector.shape_cast %532 : vector<1x1x16x4xf32> to vector<16x4xf32>
    %c80_713 = arith.constant 80 : index
    %c0_714 = arith.constant 0 : index
    %534 = vector.load %arg13[%c80_713, %c0_714] : memref<256x4xf32, #tpu.memory_space<vmem>>, vector<16x4xf32>
    tpu.vector_store %arg13[%c80_713, %c0_714], %533 {strides = array<i32>} : memref<256x4xf32, #tpu.memory_space<vmem>>, vector<16x4xf32>,
    %c5_715 = arith.constant 5 : index
    %c0_716 = arith.constant 0 : index
    %c0_717 = arith.constant 0 : index
    %c1_718 = arith.constant 1 : index
    %535 = vector.load %arg12[%c5_715, %c0_716, %c0_717, %c1_718] : memref<10x2x16x5xf32, #tpu.memory_space<vmem>>, vector<1x1x16x4xf32>
    %536 = vector.shape_cast %535 : vector<1x1x16x4xf32> to vector<16x4xf32>
    %c96_719 = arith.constant 96 : index
    %c0_720 = arith.constant 0 : index
    %537 = vector.load %arg13[%c96_719, %c0_720] : memref<256x4xf32, #tpu.memory_space<vmem>>, vector<16x4xf32>
    tpu.vector_store %arg13[%c96_719, %c0_720], %536 {strides = array<i32>} : memref<256x4xf32, #tpu.memory_space<vmem>>, vector<16x4xf32>,
    %c5_721 = arith.constant 5 : index
    %c1_722 = arith.constant 1 : index
    %c0_723 = arith.constant 0 : index
    %c1_724 = arith.constant 1 : index
    %538 = vector.load %arg12[%c5_721, %c1_722, %c0_723, %c1_724] : memref<10x2x16x5xf32, #tpu.memory_space<vmem>>, vector<1x1x16x4xf32>
    %539 = vector.shape_cast %538 : vector<1x1x16x4xf32> to vector<16x4xf32>
    %c112_725 = arith.constant 112 : index
    %c0_726 = arith.constant 0 : index
    %540 = vector.load %arg13[%c112_725, %c0_726] : memref<256x4xf32, #tpu.memory_space<vmem>>, vector<16x4xf32>
    tpu.vector_store %arg13[%c112_725, %c0_726], %539 {strides = array<i32>} : memref<256x4xf32, #tpu.memory_space<vmem>>, vector<16x4xf32>,
    %c6_727 = arith.constant 6 : index
    %c0_728 = arith.constant 0 : index
    %c0_729 = arith.constant 0 : index
    %c0_730 = arith.constant 0 : index
    %541 = vector.load %arg12[%c6_727, %c0_728, %c0_729, %c0_730] : memref<10x2x16x5xf32, #tpu.memory_space<vmem>>, vector<1x1x16x4xf32>
    %542 = vector.shape_cast %541 : vector<1x1x16x4xf32> to vector<16x4xf32>
    %c128_731 = arith.constant 128 : index
    %c0_732 = arith.constant 0 : index
    %543 = vector.load %arg13[%c128_731, %c0_732] : memref<256x4xf32, #tpu.memory_space<vmem>>, vector<16x4xf32>
    tpu.vector_store %arg13[%c128_731, %c0_732], %542 {strides = array<i32>} : memref<256x4xf32, #tpu.memory_space<vmem>>, vector<16x4xf32>,
    %c6_733 = arith.constant 6 : index
    %c1_734 = arith.constant 1 : index
    %c0_735 = arith.constant 0 : index
    %c0_736 = arith.constant 0 : index
    %544 = vector.load %arg12[%c6_733, %c1_734, %c0_735, %c0_736] : memref<10x2x16x5xf32, #tpu.memory_space<vmem>>, vector<1x1x16x4xf32>
    %545 = vector.shape_cast %544 : vector<1x1x16x4xf32> to vector<16x4xf32>
    %c144_737 = arith.constant 144 : index
    %c0_738 = arith.constant 0 : index
    %546 = vector.load %arg13[%c144_737, %c0_738] : memref<256x4xf32, #tpu.memory_space<vmem>>, vector<16x4xf32>
    tpu.vector_store %arg13[%c144_737, %c0_738], %545 {strides = array<i32>} : memref<256x4xf32, #tpu.memory_space<vmem>>, vector<16x4xf32>,
    %c6_739 = arith.constant 6 : index
    %c0_740 = arith.constant 0 : index
    %c0_741 = arith.constant 0 : index
    %c1_742 = arith.constant 1 : index
    %547 = vector.load %arg12[%c6_739, %c0_740, %c0_741, %c1_742] : memref<10x2x16x5xf32, #tpu.memory_space<vmem>>, vector<1x1x16x4xf32>
    %548 = vector.shape_cast %547 : vector<1x1x16x4xf32> to vector<16x4xf32>
    %c160_743 = arith.constant 160 : index
    %c0_744 = arith.constant 0 : index
    %549 = vector.load %arg13[%c160_743, %c0_744] : memref<256x4xf32, #tpu.memory_space<vmem>>, vector<16x4xf32>
    tpu.vector_store %arg13[%c160_743, %c0_744], %548 {strides = array<i32>} : memref<256x4xf32, #tpu.memory_space<vmem>>, vector<16x4xf32>,
    %c6_745 = arith.constant 6 : index
    %c1_746 = arith.constant 1 : index
    %c0_747 = arith.constant 0 : index
    %c1_748 = arith.constant 1 : index
    %550 = vector.load %arg12[%c6_745, %c1_746, %c0_747, %c1_748] : memref<10x2x16x5xf32, #tpu.memory_space<vmem>>, vector<1x1x16x4xf32>
    %551 = vector.shape_cast %550 : vector<1x1x16x4xf32> to vector<16x4xf32>
    %c176_749 = arith.constant 176 : index
    %c0_750 = arith.constant 0 : index
    %552 = vector.load %arg13[%c176_749, %c0_750] : memref<256x4xf32, #tpu.memory_space<vmem>>, vector<16x4xf32>
    tpu.vector_store %arg13[%c176_749, %c0_750], %551 {strides = array<i32>} : memref<256x4xf32, #tpu.memory_space<vmem>>, vector<16x4xf32>,
    %c7_751 = arith.constant 7 : index
    %c0_752 = arith.constant 0 : index
    %c0_753 = arith.constant 0 : index
    %c0_754 = arith.constant 0 : index
    %553 = vector.load %arg12[%c7_751, %c0_752, %c0_753, %c0_754] : memref<10x2x16x5xf32, #tpu.memory_space<vmem>>, vector<1x1x16x4xf32>
    %554 = vector.shape_cast %553 : vector<1x1x16x4xf32> to vector<16x4xf32>
    %c192_755 = arith.constant 192 : index
    %c0_756 = arith.constant 0 : index
    %555 = vector.load %arg13[%c192_755, %c0_756] : memref<256x4xf32, #tpu.memory_space<vmem>>, vector<16x4xf32>
    tpu.vector_store %arg13[%c192_755, %c0_756], %554 {strides = array<i32>} : memref<256x4xf32, #tpu.memory_space<vmem>>, vector<16x4xf32>,
    %c7_757 = arith.constant 7 : index
    %c1_758 = arith.constant 1 : index
    %c0_759 = arith.constant 0 : index
    %c0_760 = arith.constant 0 : index
    %556 = vector.load %arg12[%c7_757, %c1_758, %c0_759, %c0_760] : memref<10x2x16x5xf32, #tpu.memory_space<vmem>>, vector<1x1x16x4xf32>
    %557 = vector.shape_cast %556 : vector<1x1x16x4xf32> to vector<16x4xf32>
    %c208_761 = arith.constant 208 : index
    %c0_762 = arith.constant 0 : index
    %558 = vector.load %arg13[%c208_761, %c0_762] : memref<256x4xf32, #tpu.memory_space<vmem>>, vector<16x4xf32>
    tpu.vector_store %arg13[%c208_761, %c0_762], %557 {strides = array<i32>} : memref<256x4xf32, #tpu.memory_space<vmem>>, vector<16x4xf32>,
    %c7_763 = arith.constant 7 : index
    %c0_764 = arith.constant 0 : index
    %c0_765 = arith.constant 0 : index
    %c1_766 = arith.constant 1 : index
    %559 = vector.load %arg12[%c7_763, %c0_764, %c0_765, %c1_766] : memref<10x2x16x5xf32, #tpu.memory_space<vmem>>, vector<1x1x16x4xf32>
    %560 = vector.shape_cast %559 : vector<1x1x16x4xf32> to vector<16x4xf32>
    %c224_767 = arith.constant 224 : index
    %c0_768 = arith.constant 0 : index
    %561 = vector.load %arg13[%c224_767, %c0_768] : memref<256x4xf32, #tpu.memory_space<vmem>>, vector<16x4xf32>
    tpu.vector_store %arg13[%c224_767, %c0_768], %560 {strides = array<i32>} : memref<256x4xf32, #tpu.memory_space<vmem>>, vector<16x4xf32>,
    %c7_769 = arith.constant 7 : index
    %c1_770 = arith.constant 1 : index
    %c0_771 = arith.constant 0 : index
    %c1_772 = arith.constant 1 : index
    %562 = vector.load %arg12[%c7_769, %c1_770, %c0_771, %c1_772] : memref<10x2x16x5xf32, #tpu.memory_space<vmem>>, vector<1x1x16x4xf32>
    %563 = vector.shape_cast %562 : vector<1x1x16x4xf32> to vector<16x4xf32>
    %c240_773 = arith.constant 240 : index
    %c0_774 = arith.constant 0 : index
    %564 = vector.load %arg13[%c240_773, %c0_774] : memref<256x4xf32, #tpu.memory_space<vmem>>, vector<16x4xf32>
    tpu.vector_store %arg13[%c240_773, %c0_774], %563 {strides = array<i32>} : memref<256x4xf32, #tpu.memory_space<vmem>>, vector<16x4xf32>,
    %c0_775 = arith.constant 0 : index
    %c0_776 = arith.constant 0 : index
    %565 = vector.load %arg13[%c0_775, %c0_776] : memref<256x4xf32, #tpu.memory_space<vmem>>, vector<256x4xf32>
    %cst_777 = arith.constant dense<0.000000e+00> : vector<32x4xf32>
    %566 = tpu.matmul %391, %565, %cst_777 {dimension_numbers = #tpu.dot_dimension_numbers<[1], [0], [0], [1], [0, 0, 1, 1], [], []>} : vector<32x256xf32>, vector<256x4xf32>, vector<32x4xf32> -> vector<32x4xf32>
    %567 = vector.broadcast %392 : vector<32x1xf32> to vector<32x4xf32>
    %568 = arith.addf %566, %567 : vector<32x4xf32>
    %cst_778 = arith.constant 0.000000e+00 : f32
    %569 = vector.broadcast %cst_778 : f32 to vector<32x4xf32>
    %570 = arith.maximumf %568, %569 : vector<32x4xf32>
    %571 = vector.extract_strided_slice %570 {offsets = [0, 0], sizes = [32, 1], strides = [1, 1]} : vector<32x4xf32> to vector<32x1xf32>
    %c256 = arith.constant 256 : index
    %c0_779 = arith.constant 0 : index
    %572 = vector.load %arg14[%c256, %c0_779] : memref<512x1xf32, #tpu.memory_space<vmem>>, vector<32x1xf32>
    tpu.vector_store %arg14[%c256, %c0_779], %571 {strides = array<i32>} : memref<512x1xf32, #tpu.memory_space<vmem>>, vector<32x1xf32>,
    %573 = vector.extract_strided_slice %570 {offsets = [0, 1], sizes = [32, 1], strides = [1, 1]} : vector<32x4xf32> to vector<32x1xf32>
    %c288 = arith.constant 288 : index
    %c0_780 = arith.constant 0 : index
    %574 = vector.load %arg14[%c288, %c0_780] : memref<512x1xf32, #tpu.memory_space<vmem>>, vector<32x1xf32>
    tpu.vector_store %arg14[%c288, %c0_780], %573 {strides = array<i32>} : memref<512x1xf32, #tpu.memory_space<vmem>>, vector<32x1xf32>,
    %575 = vector.extract_strided_slice %570 {offsets = [0, 2], sizes = [32, 1], strides = [1, 1]} : vector<32x4xf32> to vector<32x1xf32>
    %c320 = arith.constant 320 : index
    %c0_781 = arith.constant 0 : index
    %576 = vector.load %arg14[%c320, %c0_781] : memref<512x1xf32, #tpu.memory_space<vmem>>, vector<32x1xf32>
    tpu.vector_store %arg14[%c320, %c0_781], %575 {strides = array<i32>} : memref<512x1xf32, #tpu.memory_space<vmem>>, vector<32x1xf32>,
    %577 = vector.extract_strided_slice %570 {offsets = [0, 3], sizes = [32, 1], strides = [1, 1]} : vector<32x4xf32> to vector<32x1xf32>
    %c352 = arith.constant 352 : index
    %c0_782 = arith.constant 0 : index
    %578 = vector.load %arg14[%c352, %c0_782] : memref<512x1xf32, #tpu.memory_space<vmem>>, vector<32x1xf32>
    tpu.vector_store %arg14[%c352, %c0_782], %577 {strides = array<i32>} : memref<512x1xf32, #tpu.memory_space<vmem>>, vector<32x1xf32>,
    %c6_783 = arith.constant 6 : index
    %c0_784 = arith.constant 0 : index
    %c0_785 = arith.constant 0 : index
    %c0_786 = arith.constant 0 : index
    %579 = vector.load %arg12[%c6_783, %c0_784, %c0_785, %c0_786] : memref<10x2x16x5xf32, #tpu.memory_space<vmem>>, vector<1x1x16x4xf32>
    %580 = vector.shape_cast %579 : vector<1x1x16x4xf32> to vector<16x4xf32>
    %c0_787 = arith.constant 0 : index
    %c0_788 = arith.constant 0 : index
    %581 = vector.load %arg13[%c0_787, %c0_788] : memref<256x4xf32, #tpu.memory_space<vmem>>, vector<16x4xf32>
    tpu.vector_store %arg13[%c0_787, %c0_788], %580 {strides = array<i32>} : memref<256x4xf32, #tpu.memory_space<vmem>>, vector<16x4xf32>,
    %c6_789 = arith.constant 6 : index
    %c1_790 = arith.constant 1 : index
    %c0_791 = arith.constant 0 : index
    %c0_792 = arith.constant 0 : index
    %582 = vector.load %arg12[%c6_789, %c1_790, %c0_791, %c0_792] : memref<10x2x16x5xf32, #tpu.memory_space<vmem>>, vector<1x1x16x4xf32>
    %583 = vector.shape_cast %582 : vector<1x1x16x4xf32> to vector<16x4xf32>
    %c16_793 = arith.constant 16 : index
    %c0_794 = arith.constant 0 : index
    %584 = vector.load %arg13[%c16_793, %c0_794] : memref<256x4xf32, #tpu.memory_space<vmem>>, vector<16x4xf32>
    tpu.vector_store %arg13[%c16_793, %c0_794], %583 {strides = array<i32>} : memref<256x4xf32, #tpu.memory_space<vmem>>, vector<16x4xf32>,
    %c6_795 = arith.constant 6 : index
    %c0_796 = arith.constant 0 : index
    %c0_797 = arith.constant 0 : index
    %c1_798 = arith.constant 1 : index
    %585 = vector.load %arg12[%c6_795, %c0_796, %c0_797, %c1_798] : memref<10x2x16x5xf32, #tpu.memory_space<vmem>>, vector<1x1x16x4xf32>
    %586 = vector.shape_cast %585 : vector<1x1x16x4xf32> to vector<16x4xf32>
    %c32_799 = arith.constant 32 : index
    %c0_800 = arith.constant 0 : index
    %587 = vector.load %arg13[%c32_799, %c0_800] : memref<256x4xf32, #tpu.memory_space<vmem>>, vector<16x4xf32>
    tpu.vector_store %arg13[%c32_799, %c0_800], %586 {strides = array<i32>} : memref<256x4xf32, #tpu.memory_space<vmem>>, vector<16x4xf32>,
    %c6_801 = arith.constant 6 : index
    %c1_802 = arith.constant 1 : index
    %c0_803 = arith.constant 0 : index
    %c1_804 = arith.constant 1 : index
    %588 = vector.load %arg12[%c6_801, %c1_802, %c0_803, %c1_804] : memref<10x2x16x5xf32, #tpu.memory_space<vmem>>, vector<1x1x16x4xf32>
    %589 = vector.shape_cast %588 : vector<1x1x16x4xf32> to vector<16x4xf32>
    %c48_805 = arith.constant 48 : index
    %c0_806 = arith.constant 0 : index
    %590 = vector.load %arg13[%c48_805, %c0_806] : memref<256x4xf32, #tpu.memory_space<vmem>>, vector<16x4xf32>
    tpu.vector_store %arg13[%c48_805, %c0_806], %589 {strides = array<i32>} : memref<256x4xf32, #tpu.memory_space<vmem>>, vector<16x4xf32>,
    %c7_807 = arith.constant 7 : index
    %c0_808 = arith.constant 0 : index
    %c0_809 = arith.constant 0 : index
    %c0_810 = arith.constant 0 : index
    %591 = vector.load %arg12[%c7_807, %c0_808, %c0_809, %c0_810] : memref<10x2x16x5xf32, #tpu.memory_space<vmem>>, vector<1x1x16x4xf32>
    %592 = vector.shape_cast %591 : vector<1x1x16x4xf32> to vector<16x4xf32>
    %c64_811 = arith.constant 64 : index
    %c0_812 = arith.constant 0 : index
    %593 = vector.load %arg13[%c64_811, %c0_812] : memref<256x4xf32, #tpu.memory_space<vmem>>, vector<16x4xf32>
    tpu.vector_store %arg13[%c64_811, %c0_812], %592 {strides = array<i32>} : memref<256x4xf32, #tpu.memory_space<vmem>>, vector<16x4xf32>,
    %c7_813 = arith.constant 7 : index
    %c1_814 = arith.constant 1 : index
    %c0_815 = arith.constant 0 : index
    %c0_816 = arith.constant 0 : index
    %594 = vector.load %arg12[%c7_813, %c1_814, %c0_815, %c0_816] : memref<10x2x16x5xf32, #tpu.memory_space<vmem>>, vector<1x1x16x4xf32>
    %595 = vector.shape_cast %594 : vector<1x1x16x4xf32> to vector<16x4xf32>
    %c80_817 = arith.constant 80 : index
    %c0_818 = arith.constant 0 : index
    %596 = vector.load %arg13[%c80_817, %c0_818] : memref<256x4xf32, #tpu.memory_space<vmem>>, vector<16x4xf32>
    tpu.vector_store %arg13[%c80_817, %c0_818], %595 {strides = array<i32>} : memref<256x4xf32, #tpu.memory_space<vmem>>, vector<16x4xf32>,
    %c7_819 = arith.constant 7 : index
    %c0_820 = arith.constant 0 : index
    %c0_821 = arith.constant 0 : index
    %c1_822 = arith.constant 1 : index
    %597 = vector.load %arg12[%c7_819, %c0_820, %c0_821, %c1_822] : memref<10x2x16x5xf32, #tpu.memory_space<vmem>>, vector<1x1x16x4xf32>
    %598 = vector.shape_cast %597 : vector<1x1x16x4xf32> to vector<16x4xf32>
    %c96_823 = arith.constant 96 : index
    %c0_824 = arith.constant 0 : index
    %599 = vector.load %arg13[%c96_823, %c0_824] : memref<256x4xf32, #tpu.memory_space<vmem>>, vector<16x4xf32>
    tpu.vector_store %arg13[%c96_823, %c0_824], %598 {strides = array<i32>} : memref<256x4xf32, #tpu.memory_space<vmem>>, vector<16x4xf32>,
    %c7_825 = arith.constant 7 : index
    %c1_826 = arith.constant 1 : index
    %c0_827 = arith.constant 0 : index
    %c1_828 = arith.constant 1 : index
    %600 = vector.load %arg12[%c7_825, %c1_826, %c0_827, %c1_828] : memref<10x2x16x5xf32, #tpu.memory_space<vmem>>, vector<1x1x16x4xf32>
    %601 = vector.shape_cast %600 : vector<1x1x16x4xf32> to vector<16x4xf32>
    %c112_829 = arith.constant 112 : index
    %c0_830 = arith.constant 0 : index
    %602 = vector.load %arg13[%c112_829, %c0_830] : memref<256x4xf32, #tpu.memory_space<vmem>>, vector<16x4xf32>
    tpu.vector_store %arg13[%c112_829, %c0_830], %601 {strides = array<i32>} : memref<256x4xf32, #tpu.memory_space<vmem>>, vector<16x4xf32>,
    %c8_831 = arith.constant 8 : index
    %c0_832 = arith.constant 0 : index
    %c0_833 = arith.constant 0 : index
    %c0_834 = arith.constant 0 : index
    %603 = vector.load %arg12[%c8_831, %c0_832, %c0_833, %c0_834] : memref<10x2x16x5xf32, #tpu.memory_space<vmem>>, vector<1x1x16x4xf32>
    %604 = vector.shape_cast %603 : vector<1x1x16x4xf32> to vector<16x4xf32>
    %c128_835 = arith.constant 128 : index
    %c0_836 = arith.constant 0 : index
    %605 = vector.load %arg13[%c128_835, %c0_836] : memref<256x4xf32, #tpu.memory_space<vmem>>, vector<16x4xf32>
    tpu.vector_store %arg13[%c128_835, %c0_836], %604 {strides = array<i32>} : memref<256x4xf32, #tpu.memory_space<vmem>>, vector<16x4xf32>,
    %c8_837 = arith.constant 8 : index
    %c1_838 = arith.constant 1 : index
    %c0_839 = arith.constant 0 : index
    %c0_840 = arith.constant 0 : index
    %606 = vector.load %arg12[%c8_837, %c1_838, %c0_839, %c0_840] : memref<10x2x16x5xf32, #tpu.memory_space<vmem>>, vector<1x1x16x4xf32>
    %607 = vector.shape_cast %606 : vector<1x1x16x4xf32> to vector<16x4xf32>
    %c144_841 = arith.constant 144 : index
    %c0_842 = arith.constant 0 : index
    %608 = vector.load %arg13[%c144_841, %c0_842] : memref<256x4xf32, #tpu.memory_space<vmem>>, vector<16x4xf32>
    tpu.vector_store %arg13[%c144_841, %c0_842], %607 {strides = array<i32>} : memref<256x4xf32, #tpu.memory_space<vmem>>, vector<16x4xf32>,
    %c8_843 = arith.constant 8 : index
    %c0_844 = arith.constant 0 : index
    %c0_845 = arith.constant 0 : index
    %c1_846 = arith.constant 1 : index
    %609 = vector.load %arg12[%c8_843, %c0_844, %c0_845, %c1_846] : memref<10x2x16x5xf32, #tpu.memory_space<vmem>>, vector<1x1x16x4xf32>
    %610 = vector.shape_cast %609 : vector<1x1x16x4xf32> to vector<16x4xf32>
    %c160_847 = arith.constant 160 : index
    %c0_848 = arith.constant 0 : index
    %611 = vector.load %arg13[%c160_847, %c0_848] : memref<256x4xf32, #tpu.memory_space<vmem>>, vector<16x4xf32>
    tpu.vector_store %arg13[%c160_847, %c0_848], %610 {strides = array<i32>} : memref<256x4xf32, #tpu.memory_space<vmem>>, vector<16x4xf32>,
    %c8_849 = arith.constant 8 : index
    %c1_850 = arith.constant 1 : index
    %c0_851 = arith.constant 0 : index
    %c1_852 = arith.constant 1 : index
    %612 = vector.load %arg12[%c8_849, %c1_850, %c0_851, %c1_852] : memref<10x2x16x5xf32, #tpu.memory_space<vmem>>, vector<1x1x16x4xf32>
    %613 = vector.shape_cast %612 : vector<1x1x16x4xf32> to vector<16x4xf32>
    %c176_853 = arith.constant 176 : index
    %c0_854 = arith.constant 0 : index
    %614 = vector.load %arg13[%c176_853, %c0_854] : memref<256x4xf32, #tpu.memory_space<vmem>>, vector<16x4xf32>
    tpu.vector_store %arg13[%c176_853, %c0_854], %613 {strides = array<i32>} : memref<256x4xf32, #tpu.memory_space<vmem>>, vector<16x4xf32>,
    %c9_855 = arith.constant 9 : index
    %c0_856 = arith.constant 0 : index
    %c0_857 = arith.constant 0 : index
    %c0_858 = arith.constant 0 : index
    %615 = vector.load %arg12[%c9_855, %c0_856, %c0_857, %c0_858] : memref<10x2x16x5xf32, #tpu.memory_space<vmem>>, vector<1x1x16x4xf32>
    %616 = vector.shape_cast %615 : vector<1x1x16x4xf32> to vector<16x4xf32>
    %c192_859 = arith.constant 192 : index
    %c0_860 = arith.constant 0 : index
    %617 = vector.load %arg13[%c192_859, %c0_860] : memref<256x4xf32, #tpu.memory_space<vmem>>, vector<16x4xf32>
    tpu.vector_store %arg13[%c192_859, %c0_860], %616 {strides = array<i32>} : memref<256x4xf32, #tpu.memory_space<vmem>>, vector<16x4xf32>,
    %c9_861 = arith.constant 9 : index
    %c1_862 = arith.constant 1 : index
    %c0_863 = arith.constant 0 : index
    %c0_864 = arith.constant 0 : index
    %618 = vector.load %arg12[%c9_861, %c1_862, %c0_863, %c0_864] : memref<10x2x16x5xf32, #tpu.memory_space<vmem>>, vector<1x1x16x4xf32>
    %619 = vector.shape_cast %618 : vector<1x1x16x4xf32> to vector<16x4xf32>
    %c208_865 = arith.constant 208 : index
    %c0_866 = arith.constant 0 : index
    %620 = vector.load %arg13[%c208_865, %c0_866] : memref<256x4xf32, #tpu.memory_space<vmem>>, vector<16x4xf32>
    tpu.vector_store %arg13[%c208_865, %c0_866], %619 {strides = array<i32>} : memref<256x4xf32, #tpu.memory_space<vmem>>, vector<16x4xf32>,
    %c9_867 = arith.constant 9 : index
    %c0_868 = arith.constant 0 : index
    %c0_869 = arith.constant 0 : index
    %c1_870 = arith.constant 1 : index
    %621 = vector.load %arg12[%c9_867, %c0_868, %c0_869, %c1_870] : memref<10x2x16x5xf32, #tpu.memory_space<vmem>>, vector<1x1x16x4xf32>
    %622 = vector.shape_cast %621 : vector<1x1x16x4xf32> to vector<16x4xf32>
    %c224_871 = arith.constant 224 : index
    %c0_872 = arith.constant 0 : index
    %623 = vector.load %arg13[%c224_871, %c0_872] : memref<256x4xf32, #tpu.memory_space<vmem>>, vector<16x4xf32>
    tpu.vector_store %arg13[%c224_871, %c0_872], %622 {strides = array<i32>} : memref<256x4xf32, #tpu.memory_space<vmem>>, vector<16x4xf32>,
    %c9_873 = arith.constant 9 : index
    %c1_874 = arith.constant 1 : index
    %c0_875 = arith.constant 0 : index
    %c1_876 = arith.constant 1 : index
    %624 = vector.load %arg12[%c9_873, %c1_874, %c0_875, %c1_876] : memref<10x2x16x5xf32, #tpu.memory_space<vmem>>, vector<1x1x16x4xf32>
    %625 = vector.shape_cast %624 : vector<1x1x16x4xf32> to vector<16x4xf32>
    %c240_877 = arith.constant 240 : index
    %c0_878 = arith.constant 0 : index
    %626 = vector.load %arg13[%c240_877, %c0_878] : memref<256x4xf32, #tpu.memory_space<vmem>>, vector<16x4xf32>
    tpu.vector_store %arg13[%c240_877, %c0_878], %625 {strides = array<i32>} : memref<256x4xf32, #tpu.memory_space<vmem>>, vector<16x4xf32>,
    %c0_879 = arith.constant 0 : index
    %c0_880 = arith.constant 0 : index
    %627 = vector.load %arg13[%c0_879, %c0_880] : memref<256x4xf32, #tpu.memory_space<vmem>>, vector<256x4xf32>
    %cst_881 = arith.constant dense<0.000000e+00> : vector<32x4xf32>
    %628 = tpu.matmul %391, %627, %cst_881 {dimension_numbers = #tpu.dot_dimension_numbers<[1], [0], [0], [1], [0, 0, 1, 1], [], []>} : vector<32x256xf32>, vector<256x4xf32>, vector<32x4xf32> -> vector<32x4xf32>
    %629 = vector.broadcast %392 : vector<32x1xf32> to vector<32x4xf32>
    %630 = arith.addf %628, %629 : vector<32x4xf32>
    %cst_882 = arith.constant 0.000000e+00 : f32
    %631 = vector.broadcast %cst_882 : f32 to vector<32x4xf32>
    %632 = arith.maximumf %630, %631 : vector<32x4xf32>
    %633 = vector.extract_strided_slice %632 {offsets = [0, 0], sizes = [32, 1], strides = [1, 1]} : vector<32x4xf32> to vector<32x1xf32>
    %c384 = arith.constant 384 : index
    %c0_883 = arith.constant 0 : index
    %634 = vector.load %arg14[%c384, %c0_883] : memref<512x1xf32, #tpu.memory_space<vmem>>, vector<32x1xf32>
    tpu.vector_store %arg14[%c384, %c0_883], %633 {strides = array<i32>} : memref<512x1xf32, #tpu.memory_space<vmem>>, vector<32x1xf32>,
    %635 = vector.extract_strided_slice %632 {offsets = [0, 1], sizes = [32, 1], strides = [1, 1]} : vector<32x4xf32> to vector<32x1xf32>
    %c416 = arith.constant 416 : index
    %c0_884 = arith.constant 0 : index
    %636 = vector.load %arg14[%c416, %c0_884] : memref<512x1xf32, #tpu.memory_space<vmem>>, vector<32x1xf32>
    tpu.vector_store %arg14[%c416, %c0_884], %635 {strides = array<i32>} : memref<512x1xf32, #tpu.memory_space<vmem>>, vector<32x1xf32>,
    %637 = vector.extract_strided_slice %632 {offsets = [0, 2], sizes = [32, 1], strides = [1, 1]} : vector<32x4xf32> to vector<32x1xf32>
    %c448 = arith.constant 448 : index
    %c0_885 = arith.constant 0 : index
    %638 = vector.load %arg14[%c448, %c0_885] : memref<512x1xf32, #tpu.memory_space<vmem>>, vector<32x1xf32>
    tpu.vector_store %arg14[%c448, %c0_885], %637 {strides = array<i32>} : memref<512x1xf32, #tpu.memory_space<vmem>>, vector<32x1xf32>,
    %639 = vector.extract_strided_slice %632 {offsets = [0, 3], sizes = [32, 1], strides = [1, 1]} : vector<32x4xf32> to vector<32x1xf32>
    %c480 = arith.constant 480 : index
    %c0_886 = arith.constant 0 : index
    %640 = vector.load %arg14[%c480, %c0_886] : memref<512x1xf32, #tpu.memory_space<vmem>>, vector<32x1xf32>
    tpu.vector_store %arg14[%c480, %c0_886], %639 {strides = array<i32>} : memref<512x1xf32, #tpu.memory_space<vmem>>, vector<32x1xf32>,
    %c0_887 = arith.constant 0 : index
    %c0_888 = arith.constant 0 : index
    %641 = vector.load %arg6[%c0_887, %c0_888] : memref<100x512xf32, #tpu.memory_space<vmem>>, vector<100x512xf32>
    %c0_889 = arith.constant 0 : index
    %c0_890 = arith.constant 0 : index
    %642 = vector.load %arg14[%c0_889, %c0_890] : memref<512x1xf32, #tpu.memory_space<vmem>>, vector<512x1xf32>
    %cst_891 = arith.constant dense<0.000000e+00> : vector<100x1xf32>
    %643 = tpu.matmul %641, %642, %cst_891 {dimension_numbers = #tpu.dot_dimension_numbers<[1], [0], [0], [1], [0, 0, 1, 1], [], []>} : vector<100x512xf32>, vector<512x1xf32>, vector<100x1xf32> -> vector<100x1xf32>
    %c0_892 = arith.constant 0 : index
    %c0_893 = arith.constant 0 : index
    %644 = vector.load %arg7[%c0_892, %c0_893] : memref<100x1xf32, #tpu.memory_space<vmem>>, vector<100x1xf32>
    %645 = arith.addf %643, %644 : vector<100x1xf32>
    %cst_894 = arith.constant 0.000000e+00 : f32
    %646 = vector.broadcast %cst_894 : f32 to vector<100x1xf32>
    %647 = arith.maximumf %645, %646 : vector<100x1xf32>
    %c0_895 = arith.constant 0 : index
    %c0_896 = arith.constant 0 : index
    %648 = vector.load %arg8[%c0_895, %c0_896] : memref<10x100xf32, #tpu.memory_space<vmem>>, vector<10x100xf32>
    %cst_897 = arith.constant dense<0.000000e+00> : vector<10x1xf32>
    %649 = tpu.matmul %648, %647, %cst_897 {dimension_numbers = #tpu.dot_dimension_numbers<[1], [0], [0], [1], [0, 0, 1, 1], [], []>} : vector<10x100xf32>, vector<100x1xf32>, vector<10x1xf32> -> vector<10x1xf32>
    %c0_898 = arith.constant 0 : index
    %c0_899 = arith.constant 0 : index
    %650 = vector.load %arg9[%c0_898, %c0_899] : memref<10x1xf32, #tpu.memory_space<vmem>>, vector<10x1xf32>
    %651 = arith.addf %649, %650 : vector<10x1xf32>
    %c0_900 = arith.constant 0 : index
    %c0_901 = arith.constant 0 : index
    %c0_902 = arith.constant 0 : index
    %652 = vector.load %arg10[%c0_900, %c0_901, %c0_902] : memref<1x10x1xf32, #tpu.memory_space<vmem>>, vector<1x10x1xf32>
    %653 = vector.shape_cast %652 : vector<1x10x1xf32> to vector<10x1xf32>
    %654 = vector.shape_cast %651 : vector<10x1xf32> to vector<1x10x1xf32>
    tpu.vector_store %arg10[%c0_900, %c0_901, %c0_902], %654 {strides = array<i32>} : memref<1x10x1xf32, #tpu.memory_space<vmem>>, vector<1x10x1xf32>,
    return
  }
  func.func @transform_0(%arg0: i32) -> (i32, i32, i32, i32, i32) {
    %c0_i32 = arith.constant 0 : i32
    %c0_i32_0 = arith.constant 0 : i32
    %c0_i32_1 = arith.constant 0 : i32
    %c0_i32_2 = arith.constant 0 : i32
    %c0_i32_3 = arith.constant 0 : i32
    return %arg0, %c0_i32, %c0_i32_0, %c0_i32_1, %c0_i32_2 : i32, i32, i32, i32, i32
  }
  func.func @transform_1(%arg0: i32) -> (i32, i32) {
    %c0_i32 = arith.constant 0 : i32
    %c0_i32_0 = arith.constant 0 : i32
    %c0_i32_1 = arith.constant 0 : i32
    return %c0_i32, %c0_i32_0 : i32, i32
  }
  func.func @transform_2(%arg0: i32) -> (i32, i32) {
    %c0_i32 = arith.constant 0 : i32
    %c0_i32_0 = arith.constant 0 : i32
    %c0_i32_1 = arith.constant 0 : i32
    return %c0_i32, %c0_i32_0 : i32, i32
  }
  func.func @transform_3(%arg0: i32) -> (i32, i32) {
    %c0_i32 = arith.constant 0 : i32
    %c0_i32_0 = arith.constant 0 : i32
    %c0_i32_1 = arith.constant 0 : i32
    return %c0_i32, %c0_i32_0 : i32, i32
  }
  func.func @transform_4(%arg0: i32) -> (i32, i32) {
    %c0_i32 = arith.constant 0 : i32
    %c0_i32_0 = arith.constant 0 : i32
    %c0_i32_1 = arith.constant 0 : i32
    return %c0_i32, %c0_i32_0 : i32, i32
  }
  func.func @transform_5(%arg0: i32) -> (i32, i32) {
    %c0_i32 = arith.constant 0 : i32
    %c0_i32_0 = arith.constant 0 : i32
    %c0_i32_1 = arith.constant 0 : i32
    return %c0_i32, %c0_i32_0 : i32, i32
  }
  func.func @transform_6(%arg0: i32) -> (i32, i32) {
    %c0_i32 = arith.constant 0 : i32
    %c0_i32_0 = arith.constant 0 : i32
    %c0_i32_1 = arith.constant 0 : i32
    return %c0_i32, %c0_i32_0 : i32, i32
  }
  func.func @transform_7(%arg0: i32) -> (i32, i32) {
    %c0_i32 = arith.constant 0 : i32
    %c0_i32_0 = arith.constant 0 : i32
    %c0_i32_1 = arith.constant 0 : i32
    return %c0_i32, %c0_i32_0 : i32, i32
  }
  func.func @transform_8(%arg0: i32) -> (i32, i32) {
    %c0_i32 = arith.constant 0 : i32
    %c0_i32_0 = arith.constant 0 : i32
    %c0_i32_1 = arith.constant 0 : i32
    return %c0_i32, %c0_i32_0 : i32, i32
  }
  func.func @transform_9(%arg0: i32) -> (i32, i32, i32) {
    %c0_i32 = arith.constant 0 : i32
    %c0_i32_0 = arith.constant 0 : i32
    %c0_i32_1 = arith.constant 0 : i32
    return %arg0, %c0_i32, %c0_i32_0 : i32, i32, i32
  }
}

</mosaic_0001>

<bundles_post_ra>
// kernel: seqnet_forward.1
= control target key start
LH: loop header
LB: loop body
LE: loop exit
PB: predicated region body
PF: predicated region fallthrough
CT: control target
= control target key end

     0   :  { %s5045_s30 = smov 0   ;;  %s6930_s0 = inlined_call_operand.vmem [shape: f32[2,2,10,6,10], index: 0, kind: input, shape index: {}]   ;;  %s6931_s1 = inlined_call_operand.vmem [shape: f32[16,75], index: 1, kind: input, shape index: {}]   ;;  %s6932_s2 = inlined_call_operand.vmem [shape: f32[16,1], index: 2, kind: input, shape index: {}]   ;;  %s6933_s3 = inlined_call_operand.vmem [shape: f32[32,256], index: 3, kind: input, shape index: {}]   ;;  %s6934_s4 = inlined_call_operand.vmem [shape: f32[32,1], index: 4, kind: input, shape index: {}]   ;;  %s6935_s5 = inlined_call_operand.vmem [shape: f32[100,512], index: 5, kind: input, shape index: {}]   ;;  %s6936_s6 = inlined_call_operand.vmem [shape: f32[100,1], index: 6, kind: input, shape index: {}]   ;;  %s6937_s7 = inlined_call_operand.vmem [shape: f32[10,100], index: 7, kind: input, shape index: {}]   ;;  %s6938_s8 = inlined_call_operand.vmem [shape: f32[10,1], index: 8, kind: input, shape index: {}]   ;;  %s6939_s9 = inlined_call_operand.vmem [shape: f32[2,10,1], index: 9, kind: output, shape index: {}]  }
   0x1 LB: > { %s4123_s10 = sadd.s32 4294967295, %s4988_s30   ;;  %p4127_p0 = scmp.ge.s32.totalorder %s4988_s30, 1  ;;  %s4988_s30 = sphi %s5045_s30, %s19_s30  }
   0x2   : > { %p287_p1 = scmp.lt.s32.totalorder %s4988_s30, 3 }
   0x4   : > { %p288_p2 = pnand %p4127_p0, %p287_p1 }
   0x6   : > { %291 = sbr.rel (%p288_p2) target bundleno = 1759 (0x6df), region = 56 }
   0xb   : > { %p323_p3 = scmp.lt.s32.totalorder %s4123_s10, 1  ;;  %s4990_s15 = smov 126   ;;  %vm341_vm0 = vcmask 59392   ;;  %vm1283_vm1 = vcmask 613376   ;;  %v5118_v28 = vld [vmem:[%s6931_s1] sm:$0xff]  ;;  %vm1290_vm2 = vcmask 1042432  }
   0xc   : > { %s4991_s16 = smov 127   ;;  %4770 = vmatprep.mubr.msk.f32.mxu0 %vm1283_vm1, %v5118_v28  ;;  %4793 = vmatprep.mubr.msk.f32.mxu1 %vm1283_vm1, %v5118_v28  ;;  %vm1218_vm3 = vcmask 39936   ;;  %vm1372_vm4 = vcmask 7168   ;;  %vm1376_vm5 = vcmask 15368   ;;  %s4994_s29 = smov 125   ;;  %vm2331_vm6 = vcmask 31744  }
   0xd   : > { %s6959_s10 = smov (!%p323_p3, %s4123_s10), 1  ;;  %vm1389_vm7 = vcmask 23568   ;;  %vm1400_vm8 = vcmask 31768   ;;  %vm1411_vm9 = vcmask 39968   ;;  %vm3979_vm10 = vcmask 818176  }
   0xe   : > { %s4963_s11 = smul.u32 160, %s6959_s10  ;;  %vm3986_vm11 = vcmask 1043456   ;;  %vm4066_vm12 = vcmask 1024  }
  0x10   : > { %s5059_s14 = scalar_lea.vmem %s6930_s0, %s4963_s11 }
  0x11   : > { %v4283_v0 = vld [vmem:[%s5059_s14 + $0x10] sm:$0x7]  ;;  %v4275_v1 = vld [vmem:[%s5059_s14 + $0x13] sm:$0x7]  ;;  %v4235_v3 = vld [vmem:[%s5059_s14 + $0x5b] sm:$0x7] }
  0x12   : > { %1186 = vrot.lane.b32.xlu0 %v4283_v0, %s4990_s15  ;;  %1138 = vrot.lane.b32.xlu1 %v4275_v1, %s4991_s16  ;;  %v4267_v2 = vld [vmem:[%s5059_s14 + $0x10] sm:$0x7]  ;;  %v4243_v4 = vld [vmem:[%s5059_s14 + $0x58] sm:$0x7] }
  0x13   : > { %v4227_v5 = vld [vmem:[%s5059_s14 + $0x58] sm:$0x7]  ;;  %v4203_v6 = vld [vmem:[%s5059_s14 + $0x8] sm:$0x7]  ;;  %v4195_v7 = vld [vmem:[%s5059_s14 + $0xb] sm:$0x7] }
  0x14   : > { %v4187_v8 = vld [vmem:[%s5059_s14 + $0x8] sm:$0x7]  ;;  %v4155_v9 = vld [vmem:[%s5059_s14 + $0x53] sm:$0x7]  ;;  %v4163_v10 = vld [vmem:[%s5059_s14 + $0x50] sm:$0x7] }
  0x15   : > { %v4147_v11 = vld [vmem:[%s5059_s14 + $0x50] sm:$0x7]  ;;  %v414_v12 = vld [vmem:[%s5059_s14 + $0x3] sm:$0x7]  ;;  %v366_v13 = vld [vmem:[%s5059_s14] sm:$0x7] }
  0x16   : > { %1090 = vrot.lane.b32.xlu0 %v4267_v2, %s4991_s16  ;;  %961 = vrot.lane.b32.xlu1 %v4235_v3, %s4991_s16  ;;  %v4259_v14 = vld [vmem:[%s5059_s14 + $0x13] sm:$0x7]  ;;  %v4251_v15 = vld [vmem:[%s5059_s14 + $0x10] sm:$0x7] }
  0x17   : > { %1066 = vst.msk [vmem:[#allocation2 + $0x3f] sm:$0x7] %vm341_vm0, %v4259_v14  ;;  %1050 = vst.msk [vmem:[#allocation2 + $0x3c] sm:$0x7] %vm341_vm0, %v4251_v15  ;;  %v4219_v16 = vld [vmem:[%s5059_s14 + $0x5b] sm:$0x7] }
  0x18   : > { %v4285_v17 = vld [vmem:[%s5059_s14 + $0x20] sm:$0x7]  ;;  %889 = vst.msk [vmem:[#allocation2 + $0x30] sm:$0x7] %vm341_vm0, %v4219_v16  ;;  %v4211_v19 = vld [vmem:[%s5059_s14 + $0x58] sm:$0x7] }
  0x19   : > { %v462_v18 = vld [vmem:[%s5059_s14] sm:$0x7]  ;;  %873 = vst.msk [vmem:[#allocation2 + $0x2d] sm:$0x7] %vm341_vm0, %v4211_v19  ;;  %v4171_v20 = vld [vmem:[%s5059_s14 + $0x8] sm:$0x7] }
  0x1a   : > { %1009 = vrot.lane.b32.xlu0 %v4243_v4, %s4990_s15  ;;  %913 = vrot.lane.b32.xlu1 %v4227_v5, %s4991_s16  ;;  %v4179_v21 = vld [vmem:[%s5059_s14 + $0xb] sm:$0x7]  ;;  %696 = vst.msk [vmem:[#allocation2 + $0x1e] sm:$0x7] %vm341_vm0, %v4171_v20  ;;  %v4131_v22 = vld [vmem:[%s5059_s14 + $0x50] sm:$0x7] }
  0x1b   : > { %712 = vst.msk [vmem:[#allocation2 + $0x21] sm:$0x7] %vm341_vm0, %v4179_v21  ;;  %v4139_v23 = vld [vmem:[%s5059_s14 + $0x53] sm:$0x7]  ;;  %v4277_v24 = vld [vmem:[%s5059_s14 + $0x23] sm:$0x7] }
  0x1c   : > { %v4269_v25 = vld [vmem:[%s5059_s14 + $0x20] sm:$0x7]  ;;  %519 = vst.msk [vmem:[#allocation2 + $0xf] sm:$0x7] %vm341_vm0, %v4131_v22  ;;  %535 = vst.msk [vmem:[#allocation2 + $0x12] sm:$0x7] %vm341_vm0, %v4139_v23 }
  0x1d   : > { %v333_v26 = vld [vmem:[%s5059_s14] sm:$0x7]  ;;  %v350_v27 = vld [vmem:[%s5059_s14 + $0x3] sm:$0x7]  ;;  %v4245_v30 = vld [vmem:[%s5059_s14 + $0x68] sm:$0x7] }
  0x1e   : > { %832 = vrot.lane.b32.xlu1 %v4203_v6, %s4990_s15  ;;  %784 = vrot.lane.b32.xlu0 %v4195_v7, %s4991_s16  ;;  %342 = vst.msk [vmem:[#allocation2] sm:$0x7] %vm341_vm0, %v333_v26  ;;  %358 = vst.msk [vmem:[#allocation2 + $0x3] sm:$0x7] %vm341_vm0, %v350_v27  ;;  %v4261_v29 = vld [vmem:[%s5059_s14 + $0x23] sm:$0x7] }
  0x1f   : > { %v4237_v31 = vld [vmem:[%s5059_s14 + $0x6b] sm:$0x7]  ;;  %1068 = vst.msk [vmem:[#allocation2 + $0xdf] sm:$0x7] %vm341_vm0, %v4261_v29  ;;  %v4253_v32 = vld [vmem:[%s5059_s14 + $0x20] sm:$0x7] }
  0x20   : > { %1052 = vst.msk [vmem:[#allocation2 + $0xdc] sm:$0x7] %vm341_vm0, %v4253_v32  ;;  %v4221_v33 = vld [vmem:[%s5059_s14 + $0x6b] sm:$0x7]  ;;  %v4213_v34 = vld [vmem:[%s5059_s14 + $0x68] sm:$0x7] }
  0x21   : > { %891 = vst.msk [vmem:[#allocation2 + $0xd0] sm:$0x7] %vm341_vm0, %v4221_v33  ;;  %875 = vst.msk [vmem:[#allocation2 + $0xcd] sm:$0x7] %vm341_vm0, %v4213_v34  ;;  %v4173_v35 = vld [vmem:[%s5059_s14 + $0x18] sm:$0x7] }
  0x22   : > { %736 = vrot.lane.b32.xlu0 %v4187_v8, %s4991_s16  ;;  %607 = vrot.lane.b32.xlu1 %v4155_v9, %s4991_s16  ;;  %v4181_v36 = vld [vmem:[%s5059_s14 + $0x1b] sm:$0x7]  ;;  %698 = vst.msk [vmem:[#allocation2 + $0xbe] sm:$0x7] %vm341_vm0, %v4173_v35  ;;  %v4229_v38 = vld [vmem:[%s5059_s14 + $0x68] sm:$0x7] }
  0x23   : > { %714 = vst.msk [vmem:[#allocation2 + $0xc1] sm:$0x7] %vm341_vm0, %v4181_v36  ;;  %v4197_v37 = vld [vmem:[%s5059_s14 + $0x1b] sm:$0x7]  ;;  %v4284_v40 = vld [vmem:[%s5059_s14 + $0x18] sm:$0x7] }
  0x24   : > { %v4260_v39 = vld [vmem:[%s5059_s14 + $0x1b] sm:$0x7]  ;;  %v4205_v41 = vld [vmem:[%s5059_s14 + $0x18] sm:$0x7]  ;;  %v4133_v45 = vld [vmem:[%s5059_s14 + $0x60] sm:$0x7] }
  0x25   : > { %1067 = vst.msk [vmem:[#allocation2 + $0x8f] sm:$0x7] %vm341_vm0, %v4260_v39  ;;  %v4268_v42 = vld [vmem:[%s5059_s14 + $0x18] sm:$0x7]  ;;  %521 = vst.msk [vmem:[#allocation2 + $0xaf] sm:$0x7] %vm341_vm0, %v4133_v45 }
  0x26   : > { %655 = vrot.lane.b32.xlu0 %v4163_v10, %s4990_s15  ;;  %559 = vrot.lane.b32.xlu1 %v4147_v11, %s4991_s16  ;;  %v4189_v43 = vld [vmem:[%s5059_s14 + $0x18] sm:$0x7]  ;;  %v4141_v46 = vld [vmem:[%s5059_s14 + $0x63] sm:$0x7] }
  0x27   : > { %v4252_v44 = vld [vmem:[%s5059_s14 + $0x18] sm:$0x7]  ;;  %v4157_v47 = vld [vmem:[%s5059_s14 + $0x63] sm:$0x7]  ;;  %v4276_v48 = vld [vmem:[%s5059_s14 + $0x1b] sm:$0x7] }
  0x28   : > { %1051 = vst.msk [vmem:[#allocation2 + $0x8c] sm:$0x7] %vm341_vm0, %v4252_v44  ;;  %537 = vst.msk [vmem:[#allocation2 + $0xb2] sm:$0x7] %vm341_vm0, %v4141_v46  ;;  %v4220_v49 = vld [vmem:[%s5059_s14 + $0x63] sm:$0x7] }
  0x29   : > { %v335_v50 = vld [vmem:[%s5059_s14 + $0x10] sm:$0x7]  ;;  %890 = vst.msk [vmem:[#allocation2 + $0x80] sm:$0x7] %vm341_vm0, %v4220_v49  ;;  %v352_v51 = vld [vmem:[%s5059_s14 + $0x13] sm:$0x7] }
  0x2a   : > { %430 = vrot.lane.b32.xlu1 %v414_v12, %s4991_s16  ;;  %382 = vrot.lane.b32.xlu0 %v366_v13, %s4991_s16  ;;  %344 = vst.msk [vmem:[#allocation2 + $0xa0] sm:$0x7] %vm341_vm0, %v335_v50  ;;  %v4236_v52 = vld [vmem:[%s5059_s14 + $0x63] sm:$0x7]  ;;  %v4165_v53 = vld [vmem:[%s5059_s14 + $0x60] sm:$0x7] }
  0x2b   : > { %360 = vst.msk [vmem:[#allocation2 + $0xa3] sm:$0x7] %vm341_vm0, %v352_v51  ;;  %v4149_v54 = vld [vmem:[%s5059_s14 + $0x60] sm:$0x7]  ;;  %v368_v57 = vld [vmem:[%s5059_s14 + $0x10] sm:$0x7] }
  0x2c   : > { %v4244_v55 = vld [vmem:[%s5059_s14 + $0x60] sm:$0x7]  ;;  %v4172_v59 = vld [vmem:[%s5059_s14 + $0x10] sm:$0x7]  ;;  %v4180_v60 = vld [vmem:[%s5059_s14 + $0x13] sm:$0x7] }
  0x2d   : > { %v4212_v56 = vld [vmem:[%s5059_s14 + $0x60] sm:$0x7]  ;;  %697 = vst.msk [vmem:[#allocation2 + $0x6e] sm:$0x7] %vm341_vm0, %v4172_v59  ;;  %713 = vst.msk [vmem:[#allocation2 + $0x71] sm:$0x7] %vm341_vm0, %v4180_v60 }
  0x2e   : > { %1190 = vrot.lane.b32.xlu1 %v4285_v17, %s4990_s15  ;;  %478 = vrot.lane.b32.xlu0 %v462_v18, %s4990_s15  ;;  %874 = vst.msk [vmem:[#allocation2 + $0x7d] sm:$0x7] %vm341_vm0, %v4212_v56  ;;  %v4228_v58 = vld [vmem:[%s5059_s14 + $0x60] sm:$0x7]  ;;  %v464_v61 = vld [vmem:[%s5059_s14 + $0x10] sm:$0x7] }
  0x2f   : > { %v416_v62 = vld [vmem:[%s5059_s14 + $0x13] sm:$0x7]  ;;  %v4204_v63 = vld [vmem:[%s5059_s14 + $0x10] sm:$0x7]  ;;  %v4132_v1 = vld [vmem:[%s5059_s14 + $0x58] sm:$0x7] }
  0x30   : > { %v4196_v0 = vld [vmem:[%s5059_s14 + $0x13] sm:$0x7]  ;;  %v4140_v2 = vld [vmem:[%s5059_s14 + $0x5b] sm:$0x7]  ;;  %520 = vst.msk [vmem:[#allocation2 + $0x5f] sm:$0x7] %vm341_vm0, %v4132_v1 }
  0x31   : > { %536 = vst.msk [vmem:[#allocation2 + $0x62] sm:$0x7] %vm341_vm0, %v4140_v2  ;;  %v4156_v3 = vld [vmem:[%s5059_s14 + $0x5b] sm:$0x7]  ;;  %v4188_v4 = vld [vmem:[%s5059_s14 + $0x10] sm:$0x7] }
  0x32   : > { %1142 = vrot.lane.b32.xlu1 %v4277_v24, %s4991_s16  ;;  %1094 = vrot.lane.b32.xlu0 %v4269_v25, %s4991_s16  ;;  %v4263_v5 = vld [vmem:[%s5059_s14 + $0x33] sm:$0x7]  ;;  %v334_v6 = vld [vmem:[%s5059_s14 + $0x8] sm:$0x7] }
  0x33   : > { %1070 = vst.msk [vmem:[#allocation2 + $0x17f] sm:$0x7] %vm341_vm0, %v4263_v5  ;;  %343 = vst.msk [vmem:[#allocation2 + $0x50] sm:$0x7] %vm341_vm0, %v334_v6  ;;  %v351_v7 = vld [vmem:[%s5059_s14 + $0xb] sm:$0x7] }
  0x34   : > { %v4287_v8 = vld [vmem:[%s5059_s14 + $0x30] sm:$0x7]  ;;  %v4164_v9 = vld [vmem:[%s5059_s14 + $0x58] sm:$0x7]  ;;  %359 = vst.msk [vmem:[#allocation2 + $0x53] sm:$0x7] %vm341_vm0, %v351_v7 }
  0x35   : > { %v4271_v10 = vld [vmem:[%s5059_s14 + $0x30] sm:$0x7]  ;;  %v4148_v11 = vld [vmem:[%s5059_s14 + $0x58] sm:$0x7]  ;;  %v367_v13 = vld [vmem:[%s5059_s14 + $0x8] sm:$0x7] }
  0x36   : > { %1013 = vrot.lane.b32.xlu1 %v4245_v30, %s4990_s15  ;;  %965 = vrot.lane.b32.xlu0 %v4237_v31, %s4991_s16  ;;  %v4255_v12 = vld [vmem:[%s5059_s14 + $0x30] sm:$0x7]  ;;  %v4279_v14 = vld [vmem:[%s5059_s14 + $0x33] sm:$0x7] }
  0x37   : > { %1054 = vst.msk [vmem:[#allocation2 + $0x17c] sm:$0x7] %vm341_vm0, %v4255_v12  ;;  %v4223_v15 = vld [vmem:[%s5059_s14 + $0x7b] sm:$0x7]  ;;  %v463_v16 = vld [vmem:[%s5059_s14 + $0x8] sm:$0x7] }
  0x38   : > { %893 = vst.msk [vmem:[#allocation2 + $0x170] sm:$0x7] %vm341_vm0, %v4223_v15  ;;  %v415_v17 = vld [vmem:[%s5059_s14 + $0xb] sm:$0x7]  ;;  %v4215_v18 = vld [vmem:[%s5059_s14 + $0x78] sm:$0x7] }
  0x39   : > { %877 = vst.msk [vmem:[#allocation2 + $0x16d] sm:$0x7] %vm341_vm0, %v4215_v18  ;;  %v4247_v19 = vld [vmem:[%s5059_s14 + $0x78] sm:$0x7]  ;;  %v4239_v20 = vld [vmem:[%s5059_s14 + $0x7b] sm:$0x7] }
  0x3a   : > { %788 = vrot.lane.b32.xlu1 %v4197_v37, %s4991_s16  ;;  %917 = vrot.lane.b32.xlu0 %v4229_v38, %s4991_s16  ;;  %v4175_v21 = vld [vmem:[%s5059_s14 + $0x28] sm:$0x7]  ;;  %v4183_v22 = vld [vmem:[%s5059_s14 + $0x2b] sm:$0x7] }
  0x3b   : > { %700 = vst.msk [vmem:[#allocation2 + $0x15e] sm:$0x7] %vm341_vm0, %v4175_v21  ;;  %716 = vst.msk [vmem:[#allocation2 + $0x161] sm:$0x7] %vm341_vm0, %v4183_v22  ;;  %v4199_v23 = vld [vmem:[%s5059_s14 + $0x2b] sm:$0x7] }
  0x3c   : > { %v4231_v24 = vld [vmem:[%s5059_s14 + $0x78] sm:$0x7]  ;;  %v4262_v25 = vld [vmem:[%s5059_s14 + $0x2b] sm:$0x7]  ;;  %v4286_v26 = vld [vmem:[%s5059_s14 + $0x28] sm:$0x7] }
  0x3d   : > { %1069 = vst.msk [vmem:[#allocation2 + $0x12f] sm:$0x7] %vm341_vm0, %v4262_v25  ;;  %v4207_v27 = vld [vmem:[%s5059_s14 + $0x28] sm:$0x7]  ;;  %v4135_v32 = vld [vmem:[%s5059_s14 + $0x70] sm:$0x7] }
  0x3e   : > { %1188 = vrot.lane.b32.xlu1 %v4284_v40, %s4990_s15  ;;  %836 = vrot.lane.b32.xlu0 %v4205_v41, %s4990_s15  ;;  %v4270_v29 = vld [vmem:[%s5059_s14 + $0x28] sm:$0x7]  ;;  %523 = vst.msk [vmem:[#allocation2 + $0x14f] sm:$0x7] %vm341_vm0, %v4135_v32  ;;  %v4143_v33 = vld [vmem:[%s5059_s14 + $0x73] sm:$0x7] }
  0x3f   : > { %v4191_v30 = vld [vmem:[%s5059_s14 + $0x28] sm:$0x7]  ;;  %v4159_v34 = vld [vmem:[%s5059_s14 + $0x73] sm:$0x7]  ;;  %v4278_v35 = vld [vmem:[%s5059_s14 + $0x2b] sm:$0x7] }
  0x40   : > { %v4254_v31 = vld [vmem:[%s5059_s14 + $0x28] sm:$0x7]  ;;  %539 = vst.msk [vmem:[#allocation2 + $0x152] sm:$0x7] %vm341_vm0, %v4143_v33  ;;  %v4222_v36 = vld [vmem:[%s5059_s14 + $0x73] sm:$0x7] }
  0x41   : > { %1053 = vst.msk [vmem:[#allocation2 + $0x12c] sm:$0x7] %vm341_vm0, %v4254_v31  ;;  %v337_v37 = vld [vmem:[%s5059_s14 + $0x20] sm:$0x7]  ;;  %v354_v38 = vld [vmem:[%s5059_s14 + $0x23] sm:$0x7] }
  0x42   : > { %1092 = vrot.lane.b32.xlu1 %v4268_v42, %s4991_s16  ;;  %740 = vrot.lane.b32.xlu0 %v4189_v43, %s4991_s16  ;;  %892 = vst.msk [vmem:[#allocation2 + $0x120] sm:$0x7] %vm341_vm0, %v4222_v36  ;;  %346 = vst.msk [vmem:[#allocation2 + $0x140] sm:$0x7] %vm341_vm0, %v337_v37  ;;  %v4238_v39 = vld [vmem:[%s5059_s14 + $0x73] sm:$0x7] }
  0x43   : > { %362 = vst.msk [vmem:[#allocation2 + $0x143] sm:$0x7] %vm341_vm0, %v354_v38  ;;  %v4167_v40 = vld [vmem:[%s5059_s14 + $0x70] sm:$0x7]  ;;  %v418_v59 = vld [vmem:[%s5059_s14 + $0x23] sm:$0x7] }
  0x44   : > { %v4151_v43 = vld [vmem:[%s5059_s14 + $0x70] sm:$0x7]  ;;  %v4134_v60 = vld [vmem:[%s5059_s14 + $0x68] sm:$0x7]  ;;  %v4198_v2 = vld [vmem:[%s5059_s14 + $0x23] sm:$0x7] }
  0x45   : > { %v4246_v44 = vld [vmem:[%s5059_s14 + $0x70] sm:$0x7]  ;;  %522 = vst.msk [vmem:[#allocation2 + $0xff] sm:$0x7] %vm341_vm0, %v4134_v60  ;;  %v4158_v6 = vld [vmem:[%s5059_s14 + $0x6b] sm:$0x7] }
  0x46   : > { %611 = vrot.lane.b32.xlu1 %v4157_v47, %s4991_s16  ;;  %1140 = vrot.lane.b32.xlu0 %v4276_v48, %s4991_s16  ;;  %v4214_v47 = vld [vmem:[%s5059_s14 + $0x70] sm:$0x7]  ;;  %v370_v48 = vld [vmem:[%s5059_s14 + $0x20] sm:$0x7] }
  0x47   : > { %876 = vst.msk [vmem:[#allocation2 + $0x11d] sm:$0x7] %vm341_vm0, %v4214_v47  ;;  %v4166_v15 = vld [vmem:[%s5059_s14 + $0x68] sm:$0x7]  ;;  %v369_v21 = vld [vmem:[%s5059_s14 + $0x18] sm:$0x7] }
  0x48   : > { %v4257_v22 = vld [vmem:[%s5059_s14 + $0x40] sm:$0x7]  ;;  %v5357_v37 = vld [vmem:[%s6931_s1 + $0x8] sm:$0xff] }
  0x49   : > { %1056 = vst.msk [vmem:[#allocation2 + $0x21c] sm:$0x7] %vm341_vm0, %v4257_v22  ;;  %v4249_v38 = vld [vmem:[%s5059_s14 + $0x88] sm:$0x7]  ;;  %v356_v22 = vld [vmem:[%s5059_s14 + $0x33] sm:$0x7] }
  0x4a   : > { %963 = vrot.lane.b32.xlu1 %v4236_v52, %s4991_s16  ;;  %659 = vrot.lane.b32.xlu0 %v4165_v53, %s4990_s15  ;;  %v4230_v52 = vld [vmem:[%s5059_s14 + $0x70] sm:$0x7]  ;;  %v4174_v53 = vld [vmem:[%s5059_s14 + $0x20] sm:$0x7]  ;;  %364 = vst.msk [vmem:[#allocation2 + $0x1e3] sm:$0x7] %vm341_vm0, %v356_v22 }
  0x4b   : > { %699 = vst.msk [vmem:[#allocation2 + $0x10e] sm:$0x7] %vm341_vm0, %v4174_v53 }
  0x4e   : > { %563 = vrot.lane.b32.xlu1 %v4149_v54, %s4991_s16  ;;  %1011 = vrot.lane.b32.xlu0 %v4244_v55, %s4990_s15  ;;  %v4182_v54 = vld [vmem:[%s5059_s14 + $0x23] sm:$0x7]  ;;  %v466_v55 = vld [vmem:[%s5059_s14 + $0x20] sm:$0x7] }
  0x4f   : > { %715 = vst.msk [vmem:[#allocation2 + $0x111] sm:$0x7] %vm341_vm0, %v4182_v54 }
  0x52   : > { %386 = vrot.lane.b32.xlu1 %v368_v57, %s4991_s16  ;;  %915 = vrot.lane.b32.xlu0 %v4228_v58, %s4991_s16 }
  0x56   : > { %482 = vrot.lane.b32.xlu1 %v464_v61, %s4990_s15  ;;  %434 = vrot.lane.b32.xlu0 %v416_v62, %s4991_s16  ;;  %v4142_v61 = vld [vmem:[%s5059_s14 + $0x6b] sm:$0x7]  ;;  %v4206_v62 = vld [vmem:[%s5059_s14 + $0x20] sm:$0x7] }
  0x57   : > { %538 = vst.msk [vmem:[#allocation2 + $0x102] sm:$0x7] %vm341_vm0, %v4142_v61 }
  0x5a   : > { %834 = vrot.lane.b32.xlu1 %v4204_v63, %s4990_s15  ;;  %786 = vrot.lane.b32.xlu0 %v4196_v0, %s4991_s16 }
  0x5e   : > { %609 = vrot.lane.b32.xlu1 %v4156_v3, %s4991_s16  ;;  %738 = vrot.lane.b32.xlu0 %v4188_v4, %s4991_s16  ;;  %v336_v3 = vld [vmem:[%s5059_s14 + $0x18] sm:$0x7]  ;;  %v353_v4 = vld [vmem:[%s5059_s14 + $0x1b] sm:$0x7] }
  0x5f   : > { %345 = vst.msk [vmem:[#allocation2 + $0xf0] sm:$0x7] %vm341_vm0, %v336_v3  ;;  %361 = vst.msk [vmem:[#allocation2 + $0xf3] sm:$0x7] %vm341_vm0, %v353_v4 }
  0x62   : > { %1194 = vrot.lane.b32.xlu1 %v4287_v8, %s4990_s15  ;;  %657 = vrot.lane.b32.xlu0 %v4164_v9, %s4990_s15 }
  0x66   : > { %1098 = vrot.lane.b32.xlu1 %v4271_v10, %s4991_s16  ;;  %561 = vrot.lane.b32.xlu0 %v4148_v11, %s4991_s16  ;;  %v4190_v10 = vld [vmem:[%s5059_s14 + $0x20] sm:$0x7]  ;;  %v4150_v11 = vld [vmem:[%s5059_s14 + $0x68] sm:$0x7] }
  0x6a   : > { %384 = vrot.lane.b32.xlu1 %v367_v13, %s4991_s16  ;;  %1146 = vrot.lane.b32.xlu0 %v4279_v14, %s4991_s16 }
  0x6e   : > { %480 = vrot.lane.b32.xlu1 %v463_v16, %s4990_s15  ;;  %432 = vrot.lane.b32.xlu0 %v415_v17, %s4991_s16  ;;  %v4265_v16 = vld [vmem:[%s5059_s14 + $0x43] sm:$0x7]  ;;  %v417_v17 = vld [vmem:[%s5059_s14 + $0x1b] sm:$0x7] }
  0x6f   : > { %1072 = vst.msk [vmem:[#allocation2 + $0x21f] sm:$0x7] %vm341_vm0, %v4265_v16  ;;  %v4169_v16 = vld [vmem:[%s5059_s14 + $0x80] sm:$0x7] }
  0x72   : > { %1017 = vrot.lane.b32.xlu1 %v4247_v19, %s4990_s15  ;;  %969 = vrot.lane.b32.xlu0 %v4239_v20, %s4991_s16 }
  0x76   : > { %792 = vrot.lane.b32.xlu1 %v4199_v23, %s4991_s16  ;;  %921 = vrot.lane.b32.xlu0 %v4231_v24, %s4991_s16  ;;  %v4289_v24 = vld [vmem:[%s5059_s14 + $0x40] sm:$0x7] }
  0x7a   : > { %1192 = vrot.lane.b32.xlu1 %v4286_v26, %s4990_s15  ;;  %840 = vrot.lane.b32.xlu0 %v4207_v27, %s4990_s15  ;;  %v465_v27 = vld [vmem:[%s5059_s14 + $0x18] sm:$0x7] }
  0x7e   : > { %1096 = vrot.lane.b32.xlu1 %v4270_v29, %s4991_s16  ;;  %744 = vrot.lane.b32.xlu0 %v4191_v30, %s4991_s16  ;;  %v4225_v29 = vld [vmem:[%s5059_s14 + $0x8b] sm:$0x7]  ;;  %v4281_v30 = vld [vmem:[%s5059_s14 + $0x43] sm:$0x7] }
  0x7f   : > { %895 = vst.msk [vmem:[#allocation2 + $0x210] sm:$0x7] %vm341_vm0, %v4225_v29 }
  0x82   : > { %615 = vrot.lane.b32.xlu1 %v4159_v34, %s4991_s16  ;;  %1144 = vrot.lane.b32.xlu0 %v4278_v35, %s4991_s16  ;;  %v4273_v34 = vld [vmem:[%s5059_s14 + $0x40] sm:$0x7]  ;;  %v4264_v35 = vld [vmem:[%s5059_s14 + $0x3b] sm:$0x7] }
  0x83   : > { %1071 = vst.msk [vmem:[#allocation2 + $0x1cf] sm:$0x7] %vm341_vm0, %v4264_v35  ;;  %v4153_v35 = vld [vmem:[%s5059_s14 + $0x80] sm:$0x7] }
  0x84   : > { %v1187_v41 = vpop.permute.xlu0 %1186  ;;  %v1139_v42 = vpop.permute.xlu1 %1138 }
  0x85   : > { %1210 = vst.msk [vmem:[#allocation2 + $0x48] sm:$0x7] %vm341_vm0, %v1187_v41  ;;  %1162 = vst.msk [vmem:[#allocation2 + $0x45] sm:$0x7] %vm341_vm0, %v1139_v42  ;;  %v4241_v42 = vld [vmem:[%s5059_s14 + $0x8b] sm:$0x7] }
  0x86   : > { %967 = vrot.lane.b32.xlu1 %v4238_v39, %s4991_s16  ;;  %663 = vrot.lane.b32.xlu0 %v4167_v40, %s4990_s15 }
  0x88   : > { %v1091_v45 = vpop.permute.xlu0 %1090  ;;  %v962_v46 = vpop.permute.xlu1 %961 }
  0x89   : > { %1114 = vst.msk [vmem:[#allocation2 + $0x42] sm:$0x7] %vm341_vm0, %v1091_v45  ;;  %985 = vst.msk [vmem:[#allocation2 + $0x36] sm:$0x7] %vm341_vm0, %v962_v46  ;;  %v4233_v45 = vld [vmem:[%s5059_s14 + $0x88] sm:$0x7] }
  0x8a   : > { %567 = vrot.lane.b32.xlu1 %v4151_v43, %s4991_s16  ;;  %1015 = vrot.lane.b32.xlu0 %v4246_v44, %s4990_s15  ;;  %v4217_v43 = vld [vmem:[%s5059_s14 + $0x88] sm:$0x7] }
  0x8b   : > { %879 = vst.msk [vmem:[#allocation2 + $0x20d] sm:$0x7] %vm341_vm0, %v4217_v43  ;;  %v372_v43 = vld [vmem:[%s5059_s14 + $0x30] sm:$0x7] }
  0x8c   : > { %v1010_v49 = vpop.permute.xlu0 %1009  ;;  %v914_v50 = vpop.permute.xlu1 %913  ;;  %v1272_v51 = vld [vmem:[#allocation2 + $0x48] sm:$0x7] }
  0x8d   : > { %1033 = vst.msk [vmem:[#allocation2 + $0x39] sm:$0x7] %vm341_vm0, %v1010_v49  ;;  %937 = vst.msk [vmem:[#allocation2 + $0x33] sm:$0x7] %vm341_vm0, %v914_v50  ;;  %4750 = vmatprep.subr.msk.mxu0 %vm1290_vm2, %v1272_v51  ;;  %v4288_v49 = vld [vmem:[%s5059_s14 + $0x38] sm:$0x7] }
  0x8e   : > { %4751 = vmatpush3.msk.msra.mxu0 %vm1290_vm2, %v1272_v51  ;;  %390 = vrot.lane.b32.xlu1 %v370_v48, %s4991_s16  ;;  %v4256_v50 = vld [vmem:[%s5059_s14 + $0x38] sm:$0x7]  ;;  %v4280_v51 = vld [vmem:[%s5059_s14 + $0x3b] sm:$0x7] }
  0x8f   : > { %919 = vrot.lane.b32.xlu0 %v4230_v52, %s4991_s16  ;;  %1055 = vst.msk [vmem:[#allocation2 + $0x1cc] sm:$0x7] %vm341_vm0, %v4256_v50 }
  0x90   : > { %v833_v56 = vpop.permute.xlu1 %832  ;;  %v785_v57 = vpop.permute.xlu0 %784  ;;  %v1271_v58 = vld [vmem:[#allocation2 + $0x40] sm:$0xff] }
  0x91   : > { %856 = vst.msk [vmem:[#allocation2 + $0x2a] sm:$0x7] %vm341_vm0, %v833_v56  ;;  %808 = vst.msk [vmem:[#allocation2 + $0x27] sm:$0x7] %vm341_vm0, %v785_v57  ;;  %4752 = vmatprep.subr.mxu0 %v1271_v58  ;;  %v4224_v56 = vld [vmem:[%s5059_s14 + $0x83] sm:$0x7] }
  0x92   : > { %4753 = vmatpush3.msra.mxu0 %v1271_v58  ;;  %486 = vrot.lane.b32.xlu1 %v466_v55, %s4990_s15  ;;  %v4272_v55 = vld [vmem:[%s5059_s14 + $0x38] sm:$0x7]  ;;  %v4185_v58 = vld [vmem:[%s5059_s14 + $0x3b] sm:$0x7]  ;;  %894 = vst.msk [vmem:[#allocation2 + $0x1c0] sm:$0x7] %vm341_vm0, %v4224_v56 }
  0x93   : > { %438 = vrot.lane.b32.xlu0 %v418_v59, %s4991_s16  ;;  %v4177_v57 = vld [vmem:[%s5059_s14 + $0x38] sm:$0x7]  ;;  %718 = vst.msk [vmem:[#allocation2 + $0x201] sm:$0x7] %vm341_vm0, %v4185_v58 }
  0x94   : > { %v737_v63 = vpop.permute.xlu0 %736  ;;  %v608_v0 = vpop.permute.xlu1 %607  ;;  %v1270_v1 = vld [vmem:[#allocation2 + $0x38] sm:$0xff]  ;;  %v1269_v5 = vld [vmem:[#allocation2 + $0x30] sm:$0xff]  ;;  %702 = vst.msk [vmem:[#allocation2 + $0x1fe] sm:$0x7] %vm341_vm0, %v4177_v57  ;;  %v4266_v57 = vld [vmem:[%s5059_s14 + $0x4b] sm:$0x7] }
  0x95   : > { %760 = vst.msk [vmem:[#allocation2 + $0x24] sm:$0x7] %vm341_vm0, %v737_v63  ;;  %631 = vst.msk [vmem:[#allocation2 + $0x18] sm:$0x7] %vm341_vm0, %v608_v0  ;;  %4754 = vmatprep.subr.mxu0 %v1270_v1  ;;  %v4209_v59 = vld [vmem:[%s5059_s14 + $0x38] sm:$0x7] }
  0x96   : > { %4755 = vmatpush3.msra.mxu0 %v1270_v1  ;;  %838 = vrot.lane.b32.xlu1 %v4206_v62, %s4990_s15  ;;  %v4201_v0 = vld [vmem:[%s5059_s14 + $0x3b] sm:$0x7]  ;;  %v4248_v1 = vld [vmem:[%s5059_s14 + $0x80] sm:$0x7]  ;;  %v4168_v56 = vld [vmem:[%s5059_s14 + $0x78] sm:$0x7] }
  0x97   : > { %790 = vrot.lane.b32.xlu0 %v4198_v2, %s4991_s16  ;;  %4756 = vmatprep.subr.mxu0 %v1269_v5  ;;  %1073 = vst.msk [vmem:[#allocation2 + $0x26f] sm:$0x7] %vm341_vm0, %v4266_v57  ;;  %v1262_v57 = vld [vmem:[%s6932_s2 + $0x8] sm:$0xff] }
  0x98   : > { %4757 = vmatpush3.msra.mxu0 %v1269_v5  ;;  %v656_v7 = vpop.permute.xlu0 %655  ;;  %v560_v8 = vpop.permute.xlu1 %559  ;;  %v1268_v9 = vld [vmem:[#allocation2 + $0x28] sm:$0xff]  ;;  %v4240_v5 = vld [vmem:[%s5059_s14 + $0x83] sm:$0x7] }
  0x99   : > { %679 = vst.msk [vmem:[#allocation2 + $0x1b] sm:$0x7] %vm341_vm0, %v656_v7  ;;  %583 = vst.msk [vmem:[#allocation2 + $0x15] sm:$0x7] %vm341_vm0, %v560_v8  ;;  %4758 = vmatprep.subr.mxu0 %v1268_v9  ;;  %v4232_v7 = vld [vmem:[%s5059_s14 + $0x80] sm:$0x7] }
  0x9a   : > { %4759 = vmatpush3.msra.mxu0 %v1268_v9  ;;  %613 = vrot.lane.b32.xlu1 %v4158_v6, %s4991_s16  ;;  %v4216_v6 = vld [vmem:[%s5059_s14 + $0x80] sm:$0x7] }
  0x9b   : > { %742 = vrot.lane.b32.xlu0 %v4190_v10, %s4991_s16  ;;  %878 = vst.msk [vmem:[#allocation2 + $0x1bd] sm:$0x7] %vm341_vm0, %v4216_v6  ;;  %v4282_v6 = vld [vmem:[%s5059_s14 + $0x4b] sm:$0x7] }
  0x9c   : > { %v431_v12 = vpop.permute.xlu1 %430  ;;  %v383_v13 = vpop.permute.xlu0 %382  ;;  %v1267_v14 = vld [vmem:[#allocation2 + $0x20] sm:$0xff] }
  0x9d   : > { %454 = vst.msk [vmem:[#allocation2 + $0x9] sm:$0x7] %vm341_vm0, %v431_v12  ;;  %406 = vst.msk [vmem:[#allocation2 + $0x6] sm:$0x7] %vm341_vm0, %v383_v13  ;;  %4760 = vmatprep.subr.mxu0 %v1267_v14  ;;  %v4176_v12 = vld [vmem:[%s5059_s14 + $0x30] sm:$0x7] }
  0x9e   : > { %4761 = vmatpush3.msra.mxu0 %v1267_v14  ;;  %565 = vrot.lane.b32.xlu1 %v4150_v11, %s4991_s16  ;;  %v4193_v11 = vld [vmem:[%s5059_s14 + $0x38] sm:$0x7]  ;;  %v4184_v13 = vld [vmem:[%s5059_s14 + $0x33] sm:$0x7]  ;;  %v4137_v14 = vld [vmem:[%s5059_s14 + $0x80] sm:$0x7] }
  0x9f   : > { %661 = vrot.lane.b32.xlu0 %v4166_v15, %s4990_s15  ;;  %701 = vst.msk [vmem:[#allocation2 + $0x1ae] sm:$0x7] %vm341_vm0, %v4176_v12  ;;  %717 = vst.msk [vmem:[#allocation2 + $0x1b1] sm:$0x7] %vm341_vm0, %v4184_v13  ;;  %v4145_v15 = vld [vmem:[%s5059_s14 + $0x83] sm:$0x7] }
  0xa0   : > { %v1191_v18 = vpop.permute.xlu1 %1190  ;;  %v479_v19 = vpop.permute.xlu0 %478  ;;  %v1266_v20 = vld [vmem:[#allocation2 + $0x18] sm:$0xff]  ;;  %v1265_v23 = vld [vmem:[#allocation2 + $0x10] sm:$0xff]  ;;  %525 = vst.msk [vmem:[#allocation2 + $0x1ef] sm:$0x7] %vm341_vm0, %v4137_v14  ;;  %541 = vst.msk [vmem:[#allocation2 + $0x1f2] sm:$0x7] %vm341_vm0, %v4145_v15 }
  0xa1   : > { %1212 = vst.msk [vmem:[#allocation2 + $0xe8] sm:$0x7] %vm341_vm0, %v1191_v18  ;;  %502 = vst.msk [vmem:[#allocation2 + $0xc] sm:$0x7] %vm341_vm0, %v479_v19  ;;  %4762 = vmatprep.subr.mxu0 %v1266_v20  ;;  %v4178_v12 = vld [vmem:[%s5059_s14 + $0x40] sm:$0x7] }
  0xa2   : > { %4763 = vmatpush3.msra.mxu0 %v1266_v20  ;;  %436 = vrot.lane.b32.xlu1 %v417_v17, %s4991_s16  ;;  %v4161_v20 = vld [vmem:[%s5059_s14 + $0x83] sm:$0x7]  ;;  %703 = vst.msk [vmem:[#allocation2 + $0x24e] sm:$0x7] %vm341_vm0, %v4178_v12  ;;  %v4250_v14 = vld [vmem:[%s5059_s14 + $0x90] sm:$0x7] }
  0xa3   : > { %388 = vrot.lane.b32.xlu0 %v369_v21, %s4991_s16  ;;  %4764 = vmatprep.subr.mxu0 %v1265_v23  ;;  %v339_v21 = vld [vmem:[%s5059_s14 + $0x30] sm:$0x7]  ;;  %v4186_v13 = vld [vmem:[%s5059_s14 + $0x43] sm:$0x7] }
  0xa4   : > { %4765 = vmatpush3.msra.mxu0 %v1265_v23  ;;  %v1143_v25 = vpop.permute.xlu1 %1142  ;;  %v1095_v26 = vpop.permute.xlu0 %1094  ;;  %v1263_v36 = vld [vmem:[#allocation2] sm:$0xff]  ;;  %348 = vst.msk [vmem:[#allocation2 + $0x1e0] sm:$0x7] %vm341_vm0, %v339_v21  ;;  %v4208_v23 = vld [vmem:[%s5059_s14 + $0x30] sm:$0x7] }
  0xa5   : > { %1164 = vst.msk [vmem:[#allocation2 + $0xe5] sm:$0x7] %vm341_vm0, %v1143_v25  ;;  %1116 = vst.msk [vmem:[#allocation2 + $0xe2] sm:$0x7] %vm341_vm0, %v1095_v26 }
  0xa6   : > { %1198 = vrot.lane.b32.xlu1 %v4289_v24, %s4990_s15  ;;  %v4992_v24 = vmov 0   ;;  %719 = vst.msk [vmem:[#allocation2 + $0x251] sm:$0x7] %vm341_vm0, %v4186_v13 }
  0xa7   : > { %484 = vrot.lane.b32.xlu0 %v465_v27, %s4990_s15  ;;  %4978 = vset.pattern.permute.xlu1 %v4992_v24 }
  0xa8   : > { %v1014_v31 = vpop.permute.xlu1 %1013  ;;  %v966_v32 = vpop.permute.xlu0 %965  ;;  %v1264_v33 = vld [vmem:[#allocation2 + $0x8] sm:$0xff]  ;;  %4977 = vset.pattern.permute.xlu0 %v4992_v24  ;;  %v4234_v24 = vld [vmem:[%s5059_s14 + $0x90] sm:$0x7] }
  0xa9   : > { %1035 = vst.msk [vmem:[#allocation2 + $0xd9] sm:$0x7] %vm341_vm0, %v1014_v31  ;;  %987 = vst.msk [vmem:[#allocation2 + $0xd6] sm:$0x7] %vm341_vm0, %v966_v32  ;;  %4766 = vmatprep.subr.mxu0 %v1264_v33  ;;  %v1553_v41 = vld [vmem:[#allocation2 + $0xe8] sm:$0x7] }
  0xaa   : > { %1150 = vrot.lane.b32.xlu1 %v4281_v30, %s4991_s16  ;;  %4767 = vmatpush3.msra.mxu0 %v1264_v33  ;;  %v4200_v30 = vld [vmem:[%s5059_s14 + $0x33] sm:$0x7]  ;;  %v4192_v31 = vld [vmem:[%s5059_s14 + $0x30] sm:$0x7] }
  0xab   : > { %1102 = vrot.lane.b32.xlu0 %v4273_v34, %s4991_s16  ;;  %4768 = vmatprep.subr.mxu0 %v1263_v36 }
  0xac   : > { %v789_v39 = vpop.permute.xlu1 %788  ;;  %v918_v40 = vpop.permute.xlu0 %917  ;;  %4769 = vmatpush3.msra.mxu0 %v1263_v36  ;;  %v1552_v44 = vld [vmem:[#allocation2 + $0xe0] sm:$0xff]  ;;  %v4136_v36 = vld [vmem:[%s5059_s14 + $0x78] sm:$0x7] }
  0xad   : > { %810 = vst.msk [vmem:[#allocation2 + $0xc7] sm:$0x7] %vm341_vm0, %v789_v39  ;;  %939 = vst.msk [vmem:[#allocation2 + $0xd3] sm:$0x7] %vm341_vm0, %v918_v40  ;;  %4796 = vmatprep.subr.msk.mxu0 %vm1290_vm2, %v1553_v41  ;;  %4771 = vmatmul.mubr.msk.f32.vlgmr.msra.gmra.mxu0 %vm1283_vm1, %v5357_v37  ;;  %v420_v39 = vld [vmem:[%s5059_s14 + $0x33] sm:$0x7] }
  0xae   : > { %1021 = vrot.lane.b32.xlu1 %v4249_v38, %s4990_s15  ;;  %4797 = vmatpush3.msk.msra.mxu0 %vm1290_vm2, %v1553_v41  ;;  %v4144_v38 = vld [vmem:[%s5059_s14 + $0x7b] sm:$0x7]  ;;  %524 = vst.msk [vmem:[#allocation2 + $0x19f] sm:$0x7] %vm341_vm0, %v4136_v36  ;;  %v4170_v36 = vld [vmem:[%s5059_s14 + $0x88] sm:$0x7] }
  0xaf   : > { %973 = vrot.lane.b32.xlu0 %v4241_v42, %s4991_s16  ;;  %4798 = vmatprep.subr.mxu0 %v1552_v44  ;;  %540 = vst.msk [vmem:[#allocation2 + $0x1a2] sm:$0x7] %vm341_vm0, %v4144_v38 }
  0xb0   : > { %v1189_v46 = vpop.permute.xlu1 %1188  ;;  %v837_v47 = vpop.permute.xlu0 %836  ;;  %4799 = vmatpush3.msra.mxu0 %v1552_v44  ;;  %v1551_v48 = vld [vmem:[#allocation2 + $0xd8] sm:$0xff]  ;;  %4816 = vmatprep.mubr.msk.f32.mxu0 %vm1283_vm1, %v5118_v28  ;;  %v338_v44 = vld [vmem:[%s5059_s14 + $0x28] sm:$0x7] }
  0xb1   : > { %1211 = vst.msk [vmem:[#allocation2 + $0x98] sm:$0x7] %vm341_vm0, %v1189_v46  ;;  %858 = vst.msk [vmem:[#allocation2 + $0xca] sm:$0x7] %vm341_vm0, %v837_v47  ;;  %4800 = vmatprep.subr.mxu0 %v1551_v48  ;;  %v4160_v47 = vld [vmem:[%s5059_s14 + $0x7b] sm:$0x7] }
  0xb2   : > { %925 = vrot.lane.b32.xlu1 %v4233_v45, %s4991_s16  ;;  %4801 = vmatpush3.msra.mxu0 %v1551_v48  ;;  %v355_v45 = vld [vmem:[%s5059_s14 + $0x2b] sm:$0x7]  ;;  %347 = vst.msk [vmem:[#allocation2 + $0x190] sm:$0x7] %vm341_vm0, %v338_v44 }
  0xb3   : > { %1196 = vrot.lane.b32.xlu0 %v4288_v49, %s4990_s15  ;;  %363 = vst.msk [vmem:[#allocation2 + $0x193] sm:$0x7] %vm341_vm0, %v355_v45 }
  0xb4   : > { %v1093_v52 = vpop.permute.xlu1 %1092  ;;  %v741_v53 = vpop.permute.xlu0 %740  ;;  %v1550_v54 = vld [vmem:[#allocation2 + $0xd0] sm:$0xff] }
  0xb5   : > { %1115 = vst.msk [vmem:[#allocation2 + $0x92] sm:$0x7] %vm341_vm0, %v1093_v52  ;;  %762 = vst.msk [vmem:[#allocation2 + $0xc4] sm:$0x7] %vm341_vm0, %v741_v53  ;;  %4802 = vmatprep.subr.mxu0 %v1550_v54  ;;  %v4152_v52 = vld [vmem:[%s5059_s14 + $0x78] sm:$0x7] }
  0xb6   : > { %1148 = vrot.lane.b32.xlu1 %v4280_v51, %s4991_s16  ;;  %4803 = vmatpush3.msra.mxu0 %v1550_v54  ;;  %v468_v51 = vld [vmem:[%s5059_s14 + $0x30] sm:$0x7] }
  0xb7   : > { %1100 = vrot.lane.b32.xlu0 %v4272_v55, %s4991_s16 }
  0xb8   : > { %v612_v60 = vpop.permute.xlu1 %611  ;;  %v1141_v61 = vpop.permute.xlu0 %1140  ;;  %v1424_v62 = vld [vmem:[#allocation2 + $0x98] sm:$0x7]  ;;  %v1549_v63 = vld [vmem:[#allocation2 + $0xc8] sm:$0xff] }
  0xb9   : > { %633 = vst.msk [vmem:[#allocation2 + $0xb8] sm:$0x7] %vm341_vm0, %v612_v60  ;;  %1163 = vst.msk [vmem:[#allocation2 + $0x95] sm:$0x7] %vm341_vm0, %v1141_v61  ;;  %4773 = vmatprep.subr.msk.mxu1 %vm1290_vm2, %v1424_v62  ;;  %4804 = vmatprep.subr.mxu0 %v1549_v63 }
  0xba   : > { %4774 = vmatpush3.msk.msra.mxu1 %vm1290_vm2, %v1424_v62  ;;  %844 = vrot.lane.b32.xlu1 %v4209_v59, %s4990_s15  ;;  %v371_v62 = vld [vmem:[%s5059_s14 + $0x28] sm:$0x7] }
  0xbb   : > { %796 = vrot.lane.b32.xlu0 %v4201_v0, %s4991_s16  ;;  %4805 = vmatpush3.msra.mxu0 %v1549_v63  ;;  %v4258_v63 = vld [vmem:[%s5059_s14 + $0x48] sm:$0x7] }
  0xbc   : > { %v964_v2 = vpop.permute.xlu1 %963  ;;  %v660_v3 = vpop.permute.xlu0 %659  ;;  %v1548_v4 = vld [vmem:[#allocation2 + $0xc0] sm:$0xff]  ;;  %1057 = vst.msk [vmem:[#allocation2 + $0x26c] sm:$0x7] %vm341_vm0, %v4258_v63  ;;  %v4290_v0 = vld [vmem:[%s5059_s14 + $0x48] sm:$0x7] }
  0xbd   : > { %986 = vst.msk [vmem:[#allocation2 + $0x86] sm:$0x7] %vm341_vm0, %v964_v2  ;;  %681 = vst.msk [vmem:[#allocation2 + $0xbb] sm:$0x7] %vm341_vm0, %v660_v3  ;;  %4806 = vmatprep.subr.mxu0 %v1548_v4 }
  0xbe   : > { %1019 = vrot.lane.b32.xlu1 %v4248_v1, %s4990_s15  ;;  %4807 = vmatpush3.msra.mxu0 %v1548_v4  ;;  %v467_v4 = vld [vmem:[%s5059_s14 + $0x28] sm:$0x7] }
  0xbf   : > { %971 = vrot.lane.b32.xlu0 %v4240_v5, %s4991_s16  ;;  %v4226_v5 = vld [vmem:[%s5059_s14 + $0x93] sm:$0x7] }
  0xc0   : > { %v564_v8 = vpop.permute.xlu1 %563  ;;  %v1012_v9 = vpop.permute.xlu0 %1011  ;;  %v1423_v10 = vld [vmem:[#allocation2 + $0x90] sm:$0xff]  ;;  %896 = vst.msk [vmem:[#allocation2 + $0x260] sm:$0x7] %vm341_vm0, %v4226_v5 }
  0xc1   : > { %585 = vst.msk [vmem:[#allocation2 + $0xb5] sm:$0x7] %vm341_vm0, %v564_v8  ;;  %1034 = vst.msk [vmem:[#allocation2 + $0x89] sm:$0x7] %vm341_vm0, %v1012_v9  ;;  %4775 = vmatprep.subr.mxu1 %v1423_v10 }
  0xc2   : > { %923 = vrot.lane.b32.xlu1 %v4232_v7, %s4991_s16  ;;  %4776 = vmatpush3.msra.mxu1 %v1423_v10  ;;  %v4274_v10 = vld [vmem:[%s5059_s14 + $0x48] sm:$0x7] }
  0xc3   : > { %748 = vrot.lane.b32.xlu0 %v4193_v11, %s4991_s16  ;;  %v4218_v11 = vld [vmem:[%s5059_s14 + $0x90] sm:$0x7] }
  0xc4   : > { %v387_v17 = vpop.permute.xlu1 %386  ;;  %v916_v18 = vpop.permute.xlu0 %915  ;;  %v1547_v19 = vld [vmem:[#allocation2 + $0xb8] sm:$0xff]  ;;  %880 = vst.msk [vmem:[#allocation2 + $0x25d] sm:$0x7] %vm341_vm0, %v4218_v11 }
  0xc5   : > { %408 = vst.msk [vmem:[#allocation2 + $0xa6] sm:$0x7] %vm341_vm0, %v387_v17  ;;  %938 = vst.msk [vmem:[#allocation2 + $0x83] sm:$0x7] %vm341_vm0, %v916_v18  ;;  %4808 = vmatprep.subr.mxu0 %v1547_v19  ;;  %v4242_v18 = vld [vmem:[%s5059_s14 + $0x93] sm:$0x7] }
  0xc6   : > { %667 = vrot.lane.b32.xlu1 %v4169_v16, %s4990_s15  ;;  %4809 = vmatpush3.msra.mxu0 %v1547_v19 }
  0xc7   : > { %619 = vrot.lane.b32.xlu0 %v4161_v20, %s4991_s16  ;;  %v4202_v20 = vld [vmem:[%s5059_s14 + $0x43] sm:$0x7] }
  0xc8   : > { %v483_v25 = vpop.permute.xlu1 %482  ;;  %v435_v26 = vpop.permute.xlu0 %434  ;;  %v1422_v27 = vld [vmem:[#allocation2 + $0x88] sm:$0xff]  ;;  %v1546_v29 = vld [vmem:[#allocation2 + $0xb0] sm:$0xff] }
  0xc9   : > { %504 = vst.msk [vmem:[#allocation2 + $0xac] sm:$0x7] %vm341_vm0, %v483_v25  ;;  %456 = vst.msk [vmem:[#allocation2 + $0xa9] sm:$0x7] %vm341_vm0, %v435_v26  ;;  %4777 = vmatprep.subr.mxu1 %v1422_v27  ;;  %4810 = vmatprep.subr.mxu0 %v1546_v29  ;;  %v4138_v25 = vld [vmem:[%s5059_s14 + $0x88] sm:$0x7] }
  0xca   : > { %842 = vrot.lane.b32.xlu1 %v4208_v23, %s4990_s15  ;;  %4778 = vmatpush3.msra.mxu1 %v1422_v27  ;;  %v4146_v26 = vld [vmem:[%s5059_s14 + $0x8b] sm:$0x7]  ;;  %v340_v27 = vld [vmem:[%s5059_s14 + $0x38] sm:$0x7]  ;;  %526 = vst.msk [vmem:[#allocation2 + $0x23f] sm:$0x7] %vm341_vm0, %v4138_v25 }
  0xcb   : > { %794 = vrot.lane.b32.xlu0 %v4200_v30, %s4991_s16  ;;  %4811 = vmatpush3.msra.mxu0 %v1546_v29  ;;  %542 = vst.msk [vmem:[#allocation2 + $0x242] sm:$0x7] %vm341_vm0, %v4146_v26  ;;  %349 = vst.msk [vmem:[#allocation2 + $0x230] sm:$0x7] %vm341_vm0, %v340_v27  ;;  %v357_v29 = vld [vmem:[%s5059_s14 + $0x3b] sm:$0x7] }
  0xcc   : > { %v835_v32 = vpop.permute.xlu1 %834  ;;  %v787_v33 = vpop.permute.xlu0 %786  ;;  %v1421_v34 = vld [vmem:[#allocation2 + $0x80] sm:$0xff]  ;;  %365 = vst.msk [vmem:[#allocation2 + $0x233] sm:$0x7] %vm341_vm0, %v357_v29 }
  0xcd   : > { %857 = vst.msk [vmem:[#allocation2 + $0x7a] sm:$0x7] %vm341_vm0, %v835_v32  ;;  %809 = vst.msk [vmem:[#allocation2 + $0x77] sm:$0x7] %vm341_vm0, %v787_v33  ;;  %4779 = vmatprep.subr.mxu1 %v1421_v34  ;;  %v1544_v46 = vld [vmem:[#allocation2 + $0xa0] sm:$0xff] }
  0xce   : > { %746 = vrot.lane.b32.xlu1 %v4192_v31, %s4991_s16  ;;  %4780 = vmatpush3.msra.mxu1 %v1421_v34  ;;  %v4194_v30 = vld [vmem:[%s5059_s14 + $0x40] sm:$0x7] }
  0xcf   : > { %571 = vrot.lane.b32.xlu0 %v4153_v35, %s4991_s16  ;;  %v5534_v31 = vld [vmem:[%s6931_s1] sm:$0xff] }
  0xd0   : > { %v610_v40 = vpop.permute.xlu1 %609  ;;  %v739_v41 = vpop.permute.xlu0 %738  ;;  %v1545_v42 = vld [vmem:[#allocation2 + $0xa8] sm:$0xff]  ;;  %v4210_v35 = vld [vmem:[%s5059_s14 + $0x40] sm:$0x7] }
  0xd1   : > { %632 = vst.msk [vmem:[#allocation2 + $0x68] sm:$0x7] %vm341_vm0, %v610_v40  ;;  %761 = vst.msk [vmem:[#allocation2 + $0x74] sm:$0x7] %vm341_vm0, %v739_v41  ;;  %4812 = vmatprep.subr.mxu0 %v1545_v42 }
  0xd2   : > { %442 = vrot.lane.b32.xlu1 %v420_v39, %s4991_s16  ;;  %4813 = vmatpush3.msra.mxu0 %v1545_v42  ;;  %v4162_v42 = vld [vmem:[%s5059_s14 + $0x8b] sm:$0x7] }
  0xd3   : > { %394 = vrot.lane.b32.xlu0 %v372_v43, %s4991_s16  ;;  %4814 = vmatprep.subr.mxu0 %v1544_v46  ;;  %v373_v43 = vld [vmem:[%s5059_s14 + $0x38] sm:$0x7] }
  0xd4   : > { %v1195_v48 = vpop.permute.xlu1 %1194  ;;  %v658_v49 = vpop.permute.xlu0 %657  ;;  %4815 = vmatpush3.msra.mxu0 %v1544_v46  ;;  %v1420_v50 = vld [vmem:[#allocation2 + $0x78] sm:$0xff] }
  0xd5   : > { %1214 = vst.msk [vmem:[#allocation2 + $0x188] sm:$0x7] %vm341_vm0, %v1195_v48  ;;  %680 = vst.msk [vmem:[#allocation2 + $0x6b] sm:$0x7] %vm341_vm0, %v658_v49  ;;  %4781 = vmatprep.subr.mxu1 %v1420_v50  ;;  %4817 = vmatmul.mubr.msk.f32.vlgmr.msra.gmra.mxu0 %vm1283_vm1, %v5357_v37  ;;  %v469_v48 = vld [vmem:[%s5059_s14 + $0x38] sm:$0x7] }
  0xd6   : > { %617 = vrot.lane.b32.xlu1 %v4160_v47, %s4991_s16  ;;  %4782 = vmatpush3.msra.mxu1 %v1420_v50  ;;  %v4154_v47 = vld [vmem:[%s5059_s14 + $0x88] sm:$0x7] }
  0xd7   : > { %490 = vrot.lane.b32.xlu0 %v468_v51, %s4990_s15  ;;  %4862 = vmatprep.mubr.msk.f32.mxu0 %vm1283_vm1, %v5118_v28  ;;  %v419_v28 = vld [vmem:[%s5059_s14 + $0x2b] sm:$0x7] }
  0xd8   : > { %v1099_v53 = vpop.permute.xlu1 %1098  ;;  %v562_v54 = vpop.permute.xlu0 %561  ;;  %v1419_v55 = vld [vmem:[#allocation2 + $0x70] sm:$0xff] }
  0xd9   : > { %1118 = vst.msk [vmem:[#allocation2 + $0x182] sm:$0x7] %vm341_vm0, %v1099_v53  ;;  %584 = vst.msk [vmem:[#allocation2 + $0x65] sm:$0x7] %vm341_vm0, %v562_v54  ;;  %4783 = vmatprep.subr.mxu1 %v1419_v55  ;;  %v1261_v53 = vld [vmem:[%s6932_s2] sm:$0xff]  ;;  %v4993_v54 = vmov 0.0  }
  0xda   : > { %569 = vrot.lane.b32.xlu1 %v4152_v52, %s4991_s16  ;;  %4784 = vmatpush3.msra.mxu1 %v1419_v55  ;;  %v421_v52 = vld [vmem:[%s5059_s14 + $0x3b] sm:$0x7]  ;;  %1222 = vst.msk [vmem:[#allocation3 + $0x18] sm:$0xff] %vm1218_vm3, %v4993_v54  ;;  %1219 = vst.msk [vmem:[#allocation3] sm:$0xff] %vm1218_vm3, %v4993_v54 }
  0xdb   : > { %665 = vrot.lane.b32.xlu0 %v4168_v56, %s4990_s15  ;;  %1220 = vst.msk [vmem:[#allocation3 + $0x8] sm:$0xff] %vm1218_vm3, %v4993_v54  ;;  %1221 = vst.msk [vmem:[#allocation3 + $0x10] sm:$0xff] %vm1218_vm3, %v4993_v54 }
  0xdc   : > { %v385_v58 = vpop.permute.xlu1 %384  ;;  %v1147_v59 = vpop.permute.xlu0 %1146  ;;  %v1418_v60 = vld [vmem:[#allocation2 + $0x68] sm:$0xff]  ;;  %1223 = vst.msk [vmem:[#allocation3 + $0x20] sm:$0xff] %vm1218_vm3, %v4993_v54  ;;  %1224 = vst.msk [vmem:[#allocation3 + $0x28] sm:$0xff] %vm1218_vm3, %v4993_v54 }
  0xdd   : > { %v1811_v61 = vld [vmem:[#allocation2 + $0x188] sm:$0x7]  ;;  %407 = vst.msk [vmem:[#allocation2 + $0x56] sm:$0x7] %vm341_vm0, %v385_v58  ;;  %1166 = vst.msk [vmem:[#allocation2 + $0x185] sm:$0x7] %vm341_vm0, %v1147_v59  ;;  %4785 = vmatprep.subr.mxu1 %v1418_v60 }
  0xde   : > { %4842 = vmatprep.subr.msk.mxu0 %vm1290_vm2, %v1811_v61  ;;  %440 = vrot.lane.b32.xlu1 %v419_v28, %s4991_s16  ;;  %1225 = vst.msk [vmem:[#allocation3 + $0x30] sm:$0xff] %vm1218_vm3, %v4993_v54  ;;  %1226 = vst.msk [vmem:[#allocation3 + $0x38] sm:$0xff] %vm1218_vm3, %v4993_v54 }
  0xdf   : > { %4786 = vmatpush3.msra.mxu1 %v1418_v60  ;;  %392 = vrot.lane.b32.xlu0 %v371_v62, %s4991_s16  ;;  %1227 = vst.msk [vmem:[#allocation3 + $0x40] sm:$0xff] %vm1218_vm3, %v4993_v54  ;;  %1228 = vst.msk [vmem:[#allocation3 + $0x48] sm:$0xff] %vm1218_vm3, %v4993_v54 }
  0xe0   : > { %4843 = vmatpush3.msk.msra.mxu0 %vm1290_vm2, %v1811_v61  ;;  %v481_v1 = vpop.permute.xlu1 %480  ;;  %v433_v2 = vpop.permute.xlu0 %432  ;;  %v1417_v3 = vld [vmem:[#allocation2 + $0x60] sm:$0xff]  ;;  %1229 = vst.msk [vmem:[#allocation3 + $0x50] sm:$0xff] %vm1218_vm3, %v4993_v54  ;;  %1230 = vst.msk [vmem:[#allocation3 + $0x58] sm:$0xff] %vm1218_vm3, %v4993_v54 }
  0xe1   : > { %503 = vst.msk [vmem:[#allocation2 + $0x5c] sm:$0x7] %vm341_vm0, %v481_v1  ;;  %455 = vst.msk [vmem:[#allocation2 + $0x59] sm:$0x7] %vm341_vm0, %v433_v2  ;;  %4787 = vmatprep.subr.mxu1 %v1417_v3  ;;  %v2352_v62 = vld [vmem:[#allocation3 + $0x18] sm:$0xff] }
  0xe2   : > { %1200 = vrot.lane.b32.xlu1 %v4290_v0, %s4990_s15  ;;  %4788 = vmatpush3.msra.mxu1 %v1417_v3  ;;  %1231 = vst.msk [vmem:[#allocation3 + $0x60] sm:$0xff] %vm1218_vm3, %v4993_v54  ;;  %1232 = vst.msk [vmem:[#allocation3 + $0x68] sm:$0xff] %vm1218_vm3, %v4993_v54  ;;  %v2351_v1 = vld [vmem:[#allocation3 + $0x10] sm:$0xff] }
  0xe3   : > { %488 = vrot.lane.b32.xlu0 %v467_v4, %s4990_s15  ;;  %1233 = vst.msk [vmem:[#allocation3 + $0x70] sm:$0xff] %vm1218_vm3, %v4993_v54  ;;  %1234 = vst.msk [vmem:[#allocation3 + $0x78] sm:$0xff] %vm1218_vm3, %v4993_v54 }
  0xe4   : > { %v1018_v7 = vpop.permute.xlu1 %1017  ;;  %v970_v8 = vpop.permute.xlu0 %969  ;;  %v1810_v9 = vld [vmem:[#allocation2 + $0x180] sm:$0xff]  ;;  %v1415_v19 = vld [vmem:[#allocation2 + $0x50] sm:$0xff]  ;;  %1235 = vst.msk [vmem:[#allocation3 + $0x80] sm:$0xff] %vm1218_vm3, %v4993_v54  ;;  %1236 = vst.msk [vmem:[#allocation3 + $0x88] sm:$0xff] %vm1218_vm3, %v4993_v54 }
  0xe5   : > { %1037 = vst.msk [vmem:[#allocation2 + $0x179] sm:$0x7] %vm341_vm0, %v1018_v7  ;;  %989 = vst.msk [vmem:[#allocation2 + $0x176] sm:$0x7] %vm341_vm0, %v970_v8  ;;  %4844 = vmatprep.subr.mxu0 %v1810_v9 }
  0xe6   : > { %1152 = vrot.lane.b32.xlu1 %v4282_v6, %s4991_s16  ;;  %4845 = vmatpush3.msra.mxu0 %v1810_v9  ;;  %1237 = vst.msk [vmem:[#allocation3 + $0x90] sm:$0xff] %vm1218_vm3, %v4993_v54  ;;  %1238 = vst.msk [vmem:[#allocation3 + $0x98] sm:$0xff] %vm1218_vm3, %v4993_v54  ;;  %v2340_v6 = vld [vmem:[#allocation3 + $0x8] sm:$0xff] }
  0xe7   : > { %1104 = vrot.lane.b32.xlu0 %v4274_v10, %s4991_s16  ;;  %1239 = vst.msk [vmem:[#allocation3 + $0xa0] sm:$0xff] %vm1218_vm3, %v4993_v54  ;;  %1240 = vst.msk [vmem:[#allocation3 + $0xa8] sm:$0xff] %vm1218_vm3, %v4993_v54 }
  0xe8   : > { %v793_v15 = vpop.permute.xlu1 %792  ;;  %v922_v16 = vpop.permute.xlu0 %921  ;;  %v1416_v17 = vld [vmem:[#allocation2 + $0x58] sm:$0xff]  ;;  %1241 = vst.msk [vmem:[#allocation3 + $0xb0] sm:$0xff] %vm1218_vm3, %v4993_v54  ;;  %1242 = vst.msk [vmem:[#allocation3 + $0xb8] sm:$0xff] %vm1218_vm3, %v4993_v54 }
  0xe9   : > { %812 = vst.msk [vmem:[#allocation2 + $0x167] sm:$0x7] %vm341_vm0, %v793_v15  ;;  %941 = vst.msk [vmem:[#allocation2 + $0x173] sm:$0x7] %vm341_vm0, %v922_v16  ;;  %4789 = vmatprep.subr.mxu1 %v1416_v17 }
  0xea   : > { %1023 = vrot.lane.b32.xlu1 %v4250_v14, %s4990_s15  ;;  %4790 = vmatpush3.msra.mxu1 %v1416_v17  ;;  %1243 = vst.msk [vmem:[#allocation3 + $0xc0] sm:$0xff] %vm1218_vm3, %v4993_v54  ;;  %1244 = vst.msk [vmem:[#allocation3 + $0xc8] sm:$0xff] %vm1218_vm3, %v4993_v54  ;;  %v2339_v14 = vld [vmem:[#allocation3] sm:$0xff] }
  0xeb   : > { %975 = vrot.lane.b32.xlu0 %v4242_v18, %s4991_s16  ;;  %4791 = vmatprep.subr.mxu1 %v1415_v19  ;;  %1245 = vst.msk [vmem:[#allocation3 + $0xd0] sm:$0xff] %vm1218_vm3, %v4993_v54  ;;  %1246 = vst.msk [vmem:[#allocation3 + $0xd8] sm:$0xff] %vm1218_vm3, %v4993_v54 }
  0xec   : > { %v1193_v21 = vpop.permute.xlu1 %1192  ;;  %v841_v22 = vpop.permute.xlu0 %840  ;;  %4792 = vmatpush3.msra.mxu1 %v1415_v19  ;;  %v1809_v23 = vld [vmem:[#allocation2 + $0x178] sm:$0xff]  ;;  %1247 = vst.msk [vmem:[#allocation3 + $0xe0] sm:$0xff] %vm1218_vm3, %v4993_v54  ;;  %1248 = vst.msk [vmem:[#allocation3 + $0xe8] sm:$0xff] %vm1218_vm3, %v4993_v54 }
  0xed   : > { %1213 = vst.msk [vmem:[#allocation2 + $0x138] sm:$0x7] %vm341_vm0, %v1193_v21  ;;  %860 = vst.msk [vmem:[#allocation2 + $0x16a] sm:$0x7] %vm341_vm0, %v841_v22  ;;  %4846 = vmatprep.subr.mxu0 %v1809_v23  ;;  %4794 = vmatmul.mubr.msk.f32.vlgmr.msra.gmra.mxu1 %vm1283_vm1, %v5357_v37 }
  0xee   : > { %798 = vrot.lane.b32.xlu1 %v4202_v20, %s4991_s16  ;;  %4847 = vmatpush3.msra.mxu0 %v1809_v23  ;;  %1249 = vst.msk [vmem:[#allocation3 + $0xf0] sm:$0xff] %vm1218_vm3, %v4993_v54  ;;  %1250 = vst.msk [vmem:[#allocation3 + $0xf8] sm:$0xff] %vm1218_vm3, %v4993_v54 }
  0xef   : > { %927 = vrot.lane.b32.xlu0 %v4234_v24, %s4991_s16  ;;  %4839 = vmatprep.mubr.msk.f32.mxu1 %vm1283_vm1, %v5534_v31  ;;  %1251 = vst.msk [vmem:[#allocation3 + $0x100] sm:$0xff] %vm1218_vm3, %v4993_v54  ;;  %1252 = vst.msk [vmem:[#allocation3 + $0x108] sm:$0xff] %vm1218_vm3, %v4993_v54 }
  0xf0   : > { %v1097_v32 = vpop.permute.xlu1 %1096  ;;  %v745_v33 = vpop.permute.xlu0 %744  ;;  %v1808_v34 = vld [vmem:[#allocation2 + $0x170] sm:$0xff]  ;;  %1253 = vst.msk [vmem:[#allocation3 + $0x110] sm:$0xff] %vm1218_vm3, %v4993_v54  ;;  %1254 = vst.msk [vmem:[#allocation3 + $0x118] sm:$0xff] %vm1218_vm3, %v4993_v54 }
  0xf1   : > { %1117 = vst.msk [vmem:[#allocation2 + $0x132] sm:$0x7] %vm341_vm0, %v1097_v32  ;;  %764 = vst.msk [vmem:[#allocation2 + $0x164] sm:$0x7] %vm341_vm0, %v745_v33  ;;  %4848 = vmatprep.subr.mxu0 %v1808_v34 }
  0xf2   : > { %750 = vrot.lane.b32.xlu1 %v4194_v30, %s4991_s16  ;;  %4849 = vmatpush3.msra.mxu0 %v1808_v34  ;;  %1255 = vst.msk [vmem:[#allocation3 + $0x120] sm:$0xff] %vm1218_vm3, %v4993_v54  ;;  %1256 = vst.msk [vmem:[#allocation3 + $0x128] sm:$0xff] %vm1218_vm3, %v4993_v54 }
  0xf3   : > { %846 = vrot.lane.b32.xlu0 %v4210_v35, %s4990_s15  ;;  %1257 = vst.msk [vmem:[#allocation3 + $0x130] sm:$0xff] %vm1218_vm3, %v4993_v54  ;;  %1258 = vst.msk [vmem:[#allocation3 + $0x138] sm:$0xff] %vm1218_vm3, %v4993_v54 }
  0xf4   : > { %v616_v38 = vpop.permute.xlu1 %615  ;;  %v1145_v39 = vpop.permute.xlu0 %1144  ;;  %v1682_v40 = vld [vmem:[#allocation2 + $0x138] sm:$0x7]  ;;  %v1807_v41 = vld [vmem:[#allocation2 + $0x168] sm:$0xff] }
  0xf5   : > { %635 = vst.msk [vmem:[#allocation2 + $0x158] sm:$0x7] %vm341_vm0, %v616_v38  ;;  %1165 = vst.msk [vmem:[#allocation2 + $0x135] sm:$0x7] %vm341_vm0, %v1145_v39  ;;  %4819 = vmatprep.subr.msk.mxu1 %vm1290_vm2, %v1682_v40  ;;  %4850 = vmatprep.subr.mxu0 %v1807_v41 }
  0xf6   : > { %669 = vrot.lane.b32.xlu1 %v4170_v36, %s4990_s15  ;;  %4820 = vmatpush3.msk.msra.mxu1 %vm1290_vm2, %v1682_v40 }
  0xf7   : > { %621 = vrot.lane.b32.xlu0 %v4162_v42, %s4991_s16  ;;  %4851 = vmatpush3.msra.mxu0 %v1807_v41 }
  0xf8   : > { %v968_v44 = vpop.permute.xlu1 %967  ;;  %v664_v45 = vpop.permute.xlu0 %663  ;;  %v1806_v46 = vld [vmem:[#allocation2 + $0x160] sm:$0xff] }
  0xf9   : > { %988 = vst.msk [vmem:[#allocation2 + $0x126] sm:$0x7] %vm341_vm0, %v968_v44  ;;  %683 = vst.msk [vmem:[#allocation2 + $0x15b] sm:$0x7] %vm341_vm0, %v664_v45  ;;  %4852 = vmatprep.subr.mxu0 %v1806_v46  ;;  %v3373_v9 = vld [vmem:[#allocation3 + $0x128] sm:$0xff]  ;;  %v3372_v42 = vld [vmem:[#allocation3 + $0x120] sm:$0xff] }
  0xfa   : > { %396 = vrot.lane.b32.xlu1 %v373_v43, %s4991_s16  ;;  %4853 = vmatpush3.msra.mxu0 %v1806_v46  ;;  %v3385_v63 = vld [vmem:[#allocation3 + $0x138] sm:$0xff]  ;;  %v3384_v4 = vld [vmem:[#allocation3 + $0x130] sm:$0xff] }
  0xfb   : > { %573 = vrot.lane.b32.xlu0 %v4154_v47, %s4991_s16 }
  0xfc   : > { %v568_v49 = vpop.permute.xlu1 %567  ;;  %v1016_v50 = vpop.permute.xlu0 %1015  ;;  %v1681_v51 = vld [vmem:[#allocation2 + $0x130] sm:$0xff] }
  0xfd   : > { %587 = vst.msk [vmem:[#allocation2 + $0x155] sm:$0x7] %vm341_vm0, %v568_v49  ;;  %1036 = vst.msk [vmem:[#allocation2 + $0x129] sm:$0x7] %vm341_vm0, %v1016_v50  ;;  %4821 = vmatprep.subr.mxu1 %v1681_v51 }
  0xfe   : > { %492 = vrot.lane.b32.xlu1 %v469_v48, %s4990_s15  ;;  %4822 = vmatpush3.msra.mxu1 %v1681_v51 }
  0xff   : > { %444 = vrot.lane.b32.xlu0 %v421_v52, %s4991_s16 }
 0x100   : > { %v391_v55 = vpop.permute.xlu1 %390  ;;  %v1805_v56 = vld [vmem:[#allocation2 + $0x158] sm:$0xff] }
 0x101   : > { %410 = vst.msk [vmem:[#allocation2 + $0x146] sm:$0x7] %vm341_vm0, %v391_v55  ;;  %v920_v28 = vpop.permute.xlu0 %919  ;;  %4854 = vmatprep.subr.mxu0 %v1805_v56 }
 0x102   : > { %940 = vst.msk [vmem:[#allocation2 + $0x123] sm:$0x7] %vm341_vm0, %v920_v28  ;;  %4855 = vmatpush3.msra.mxu0 %v1805_v56  ;;  %1275 = vperm.xlu1 %4978, %v1261_v53  }
 0x103   : > { %1280 = vperm.xlu0 %4977, %v1262_v57  }
 0x104   : > { %v487_v58 = vpop.permute.xlu1 %486  ;;  %v1680_v59 = vld [vmem:[#allocation2 + $0x128] sm:$0xff]  ;;  %v1804_v60 = vld [vmem:[#allocation2 + $0x150] sm:$0xff] }
 0x105   : > { %506 = vst.msk [vmem:[#allocation2 + $0x14c] sm:$0x7] %vm341_vm0, %v487_v58  ;;  %v439_v61 = vpop.permute.xlu0 %438  ;;  %4823 = vmatprep.subr.mxu1 %v1680_v59  ;;  %4856 = vmatprep.subr.mxu0 %v1804_v60 }
 0x106   : > { %458 = vst.msk [vmem:[#allocation2 + $0x149] sm:$0x7] %vm341_vm0, %v439_v61  ;;  %4824 = vmatpush3.msra.mxu1 %v1680_v59  ;;  %4857 = vmatpush3.msra.mxu0 %v1804_v60 }
 0x107   : > { %2357 = vrot.lane.b32.xlu0 %v2352_v62, %s4991_s16  ;;  %3390 = vrot.lane.b32.xlu1 %v3385_v63, %s4991_s16 }
 0x108   : > { %v839_v0 = vpop.permute.xlu1 %838  ;;  %v1802_v10 = vld [vmem:[#allocation2 + $0x140] sm:$0xff] }
 0x109   : > { %859 = vst.msk [vmem:[#allocation2 + $0x11a] sm:$0x7] %vm341_vm0, %v839_v0  ;;  %v791_v2 = vpop.permute.xlu0 %790  ;;  %v1679_v3 = vld [vmem:[#allocation2 + $0x120] sm:$0xff] }
 0x10a   : > { %811 = vst.msk [vmem:[#allocation2 + $0x117] sm:$0x7] %vm341_vm0, %v791_v2  ;;  %4825 = vmatprep.subr.mxu1 %v1679_v3 }
 0x10b   : > { %4826 = vmatpush3.msra.mxu1 %v1679_v3  ;;  %2355 = vrot.lane.b32.xlu0 %v2351_v1, %s4991_s16 }
 0x10c   : > { %v614_v5 = vpop.permute.xlu1 %613  ;;  %3388 = vrot.lane.b32.xlu1 %v3384_v4, %s4991_s16 }
 0x10d   : > { %634 = vst.msk [vmem:[#allocation2 + $0x108] sm:$0x7] %vm341_vm0, %v614_v5  ;;  %v743_v7 = vpop.permute.xlu0 %742  ;;  %v1803_v8 = vld [vmem:[#allocation2 + $0x148] sm:$0xff] }
 0x10e   : > { %763 = vst.msk [vmem:[#allocation2 + $0x114] sm:$0x7] %vm341_vm0, %v743_v7  ;;  %4858 = vmatprep.subr.mxu0 %v1803_v8 }
 0x10f   : > { %4859 = vmatpush3.msra.mxu0 %v1803_v8  ;;  %2345 = vrot.lane.b32.xlu0 %v2340_v6, %s4991_s16 }
 0x110   : > { %4860 = vmatprep.subr.mxu0 %v1802_v10  ;;  %v566_v11 = vpop.permute.xlu1 %565  ;;  %3378 = vrot.lane.b32.xlu1 %v3373_v9, %s4991_s16  ;;  %v5677_v9 = vld [vmem:[%s6931_s1 + $0x8] sm:$0xff] }
 0x111   : > { %586 = vst.msk [vmem:[#allocation2 + $0x105] sm:$0x7] %vm341_vm0, %v566_v11  ;;  %v662_v12 = vpop.permute.xlu0 %661  ;;  %4861 = vmatpush3.msra.mxu0 %v1802_v10  ;;  %v1678_v13 = vld [vmem:[#allocation2 + $0x118] sm:$0xff] }
 0x112   : > { %682 = vst.msk [vmem:[#allocation2 + $0x10b] sm:$0x7] %vm341_vm0, %v662_v12  ;;  %4827 = vmatprep.subr.mxu1 %v1678_v13  ;;  %4863 = vmatmul.mubr.msk.f32.vlgmr.msra.gmra.mxu0 %vm1283_vm1, %v5357_v37 }
 0x113   : > { %4828 = vmatpush3.msra.mxu1 %v1678_v13  ;;  %4908 = vmatprep.mubr.msk.f32.mxu0 %vm1283_vm1, %v5534_v31 }
 0x114   : > { %v437_v15 = vpop.permute.xlu1 %436  ;;  %2343 = vrot.lane.b32.xlu0 %v2339_v14, %s4991_s16  ;;  %3376 = vrot.lane.b32.xlu1 %v3372_v42, %s4991_s16 }
 0x115   : > { %457 = vst.msk [vmem:[#allocation2 + $0xf9] sm:$0x7] %vm341_vm0, %v437_v15  ;;  %v389_v16 = vpop.permute.xlu0 %388  ;;  %v1677_v17 = vld [vmem:[#allocation2 + $0x110] sm:$0xff] }
 0x116   : > { %409 = vst.msk [vmem:[#allocation2 + $0xf6] sm:$0x7] %vm341_vm0, %v389_v16  ;;  %4829 = vmatprep.subr.mxu1 %v1677_v17 }
 0x117   : > { %4830 = vmatpush3.msra.mxu1 %v1677_v17 }
 0x118   : > { %v1199_v18 = vpop.permute.xlu1 %1198  ;;  %v1675_v21 = vld [vmem:[#allocation2 + $0x100] sm:$0xff] }
 0x119   : > { %1216 = vst.msk [vmem:[#allocation2 + $0x228] sm:$0x7] %vm341_vm0, %v1199_v18  ;;  %v485_v19 = vpop.permute.xlu0 %484  ;;  %v1676_v20 = vld [vmem:[#allocation2 + $0x108] sm:$0xff] }
 0x11a   : > { %505 = vst.msk [vmem:[#allocation2 + $0xfc] sm:$0x7] %vm341_vm0, %v485_v19  ;;  %4831 = vmatprep.subr.mxu1 %v1676_v20 }
 0x11b   : > { %4832 = vmatpush3.msra.mxu1 %v1676_v20 }
 0x11c   : > { %4833 = vmatprep.subr.mxu1 %v1675_v21  ;;  %v1151_v22 = vpop.permute.xlu1 %1150 }
 0x11d   : > { %1168 = vst.msk [vmem:[#allocation2 + $0x225] sm:$0x7] %vm341_vm0, %v1151_v22  ;;  %v1103_v23 = vpop.permute.xlu0 %1102  ;;  %4834 = vmatpush3.msra.mxu1 %v1675_v21  ;;  %v1673_v29 = vld [vmem:[#allocation2 + $0xf0] sm:$0xff] }
 0x11e   : > { %1120 = vst.msk [vmem:[#allocation2 + $0x222] sm:$0x7] %vm341_vm0, %v1103_v23 }
 0x120   : > { %v1022_v24 = vpop.permute.xlu1 %1021  ;;  %v2069_v25 = vld [vmem:[#allocation2 + $0x228] sm:$0x7] }
 0x121   : > { %1039 = vst.msk [vmem:[#allocation2 + $0x219] sm:$0x7] %vm341_vm0, %v1022_v24  ;;  %v974_v26 = vpop.permute.xlu0 %973  ;;  %v1674_v27 = vld [vmem:[#allocation2 + $0xf8] sm:$0xff]  ;;  %4888 = vmatprep.subr.msk.mxu0 %vm1290_vm2, %v2069_v25 }
 0x122   : > { %991 = vst.msk [vmem:[#allocation2 + $0x216] sm:$0x7] %vm341_vm0, %v974_v26  ;;  %4835 = vmatprep.subr.mxu1 %v1674_v27  ;;  %4889 = vmatpush3.msk.msra.mxu0 %vm1290_vm2, %v2069_v25 }
 0x123   : > { %4836 = vmatpush3.msra.mxu1 %v1674_v27 }
 0x124   : > { %4837 = vmatprep.subr.mxu1 %v1673_v29  ;;  %v926_v30 = vpop.permute.xlu1 %925 }
 0x125   : > { %943 = vst.msk [vmem:[#allocation2 + $0x213] sm:$0x7] %vm341_vm0, %v926_v30  ;;  %v1197_v32 = vpop.permute.xlu0 %1196  ;;  %4838 = vmatpush3.msra.mxu1 %v1673_v29  ;;  %v2068_v33 = vld [vmem:[#allocation2 + $0x220] sm:$0xff] }
 0x126   : > { %1215 = vst.msk [vmem:[#allocation2 + $0x1d8] sm:$0x7] %vm341_vm0, %v1197_v32  ;;  %4840 = vmatmul.mubr.msk.f32.vlgmr.msra.gmra.mxu1 %vm1283_vm1, %v5357_v37  ;;  %4890 = vmatprep.subr.mxu0 %v2068_v33 }
 0x127   : > { %4891 = vmatpush3.msra.mxu0 %v2068_v33  ;;  %4885 = vmatprep.mubr.msk.f32.mxu1 %vm1283_vm1, %v5534_v31 }
 0x128   : > { %v1149_v34 = vpop.permute.xlu1 %1148 }
 0x129   : > { %1167 = vst.msk [vmem:[#allocation2 + $0x1d5] sm:$0x7] %vm341_vm0, %v1149_v34  ;;  %v1101_v35 = vpop.permute.xlu0 %1100  ;;  %v2067_v36 = vld [vmem:[#allocation2 + $0x218] sm:$0xff] }
 0x12a   : > { %1119 = vst.msk [vmem:[#allocation2 + $0x1d2] sm:$0x7] %vm341_vm0, %v1101_v35  ;;  %4892 = vmatprep.subr.mxu0 %v2067_v36 }
 0x12b   : > { %4893 = vmatpush3.msra.mxu0 %v2067_v36 }
 0x12c   : > { %v845_v38 = vpop.permute.xlu1 %844  ;;  %v2066_v39 = vld [vmem:[#allocation2 + $0x210] sm:$0xff] }
 0x12d   : > { %862 = vst.msk [vmem:[#allocation2 + $0x20a] sm:$0x7] %vm341_vm0, %v845_v38  ;;  %v797_v40 = vpop.permute.xlu0 %796  ;;  %v1940_v37 = vld [vmem:[#allocation2 + $0x1d8] sm:$0x7]  ;;  %4894 = vmatprep.subr.mxu0 %v2066_v39 }
 0x12e   : > { %814 = vst.msk [vmem:[#allocation2 + $0x207] sm:$0x7] %vm341_vm0, %v797_v40  ;;  %4865 = vmatprep.subr.msk.mxu1 %vm1290_vm2, %v1940_v37  ;;  %4895 = vmatpush3.msra.mxu0 %v2066_v39 }
 0x12f   : > { %4866 = vmatpush3.msk.msra.mxu1 %vm1290_vm2, %v1940_v37 }
 0x130   : > { %v1020_v41 = vpop.permute.xlu1 %1019 }
 0x131   : > { %1038 = vst.msk [vmem:[#allocation2 + $0x1c9] sm:$0x7] %vm341_vm0, %v1020_v41  ;;  %v972_v43 = vpop.permute.xlu0 %971  ;;  %v1939_v44 = vld [vmem:[#allocation2 + $0x1d0] sm:$0xff] }
 0x132   : > { %990 = vst.msk [vmem:[#allocation2 + $0x1c6] sm:$0x7] %vm341_vm0, %v972_v43  ;;  %4867 = vmatprep.subr.mxu1 %v1939_v44 }
 0x133   : > { %4868 = vmatpush3.msra.mxu1 %v1939_v44 }
 0x134   : > { %v924_v45 = vpop.permute.xlu1 %923 }
 0x135   : > { %942 = vst.msk [vmem:[#allocation2 + $0x1c3] sm:$0x7] %vm341_vm0, %v924_v45  ;;  %v749_v46 = vpop.permute.xlu0 %748  ;;  %v2065_v47 = vld [vmem:[#allocation2 + $0x208] sm:$0xff] }
 0x136   : > { %766 = vst.msk [vmem:[#allocation2 + $0x204] sm:$0x7] %vm341_vm0, %v749_v46  ;;  %4896 = vmatprep.subr.mxu0 %v2065_v47 }
 0x137   : > { %4897 = vmatpush3.msra.mxu0 %v2065_v47 }
 0x138   : > { %v668_v48 = vpop.permute.xlu1 %667 }
 0x139   : > { %685 = vst.msk [vmem:[#allocation2 + $0x1fb] sm:$0x7] %vm341_vm0, %v668_v48  ;;  %v620_v49 = vpop.permute.xlu0 %619  ;;  %v1938_v50 = vld [vmem:[#allocation2 + $0x1c8] sm:$0xff] }
 0x13a   : > { %637 = vst.msk [vmem:[#allocation2 + $0x1f8] sm:$0x7] %vm341_vm0, %v620_v49  ;;  %4869 = vmatprep.subr.mxu1 %v1938_v50 }
 0x13b   : > { %4870 = vmatpush3.msra.mxu1 %v1938_v50 }
 0x13c   : > { %v843_v51 = vpop.permute.xlu1 %842  ;;  %v1937_v52 = vld [vmem:[#allocation2 + $0x1c0] sm:$0xff] }
 0x13d   : > { %861 = vst.msk [vmem:[#allocation2 + $0x1ba] sm:$0x7] %vm341_vm0, %v843_v51  ;;  %v795_v53 = vpop.permute.xlu0 %794  ;;  %4871 = vmatprep.subr.mxu1 %v1937_v52  ;;  %v2064_v54 = vld [vmem:[#allocation2 + $0x200] sm:$0xff] }
 0x13e   : > { %813 = vst.msk [vmem:[#allocation2 + $0x1b7] sm:$0x7] %vm341_vm0, %v795_v53  ;;  %4898 = vmatprep.subr.mxu0 %v2064_v54  ;;  %4872 = vmatpush3.msra.mxu1 %v1937_v52 }
 0x13f   : > { %4899 = vmatpush3.msra.mxu0 %v2064_v54 }
 0x140   : > { %v747_v55 = vpop.permute.xlu1 %746 }
 0x141   : > { %765 = vst.msk [vmem:[#allocation2 + $0x1b4] sm:$0x7] %vm341_vm0, %v747_v55  ;;  %v572_v56 = vpop.permute.xlu0 %571  ;;  %v2063_v57 = vld [vmem:[#allocation2 + $0x1f8] sm:$0xff] }
 0x142   : > { %589 = vst.msk [vmem:[#allocation2 + $0x1f5] sm:$0x7] %vm341_vm0, %v572_v56  ;;  %4900 = vmatprep.subr.mxu0 %v2063_v57 }
 0x143   : > { %4901 = vmatpush3.msra.mxu0 %v2063_v57 }
 0x144   : > { %v443_v28 = vpop.permute.xlu1 %442 }
 0x145   : > { %460 = vst.msk [vmem:[#allocation2 + $0x1e9] sm:$0x7] %vm341_vm0, %v443_v28  ;;  %v395_v58 = vpop.permute.xlu0 %394  ;;  %v1936_v59 = vld [vmem:[#allocation2 + $0x1b8] sm:$0xff] }
 0x146   : > { %412 = vst.msk [vmem:[#allocation2 + $0x1e6] sm:$0x7] %vm341_vm0, %v395_v58  ;;  %4873 = vmatprep.subr.mxu1 %v1936_v59 }
 0x147   : > { %4874 = vmatpush3.msra.mxu1 %v1936_v59 }
 0x148   : > { %v618_v60 = vpop.permute.xlu1 %617  ;;  %v1935_v61 = vld [vmem:[#allocation2 + $0x1b0] sm:$0xff] }
 0x149   : > { %636 = vst.msk [vmem:[#allocation2 + $0x1a8] sm:$0x7] %vm341_vm0, %v618_v60  ;;  %v491_v62 = vpop.permute.xlu0 %490  ;;  %4875 = vmatprep.subr.mxu1 %v1935_v61  ;;  %v2062_v63 = vld [vmem:[#allocation2 + $0x1f0] sm:$0xff] }
 0x14a   : > { %508 = vst.msk [vmem:[#allocation2 + $0x1ec] sm:$0x7] %vm341_vm0, %v491_v62  ;;  %4902 = vmatprep.subr.mxu0 %v2062_v63  ;;  %4876 = vmatpush3.msra.mxu1 %v1935_v61 }
 0x14b   : > { %4903 = vmatpush3.msra.mxu0 %v2062_v63 }
 0x14c   : > { %v570_v0 = vpop.permute.xlu1 %569 }
 0x14d   : > { %588 = vst.msk [vmem:[#allocation2 + $0x1a5] sm:$0x7] %vm341_vm0, %v570_v0  ;;  %v666_v1 = vpop.permute.xlu0 %665  ;;  %v2060_v5 = vld [vmem:[#allocation2 + $0x1e0] sm:$0xff] }
 0x14e   : > { %684 = vst.msk [vmem:[#allocation2 + $0x1ab] sm:$0x7] %vm341_vm0, %v666_v1 }
 0x150   : > { %v441_v2 = vpop.permute.xlu1 %440 }
 0x151   : > { %459 = vst.msk [vmem:[#allocation2 + $0x199] sm:$0x7] %vm341_vm0, %v441_v2  ;;  %v393_v3 = vpop.permute.xlu0 %392  ;;  %v2061_v4 = vld [vmem:[#allocation2 + $0x1e8] sm:$0xff] }
 0x152   : > { %411 = vst.msk [vmem:[#allocation2 + $0x196] sm:$0x7] %vm341_vm0, %v393_v3  ;;  %4904 = vmatprep.subr.mxu0 %v2061_v4  ;;  %v2336_v3 = vld [vmem:[#allocation3 + $0x18] sm:$0xff] }
 0x153   : > { %4905 = vmatpush3.msra.mxu0 %v2061_v4  ;;  %v2330_v4 = vld [vmem:[#allocation3 + $0x8] sm:$0xff]  ;;  %2338 = vst.msk [vmem:[#allocation4 + $0x18] sm:$0xff] %vm2331_vm6, %v2336_v3 }
 0x154   : > { %4906 = vmatprep.subr.mxu0 %v2060_v5  ;;  %v1201_v6 = vpop.permute.xlu1 %1200  ;;  %v1933_v10 = vld [vmem:[#allocation2 + $0x1a0] sm:$0xff]  ;;  %2333 = vst.msk [vmem:[#allocation4 + $0x8] sm:$0xff] %vm2331_vm6, %v2330_v4 }
 0x155   : > { %1217 = vst.msk [vmem:[#allocation2 + $0x278] sm:$0x7] %vm341_vm0, %v1201_v6  ;;  %v489_v7 = vpop.permute.xlu0 %488  ;;  %4907 = vmatpush3.msra.mxu0 %v2060_v5  ;;  %v1934_v8 = vld [vmem:[#allocation2 + $0x1a8] sm:$0xff]  ;;  %v2335_v6 = vld [vmem:[#allocation3 + $0x10] sm:$0xff] }
 0x156   : > { %507 = vst.msk [vmem:[#allocation2 + $0x19c] sm:$0x7] %vm341_vm0, %v489_v7  ;;  %4877 = vmatprep.subr.mxu1 %v1934_v8  ;;  %4909 = vmatmul.mubr.msk.f32.vlgmr.msra.gmra.mxu0 %vm1283_vm1, %v5677_v9  ;;  %v2329_v7 = vld [vmem:[#allocation3] sm:$0xff] }
 0x157   : > { %4878 = vmatpush3.msra.mxu1 %v1934_v8  ;;  %2337 = vst.msk [vmem:[#allocation4 + $0x10] sm:$0xff] %vm2331_vm6, %v2335_v6  ;;  %2332 = vst.msk [vmem:[#allocation4] sm:$0xff] %vm2331_vm6, %v2329_v7 }
 0x158   : > { %4879 = vmatprep.subr.mxu1 %v1933_v10  ;;  %v1153_v11 = vpop.permute.xlu1 %1152 }
 0x159   : > { %1169 = vst.msk [vmem:[#allocation2 + $0x275] sm:$0x7] %vm341_vm0, %v1153_v11  ;;  %v1105_v12 = vpop.permute.xlu0 %1104  ;;  %4880 = vmatpush3.msra.mxu1 %v1933_v10  ;;  %v1931_v16 = vld [vmem:[#allocation2 + $0x190] sm:$0xff] }
 0x15a   : > { %1121 = vst.msk [vmem:[#allocation2 + $0x272] sm:$0x7] %vm341_vm0, %v1105_v12 }
 0x15c   : > { %v1024_v13 = vpop.permute.xlu1 %1023  ;;  %v2198_v19 = vld [vmem:[#allocation2 + $0x278] sm:$0x7] }
 0x15d   : > { %1040 = vst.msk [vmem:[#allocation2 + $0x269] sm:$0x7] %vm341_vm0, %v1024_v13  ;;  %v976_v14 = vpop.permute.xlu0 %975  ;;  %v1932_v15 = vld [vmem:[#allocation2 + $0x198] sm:$0xff] }
 0x15e   : > { %992 = vst.msk [vmem:[#allocation2 + $0x266] sm:$0x7] %vm341_vm0, %v976_v14  ;;  %4881 = vmatprep.subr.mxu1 %v1932_v15 }
 0x15f   : > { %4882 = vmatpush3.msra.mxu1 %v1932_v15 }
 0x160   : > { %4883 = vmatprep.subr.mxu1 %v1931_v16  ;;  %v799_v17 = vpop.permute.xlu1 %798 }
 0x161   : > { %815 = vst.msk [vmem:[#allocation2 + $0x257] sm:$0x7] %vm341_vm0, %v799_v17  ;;  %v928_v18 = vpop.permute.xlu0 %927  ;;  %4884 = vmatpush3.msra.mxu1 %v1931_v16  ;;  %v2197_v20 = vld [vmem:[#allocation2 + $0x270] sm:$0xff] }
 0x162   : > { %944 = vst.msk [vmem:[#allocation2 + $0x263] sm:$0x7] %vm341_vm0, %v928_v18  ;;  %4886 = vmatmul.mubr.msk.f32.vlgmr.msra.gmra.mxu1 %vm1283_vm1, %v5677_v9  ;;  %4911 = vmatprep.subr.msk.mxu1 %vm1290_vm2, %v2198_v19 }
 0x163   : > { %4912 = vmatpush3.msk.msra.mxu1 %vm1290_vm2, %v2198_v19  ;;  %4931 = vmatprep.mubr.msk.f32.mxu1 %vm1283_vm1, %v5534_v31 }
 0x164   : > { %4913 = vmatprep.subr.mxu1 %v2197_v20  ;;  %v751_v21 = vpop.permute.xlu1 %750 }
 0x165   : > { %767 = vst.msk [vmem:[#allocation2 + $0x254] sm:$0x7] %vm341_vm0, %v751_v21  ;;  %v847_v22 = vpop.permute.xlu0 %846  ;;  %4914 = vmatpush3.msra.mxu1 %v2197_v20  ;;  %v2196_v23 = vld [vmem:[#allocation2 + $0x268] sm:$0xff] }
 0x166   : > { %863 = vst.msk [vmem:[#allocation2 + $0x25a] sm:$0x7] %vm341_vm0, %v847_v22  ;;  %4915 = vmatprep.subr.mxu1 %v2196_v23 }
 0x167   : > { %4916 = vmatpush3.msra.mxu1 %v2196_v23 }
 0x168   : > { %v670_v24 = vpop.permute.xlu1 %669 }
 0x169   : > { %686 = vst.msk [vmem:[#allocation2 + $0x24b] sm:$0x7] %vm341_vm0, %v670_v24  ;;  %v622_v25 = vpop.permute.xlu0 %621  ;;  %v2195_v26 = vld [vmem:[#allocation2 + $0x260] sm:$0xff] }
 0x16a   : > { %638 = vst.msk [vmem:[#allocation2 + $0x248] sm:$0x7] %vm341_vm0, %v622_v25  ;;  %4917 = vmatprep.subr.mxu1 %v2195_v26 }
 0x16b   : > { %4918 = vmatpush3.msra.mxu1 %v2195_v26 }
 0x16c   : > { %v397_v31 = vpop.permute.xlu1 %396  ;;  %v2193_v30 = vld [vmem:[#allocation2 + $0x250] sm:$0xff] }
 0x16d   : > { %413 = vst.msk [vmem:[#allocation2 + $0x236] sm:$0x7] %vm341_vm0, %v397_v31  ;;  %v574_v27 = vpop.permute.xlu0 %573  ;;  %v2194_v29 = vld [vmem:[#allocation2 + $0x258] sm:$0xff]  ;;  %v4772_v38 = vpop.f32.mrf.mxu0 }
 0x16e   : > { %590 = vst.msk [vmem:[#allocation2 + $0x245] sm:$0x7] %vm341_vm0, %v574_v27  ;;  %4919 = vmatprep.subr.mxu1 %v2194_v29 }
 0x16f   : > { %4920 = vmatpush3.msra.mxu1 %v2194_v29  ;;  %v1360_v40 = vpop.f32.mrf.mxu0 }
 0x170   : > { %4921 = vmatprep.subr.mxu1 %v2193_v30  ;;  %v493_v32 = vpop.permute.xlu1 %492 }
 0x171   : > { %509 = vst.msk [vmem:[#allocation2 + $0x23c] sm:$0x7] %vm341_vm0, %v493_v32  ;;  %v445_v33 = vpop.permute.xlu0 %444  ;;  %4922 = vmatpush3.msra.mxu1 %v2193_v30  ;;  %v2192_v34 = vld [vmem:[#allocation2 + $0x248] sm:$0xff] }
 0x172   : > { %461 = vst.msk [vmem:[#allocation2 + $0x239] sm:$0x7] %vm341_vm0, %v445_v33  ;;  %4923 = vmatprep.subr.mxu1 %v2192_v34 }
 0x173   : > { %4924 = vmatpush3.msra.mxu1 %v2192_v34 }
 0x174   : > { %v2189_v39 = vld [vmem:[#allocation2 + $0x230] sm:$0xff] }
 0x175   : > { %v2191_v35 = vld [vmem:[#allocation2 + $0x240] sm:$0xff] }
 0x176   : > { %4925 = vmatprep.subr.mxu1 %v2191_v35 }
 0x177   : > { %4926 = vmatpush3.msra.mxu1 %v2191_v35 }
 0x179   : > { %v2190_v36 = vld [vmem:[#allocation2 + $0x238] sm:$0xff] }
 0x17a   : > { %4927 = vmatprep.subr.mxu1 %v2190_v36 }
 0x17b   : > { %4928 = vmatpush3.msra.mxu1 %v2190_v36 }
 0x17c   : > { %4929 = vmatprep.subr.mxu1 %v2189_v39 }
 0x17d   : > { %4930 = vmatpush3.msra.mxu1 %v2189_v39  ;;  %v5701_v37 = vpop.permute.xlu1 %1275 }
 0x17e   : > { %4932 = vmatmul.mubr.msk.f32.vlgmr.msra.gmra.mxu1 %vm1283_vm1, %v5677_v9  ;;  %v5705_v41 = vpop.permute.xlu0 %1280  ;;  %v1361_v42 = vadd.f32 %v1360_v40, %v5701_v37 }
 0x17f   : > { %v1366_v43 = vadd.f32 %v4772_v38, %v5705_v41 }
 0x180   : > { %v1369_v44 = vmax.f32 %v1361_v42, 0.0 }
 0x181   : > { %v1370_v45 = vmax.f32 %v1366_v43, 0.0  ;;  %v5797_v18 = vpop.permute.xlu1 %3390  ;;  %v5846_v43 = vld [vmem:[#allocation4 + $0x18] sm:$0xff] }
 0x182   : > { %1373 = vst.msk [vmem:[#allocation3 + $0x30] sm:$0xff] %vm1372_vm4, %v1369_v44  ;;  %v2358_v52 = vpop.permute.xlu0 %2357 }
 0x183   : > { %1377 = vst.msk [vmem:[#allocation3 + $0x20] sm:$0xff] %vm1376_vm5, %v1369_v44  ;;  %1383 = vrot.lane.b32.xlu0 %v1370_v45, %s4991_s16  ;;  %1378 = vst.msk [vmem:[#allocation3 + $0x28] sm:$0xff] %vm1376_vm5, %v1370_v45 }
 0x184   : > { %1374 = vst.msk [vmem:[#allocation3 + $0x38] sm:$0xff] %vm1372_vm4, %v1370_v45 }
 0x185   : > { %2362 = vst.msk [vmem:[#allocation4 + $0x38] sm:$0xff] %vm2331_vm6, %v2358_v52  ;;  %v5799_v19 = vpop.permute.xlu1 %3388 }
 0x186   : > { %v2356_v53 = vpop.permute.xlu0 %2355 }
 0x187   : > { %1394 = vrot.lane.b32.xlu0 %v1370_v45, %s4990_s15  ;;  %2361 = vst.msk [vmem:[#allocation4 + $0x30] sm:$0xff] %vm2331_vm6, %v2356_v53 }
 0x189   : > { %v5802_v23 = vpop.permute.xlu1 %3378 }
 0x18a   : > { %v2346_v57 = vpop.permute.xlu0 %2345 }
 0x18b   : > { %1405 = vrot.lane.b32.xlu0 %v1370_v45, %s4994_s29  ;;  %2350 = vst.msk [vmem:[#allocation4 + $0x28] sm:$0xff] %vm2331_vm6, %v2346_v57 }
 0x18d   : > { %v5817_v31 = vpop.permute.xlu1 %3376 }
 0x18e   : > { %v2344_v60 = vpop.permute.xlu0 %2343 }
 0x18f   : > { %2349 = vst.msk [vmem:[#allocation4 + $0x20] sm:$0xff] %vm2331_vm6, %v2344_v60 }
 0x195   : > { %v4818_v46 = vpop.f32.mrf.mxu0 }
 0x196   : > { %v1629_v47 = vadd.f32 %v4818_v46, %v5705_v41 }
 0x197   : > { %v1623_v48 = vpop.f32.mrf.mxu0 }
 0x198   : > { %v1633_v49 = vmax.f32 %v1629_v47, 0.0  ;;  %v1624_v50 = vadd.f32 %v1623_v48, %v5701_v37 }
 0x19a   : > { %v5718_v51 = vmax.f32 %v1624_v50, 0.0  ;;  %1636 = vst.msk [vmem:[#allocation3 + $0x78] sm:$0xff] %vm1372_vm4, %v1633_v49 }
 0x19b   : > { %1639 = vst.msk [vmem:[#allocation3 + $0x68] sm:$0xff] %vm1376_vm5, %v1633_v49 }
 0x19c   : > { %1635 = vst.msk [vmem:[#allocation3 + $0x70] sm:$0xff] %vm1372_vm4, %v5718_v51 }
 0x19d   : > { %1638 = vst.msk [vmem:[#allocation3 + $0x60] sm:$0xff] %vm1376_vm5, %v5718_v51 }
 0x1ad   : > { %v4795_v54 = vpop.f32.mrf.mxu1 }
 0x1ae   : > { %v1500_v55 = vadd.f32 %v4795_v54, %v5705_v41 }
 0x1af   : > { %v1494_v56 = vpop.f32.mrf.mxu1 }
 0x1b0   : > { %v1504_v28 = vmax.f32 %v1500_v55, 0.0  ;;  %v1495_v58 = vadd.f32 %v1494_v56, %v5701_v37  ;;  %v5888_v55 = vld [vmem:[#allocation4 + $0x10] sm:$0xff]  ;;  %v5890_v56 = vld [vmem:[#allocation4] sm:$0xff] }
 0x1b2   : > { %1515 = vrot.lane.b32.xlu1 %v1504_v28, %s4991_s16  ;;  %1525 = vrot.lane.b32.xlu0 %v1504_v28, %s4990_s15  ;;  %v1503_v59 = vmax.f32 %v1495_v58, 0.0  ;;  %1507 = vst.msk [vmem:[#allocation3 + $0x58] sm:$0xff] %vm1372_vm4, %v1504_v28 }
 0x1b3   : > { %1510 = vst.msk [vmem:[#allocation3 + $0x48] sm:$0xff] %vm1376_vm5, %v1504_v28 }
 0x1b4   : > { %1506 = vst.msk [vmem:[#allocation3 + $0x50] sm:$0xff] %vm1372_vm4, %v1503_v59 }
 0x1b5   : > { %1509 = vst.msk [vmem:[#allocation3 + $0x40] sm:$0xff] %vm1376_vm5, %v1503_v59 }
 0x1b6   : > { %1535 = vrot.lane.b32.xlu0 %v1504_v28, %s4994_s29  ;;  %1381 = vrot.lane.b32.xlu1 %v1369_v44, %s4991_s16 }
 0x1ba   : > { %1392 = vrot.lane.b32.xlu0 %v1369_v44, %s4990_s15  ;;  %1513 = vrot.lane.b32.xlu1 %v1503_v59, %s4991_s16 }
 0x1be   : > { %1403 = vrot.lane.b32.xlu0 %v1369_v44, %s4994_s29  ;;  %1523 = vrot.lane.b32.xlu1 %v1503_v59, %s4990_s15  ;;  %v5848_v44 = vld [vmem:[#allocation4 + $0x8] sm:$0xff] }
 0x1c2   : > { %1533 = vrot.lane.b32.xlu0 %v1503_v59, %s4994_s29  ;;  %1644 = vrot.lane.b32.xlu1 %v1633_v49, %s4991_s16 }
 0x1c6   : > { %1664 = vrot.lane.b32.xlu0 %v1633_v49, %s4994_s29  ;;  %1654 = vrot.lane.b32.xlu1 %v1633_v49, %s4990_s15 }
 0x1d2   : > { %v4864_v61 = vpop.f32.mrf.mxu0 }
 0x1d3   : > { %v1887_v62 = vadd.f32 %v4864_v61, %v5705_v41 }
 0x1d4   : > { %v1881_v63 = vpop.f32.mrf.mxu0 }
 0x1d5   : > { %v1891_v0 = vmax.f32 %v1887_v62, 0.0  ;;  %v1882_v1 = vadd.f32 %v1881_v63, %v5701_v37 }
 0x1d7   : > { %v5750_v2 = vmax.f32 %v1882_v1, 0.0  ;;  %1894 = vst.msk [vmem:[#allocation3 + $0xb8] sm:$0xff] %vm1372_vm4, %v1891_v0 }
 0x1d8   : > { %1897 = vst.msk [vmem:[#allocation3 + $0xa8] sm:$0xff] %vm1376_vm5, %v1891_v0 }
 0x1d9   : > { %1893 = vst.msk [vmem:[#allocation3 + $0xb0] sm:$0xff] %vm1372_vm4, %v5750_v2 }
 0x1da   : > { %1896 = vst.msk [vmem:[#allocation3 + $0xa0] sm:$0xff] %vm1376_vm5, %v5750_v2 }
 0x1e6   : > { %v4841_v5 = vpop.f32.mrf.mxu1 }
 0x1e7   : > { %v1758_v8 = vadd.f32 %v4841_v5, %v5705_v41 }
 0x1e8   : > { %v1752_v9 = vpop.f32.mrf.mxu1 }
 0x1e9   : > { %v1762_v10 = vmax.f32 %v1758_v8, 0.0  ;;  %v1753_v11 = vadd.f32 %v1752_v9, %v5701_v37 }
 0x1eb   : > { %1783 = vrot.lane.b32.xlu0 %v1762_v10, %s4990_s15  ;;  %1773 = vrot.lane.b32.xlu1 %v1762_v10, %s4991_s16  ;;  %v1761_v12 = vmax.f32 %v1753_v11, 0.0  ;;  %1765 = vst.msk [vmem:[#allocation3 + $0x98] sm:$0xff] %vm1372_vm4, %v1762_v10 }
 0x1ec   : > { %1768 = vst.msk [vmem:[#allocation3 + $0x88] sm:$0xff] %vm1376_vm5, %v1762_v10 }
 0x1ed   : > { %1764 = vst.msk [vmem:[#allocation3 + $0x90] sm:$0xff] %vm1372_vm4, %v1761_v12 }
 0x1ee   : > { %1767 = vst.msk [vmem:[#allocation3 + $0x80] sm:$0xff] %vm1376_vm5, %v1761_v12 }
 0x1ef   : > { %1793 = vrot.lane.b32.xlu0 %v1762_v10, %s4994_s29  ;;  %1642 = vrot.lane.b32.xlu1 %v5718_v51, %s4991_s16 }
 0x1f3   : > { %1791 = vrot.lane.b32.xlu0 %v1761_v12, %s4994_s29  ;;  %1652 = vrot.lane.b32.xlu1 %v5718_v51, %s4990_s15 }
 0x1f5   : > { %v1384_v13 = vpop.permute.xlu0 %1383 }
 0x1f6   : > { %1388 = vst.msk [vmem:[#allocation3 + $0x38] sm:$0xff] %vm1376_vm5, %v1384_v13 }
 0x1f7   : > { %1391 = vst.msk [vmem:[#allocation3 + $0x28] sm:$0xff] %vm1389_vm7, %v1384_v13  ;;  %1912 = vrot.lane.b32.xlu0 %v1891_v0, %s4990_s15  ;;  %1662 = vrot.lane.b32.xlu1 %v5718_v51, %s4994_s29 }
 0x1f9   : > { %v1395_v14 = vpop.permute.xlu0 %1394 }
 0x1fa   : > { %1399 = vst.msk [vmem:[#allocation3 + $0x38] sm:$0xff] %vm1389_vm7, %v1395_v14 }
 0x1fb   : > { %1402 = vst.msk [vmem:[#allocation3 + $0x28] sm:$0xff] %vm1400_vm8, %v1395_v14  ;;  %1922 = vrot.lane.b32.xlu0 %v1891_v0, %s4994_s29  ;;  %1771 = vrot.lane.b32.xlu1 %v1761_v12, %s4991_s16 }
 0x1fd   : > { %v1406_v15 = vpop.permute.xlu0 %1405 }
 0x1fe   : > { %1410 = vst.msk [vmem:[#allocation3 + $0x38] sm:$0xff] %vm1400_vm8, %v1406_v15 }
 0x1ff   : > { %1413 = vst.msk [vmem:[#allocation3 + $0x28] sm:$0xff] %vm1411_vm9, %v1406_v15  ;;  %1781 = vrot.lane.b32.xlu1 %v1761_v12, %s4990_s15 }
 0x203   : > { %1902 = vrot.lane.b32.xlu1 %v1891_v0, %s4991_s16 }
 0x205   : > { %v5789_v16 = vld [vmem:[#allocation3 + $0x38] sm:$0xff] }
 0x206   : > { %v5791_v17 = vld [vmem:[#allocation3 + $0x28] sm:$0xff]  ;;  %2370 = vst.msk [vmem:[#allocation4 + $0x58] sm:$0xff] %vm2331_vm6, %v5789_v16 }
 0x207   : > { %2366 = vst.msk [vmem:[#allocation4 + $0x48] sm:$0xff] %vm2331_vm6, %v5791_v17 }
 0x20d   : > { %v5905_v60 = vld [vmem:[#allocation4 + $0x58] sm:$0xff] }
 0x20e   : > { %v5907_v61 = vld [vmem:[#allocation4 + $0x48] sm:$0xff] }
 0x216   : > { %v4910_v20 = vpop.f32.mrf.mxu0 }
 0x217   : > { %v2145_v21 = vadd.f32 %v4910_v20, %v5705_v41 }
 0x218   : > { %v2139_v22 = vpop.f32.mrf.mxu0 }
 0x219   : > { %v5804_v24 = vmax.f32 %v2145_v21, 0.0  ;;  %v2140_v25 = vadd.f32 %v2139_v22, %v5701_v37 }
 0x21b   : > { %v5807_v26 = vmax.f32 %v2140_v25, 0.0  ;;  %2152 = vst.msk [vmem:[#allocation3 + $0xf8] sm:$0xff] %vm1372_vm4, %v5804_v24 }
 0x21c   : > { %2155 = vst.msk [vmem:[#allocation3 + $0xe8] sm:$0xff] %vm1376_vm5, %v5804_v24 }
 0x21d   : > { %2151 = vst.msk [vmem:[#allocation3 + $0xf0] sm:$0xff] %vm1372_vm4, %v5807_v26 }
 0x21e   : > { %2154 = vst.msk [vmem:[#allocation3 + $0xe0] sm:$0xff] %vm1376_vm5, %v5807_v26 }
 0x222   : > { %v4887_v27 = vpop.f32.mrf.mxu1 }
 0x223   : > { %v2016_v29 = vadd.f32 %v4887_v27, %v5705_v41 }
 0x224   : > { %v2010_v30 = vpop.f32.mrf.mxu1  ;;  %v1516_v32 = vpop.permute.xlu1 %1515 }
 0x225   : > { %v2020_v33 = vmax.f32 %v2016_v29, 0.0  ;;  %v2011_v34 = vadd.f32 %v2010_v30, %v5701_v37  ;;  %1520 = vst.msk [vmem:[#allocation3 + $0x58] sm:$0xff] %vm1376_vm5, %v1516_v32  ;;  %v1526_v35 = vpop.permute.xlu0 %1525 }
 0x226   : > { %1522 = vst.msk [vmem:[#allocation3 + $0x48] sm:$0xff] %vm1389_vm7, %v1516_v32  ;;  %1530 = vst.msk [vmem:[#allocation3 + $0x58] sm:$0xff] %vm1389_vm7, %v1526_v35 }
 0x227   : > { %1532 = vst.msk [vmem:[#allocation3 + $0x48] sm:$0xff] %vm1400_vm8, %v1526_v35  ;;  %v2019_v36 = vmax.f32 %v2011_v34, 0.0  ;;  %2041 = vrot.lane.b32.xlu0 %v2020_v33, %s4990_s15  ;;  %2031 = vrot.lane.b32.xlu1 %v2020_v33, %s4991_s16 }
 0x228   : > { %2023 = vst.msk [vmem:[#allocation3 + $0xd8] sm:$0xff] %vm1372_vm4, %v2020_v33  ;;  %v1382_v38 = vpop.permute.xlu1 %1381 }
 0x229   : > { %2026 = vst.msk [vmem:[#allocation3 + $0xc8] sm:$0xff] %vm1376_vm5, %v2020_v33  ;;  %2025 = vst.msk [vmem:[#allocation3 + $0xc0] sm:$0xff] %vm1376_vm5, %v2019_v36  ;;  %v1536_v39 = vpop.permute.xlu0 %1535 }
 0x22a   : > { %2022 = vst.msk [vmem:[#allocation3 + $0xd0] sm:$0xff] %vm1372_vm4, %v2019_v36 }
 0x22b   : > { %1387 = vst.msk [vmem:[#allocation3 + $0x30] sm:$0xff] %vm1376_vm5, %v1382_v38  ;;  %2051 = vrot.lane.b32.xlu0 %v2020_v33, %s4994_s29  ;;  %1900 = vrot.lane.b32.xlu1 %v5750_v2, %s4991_s16 }
 0x22c   : > { %1390 = vst.msk [vmem:[#allocation3 + $0x20] sm:$0xff] %vm1389_vm7, %v1382_v38  ;;  %v1514_v40 = vpop.permute.xlu1 %1513 }
 0x22d   : > { %1540 = vst.msk [vmem:[#allocation3 + $0x58] sm:$0xff] %vm1400_vm8, %v1536_v39  ;;  %v1393_v42 = vpop.permute.xlu0 %1392 }
 0x22e   : > { %1542 = vst.msk [vmem:[#allocation3 + $0x48] sm:$0xff] %vm1411_vm9, %v1536_v39 }
 0x22f   : > { %1519 = vst.msk [vmem:[#allocation3 + $0x50] sm:$0xff] %vm1376_vm5, %v1514_v40  ;;  %1920 = vrot.lane.b32.xlu0 %v5750_v2, %s4994_s29  ;;  %1910 = vrot.lane.b32.xlu1 %v5750_v2, %s4990_s15 }
 0x230   : > { %1521 = vst.msk [vmem:[#allocation3 + $0x40] sm:$0xff] %vm1389_vm7, %v1514_v40  ;;  %1398 = vst.msk [vmem:[#allocation3 + $0x30] sm:$0xff] %vm1389_vm7, %v1393_v42  ;;  %v1524_v45 = vpop.permute.xlu1 %1523 }
 0x231   : > { %1401 = vst.msk [vmem:[#allocation3 + $0x20] sm:$0xff] %vm1400_vm8, %v1393_v42  ;;  %v1404_v46 = vpop.permute.xlu0 %1403  ;;  %1531 = vst.msk [vmem:[#allocation3 + $0x40] sm:$0xff] %vm1400_vm8, %v1524_v45 }
 0x232   : > { %1529 = vst.msk [vmem:[#allocation3 + $0x50] sm:$0xff] %vm1389_vm7, %v1524_v45  ;;  %v6069_v45 = vld [vmem:[%s6933_s3 + $0x8] sm:$0xff] }
 0x233   : > { %1409 = vst.msk [vmem:[#allocation3 + $0x30] sm:$0xff] %vm1400_vm8, %v1404_v46  ;;  %2049 = vrot.lane.b32.xlu0 %v2019_v36, %s4994_s29  ;;  %2029 = vrot.lane.b32.xlu1 %v2019_v36, %s4991_s16 }
 0x234   : > { %v5852_v47 = vld [vmem:[#allocation3 + $0x58] sm:$0xff]  ;;  %1412 = vst.msk [vmem:[#allocation3 + $0x20] sm:$0xff] %vm1411_vm9, %v1404_v46  ;;  %v1645_v49 = vpop.permute.xlu1 %1644  ;;  %2575 = vmatprep.mubr.f32.mxu0 %v6069_v45  ;;  %2880 = vmatprep.mubr.f32.mxu1 %v6069_v45 }
 0x235   : > { %v5854_v48 = vld [vmem:[#allocation3 + $0x48] sm:$0xff]  ;;  %2402 = vst.msk [vmem:[#allocation4 + $0x98] sm:$0xff] %vm2331_vm6, %v5852_v47  ;;  %2663 = vst.msk [vmem:[#allocation4 + $0x18] sm:$0xff] %vm2331_vm6, %v5852_v47  ;;  %v1534_v50 = vpop.permute.xlu0 %1533 }
 0x236   : > { %2398 = vst.msk [vmem:[#allocation4 + $0x88] sm:$0xff] %vm2331_vm6, %v5854_v48  ;;  %2659 = vst.msk [vmem:[#allocation4 + $0x8] sm:$0xff] %vm2331_vm6, %v5854_v48 }
 0x237   : > { %1649 = vst.msk [vmem:[#allocation3 + $0x78] sm:$0xff] %vm1376_vm5, %v1645_v49  ;;  %2170 = vrot.lane.b32.xlu0 %v5804_v24, %s4990_s15  ;;  %2039 = vrot.lane.b32.xlu1 %v2019_v36, %s4990_s15 }
 0x238   : > { %1651 = vst.msk [vmem:[#allocation3 + $0x68] sm:$0xff] %vm1389_vm7, %v1645_v49  ;;  %v1655_v51 = vpop.permute.xlu1 %1654 }
 0x239   : > { %1539 = vst.msk [vmem:[#allocation3 + $0x50] sm:$0xff] %vm1400_vm8, %v1534_v50  ;;  %v1665_v52 = vpop.permute.xlu0 %1664  ;;  %1661 = vst.msk [vmem:[#allocation3 + $0x68] sm:$0xff] %vm1400_vm8, %v1655_v51 }
 0x23a   : > { %1541 = vst.msk [vmem:[#allocation3 + $0x40] sm:$0xff] %vm1411_vm9, %v1534_v50  ;;  %v2383_v53 = vld [vmem:[#allocation3 + $0x30] sm:$0xff]  ;;  %1671 = vst.msk [vmem:[#allocation3 + $0x68] sm:$0xff] %vm1411_vm9, %v1665_v52 }
 0x23b   : > { %1659 = vst.msk [vmem:[#allocation3 + $0x78] sm:$0xff] %vm1389_vm7, %v1655_v51  ;;  %v5877_v54 = vld [vmem:[#allocation3 + $0x20] sm:$0xff]  ;;  %2180 = vrot.lane.b32.xlu0 %v5804_v24, %s4994_s29  ;;  %2160 = vrot.lane.b32.xlu1 %v5804_v24, %s4991_s16 }
 0x23c   : > { %1669 = vst.msk [vmem:[#allocation3 + $0x78] sm:$0xff] %vm1400_vm8, %v1665_v52  ;;  %v5965_v7 = vld [vmem:[#allocation4 + $0x98] sm:$0xff] }
 0x23d   : > { %2369 = vst.msk [vmem:[#allocation4 + $0x50] sm:$0xff] %vm2331_vm6, %v2383_v53  ;;  %2365 = vst.msk [vmem:[#allocation4 + $0x40] sm:$0xff] %vm2331_vm6, %v5877_v54  ;;  %v5971_v8 = vld [vmem:[#allocation4 + $0x88] sm:$0xff]  ;;  %v5973_v9 = vld [vmem:[#allocation4 + $0x18] sm:$0xff] }
 0x23e   : > { %v4933_v58 = vpop.f32.mrf.mxu1  ;;  %v5975_v10 = vld [vmem:[#allocation4 + $0x8] sm:$0xff] }
 0x23f   : > { %v2274_v59 = vadd.f32 %v4933_v58, %v5705_v41 }
 0x240   : > { %v5892_v57 = vld [vmem:[#allocation3 + $0x50] sm:$0xff]  ;;  %v2268_v62 = vpop.f32.mrf.mxu1 }
 0x241   : > { %v5894_v28 = vld [vmem:[#allocation3 + $0x40] sm:$0xff]  ;;  %2401 = vst.msk [vmem:[#allocation4 + $0x90] sm:$0xff] %vm2331_vm6, %v5892_v57  ;;  %2662 = vst.msk [vmem:[#allocation4 + $0x10] sm:$0xff] %vm2331_vm6, %v5892_v57  ;;  %v2278_v63 = vmax.f32 %v2274_v59, 0.0  ;;  %v2269_v0 = vadd.f32 %v2268_v62, %v5701_v37  ;;  %v5912_v2 = vld [vmem:[#allocation3 + $0x68] sm:$0xff] }
 0x242   : > { %2397 = vst.msk [vmem:[#allocation4 + $0x80] sm:$0xff] %vm2331_vm6, %v5894_v28  ;;  %2658 = vst.msk [vmem:[#allocation4] sm:$0xff] %vm2331_vm6, %v5894_v28 }
 0x243   : > { %v5910_v1 = vld [vmem:[#allocation3 + $0x78] sm:$0xff]  ;;  %2430 = vst.msk [vmem:[#allocation4 + $0xc8] sm:$0xff] %vm2331_vm6, %v5912_v2  ;;  %2691 = vst.msk [vmem:[#allocation4 + $0x48] sm:$0xff] %vm2331_vm6, %v5912_v2  ;;  %v2277_v37 = vmax.f32 %v2269_v0, 0.0  ;;  %2299 = vrot.lane.b32.xlu0 %v2278_v63, %s4990_s15  ;;  %2289 = vrot.lane.b32.xlu1 %v2278_v63, %s4991_s16 }
 0x244   : > { %2434 = vst.msk [vmem:[#allocation4 + $0xd8] sm:$0xff] %vm2331_vm6, %v5910_v1  ;;  %2695 = vst.msk [vmem:[#allocation4 + $0x58] sm:$0xff] %vm2331_vm6, %v5910_v1  ;;  %v6003_v24 = vld [vmem:[#allocation4 + $0x40] sm:$0xff] }
 0x245   : > { %2281 = vst.msk [vmem:[#allocation3 + $0x118] sm:$0xff] %vm1372_vm4, %v2278_v63  ;;  %2280 = vst.msk [vmem:[#allocation3 + $0x110] sm:$0xff] %vm1372_vm4, %v2277_v37 }
 0x246   : > { %2284 = vst.msk [vmem:[#allocation3 + $0x108] sm:$0xff] %vm1376_vm5, %v2278_v63  ;;  %2283 = vst.msk [vmem:[#allocation3 + $0x100] sm:$0xff] %vm1376_vm5, %v2277_v37 }
 0x247   : > { %2309 = vrot.lane.b32.xlu0 %v2278_v63, %s4994_s29  ;;  %2158 = vrot.lane.b32.xlu1 %v5807_v26, %s4991_s16 }
 0x248   : > { %v6026_v27 = vld [vmem:[#allocation4 + $0x90] sm:$0xff] }
 0x249   : > { %v6028_v29 = vld [vmem:[#allocation4 + $0x80] sm:$0xff]  ;;  %v6030_v30 = vld [vmem:[#allocation4 + $0x10] sm:$0xff] }
 0x24a   : > { %v6034_v34 = vld [vmem:[#allocation4] sm:$0xff]  ;;  %v6046_v36 = vld [vmem:[#allocation4 + $0xc8] sm:$0xff] }
 0x24b   : > { %2178 = vrot.lane.b32.xlu0 %v5807_v26, %s4994_s29  ;;  %2168 = vrot.lane.b32.xlu1 %v5807_v26, %s4990_s15  ;;  %v6044_v35 = vld [vmem:[#allocation4 + $0xd8] sm:$0xff]  ;;  %v6052_v42 = vld [vmem:[#allocation4 + $0x48] sm:$0xff] }
 0x24c   : > { %v6048_v38 = vld [vmem:[#allocation4 + $0x58] sm:$0xff] }
 0x24f   : > { %2307 = vrot.lane.b32.xlu0 %v2277_v37, %s4994_s29  ;;  %2287 = vrot.lane.b32.xlu1 %v2277_v37, %s4991_s16 }
 0x253   : > { %2389 = vrot.lane.b32.xlu0 %v5789_v16, %s4991_s16  ;;  %2297 = vrot.lane.b32.xlu1 %v2277_v37, %s4990_s15  ;;  %v6001_v16 = vld [vmem:[#allocation4 + $0x50] sm:$0xff] }
 0x257   : > { %2377 = vrot.lane.b32.xlu0 %v5791_v17, %s4991_s16  ;;  %2421 = vrot.lane.b32.xlu1 %v5852_v47, %s4991_s16 }
 0x25b   : > { %2682 = vrot.lane.b32.xlu0 %v5852_v47, %s4991_s16  ;;  %2409 = vrot.lane.b32.xlu1 %v5854_v48, %s4991_s16 }
 0x25d   : > { %v1784_v41 = vpop.permute.xlu0 %1783  ;;  %v1774_v3 = vpop.permute.xlu1 %1773 }
 0x25e   : > { %1778 = vst.msk [vmem:[#allocation3 + $0x98] sm:$0xff] %vm1376_vm5, %v1774_v3 }
 0x25f   : > { %1780 = vst.msk [vmem:[#allocation3 + $0x88] sm:$0xff] %vm1389_vm7, %v1774_v3  ;;  %1788 = vst.msk [vmem:[#allocation3 + $0x98] sm:$0xff] %vm1389_vm7, %v1784_v41  ;;  %2670 = vrot.lane.b32.xlu0 %v5854_v48, %s4991_s16  ;;  %2419 = vrot.lane.b32.xlu1 %v5892_v57, %s4991_s16 }
 0x260   : > { %1790 = vst.msk [vmem:[#allocation3 + $0x88] sm:$0xff] %vm1400_vm8, %v1784_v41 }
 0x261   : > { %v1794_v4 = vpop.permute.xlu0 %1793  ;;  %v1643_v5 = vpop.permute.xlu1 %1642 }
 0x262   : > { %1798 = vst.msk [vmem:[#allocation3 + $0x98] sm:$0xff] %vm1400_vm8, %v1794_v4 }
 0x263   : > { %1800 = vst.msk [vmem:[#allocation3 + $0x88] sm:$0xff] %vm1411_vm9, %v1794_v4  ;;  %2407 = vrot.lane.b32.xlu1 %v5894_v28, %s4991_s16  ;;  %2387 = vrot.lane.b32.xlu0 %v2383_v53, %s4991_s16 }
 0x264   : > { %1648 = vst.msk [vmem:[#allocation3 + $0x70] sm:$0xff] %vm1376_vm5, %v1643_v5 }
 0x265   : > { %1650 = vst.msk [vmem:[#allocation3 + $0x60] sm:$0xff] %vm1389_vm7, %v1643_v5  ;;  %v1653_v6 = vpop.permute.xlu1 %1652  ;;  %v1792_v14 = vpop.permute.xlu0 %1791 }
 0x266   : > { %1658 = vst.msk [vmem:[#allocation3 + $0x70] sm:$0xff] %vm1389_vm7, %v1653_v6 }
 0x267   : > { %1660 = vst.msk [vmem:[#allocation3 + $0x60] sm:$0xff] %vm1400_vm8, %v1653_v6  ;;  %2453 = vrot.lane.b32.xlu1 %v5910_v1, %s4991_s16  ;;  %2375 = vrot.lane.b32.xlu0 %v5877_v54, %s4991_s16 }
 0x269   : > { %v1663_v11 = vpop.permute.xlu1 %1662  ;;  %v5977_v12 = vld [vmem:[#allocation3 + $0x98] sm:$0xff]  ;;  %v1913_v17 = vpop.permute.xlu0 %1912 }
 0x26a   : > { %v5979_v13 = vld [vmem:[#allocation3 + $0x88] sm:$0xff]  ;;  %1668 = vst.msk [vmem:[#allocation3 + $0x70] sm:$0xff] %vm1400_vm8, %v1663_v11 }
 0x26b   : > { %1670 = vst.msk [vmem:[#allocation3 + $0x60] sm:$0xff] %vm1411_vm9, %v1663_v11  ;;  %2441 = vrot.lane.b32.xlu1 %v5912_v2, %s4991_s16  ;;  %2680 = vrot.lane.b32.xlu0 %v5892_v57, %s4991_s16 }
 0x26c   : > { %2727 = vst.msk [vmem:[#allocation4 + $0x98] sm:$0xff] %vm2331_vm6, %v5977_v12  ;;  %2723 = vst.msk [vmem:[#allocation4 + $0x88] sm:$0xff] %vm2331_vm6, %v5979_v13 }
 0x26d   : > { %2968 = vst.msk [vmem:[#allocation4 + $0x18] sm:$0xff] %vm2331_vm6, %v5977_v12  ;;  %2964 = vst.msk [vmem:[#allocation4 + $0x8] sm:$0xff] %vm2331_vm6, %v5979_v13  ;;  %v1772_v15 = vpop.permute.xlu1 %1771  ;;  %v1923_v26 = vpop.permute.xlu0 %1922 }
 0x26e   : > { %1777 = vst.msk [vmem:[#allocation3 + $0x90] sm:$0xff] %vm1376_vm5, %v1772_v15 }
 0x26f   : > { %1779 = vst.msk [vmem:[#allocation3 + $0x80] sm:$0xff] %vm1389_vm7, %v1772_v15  ;;  %2746 = vrot.lane.b32.xlu1 %v5977_v12, %s4991_s16  ;;  %2668 = vrot.lane.b32.xlu0 %v5894_v28, %s4991_s16 }
 0x271   : > { %v1782_v20 = vpop.permute.xlu1 %1781  ;;  %v2447_v21 = vld [vmem:[#allocation3 + $0x70] sm:$0xff] }
 0x272   : > { %v2435_v22 = vld [vmem:[#allocation3 + $0x60] sm:$0xff]  ;;  %1787 = vst.msk [vmem:[#allocation3 + $0x90] sm:$0xff] %vm1389_vm7, %v1782_v20 }
 0x273   : > { %1789 = vst.msk [vmem:[#allocation3 + $0x80] sm:$0xff] %vm1400_vm8, %v1782_v20  ;;  %1797 = vst.msk [vmem:[#allocation3 + $0x90] sm:$0xff] %vm1400_vm8, %v1792_v14  ;;  %2734 = vrot.lane.b32.xlu1 %v5979_v13, %s4991_s16  ;;  %2714 = vrot.lane.b32.xlu0 %v5910_v1, %s4991_s16  ;;  %v6086_v52 = vld [vmem:[#allocation4 + $0x98] sm:$0xff]  ;;  %v6088_v53 = vld [vmem:[#allocation4 + $0x88] sm:$0xff] }
 0x274   : > { %2433 = vst.msk [vmem:[#allocation4 + $0xd0] sm:$0xff] %vm2331_vm6, %v2447_v21  ;;  %2694 = vst.msk [vmem:[#allocation4 + $0x50] sm:$0xff] %vm2331_vm6, %v2447_v21  ;;  %v6090_v54 = vld [vmem:[#allocation4 + $0x18] sm:$0xff]  ;;  %v6092_v57 = vld [vmem:[#allocation4 + $0x8] sm:$0xff] }
 0x275   : > { %2429 = vst.msk [vmem:[#allocation4 + $0xc0] sm:$0xff] %vm2331_vm6, %v2435_v22  ;;  %2690 = vst.msk [vmem:[#allocation4 + $0x40] sm:$0xff] %vm2331_vm6, %v2435_v22  ;;  %v1903_v25 = vpop.permute.xlu1 %1902 }
 0x276   : > { %1799 = vst.msk [vmem:[#allocation3 + $0x80] sm:$0xff] %vm1411_vm9, %v1792_v14  ;;  %6940 = vst [vmem:[#allocation6_spill] sm:$0xff] %v6090_v54 }
 0x277   : > { %1907 = vst.msk [vmem:[#allocation3 + $0xb8] sm:$0xff] %vm1376_vm5, %v1903_v25  ;;  %2451 = vrot.lane.b32.xlu1 %v2447_v21, %s4991_s16  ;;  %2702 = vrot.lane.b32.xlu0 %v5912_v2, %s4991_s16  ;;  %6941 = vst [vmem:[#allocation7_spill] sm:$0xff] %v6092_v57 }
 0x278   : > { %1909 = vst.msk [vmem:[#allocation3 + $0xa8] sm:$0xff] %vm1389_vm7, %v1903_v25  ;;  %1917 = vst.msk [vmem:[#allocation3 + $0xb8] sm:$0xff] %vm1389_vm7, %v1913_v17 }
 0x279   : > { %1919 = vst.msk [vmem:[#allocation3 + $0xa8] sm:$0xff] %vm1400_vm8, %v1913_v17  ;;  %1927 = vst.msk [vmem:[#allocation3 + $0xb8] sm:$0xff] %vm1400_vm8, %v1923_v26 }
 0x27a   : > { %1929 = vst.msk [vmem:[#allocation3 + $0xa8] sm:$0xff] %vm1411_vm9, %v1923_v26  ;;  %v2740_v32 = vld [vmem:[#allocation3 + $0x90] sm:$0xff] }
 0x27b   : > { %2439 = vrot.lane.b32.xlu1 %v2435_v22, %s4991_s16  ;;  %2712 = vrot.lane.b32.xlu0 %v2447_v21, %s4991_s16  ;;  %2726 = vst.msk [vmem:[#allocation4 + $0x90] sm:$0xff] %vm2331_vm6, %v2740_v32  ;;  %2967 = vst.msk [vmem:[#allocation4 + $0x10] sm:$0xff] %vm2331_vm6, %v2740_v32  ;;  %v6107_v2 = vld [vmem:[#allocation4 + $0xd0] sm:$0xff] }
 0x27c   : > { %v6109_v37 = vld [vmem:[#allocation4 + $0xc0] sm:$0xff]  ;;  %v6111_v41 = vld [vmem:[#allocation4 + $0x50] sm:$0xff] }
 0x27d   : > { %v6032_v33 = vld [vmem:[#allocation3 + $0x80] sm:$0xff] }
 0x27e   : > { %2722 = vst.msk [vmem:[#allocation4 + $0x80] sm:$0xff] %vm2331_vm6, %v6032_v33  ;;  %2963 = vst.msk [vmem:[#allocation4] sm:$0xff] %vm2331_vm6, %v6032_v33  ;;  %v6115_v5 = vld [vmem:[#allocation4 + $0x40] sm:$0xff] }
 0x27f   : > { %2744 = vrot.lane.b32.xlu1 %v2740_v32, %s4991_s16  ;;  %2700 = vrot.lane.b32.xlu0 %v2435_v22, %s4991_s16 }
 0x280   : > { %v3014_v39 = vld [vmem:[#allocation3 + $0xb8] sm:$0xff] }
 0x281   : > { %v3002_v40 = vld [vmem:[#allocation3 + $0xa8] sm:$0xff]  ;;  %2759 = vst.msk [vmem:[#allocation4 + $0xd8] sm:$0xff] %vm2331_vm6, %v3014_v39  ;;  %3000 = vst.msk [vmem:[#allocation4 + $0x58] sm:$0xff] %vm2331_vm6, %v3014_v39 }
 0x282   : > { %2755 = vst.msk [vmem:[#allocation4 + $0xc8] sm:$0xff] %vm2331_vm6, %v3002_v40  ;;  %2996 = vst.msk [vmem:[#allocation4 + $0x48] sm:$0xff] %vm2331_vm6, %v3002_v40  ;;  %v6147_v20 = vld [vmem:[#allocation4 + $0x10] sm:$0xff] }
 0x283   : > { %2732 = vrot.lane.b32.xlu1 %v6032_v33, %s4991_s16  ;;  %3019 = vrot.lane.b32.xlu0 %v3014_v39, %s4991_s16  ;;  %6942 = vst [vmem:[#allocation8_spill] sm:$0xff] %v6147_v20 }
 0x285   : > { %v6139_v17 = vld [vmem:[#allocation4 + $0x80] sm:$0xff] }
 0x286   : > { %v6149_v22 = vld [vmem:[#allocation4] sm:$0xff] }
 0x287   : > { %2778 = vrot.lane.b32.xlu1 %v3014_v39, %s4991_s16  ;;  %3007 = vrot.lane.b32.xlu0 %v3002_v40, %s4991_s16  ;;  %6943 = vst [vmem:[#allocation9_spill] sm:$0xff] %v6149_v22 }
 0x288   : > { %v6155_v39 = vld [vmem:[#allocation4 + $0xd8] sm:$0xff] }
 0x28b   : > { %2766 = vrot.lane.b32.xlu1 %v3002_v40, %s4991_s16  ;;  %2987 = vrot.lane.b32.xlu0 %v5977_v12, %s4991_s16  ;;  %v6133_v12 = vld [vmem:[#allocation4 + $0x90] sm:$0xff]  ;;  %v6157_v40 = vld [vmem:[#allocation4 + $0xc8] sm:$0xff] }
 0x28f   : > { %2985 = vrot.lane.b32.xlu0 %v2740_v32, %s4991_s16 }
 0x299   : > { %v2042_v46 = vpop.permute.xlu0 %2041  ;;  %v2032_v47 = vpop.permute.xlu1 %2031 }
 0x29a   : > { %2036 = vst.msk [vmem:[#allocation3 + $0xd8] sm:$0xff] %vm1376_vm5, %v2032_v47 }
 0x29b   : > { %2038 = vst.msk [vmem:[#allocation3 + $0xc8] sm:$0xff] %vm1389_vm7, %v2032_v47  ;;  %2046 = vst.msk [vmem:[#allocation3 + $0xd8] sm:$0xff] %vm1389_vm7, %v2042_v46 }
 0x29c   : > { %2048 = vst.msk [vmem:[#allocation3 + $0xc8] sm:$0xff] %vm1400_vm8, %v2042_v46  ;;  %v6159_v46 = vld [vmem:[#allocation4 + $0x58] sm:$0xff] }
 0x29d   : > { %v2052_v48 = vpop.permute.xlu0 %2051  ;;  %v1901_v49 = vpop.permute.xlu1 %1900 }
 0x29e   : > { %2056 = vst.msk [vmem:[#allocation3 + $0xd8] sm:$0xff] %vm1400_vm8, %v2052_v48 }
 0x29f   : > { %2058 = vst.msk [vmem:[#allocation3 + $0xc8] sm:$0xff] %vm1411_vm9, %v2052_v48 }
 0x2a0   : > { %1906 = vst.msk [vmem:[#allocation3 + $0xb0] sm:$0xff] %vm1376_vm5, %v1901_v49 }
 0x2a1   : > { %1908 = vst.msk [vmem:[#allocation3 + $0xa0] sm:$0xff] %vm1389_vm7, %v1901_v49  ;;  %v1921_v50 = vpop.permute.xlu0 %1920  ;;  %v1911_v51 = vpop.permute.xlu1 %1910  ;;  %v6165_v49 = vld [vmem:[#allocation4 + $0x48] sm:$0xff] }
 0x2a2   : > { %1916 = vst.msk [vmem:[#allocation3 + $0xb0] sm:$0xff] %vm1389_vm7, %v1911_v51 }
 0x2a3   : > { %1918 = vst.msk [vmem:[#allocation3 + $0xa0] sm:$0xff] %vm1400_vm8, %v1911_v51  ;;  %1926 = vst.msk [vmem:[#allocation3 + $0xb0] sm:$0xff] %vm1400_vm8, %v1921_v50 }
 0x2a4   : > { %1928 = vst.msk [vmem:[#allocation3 + $0xa0] sm:$0xff] %vm1411_vm9, %v1921_v50 }
 0x2a5   : > { %v2050_v28 = vpop.permute.xlu0 %2049  ;;  %v2030_v58 = vpop.permute.xlu1 %2029  ;;  %v6094_v59 = vld [vmem:[#allocation3 + $0xd8] sm:$0xff] }
 0x2a6   : > { %v6096_v62 = vld [vmem:[#allocation3 + $0xc8] sm:$0xff]  ;;  %v3271_v63 = vld [vmem:[#allocation3 + $0xd8] sm:$0xff]  ;;  %2035 = vst.msk [vmem:[#allocation3 + $0xd0] sm:$0xff] %vm1376_vm5, %v2030_v58 }
 0x2a7   : > { %2037 = vst.msk [vmem:[#allocation3 + $0xc0] sm:$0xff] %vm1389_vm7, %v2030_v58 }
 0x2a8   : > { %3032 = vst.msk [vmem:[#allocation4 + $0x98] sm:$0xff] %vm2331_vm6, %v6094_v59  ;;  %3028 = vst.msk [vmem:[#allocation4 + $0x88] sm:$0xff] %vm2331_vm6, %v6096_v62 }
 0x2a9   : > { %3273 = vst.msk [vmem:[#allocation4 + $0x18] sm:$0xff] %vm2331_vm6, %v3271_v63  ;;  %3269 = vst.msk [vmem:[#allocation4 + $0x8] sm:$0xff] %vm2331_vm6, %v6096_v62  ;;  %v2171_v0 = vpop.permute.xlu0 %2170  ;;  %v2040_v1 = vpop.permute.xlu1 %2039 }
 0x2aa   : > { %2045 = vst.msk [vmem:[#allocation3 + $0xd0] sm:$0xff] %vm1389_vm7, %v2040_v1  ;;  %v2772_v3 = vld [vmem:[#allocation3 + $0xb0] sm:$0xff] }
 0x2ab   : > { %2047 = vst.msk [vmem:[#allocation3 + $0xc0] sm:$0xff] %vm1400_vm8, %v2040_v1  ;;  %v2760_v4 = vld [vmem:[#allocation3 + $0xa0] sm:$0xff]  ;;  %2055 = vst.msk [vmem:[#allocation3 + $0xd0] sm:$0xff] %vm1400_vm8, %v2050_v28  ;;  %2776 = vrot.lane.b32.xlu1 %v2772_v3, %s4991_s16  ;;  %3017 = vrot.lane.b32.xlu0 %v2772_v3, %s4991_s16 }
 0x2ac   : > { %2057 = vst.msk [vmem:[#allocation3 + $0xc0] sm:$0xff] %vm1411_vm9, %v2050_v28 }
 0x2ad   : > { %2758 = vst.msk [vmem:[#allocation4 + $0xd0] sm:$0xff] %vm2331_vm6, %v2772_v3  ;;  %2754 = vst.msk [vmem:[#allocation4 + $0xc0] sm:$0xff] %vm2331_vm6, %v2760_v4  ;;  %v2161_v6 = vpop.permute.xlu1 %2160  ;;  %v2181_v11 = vpop.permute.xlu0 %2180 }
 0x2ae   : > { %2999 = vst.msk [vmem:[#allocation4 + $0x50] sm:$0xff] %vm2331_vm6, %v2772_v3  ;;  %2995 = vst.msk [vmem:[#allocation4 + $0x40] sm:$0xff] %vm2331_vm6, %v2760_v4 }
 0x2af   : > { %2165 = vst.msk [vmem:[#allocation3 + $0xf8] sm:$0xff] %vm1376_vm5, %v2161_v6  ;;  %2764 = vrot.lane.b32.xlu1 %v2760_v4, %s4991_s16  ;;  %3005 = vrot.lane.b32.xlu0 %v2760_v4, %s4991_s16  ;;  %v6185_v63 = vld [vmem:[#allocation4 + $0x98] sm:$0xff] }
 0x2b0   : > { %2167 = vst.msk [vmem:[#allocation3 + $0xe8] sm:$0xff] %vm1389_vm7, %v2161_v6  ;;  %2175 = vst.msk [vmem:[#allocation3 + $0xf8] sm:$0xff] %vm1389_vm7, %v2171_v0  ;;  %v6191_v6 = vld [vmem:[#allocation4 + $0x88] sm:$0xff] }
 0x2b1   : > { %2177 = vst.msk [vmem:[#allocation3 + $0xe8] sm:$0xff] %vm1400_vm8, %v2171_v0  ;;  %2185 = vst.msk [vmem:[#allocation3 + $0xf8] sm:$0xff] %vm1400_vm8, %v2181_v11 }
 0x2b2   : > { %2187 = vst.msk [vmem:[#allocation3 + $0xe8] sm:$0xff] %vm1411_vm9, %v2181_v11  ;;  %v6135_v14 = vld [vmem:[#allocation3 + $0xd0] sm:$0xff]  ;;  %6944 = vst [vmem:[#allocation10_spill] sm:$0xff] %v6185_v63 }
 0x2b3   : > { %v6137_v15 = vld [vmem:[#allocation3 + $0xc0] sm:$0xff]  ;;  %3051 = vrot.lane.b32.xlu1 %v6094_v59, %s4991_s16  ;;  %3031 = vst.msk [vmem:[#allocation4 + $0x90] sm:$0xff] %vm2331_vm6, %v6135_v14  ;;  %v3270_v21 = vld [vmem:[#allocation3 + $0xd0] sm:$0xff]  ;;  %6945 = vst [vmem:[#allocation11_spill] sm:$0xff] %v6191_v6 }
 0x2b4   : > { %3027 = vst.msk [vmem:[#allocation4 + $0x80] sm:$0xff] %vm2331_vm6, %v6137_v15  ;;  %v3266_v25 = vld [vmem:[#allocation3 + $0xc0] sm:$0xff]  ;;  %3272 = vst.msk [vmem:[#allocation4 + $0x10] sm:$0xff] %vm2331_vm6, %v3270_v21  ;;  %v6201_v21 = vld [vmem:[#allocation4 + $0xd0] sm:$0xff] }
 0x2b5   : > { %v2300_v26 = vpop.permute.xlu0 %2299  ;;  %v2290_v32 = vpop.permute.xlu1 %2289  ;;  %3268 = vst.msk [vmem:[#allocation4] sm:$0xff] %vm2331_vm6, %v3266_v25  ;;  %v6203_v25 = vld [vmem:[#allocation4 + $0xc0] sm:$0xff] }
 0x2b6   : > { %2294 = vst.msk [vmem:[#allocation3 + $0x118] sm:$0xff] %vm1376_vm5, %v2290_v32 }
 0x2b7   : > { %2296 = vst.msk [vmem:[#allocation3 + $0x108] sm:$0xff] %vm1389_vm7, %v2290_v32  ;;  %2304 = vst.msk [vmem:[#allocation3 + $0x118] sm:$0xff] %vm1389_vm7, %v2300_v26  ;;  %3049 = vrot.lane.b32.xlu1 %v6135_v14, %s4991_s16 }
 0x2b8   : > { %2306 = vst.msk [vmem:[#allocation3 + $0x108] sm:$0xff] %vm1400_vm8, %v2300_v26  ;;  %v3319_v47 = vld [vmem:[#allocation3 + $0xf8] sm:$0xff]  ;;  %v6205_v26 = vld [vmem:[#allocation4 + $0x50] sm:$0xff] }
 0x2b9   : > { %v3307_v48 = vld [vmem:[#allocation3 + $0xe8] sm:$0xff]  ;;  %3324 = vrot.lane.b32.xlu0 %v3319_v47, %s4991_s16  ;;  %3064 = vst.msk [vmem:[#allocation4 + $0xd8] sm:$0xff] %vm2331_vm6, %v3319_v47  ;;  %3305 = vst.msk [vmem:[#allocation4 + $0x58] sm:$0xff] %vm2331_vm6, %v3319_v47  ;;  %v2310_v50 = vpop.permute.xlu0 %2309  ;;  %v2159_v51 = vpop.permute.xlu1 %2158 }
 0x2ba   : > { %3060 = vst.msk [vmem:[#allocation4 + $0xc8] sm:$0xff] %vm2331_vm6, %v3307_v48  ;;  %3301 = vst.msk [vmem:[#allocation4 + $0x48] sm:$0xff] %vm2331_vm6, %v3307_v48  ;;  %v6232_v22 = vld [vmem:[#allocation4 + $0x90] sm:$0xff] }
 0x2bb   : > { %2314 = vst.msk [vmem:[#allocation3 + $0x118] sm:$0xff] %vm1400_vm8, %v2310_v50  ;;  %3083 = vrot.lane.b32.xlu1 %v3319_v47, %s4991_s16  ;;  %6947 = vst [vmem:[#allocation13_spill] sm:$0xff] %v6232_v22 }
 0x2bc   : > { %2316 = vst.msk [vmem:[#allocation3 + $0x108] sm:$0xff] %vm1411_vm9, %v2310_v50  ;;  %v3369_v50 = vld [vmem:[#allocation3 + $0x138] sm:$0xff] }
 0x2bd   : > { %2164 = vst.msk [vmem:[#allocation3 + $0xf0] sm:$0xff] %vm1376_vm5, %v2159_v51  ;;  %3312 = vrot.lane.b32.xlu0 %v3307_v48, %s4991_s16  ;;  %v2179_v28 = vpop.permute.xlu0 %2178  ;;  %v2169_v58 = vpop.permute.xlu1 %2168 }
 0x2be   : > { %2166 = vst.msk [vmem:[#allocation3 + $0xe0] sm:$0xff] %vm1389_vm7, %v2159_v51  ;;  %2174 = vst.msk [vmem:[#allocation3 + $0xf0] sm:$0xff] %vm1389_vm7, %v2169_v58 }
 0x2bf   : > { %2176 = vst.msk [vmem:[#allocation3 + $0xe0] sm:$0xff] %vm1400_vm8, %v2169_v58  ;;  %2184 = vst.msk [vmem:[#allocation3 + $0xf0] sm:$0xff] %vm1400_vm8, %v2179_v28  ;;  %3071 = vrot.lane.b32.xlu1 %v3307_v48, %s4991_s16  ;;  %v6210_v48 = vld [vmem:[#allocation4 + $0x40] sm:$0xff]  ;;  %v3368_v58 = vld [vmem:[#allocation3 + $0x130] sm:$0xff] }
 0x2c0   : > { %2186 = vst.msk [vmem:[#allocation3 + $0xe0] sm:$0xff] %vm1411_vm9, %v2179_v28  ;;  %6946 = vst [vmem:[#allocation12_spill] sm:$0xff] %v6210_v48 }
 0x2c1   : > { %2975 = vrot.lane.b32.xlu0 %v5979_v13, %s4991_s16  ;;  %v2308_v0 = vpop.permute.xlu0 %2307  ;;  %v2288_v1 = vpop.permute.xlu1 %2287 }
 0x2c2   : > { %v6187_v3 = vld [vmem:[#allocation3 + $0x118] sm:$0xff]  ;;  %2293 = vst.msk [vmem:[#allocation3 + $0x110] sm:$0xff] %vm1376_vm5, %v2288_v1 }
 0x2c3   : > { %v6189_v4 = vld [vmem:[#allocation3 + $0x108] sm:$0xff]  ;;  %2295 = vst.msk [vmem:[#allocation3 + $0x100] sm:$0xff] %vm1389_vm7, %v2288_v1 }
 0x2c4   : > { %3337 = vst.msk [vmem:[#allocation4 + $0x98] sm:$0xff] %vm2331_vm6, %v6187_v3  ;;  %3333 = vst.msk [vmem:[#allocation4 + $0x88] sm:$0xff] %vm2331_vm6, %v6189_v4  ;;  %v3364_v1 = vld [vmem:[#allocation3 + $0x128] sm:$0xff] }
 0x2c5   : > { %2973 = vrot.lane.b32.xlu0 %v6032_v33, %s4991_s16  ;;  %v2390_v13 = vpop.permute.xlu0 %2389  ;;  %v2298_v11 = vpop.permute.xlu1 %2297  ;;  %v6220_v33 = vld [vmem:[#allocation4 + $0xd8] sm:$0xff] }
 0x2c6   : > { %2394 = vst.msk [vmem:[#allocation4 + $0x78] sm:$0xff] %vm2331_vm6, %v2390_v13  ;;  %v3077_v32 = vld [vmem:[#allocation3 + $0xf0] sm:$0xff]  ;;  %3371 = vst.msk [vmem:[#allocation4 + $0xd8] sm:$0xff] %vm2331_vm6, %v3369_v50  ;;  %v6229_v13 = vld [vmem:[#allocation4 + $0x38] sm:$0xff] }
 0x2c7   : > { %2303 = vst.msk [vmem:[#allocation3 + $0x110] sm:$0xff] %vm1389_vm7, %v2298_v11  ;;  %v3065_v47 = vld [vmem:[#allocation3 + $0xe0] sm:$0xff]  ;;  %3081 = vrot.lane.b32.xlu1 %v3077_v32, %s4991_s16 }
 0x2c8   : > { %2305 = vst.msk [vmem:[#allocation3 + $0x100] sm:$0xff] %vm1400_vm8, %v2298_v11  ;;  %2313 = vst.msk [vmem:[#allocation3 + $0x110] sm:$0xff] %vm1400_vm8, %v2308_v0  ;;  %v6234_v50 = vld [vmem:[#allocation4 + $0x80] sm:$0xff] }
 0x2c9   : > { %2315 = vst.msk [vmem:[#allocation3 + $0x100] sm:$0xff] %vm1411_vm9, %v2308_v0  ;;  %3322 = vrot.lane.b32.xlu0 %v3077_v32, %s4991_s16  ;;  %v2378_v51 = vpop.permute.xlu0 %2377  ;;  %v2422_v28 = vpop.permute.xlu1 %2421  ;;  %v6227_v0 = vld [vmem:[#allocation4 + $0xc8] sm:$0xff]  ;;  %6948 = vst [vmem:[#allocation14_spill] sm:$0xff] %v6234_v50 }
 0x2ca   : > { %3063 = vst.msk [vmem:[#allocation4 + $0xd0] sm:$0xff] %vm2331_vm6, %v3077_v32  ;;  %3059 = vst.msk [vmem:[#allocation4 + $0xc0] sm:$0xff] %vm2331_vm6, %v3065_v47 }
 0x2cb   : > { %3304 = vst.msk [vmem:[#allocation4 + $0x50] sm:$0xff] %vm2331_vm6, %v3077_v32  ;;  %3300 = vst.msk [vmem:[#allocation4 + $0x40] sm:$0xff] %vm2331_vm6, %v3065_v47  ;;  %3069 = vrot.lane.b32.xlu1 %v3065_v47, %s4991_s16 }
 0x2cc   : > { %2382 = vst.msk [vmem:[#allocation4 + $0x68] sm:$0xff] %vm2331_vm6, %v2378_v51  ;;  %2426 = vst.msk [vmem:[#allocation4 + $0xb8] sm:$0xff] %vm2331_vm6, %v2422_v28 }
 0x2cd   : > { %3310 = vrot.lane.b32.xlu0 %v3065_v47, %s4991_s16  ;;  %v2683_v11 = vpop.permute.xlu0 %2682  ;;  %v2410_v32 = vpop.permute.xlu1 %2409  ;;  %3366 = vst.msk [vmem:[#allocation4 + $0xc8] sm:$0xff] %vm2331_vm6, %v3364_v1  ;;  %v3363_v1 = vld [vmem:[#allocation3 + $0x120] sm:$0xff] }
 0x2ce   : > { %2687 = vst.msk [vmem:[#allocation4 + $0x38] sm:$0xff] %vm2331_vm6, %v2683_v11  ;;  %2414 = vst.msk [vmem:[#allocation4 + $0xa8] sm:$0xff] %vm2331_vm6, %v2410_v32  ;;  %v6250_v11 = vld [vmem:[#allocation4 + $0x28] sm:$0xff] }
 0x2cf   : > { %v3350_v51 = vld [vmem:[#allocation3 + $0x110] sm:$0xff]  ;;  %3039 = vrot.lane.b32.xlu1 %v6096_v62, %s4991_s16 }
 0x2d0   : > { %v3338_v47 = vld [vmem:[#allocation3 + $0x100] sm:$0xff]  ;;  %3336 = vst.msk [vmem:[#allocation4 + $0x90] sm:$0xff] %vm2331_vm6, %v3350_v51 }
 0x2d1   : > { %v6238_v28 = vld [vmem:[#allocation4 + $0xd0] sm:$0xff]  ;;  %v6243_v57 = vld [vmem:[#allocation4 + $0xc0] sm:$0xff]  ;;  %3332 = vst.msk [vmem:[#allocation4 + $0x80] sm:$0xff] %vm2331_vm6, %v3338_v47  ;;  %3292 = vrot.lane.b32.xlu0 %v6094_v59, %s4991_s16  ;;  %v2671_v32 = vpop.permute.xlu0 %2670  ;;  %v2420_v50 = vpop.permute.xlu1 %2419 }
 0x2d2   : > { %3370 = vst.msk [vmem:[#allocation4 + $0xd0] sm:$0xff] %vm2331_vm6, %v3368_v58  ;;  %3365 = vst.msk [vmem:[#allocation4 + $0xc0] sm:$0xff] %vm2331_vm6, %v3363_v1 }
 0x2d3   : > { %2675 = vst.msk [vmem:[#allocation4 + $0x28] sm:$0xff] %vm2331_vm6, %v2671_v32  ;;  %2425 = vst.msk [vmem:[#allocation4 + $0xb0] sm:$0xff] %vm2331_vm6, %v2420_v50  ;;  %3037 = vrot.lane.b32.xlu1 %v6137_v15, %s4991_s16 }
 0x2d5   : > { %3290 = vrot.lane.b32.xlu0 %v6135_v14, %s4991_s16  ;;  %v2408_v58 = vpop.permute.xlu1 %2407  ;;  %v2388_v6 = vpop.permute.xlu0 %2387 }
 0x2d6   : > { %2413 = vst.msk [vmem:[#allocation4 + $0xa0] sm:$0xff] %vm2331_vm6, %v2408_v58  ;;  %2393 = vst.msk [vmem:[#allocation4 + $0x70] sm:$0xff] %vm2331_vm6, %v2388_v6  ;;  %v6270_v6 = vld [vmem:[#allocation4 + $0x30] sm:$0xff]  ;;  %v2325_v58 = vld [vmem:[%s6934_s4] sm:$0xff] }
 0x2d7   : > { %3356 = vrot.lane.b32.xlu1 %v6187_v3, %s4991_s16  ;;  %v6278_v3 = vld [vmem:[#allocation4 + $0x20] sm:$0xff] }
 0x2d9   : > { %3280 = vrot.lane.b32.xlu0 %v6096_v62, %s4991_s16  ;;  %v2454_v59 = vpop.permute.xlu1 %2453  ;;  %v2376_v50 = vpop.permute.xlu0 %2375  ;;  %v2327_v62 = vld [vmem:[%s6934_s4 + $0x10] sm:$0xff] }
 0x2da   : > { %2458 = vst.msk [vmem:[#allocation4 + $0xf8] sm:$0xff] %vm2331_vm6, %v2454_v59  ;;  %2381 = vst.msk [vmem:[#allocation4 + $0x60] sm:$0xff] %vm2331_vm6, %v2376_v50  ;;  %v6283_v59 = vld [vmem:[#allocation4 + $0xb8] sm:$0xff]  ;;  %v2481_v54 = vld [vmem:[#allocation4 + $0xb0] sm:$0xff] }
 0x2db   : > { %3344 = vrot.lane.b32.xlu1 %v6189_v4, %s4991_s16  ;;  %v2474_v50 = vld [vmem:[#allocation4 + $0x78] sm:$0xff] }
 0x2dd   : > { %3278 = vrot.lane.b32.xlu0 %v6137_v15, %s4991_s16  ;;  %v2442_v14 = vpop.permute.xlu1 %2441  ;;  %v2681_v1 = vpop.permute.xlu0 %2680  ;;  %v2479_v48 = vld [vmem:[#allocation4 + $0xa0] sm:$0xff] }
 0x2de   : > { %2446 = vst.msk [vmem:[#allocation4 + $0xe8] sm:$0xff] %vm2331_vm6, %v2442_v14  ;;  %2686 = vst.msk [vmem:[#allocation4 + $0x30] sm:$0xff] %vm2331_vm6, %v2681_v1 }
 0x2df   : > { %3354 = vrot.lane.b32.xlu1 %v3350_v51, %s4991_s16  ;;  %v2328_v51 = vld [vmem:[%s6934_s4 + $0x18] sm:$0xff] }
 0x2e1   : > { %2503 = vperm.xlu0 %4977, %v2327_v62   ;;  %v2747_v4 = vpop.permute.xlu1 %2746  ;;  %v2669_v32 = vpop.permute.xlu0 %2668  ;;  %v2490_v15 = vld [vmem:[#allocation4 + $0xf8] sm:$0xff]  ;;  %v6291_v62 = vld [vmem:[#allocation4 + $0xa8] sm:$0xff] }
 0x2e2   : > { %2674 = vst.msk [vmem:[#allocation4 + $0x20] sm:$0xff] %vm2331_vm6, %v2669_v32  ;;  %4417 = vmatprep.subr.mxu0 %v2490_v15  ;;  %2751 = vst.msk [vmem:[#allocation4 + $0xb8] sm:$0xff] %vm2331_vm6, %v2747_v4  ;;  %v2326_v4 = vld [vmem:[%s6934_s4 + $0x8] sm:$0xff] }
 0x2e3   : > { %3342 = vrot.lane.b32.xlu1 %v3338_v47, %s4991_s16  ;;  %4418 = vmatpush3.msra.mxu0 %v2474_v50  ;;  %v2472_v32 = vld [vmem:[#allocation4 + $0x68] sm:$0xff]  ;;  %v2473_v50 = vld [vmem:[#allocation4 + $0x70] sm:$0xff] }
 0x2e5   : > { %2493 = vperm.xlu0 %4977, %v2325_v58   ;;  %v2735_v14 = vpop.permute.xlu1 %2734  ;;  %v2715_v1 = vpop.permute.xlu0 %2714 }
 0x2e6   : > { %2719 = vst.msk [vmem:[#allocation4 + $0x78] sm:$0xff] %vm2331_vm6, %v2715_v1  ;;  %2739 = vst.msk [vmem:[#allocation4 + $0xa8] sm:$0xff] %vm2331_vm6, %v2735_v14  ;;  %v2471_v14 = vld [vmem:[#allocation4 + $0x60] sm:$0xff] }
 0x2e7   : > { %2508 = vperm.xlu1 %4978, %v2328_v51  }
 0x2e9   : > { %v2452_v47 = vpop.permute.xlu1 %2451  ;;  %v2703_v15 = vpop.permute.xlu0 %2702 }
 0x2ea   : > { %2457 = vst.msk [vmem:[#allocation4 + $0xf0] sm:$0xff] %vm2331_vm6, %v2452_v47  ;;  %2707 = vst.msk [vmem:[#allocation4 + $0x68] sm:$0xff] %vm2331_vm6, %v2703_v15  ;;  %v2488_v47 = vld [vmem:[#allocation4 + $0xe8] sm:$0xff] }
 0x2eb   : > { %2498 = vperm.xlu1 %4978, %v2326_v4  }
 0x2ed   : > { %v2440_v58 = vpop.permute.xlu1 %2439  ;;  %v2713_v20 = vpop.permute.xlu0 %2712  ;;  %v2799_v15 = vld [vmem:[#allocation4 + $0x78] sm:$0xff] }
 0x2ee   : > { %2445 = vst.msk [vmem:[#allocation4 + $0xe0] sm:$0xff] %vm2331_vm6, %v2440_v58  ;;  %2718 = vst.msk [vmem:[#allocation4 + $0x70] sm:$0xff] %vm2331_vm6, %v2713_v20 }
 0x2f1   : > { %v2745_v51 = vpop.permute.xlu1 %2744  ;;  %v2701_v1 = vpop.permute.xlu0 %2700  ;;  %v2489_v22 = vld [vmem:[#allocation4 + $0xf0] sm:$0xff] }
 0x2f2   : > { %2706 = vst.msk [vmem:[#allocation4 + $0x60] sm:$0xff] %vm2331_vm6, %v2701_v1  ;;  %4419 = vmatprep.subr.mxu0 %v2489_v22  ;;  %2750 = vst.msk [vmem:[#allocation4 + $0xb0] sm:$0xff] %vm2331_vm6, %v2745_v51  ;;  %v6308_v22 = vld [vmem:[#allocation4 + $0x68] sm:$0xff] }
 0x2f3   : > { %4420 = vmatpush3.msra.mxu0 %v2473_v50 }
 0x2f4   : > { %4421 = vmatprep.subr.mxu0 %v2488_v47 }
 0x2f5   : > { %v2733_v4 = vpop.permute.xlu1 %2732  ;;  %4422 = vmatpush3.msra.mxu0 %v2472_v32  ;;  %v3020_v63 = vpop.permute.xlu0 %3019  ;;  %v2487_v58 = vld [vmem:[#allocation4 + $0xe0] sm:$0xff]  ;;  %v6315_v32 = vld [vmem:[#allocation4 + $0x38] sm:$0xff] }
 0x2f6   : > { %3024 = vst.msk [vmem:[#allocation4 + $0x78] sm:$0xff] %vm2331_vm6, %v3020_v63  ;;  %4423 = vmatprep.subr.mxu0 %v2487_v58  ;;  %2738 = vst.msk [vmem:[#allocation4 + $0xa0] sm:$0xff] %vm2331_vm6, %v2733_v4 }
 0x2f7   : > { %4424 = vmatpush3.msra.mxu0 %v2471_v14 }
 0x2f8   : > { %4425 = vmatprep.subr.mxu0 %v6044_v35 }
 0x2f9   : > { %v2779_v20 = vpop.permute.xlu1 %2778  ;;  %4426 = vmatpush3.msra.mxu0 %v5905_v60  ;;  %v3008_v50 = vpop.permute.xlu0 %3007  ;;  %v6323_v60 = vld [vmem:[#allocation4 + $0x30] sm:$0xff] }
 0x2fa   : > { %2783 = vst.msk [vmem:[#allocation4 + $0xf8] sm:$0xff] %vm2331_vm6, %v2779_v20  ;;  %3012 = vst.msk [vmem:[#allocation4 + $0x68] sm:$0xff] %vm2331_vm6, %v3008_v50  ;;  %4427 = vmatprep.subr.mxu0 %v6107_v2  ;;  %v2796_v2 = vld [vmem:[#allocation4 + $0x60] sm:$0xff] }
 0x2fb   : > { %4428 = vmatpush3.msra.mxu0 %v6001_v16 }
 0x2fc   : > { %4429 = vmatprep.subr.mxu0 %v6046_v36 }
 0x2fd   : > { %v2767_v63 = vpop.permute.xlu1 %2766  ;;  %v2988_v35 = vpop.permute.xlu0 %2987  ;;  %4430 = vmatpush3.msra.mxu0 %v5907_v61  ;;  %v6340_v61 = vld [vmem:[%s6933_s3] sm:$0xff] }
 0x2fe   : > { %2771 = vst.msk [vmem:[#allocation4 + $0xe8] sm:$0xff] %vm2331_vm6, %v2767_v63  ;;  %2992 = vst.msk [vmem:[#allocation4 + $0x38] sm:$0xff] %vm2331_vm6, %v2988_v35  ;;  %4431 = vmatprep.subr.mxu0 %v6109_v37 }
 0x2ff   : > { %4432 = vmatpush3.msra.mxu0 %v6003_v24 }
 0x300   : > { %4433 = vmatprep.subr.mxu0 %v6283_v59  ;;  %v2806_v59 = vld [vmem:[#allocation4 + $0xb0] sm:$0xff] }
 0x301   : > { %v2986_v16 = vpop.permute.xlu0 %2985  ;;  %4434 = vmatpush3.msra.mxu0 %v6229_v13  ;;  %v2815_v36 = vld [vmem:[#allocation4 + $0xf8] sm:$0xff]  ;;  %v6394_v1 = vld [vmem:[#allocation4 + $0x68] sm:$0xff] }
 0x302   : > { %2991 = vst.msk [vmem:[#allocation4 + $0x30] sm:$0xff] %vm2331_vm6, %v2986_v16  ;;  %4435 = vmatprep.subr.mxu0 %v2481_v54  ;;  %4461 = vmatprep.subr.mxu1 %v2815_v36 }
 0x303   : > { %4436 = vmatpush3.msra.mxu0 %v6270_v6  ;;  %4462 = vmatpush3.msra.mxu1 %v2799_v15 }
 0x304   : > { %4437 = vmatprep.subr.mxu0 %v6291_v62  ;;  %v3104_v62 = vld [vmem:[#allocation4 + $0x78] sm:$0xff] }
 0x305   : > { %4438 = vmatpush3.msra.mxu0 %v6250_v11  ;;  %v2807_v11 = vld [vmem:[#allocation4 + $0xb8] sm:$0xff]  ;;  %v2813_v6 = vld [vmem:[#allocation4 + $0xe8] sm:$0xff] }
 0x306   : > { %4439 = vmatprep.subr.mxu0 %v2479_v48 }
 0x307   : > { %4440 = vmatpush3.msra.mxu0 %v6278_v3 }
 0x308   : > { %4441 = vmatprep.subr.mxu0 %v5965_v7  ;;  %v6346_v7 = vld [vmem:[%s6933_s3 + $0x18] sm:$0xff] }
 0x309   : > { %4442 = vmatpush3.msra.mxu0 %v5846_v43  ;;  %v6354_v43 = vld [vmem:[%s6933_s3 + $0x10] sm:$0xff] }
 0x30a   : > { %4443 = vmatprep.subr.mxu0 %v6026_v27  ;;  %v2798_v27 = vld [vmem:[#allocation4 + $0x70] sm:$0xff] }
 0x30b   : > { %4444 = vmatpush3.msra.mxu0 %v5888_v55  ;;  %v6366_v55 = vld [vmem:[%s6933_s3 + $0x20] sm:$0xff] }
 0x30c   : > { %4445 = vmatprep.subr.mxu0 %v5971_v8  ;;  %v6378_v8 = vld [vmem:[%s6933_s3 + $0x30] sm:$0xff] }
 0x30d   : > { %4446 = vmatpush3.msra.mxu0 %v5848_v44  ;;  %v6359_v44 = vld [vmem:[%s6933_s3 + $0x28] sm:$0xff] }
 0x30e   : > { %4447 = vmatprep.subr.mxu0 %v6028_v29 }
 0x30f   : > { %4448 = vmatpush3.msra.mxu0 %v5890_v56  ;;  %v6371_v56 = vld [vmem:[%s6933_s3 + $0x38] sm:$0xff] }
 0x310   : > { %2576 = vmatmul.mubr.f32.vlgmr.msra.gmra.mxu0 %v6340_v61 }
 0x311   : > { %2580 = vmatprep.mubr.f32.mxu0 %v6346_v7 }
 0x314   : > { %2581 = vmatmul.mubr.f32.gmra.mxu0 %v6354_v43 }
 0x315   : > { %2585 = vmatprep.mubr.f32.mxu0 %v6359_v44 }
 0x318   : > { %2586 = vmatmul.mubr.f32.gmra.mxu0 %v6366_v55 }
 0x319   : > { %2590 = vmatprep.mubr.f32.mxu0 %v6371_v56 }
 0x31c   : > { %2591 = vmatmul.mubr.f32.gmra.mxu0 %v6378_v8 }
 0x31d   : > { %v2777_v24 = vpop.permute.xlu1 %2776  ;;  %v3018_v29 = vpop.permute.xlu0 %3017  ;;  %3185 = vmatprep.mubr.f32.mxu0 %v6069_v45 }
 0x31e   : > { %2782 = vst.msk [vmem:[#allocation4 + $0xf0] sm:$0xff] %vm2331_vm6, %v2777_v24  ;;  %3023 = vst.msk [vmem:[#allocation4 + $0x70] sm:$0xff] %vm2331_vm6, %v3018_v29 }
 0x321   : > { %v2765_v54 = vpop.permute.xlu1 %2764  ;;  %v3006_v37 = vpop.permute.xlu0 %3005 }
 0x322   : > { %2770 = vst.msk [vmem:[#allocation4 + $0xe0] sm:$0xff] %vm2331_vm6, %v2765_v54  ;;  %3011 = vst.msk [vmem:[#allocation4 + $0x60] sm:$0xff] %vm2331_vm6, %v3006_v37  ;;  %v6949_v54 = vld [vmem:[#allocation12_spill] sm:$0xff] }
 0x323   : > { %v3422_v37 = vld [vmem:[#allocation4 + $0xd0] sm:$0xff] }
 0x325   : > { %v3052_v48 = vpop.permute.xlu1 %3051  ;;  %v2814_v13 = vld [vmem:[#allocation4 + $0xf0] sm:$0xff] }
 0x326   : > { %4463 = vmatprep.subr.mxu1 %v2814_v13  ;;  %3056 = vst.msk [vmem:[#allocation4 + $0xb8] sm:$0xff] %vm2331_vm6, %v3052_v48  ;;  %v3103_v58 = vld [vmem:[#allocation4 + $0x70] sm:$0xff]  ;;  %v3421_v48 = vld [vmem:[#allocation4 + $0xc8] sm:$0xff] }
 0x327   : > { %4464 = vmatpush3.msra.mxu1 %v2798_v27  ;;  %v3406_v13 = vld [vmem:[#allocation4 + $0x50] sm:$0xff] }
 0x328   : > { %4465 = vmatprep.subr.mxu1 %v2813_v6 }
 0x329   : > { %v3050_v45 = vpop.permute.xlu1 %3049  ;;  %4466 = vmatpush3.msra.mxu1 %v6308_v22  ;;  %v2812_v3 = vld [vmem:[#allocation4 + $0xe0] sm:$0xff] }
 0x32a   : > { %4467 = vmatprep.subr.mxu1 %v2812_v3  ;;  %3055 = vst.msk [vmem:[#allocation4 + $0xb0] sm:$0xff] %vm2331_vm6, %v3050_v45  ;;  %v3101_v22 = vld [vmem:[#allocation4 + $0x60] sm:$0xff]  ;;  %v3405_v3 = vld [vmem:[#allocation4 + $0x48] sm:$0xff] }
 0x32b   : > { %v3325_v51 = vpop.permute.xlu0 %3324  ;;  %4468 = vmatpush3.msra.mxu1 %v2796_v2  ;;  %v3420_v45 = vld [vmem:[#allocation4 + $0xc0] sm:$0xff] }
 0x32c   : > { %3329 = vst.msk [vmem:[#allocation4 + $0x78] sm:$0xff] %vm2331_vm6, %v3325_v51  ;;  %4469 = vmatprep.subr.mxu1 %v6155_v39  ;;  %v2789_v39 = vld [vmem:[#allocation4 + $0x28] sm:$0xff] }
 0x32d   : > { %v3084_v14 = vpop.permute.xlu1 %3083  ;;  %4470 = vmatpush3.msra.mxu1 %v6048_v38  ;;  %v3112_v35 = vld [vmem:[#allocation4 + $0xb8] sm:$0xff] }
 0x32e   : > { %3088 = vst.msk [vmem:[#allocation4 + $0xf8] sm:$0xff] %vm2331_vm6, %v3084_v14  ;;  %4471 = vmatprep.subr.mxu1 %v6201_v21 }
 0x32f   : > { %v3313_v47 = vpop.permute.xlu0 %3312  ;;  %4472 = vmatpush3.msra.mxu1 %v6111_v41  ;;  %v2788_v41 = vld [vmem:[#allocation4 + $0x20] sm:$0xff] }
 0x330   : > { %3317 = vst.msk [vmem:[#allocation4 + $0x68] sm:$0xff] %vm2331_vm6, %v3313_v47  ;;  %4473 = vmatprep.subr.mxu1 %v6157_v40 }
 0x331   : > { %v3072_v4 = vpop.permute.xlu1 %3071  ;;  %4474 = vmatpush3.msra.mxu1 %v6052_v42  ;;  %v2805_v42 = vld [vmem:[#allocation4 + $0xa8] sm:$0xff]  ;;  %v3111_v2 = vld [vmem:[#allocation4 + $0xb0] sm:$0xff] }
 0x332   : > { %3076 = vst.msk [vmem:[#allocation4 + $0xe8] sm:$0xff] %vm2331_vm6, %v3072_v4  ;;  %4475 = vmatprep.subr.mxu1 %v6203_v25  ;;  %v6952_v4 = vld [vmem:[#allocation13_spill] sm:$0xff] }
 0x333   : > { %v2976_v38 = vpop.permute.xlu0 %2975  ;;  %4476 = vmatpush3.msra.mxu1 %v6115_v5  ;;  %v2804_v5 = vld [vmem:[#allocation4 + $0xa0] sm:$0xff] }
 0x334   : > { %2980 = vst.msk [vmem:[#allocation4 + $0x28] sm:$0xff] %vm2331_vm6, %v2976_v38  ;;  %4477 = vmatprep.subr.mxu1 %v2807_v11 }
 0x335   : > { %4478 = vmatpush3.msra.mxu1 %v6315_v32  ;;  %v3120_v21 = vld [vmem:[#allocation4 + $0xf8] sm:$0xff] }
 0x336   : > { %4479 = vmatprep.subr.mxu1 %v2806_v59  ;;  %4505 = vmatprep.subr.mxu0 %v3120_v21  ;;  %3395 = vst.msk [vmem:[#allocation4 + $0xf8] sm:$0xff] %vm2331_vm6, %v5797_v18  ;;  %v3404_v59 = vld [vmem:[#allocation4 + $0x40] sm:$0xff]  ;;  %v6954_v21 = vld [vmem:[#allocation11_spill] sm:$0xff] }
 0x337   : > { %v2974_v15 = vpop.permute.xlu0 %2973  ;;  %4480 = vmatpush3.msra.mxu1 %v6323_v60  ;;  %4506 = vmatpush3.msra.mxu0 %v3104_v62  ;;  %v3409_v36 = vld [vmem:[#allocation4 + $0x68] sm:$0xff]  ;;  %v6950_v62 = vld [vmem:[#allocation10_spill] sm:$0xff] }
 0x338   : > { %2979 = vst.msk [vmem:[#allocation4 + $0x20] sm:$0xff] %vm2331_vm6, %v2974_v15  ;;  %4481 = vmatprep.subr.mxu1 %v2805_v42  ;;  %v6955_v42 = vld [vmem:[#allocation7_spill] sm:$0xff] }
 0x339   : > { %v3082_v40 = vpop.permute.xlu1 %3081  ;;  %4482 = vmatpush3.msra.mxu1 %v2789_v39  ;;  %v3118_v25 = vld [vmem:[#allocation4 + $0xe8] sm:$0xff]  ;;  %v6953_v39 = vld [vmem:[#allocation8_spill] sm:$0xff] }
 0x33a   : > { %3087 = vst.msk [vmem:[#allocation4 + $0xf0] sm:$0xff] %vm2331_vm6, %v3082_v40  ;;  %4483 = vmatprep.subr.mxu1 %v2804_v5  ;;  %3383 = vst.msk [vmem:[#allocation4 + $0xe8] sm:$0xff] %vm2331_vm6, %v5802_v23  ;;  %v6956_v5 = vld [vmem:[#allocation14_spill] sm:$0xff] }
 0x33b   : > { %v3323_v20 = vpop.permute.xlu0 %3322  ;;  %4484 = vmatpush3.msra.mxu1 %v2788_v41  ;;  %v3094_v60 = vld [vmem:[#allocation4 + $0x28] sm:$0xff] }
 0x33c   : > { %3328 = vst.msk [vmem:[#allocation4 + $0x70] sm:$0xff] %vm2331_vm6, %v3323_v20  ;;  %4485 = vmatprep.subr.mxu1 %v6086_v52  ;;  %v6422_v52 = vld [vmem:[#allocation4 + $0x38] sm:$0xff] }
 0x33d   : > { %v3070_v18 = vpop.permute.xlu1 %3069  ;;  %4486 = vmatpush3.msra.mxu1 %v5973_v9  ;;  %v3415_v20 = vld [vmem:[#allocation4 + $0x98] sm:$0xff] }
 0x33e   : > { %3075 = vst.msk [vmem:[#allocation4 + $0xe0] sm:$0xff] %vm2331_vm6, %v3070_v18  ;;  %4487 = vmatprep.subr.mxu1 %v6133_v12  ;;  %v3399_v18 = vld [vmem:[#allocation4 + $0x18] sm:$0xff] }
 0x33f   : > { %v3311_v50 = vpop.permute.xlu0 %3310  ;;  %4488 = vmatpush3.msra.mxu1 %v6030_v30  ;;  %v3093_v27 = vld [vmem:[#allocation4 + $0x20] sm:$0xff] }
 0x340   : > { %3316 = vst.msk [vmem:[#allocation4 + $0x60] sm:$0xff] %vm2331_vm6, %v3311_v50  ;;  %4489 = vmatprep.subr.mxu1 %v6088_v53  ;;  %v3411_v53 = vld [vmem:[#allocation4 + $0x78] sm:$0xff]  ;;  %v4981_v50 = vld [vmem:[%s6933_s3 + $0x8] sm:$0xff] }
 0x341   : > { %v3040_v23 = vpop.permute.xlu1 %3039  ;;  %4490 = vmatpush3.msra.mxu1 %v5975_v10  ;;  %v3119_v63 = vld [vmem:[#allocation4 + $0xf0] sm:$0xff]  ;;  %v3427_v10 = vld [vmem:[#allocation4 + $0xf8] sm:$0xff] }
 0x342   : > { %3044 = vst.msk [vmem:[#allocation4 + $0xa8] sm:$0xff] %vm2331_vm6, %v3040_v23  ;;  %4491 = vmatprep.subr.mxu1 %v6139_v17  ;;  %4507 = vmatprep.subr.mxu0 %v3119_v63  ;;  %3394 = vst.msk [vmem:[#allocation4 + $0xf0] sm:$0xff] %vm2331_vm6, %v5799_v19  ;;  %v3095_v17 = vld [vmem:[#allocation4 + $0x30] sm:$0xff]  ;;  %v3413_v63 = vld [vmem:[#allocation4 + $0x88] sm:$0xff] }
 0x343   : > { %v3293_v9 = vpop.permute.xlu0 %3292  ;;  %4492 = vmatpush3.msra.mxu1 %v6034_v34  ;;  %4508 = vmatpush3.msra.mxu0 %v3103_v58  ;;  %v3398_v23 = vld [vmem:[#allocation4 + $0x10] sm:$0xff] }
 0x344   : > { %3297 = vst.msk [vmem:[#allocation4 + $0x38] sm:$0xff] %vm2331_vm6, %v3293_v9  ;;  %2881 = vmatmul.mubr.f32.vlgmr.msra.gmra.mxu1 %v6340_v61  ;;  %4509 = vmatprep.subr.mxu0 %v3118_v25  ;;  %v6957_v25 = vld [vmem:[#allocation9_spill] sm:$0xff]  ;;  %v3412_v9 = vld [vmem:[#allocation4 + $0x80] sm:$0xff] }
 0x345   : > { %4549 = vmatprep.subr.mxu1 %v3427_v10  ;;  %v3038_v30 = vpop.permute.xlu1 %3037  ;;  %4510 = vmatpush3.msra.mxu0 %v6394_v1  ;;  %v3117_v12 = vld [vmem:[#allocation4 + $0xe0] sm:$0xff] }
 0x346   : > { %3043 = vst.msk [vmem:[#allocation4 + $0xa0] sm:$0xff] %vm2331_vm6, %v3038_v30  ;;  %4550 = vmatpush3.msra.mxu1 %v3411_v53  ;;  %4511 = vmatprep.subr.mxu0 %v3117_v12  ;;  %3382 = vst.msk [vmem:[#allocation4 + $0xe0] sm:$0xff] %vm2331_vm6, %v5817_v31  ;;  %v3410_v31 = vld [vmem:[#allocation4 + $0x70] sm:$0xff]  ;;  %v6951_v1 = vld [vmem:[#allocation6_spill] sm:$0xff] }
 0x347   : > { %v3291_v19 = vpop.permute.xlu0 %3290  ;;  %2885 = vmatprep.mubr.f32.mxu1 %v6346_v7  ;;  %4512 = vmatpush3.msra.mxu0 %v3101_v22  ;;  %v3414_v22 = vld [vmem:[#allocation4 + $0x90] sm:$0xff]  ;;  %v3396_v10 = vld [vmem:[#allocation4] sm:$0xff] }
 0x348   : > { %3296 = vst.msk [vmem:[#allocation4 + $0x30] sm:$0xff] %vm2331_vm6, %v3291_v19  ;;  %2886 = vmatmul.mubr.f32.gmra.mxu1 %v6354_v43  ;;  %4513 = vmatprep.subr.mxu0 %v6220_v33 }
 0x349   : > { %v3357_v34 = vpop.permute.xlu1 %3356  ;;  %4514 = vmatpush3.msra.mxu0 %v6159_v46  ;;  %v3426_v32 = vld [vmem:[#allocation4 + $0xf0] sm:$0xff]  ;;  %2890 = vmatprep.mubr.f32.mxu1 %v6359_v44  ;;  %v3425_v46 = vld [vmem:[#allocation4 + $0xe8] sm:$0xff] }
 0x34a   : > { %4515 = vmatprep.subr.mxu0 %v6238_v28  ;;  %4551 = vmatprep.subr.mxu1 %v3426_v32  ;;  %3361 = vst.msk [vmem:[#allocation4 + $0xb8] sm:$0xff] %vm2331_vm6, %v3357_v34  ;;  %v3110_v24 = vld [vmem:[#allocation4 + $0xa8] sm:$0xff] }
 0x34b   : > { %v3281_v16 = vpop.permute.xlu0 %3280  ;;  %4516 = vmatpush3.msra.mxu0 %v6205_v26  ;;  %4552 = vmatpush3.msra.mxu1 %v3410_v31  ;;  %v3408_v26 = vld [vmem:[#allocation4 + $0x60] sm:$0xff]  ;;  %v3403_v47 = vld [vmem:[#allocation4 + $0x38] sm:$0xff] }
 0x34c   : > { %3285 = vst.msk [vmem:[#allocation4 + $0x28] sm:$0xff] %vm2331_vm6, %v3281_v16  ;;  %2891 = vmatmul.mubr.f32.gmra.mxu1 %v6366_v55  ;;  %4517 = vmatprep.subr.mxu0 %v6227_v0  ;;  %v3423_v0 = vld [vmem:[#allocation4 + $0xd8] sm:$0xff] }
 0x34d   : > { %4553 = vmatprep.subr.mxu1 %v3425_v46  ;;  %v3345_v33 = vpop.permute.xlu1 %3344  ;;  %4518 = vmatpush3.msra.mxu0 %v6165_v49  ;;  %v3424_v28 = vld [vmem:[#allocation4 + $0xe0] sm:$0xff] }
 0x34e   : > { %4554 = vmatpush3.msra.mxu1 %v3409_v36  ;;  %4519 = vmatprep.subr.mxu0 %v6243_v57  ;;  %3349 = vst.msk [vmem:[#allocation4 + $0xa8] sm:$0xff] %vm2331_vm6, %v3345_v33  ;;  %v3407_v57 = vld [vmem:[#allocation4 + $0x58] sm:$0xff]  ;;  %v3109_v6 = vld [vmem:[#allocation4 + $0xa0] sm:$0xff] }
 0x34f   : > { %v3279_v29 = vpop.permute.xlu0 %3278  ;;  %4555 = vmatprep.subr.mxu1 %v3424_v28  ;;  %2895 = vmatprep.mubr.f32.mxu1 %v6371_v56  ;;  %v3402_v38 = vld [vmem:[#allocation4 + $0x30] sm:$0xff] }
 0x350   : > { %3284 = vst.msk [vmem:[#allocation4 + $0x20] sm:$0xff] %vm2331_vm6, %v3279_v29  ;;  %4520 = vmatpush3.msra.mxu0 %v6949_v54  ;;  %4556 = vmatpush3.msra.mxu1 %v3408_v26 }
 0x351   : > { %2896 = vmatmul.mubr.f32.gmra.mxu1 %v6378_v8  ;;  %4521 = vmatprep.subr.mxu0 %v3112_v35  ;;  %v3355_v49 = vpop.permute.xlu1 %3354  ;;  %v3419_v51 = vld [vmem:[#allocation4 + $0xb8] sm:$0xff] }
 0x352   : > { %4557 = vmatprep.subr.mxu1 %v3423_v0  ;;  %4522 = vmatpush3.msra.mxu0 %v6422_v52  ;;  %3360 = vst.msk [vmem:[#allocation4 + $0xb0] sm:$0xff] %vm2331_vm6, %v3355_v49  ;;  %v3397_v52 = vld [vmem:[#allocation4 + $0x8] sm:$0xff] }
 0x353   : > { %4558 = vmatpush3.msra.mxu1 %v3407_v57  ;;  %4523 = vmatprep.subr.mxu0 %v3111_v2  ;;  %v3401_v40 = vld [vmem:[#allocation4 + $0x28] sm:$0xff] }
 0x354   : > { %4559 = vmatprep.subr.mxu1 %v3422_v37  ;;  %4524 = vmatpush3.msra.mxu0 %v3095_v17 }
 0x355   : > { %4560 = vmatpush3.msra.mxu1 %v3406_v13  ;;  %4525 = vmatprep.subr.mxu0 %v3110_v24  ;;  %v3343_v11 = vpop.permute.xlu1 %3342  ;;  %v3417_v41 = vld [vmem:[#allocation4 + $0xa8] sm:$0xff] }
 0x356   : > { %4561 = vmatprep.subr.mxu1 %v3421_v48  ;;  %4526 = vmatpush3.msra.mxu0 %v3094_v60  ;;  %3348 = vst.msk [vmem:[#allocation4 + $0xa0] sm:$0xff] %vm2331_vm6, %v3343_v11 }
 0x357   : > { %4562 = vmatpush3.msra.mxu1 %v3405_v3  ;;  %4527 = vmatprep.subr.mxu0 %v3109_v6  ;;  %v3400_v58 = vld [vmem:[#allocation4 + $0x20] sm:$0xff] }
 0x358   : > { %4563 = vmatprep.subr.mxu1 %v3420_v45  ;;  %4528 = vmatpush3.msra.mxu0 %v3093_v27 }
 0x359   : > { %4564 = vmatpush3.msra.mxu1 %v3404_v59  ;;  %4529 = vmatprep.subr.mxu0 %v6950_v62  ;;  %v3418_v14 = vld [vmem:[#allocation4 + $0xb0] sm:$0xff] }
 0x35a   : > { %4565 = vmatprep.subr.mxu1 %v3419_v51  ;;  %4530 = vmatpush3.msra.mxu0 %v6951_v1 }
 0x35b   : > { %4566 = vmatpush3.msra.mxu1 %v3403_v47  ;;  %4531 = vmatprep.subr.mxu0 %v6952_v4 }
 0x35c   : > { %4567 = vmatprep.subr.mxu1 %v3418_v14  ;;  %4532 = vmatpush3.msra.mxu0 %v6953_v39  ;;  %v6481_v30 = vpop.permute.xlu0 %2503 }
 0x35d   : > { %4568 = vmatpush3.msra.mxu1 %v3402_v38  ;;  %4533 = vmatprep.subr.mxu0 %v6954_v21  ;;  %v3416_v15 = vld [vmem:[#allocation4 + $0xa0] sm:$0xff] }
 0x35e   : > { %4569 = vmatprep.subr.mxu1 %v3417_v41  ;;  %4534 = vmatpush3.msra.mxu0 %v6955_v42 }
 0x35f   : > { %4570 = vmatpush3.msra.mxu1 %v3401_v40  ;;  %4535 = vmatprep.subr.mxu0 %v6956_v5 }
 0x360   : > { %4571 = vmatprep.subr.mxu1 %v3416_v15  ;;  %4536 = vmatpush3.msra.mxu0 %v6957_v25 }
 0x361   : > { %4572 = vmatpush3.msra.mxu1 %v3400_v58  ;;  %3186 = vmatmul.mubr.f32.vlgmr.msra.gmra.mxu0 %v6340_v61 }
 0x362   : > { %4573 = vmatprep.subr.mxu1 %v3415_v20  ;;  %3190 = vmatprep.mubr.f32.mxu0 %v6346_v7 }
 0x363   : > { %4574 = vmatpush3.msra.mxu1 %v3399_v18  ;;  %3492 = vmatprep.mubr.f32.mxu1 %v4981_v50 }
 0x364   : > { %4575 = vmatprep.subr.mxu1 %v3414_v22 }
 0x365   : > { %4576 = vmatpush3.msra.mxu1 %v3398_v23  ;;  %3191 = vmatmul.mubr.f32.gmra.mxu0 %v6354_v43 }
 0x366   : > { %4577 = vmatprep.subr.mxu1 %v3413_v63  ;;  %3195 = vmatprep.mubr.f32.mxu0 %v6359_v44 }
 0x367   : > { %4578 = vmatpush3.msra.mxu1 %v3397_v52 }
 0x368   : > { %4579 = vmatprep.subr.mxu1 %v3412_v9 }
 0x369   : > { %4580 = vmatpush3.msra.mxu1 %v3396_v10  ;;  %3196 = vmatmul.mubr.f32.gmra.mxu0 %v6366_v55 }
 0x36a   : > { %3493 = vmatmul.mubr.f32.vlgmr.msra.gmra.mxu1 %v6340_v61  ;;  %3200 = vmatprep.mubr.f32.mxu0 %v6371_v56  ;;  %v6483_v61 = vpop.permute.xlu1 %2508 }
 0x36b   : > { %3497 = vmatprep.mubr.f32.mxu1 %v6346_v7  ;;  %v6485_v7 = vpop.permute.xlu0 %2493 }
 0x36d   : > { %3201 = vmatmul.mubr.f32.gmra.mxu0 %v6378_v8 }
 0x36e   : > { %3498 = vmatmul.mubr.f32.gmra.mxu1 %v6354_v43  ;;  %v6490_v32 = vpop.permute.xlu1 %2498 }
 0x36f   : > { %3502 = vmatprep.mubr.f32.mxu1 %v6359_v44 }
 0x372   : > { %3503 = vmatmul.mubr.f32.gmra.mxu1 %v6366_v55 }
 0x373   : > { %3507 = vmatprep.mubr.f32.mxu1 %v6371_v56 }
 0x376   : > { %3508 = vmatmul.mubr.f32.gmra.mxu1 %v6378_v8 }
 0x3d0   : > { %v4449_v53 = vpop.f32.mrf.mxu0 }
 0x3d2   : > { %v4450_v12 = vpop.f32.mrf.mxu0 }
 0x3d3   : > { %v4451_v17 = vadd.f32 %v4450_v12, %v4449_v53 }
 0x3d4   : > { %v4452_v19 = vpop.f32.mrf.mxu0 }
 0x3d5   : > { %v2578_v43 = vadd.f32 %v4451_v17, %v6485_v7 }
 0x3d6   : > { %v4453_v34 = vpop.f32.mrf.mxu0 }
 0x3d7   : > { %v6488_v44 = vmax.f32 %v2578_v43, 0.0  ;;  %v4454_v55 = vadd.f32 %v4453_v34, %v4452_v19 }
 0x3d8   : > { %v4455_v56 = vpop.f32.mrf.mxu0 }
 0x3d9   : > { %2600 = vst.msk [vmem:[#allocation5] sm:$0xff] %vm1372_vm4, %v6488_v44  ;;  %v2583_v8 = vadd.f32 %v4454_v55, %v6490_v32  ;;  %2640 = vrot.lane.b32.xlu1 %v6488_v44, %s4994_s29 }
 0x3da   : > { %v4456_v35 = vpop.f32.mrf.mxu0 }
 0x3db   : > { %v6497_v60 = vmax.f32 %v2583_v8, 0.0  ;;  %v4457_v16 = vadd.f32 %v4456_v35, %v4455_v56 }
 0x3dc   : > { %v4458_v31 = vpop.f32.mrf.mxu0 }
 0x3dd   : > { %2601 = vst.msk [vmem:[#allocation5 + $0x8] sm:$0xff] %vm1372_vm4, %v6497_v60  ;;  %v2588_v46 = vadd.f32 %v4457_v16, %v6481_v30  ;;  %2624 = vrot.lane.b32.xlu1 %v6488_v44, %s4990_s15 }
 0x3de   : > { %v4459_v33 = vpop.f32.mrf.mxu0 }
 0x3df   : > { %v2598_v36 = vmax.f32 %v2588_v46, 0.0  ;;  %v4460_v28 = vadd.f32 %v4459_v33, %v4458_v31 }
 0x3e1   : > { %2602 = vst.msk [vmem:[#allocation5 + $0x10] sm:$0xff] %vm1372_vm4, %v2598_v36  ;;  %v2593_v24 = vadd.f32 %v4460_v28, %v6483_v61  ;;  %2642 = vrot.lane.b32.xlu1 %v6497_v60, %s4994_s29 }
 0x3e3   : > { %v2599_v27 = vmax.f32 %v2593_v24, 0.0 }
 0x3e5   : > { %2603 = vst.msk [vmem:[#allocation5 + $0x18] sm:$0xff] %vm1372_vm4, %v2599_v27  ;;  %2646 = vrot.lane.b32.xlu0 %v2599_v27, %s4994_s29  ;;  %2626 = vrot.lane.b32.xlu1 %v6497_v60, %s4990_s15 }
 0x3e9   : > { %2644 = vrot.lane.b32.xlu1 %v2598_v36, %s4994_s29 }
 0x3ed   : > { %2628 = vrot.lane.b32.xlu1 %v2598_v36, %s4990_s15 }
 0x3f1   : > { %2612 = vrot.lane.b32.xlu1 %v2598_v36, %s4991_s16 }
 0x3f5   : > { %2630 = vrot.lane.b32.xlu1 %v2599_v27, %s4990_s15 }
 0x3f9   : > { %2614 = vrot.lane.b32.xlu1 %v2599_v27, %s4991_s16 }
 0x404   : > { %v4493_v29 = vpop.f32.mrf.mxu1 }
 0x406   : > { %v4494_v26 = vpop.f32.mrf.mxu1 }
 0x407   : > { %v4495_v0 = vadd.f32 %v4494_v26, %v4493_v29 }
 0x408   : > { %v4496_v54 = vpop.f32.mrf.mxu1 }
 0x409   : > { %v2883_v49 = vadd.f32 %v4495_v0, %v6485_v7 }
 0x40a   : > { %v4497_v2 = vpop.f32.mrf.mxu1 }
 0x40b   : > { %v6518_v37 = vmax.f32 %v2883_v49, 0.0  ;;  %v4498_v57 = vadd.f32 %v4497_v2, %v4496_v54 }
 0x40c   : > { %v4499_v48 = vpop.f32.mrf.mxu1 }
 0x40d   : > { %2905 = vst.msk [vmem:[#allocation5 + $0x80] sm:$0xff] %vm1372_vm4, %v6518_v37  ;;  %v2888_v13 = vadd.f32 %v4498_v57, %v6490_v32  ;;  %2945 = vrot.lane.b32.xlu1 %v6518_v37, %s4994_s29  ;;  %v3574_v57 = vld [vmem:[%s6935_s5 + $0x8] sm:$0xff] }
 0x40e   : > { %v4500_v11 = vpop.f32.mrf.mxu1  ;;  %3766 = vmatprep.mubr.f32.mxu0 %v3574_v57 }
 0x40f   : > { %v2902_v6 = vmax.f32 %v2888_v13, 0.0  ;;  %v4501_v45 = vadd.f32 %v4500_v11, %v4499_v48  ;;  %v3576_v13 = vld [vmem:[%s6935_s5 + $0x18] sm:$0xff] }
 0x410   : > { %3896 = vmatprep.mubr.f32.mxu1 %v3576_v13  ;;  %v3586_v13 = vld [vmem:[%s6935_s5 + $0x68] sm:$0xff] }
 0x411   : > { %2906 = vst.msk [vmem:[#allocation5 + $0x88] sm:$0xff] %vm1372_vm4, %v2902_v6  ;;  %v2893_v3 = vadd.f32 %v4501_v45, %v6481_v30  ;;  %v4502_v59 = vpop.f32.mrf.mxu1  ;;  %2929 = vrot.lane.b32.xlu1 %v6518_v37, %s4990_s15 }
 0x413   : > { %v2903_v62 = vmax.f32 %v2893_v3, 0.0  ;;  %v4503_v51 = vpop.f32.mrf.mxu1 }
 0x414   : > { %v4504_v14 = vadd.f32 %v4503_v51, %v4502_v59 }
 0x415   : > { %2907 = vst.msk [vmem:[#allocation5 + $0x90] sm:$0xff] %vm1372_vm4, %v2903_v62  ;;  %2947 = vrot.lane.b32.xlu1 %v2902_v6, %s4994_s29 }
 0x416   : > { %v2898_v1 = vadd.f32 %v4504_v14, %v6483_v61 }
 0x418   : > { %v2904_v47 = vmax.f32 %v2898_v1, 0.0 }
 0x419   : > { %2931 = vrot.lane.b32.xlu1 %v2902_v6, %s4990_s15 }
 0x41a   : > { %2908 = vst.msk [vmem:[#allocation5 + $0x98] sm:$0xff] %vm1372_vm4, %v2904_v47 }
 0x41d   : > { %2915 = vrot.lane.b32.xlu1 %v2902_v6, %s4991_s16 }
 0x421   : > { %v4537_v4 = vpop.f32.mrf.mxu0  ;;  %2949 = vrot.lane.b32.xlu1 %v2903_v62, %s4994_s29 }
 0x423   : > { %v4538_v39 = vpop.f32.mrf.mxu0 }
 0x424   : > { %v4539_v38 = vadd.f32 %v4538_v39, %v4537_v4 }
 0x425   : > { %v4540_v21 = vpop.f32.mrf.mxu0  ;;  %2933 = vrot.lane.b32.xlu1 %v2903_v62, %s4990_s15 }
 0x426   : > { %v3188_v41 = vadd.f32 %v4539_v38, %v6485_v7 }
 0x427   : > { %v4541_v15 = vpop.f32.mrf.mxu0 }
 0x428   : > { %v6538_v42 = vmax.f32 %v3188_v41, 0.0  ;;  %v4542_v40 = vadd.f32 %v4541_v15, %v4540_v21 }
 0x429   : > { %v4543_v5 = vpop.f32.mrf.mxu0  ;;  %2917 = vrot.lane.b32.xlu1 %v2903_v62, %s4991_s16 }
 0x42a   : > { %3210 = vst.msk [vmem:[#allocation5 + $0x100] sm:$0xff] %vm1372_vm4, %v6538_v42  ;;  %v3193_v25 = vadd.f32 %v4542_v40, %v6490_v32  ;;  %v4581_v58 = vpop.f32.mrf.mxu1  ;;  %3250 = vrot.lane.b32.xlu0 %v6538_v42, %s4994_s29 }
 0x42b   : > { %v4544_v20 = vpop.f32.mrf.mxu0 }
 0x42c   : > { %v6546_v18 = vmax.f32 %v3193_v25, 0.0  ;;  %v4545_v22 = vadd.f32 %v4544_v20, %v4543_v5  ;;  %v4582_v50 = vpop.f32.mrf.mxu1 }
 0x42d   : > { %v4583_v23 = vadd.f32 %v4582_v50, %v4581_v58  ;;  %v4546_v63 = vpop.f32.mrf.mxu0  ;;  %2951 = vrot.lane.b32.xlu1 %v2904_v47, %s4994_s29 }
 0x42e   : > { %3211 = vst.msk [vmem:[#allocation5 + $0x108] sm:$0xff] %vm1372_vm4, %v6546_v18  ;;  %v3198_v52 = vadd.f32 %v4545_v22, %v6481_v30  ;;  %v4584_v9 = vpop.f32.mrf.mxu1  ;;  %3234 = vrot.lane.b32.xlu0 %v6538_v42, %s4990_s15 }
 0x42f   : > { %v3495_v10 = vadd.f32 %v4583_v23, %v6485_v7  ;;  %v4547_v53 = vpop.f32.mrf.mxu0 }
 0x430   : > { %v6555_v12 = vmax.f32 %v3198_v52, 0.0  ;;  %v4548_v17 = vadd.f32 %v4547_v53, %v4546_v63  ;;  %v4585_v19 = vpop.f32.mrf.mxu1 }
 0x431   : > { %v3513_v43 = vmax.f32 %v3495_v10, 0.0  ;;  %v4586_v34 = vadd.f32 %v4585_v19, %v4584_v9  ;;  %2610 = vrot.lane.b32.xlu1 %v6497_v60, %s4991_s16 }
 0x432   : > { %3212 = vst.msk [vmem:[#allocation5 + $0x110] sm:$0xff] %vm1372_vm4, %v6555_v12  ;;  %v3203_v55 = vadd.f32 %v4548_v17, %v6483_v61  ;;  %v4587_v56 = vpop.f32.mrf.mxu1  ;;  %3252 = vrot.lane.b32.xlu0 %v6546_v18, %s4994_s29 }
 0x433   : > { %3517 = vst.msk [vmem:[#allocation5 + $0x180] sm:$0xff] %vm1372_vm4, %v3513_v43  ;;  %v3500_v7 = vadd.f32 %v4586_v34, %v6490_v32 }
 0x434   : > { %v3209_v8 = vmax.f32 %v3203_v55, 0.0  ;;  %v4588_v35 = vpop.f32.mrf.mxu1 }
 0x435   : > { %v3514_v16 = vmax.f32 %v3500_v7, 0.0  ;;  %v4589_v31 = vadd.f32 %v4588_v35, %v4587_v56  ;;  %2935 = vrot.lane.b32.xlu1 %v2904_v47, %s4990_s15 }
 0x436   : > { %3213 = vst.msk [vmem:[#allocation5 + $0x118] sm:$0xff] %vm1372_vm4, %v3209_v8  ;;  %v4590_v60 = vpop.f32.mrf.mxu1  ;;  %3236 = vrot.lane.b32.xlu0 %v6546_v18, %s4990_s15 }
 0x437   : > { %3518 = vst.msk [vmem:[#allocation5 + $0x188] sm:$0xff] %vm1372_vm4, %v3514_v16  ;;  %v3505_v46 = vadd.f32 %v4589_v31, %v6481_v30 }
 0x438   : > { %v4591_v33 = vpop.f32.mrf.mxu1 }
 0x439   : > { %v3515_v36 = vmax.f32 %v3505_v46, 0.0  ;;  %v4592_v28 = vadd.f32 %v4591_v33, %v4590_v60  ;;  %2919 = vrot.lane.b32.xlu1 %v2904_v47, %s4991_s16 }
 0x43a   : > { %3254 = vrot.lane.b32.xlu0 %v6555_v12, %s4994_s29 }
 0x43b   : > { %3519 = vst.msk [vmem:[#allocation5 + $0x190] sm:$0xff] %vm1372_vm4, %v3515_v36  ;;  %v3510_v32 = vadd.f32 %v4592_v28, %v6483_v61 }
 0x43d   : > { %v3516_v24 = vmax.f32 %v3510_v32, 0.0  ;;  %2913 = vrot.lane.b32.xlu1 %v6518_v37, %s4991_s16  ;;  %v3628_v32 = vld [vmem:[#allocation5 + $0x18] sm:$0xff] }
 0x43e   : > { %3238 = vrot.lane.b32.xlu0 %v6555_v12, %s4990_s15 }
 0x43f   : > { %3520 = vst.msk [vmem:[#allocation5 + $0x198] sm:$0xff] %vm1372_vm4, %v3516_v24 }
 0x441   : > { %2608 = vrot.lane.b32.xlu1 %v6488_v44, %s4991_s16 }
 0x442   : > { %3256 = vrot.lane.b32.xlu0 %v3209_v8, %s4994_s29 }
 0x445   : > { %3525 = vrot.lane.b32.xlu1 %v3513_v43, %s4991_s16 }
 0x446   : > { %3557 = vrot.lane.b32.xlu0 %v3513_v43, %s4994_s29 }
 0x44a   : > { %3240 = vrot.lane.b32.xlu0 %v3209_v8, %s4990_s15 }
 0x44b   : > { %v2641_v30 = vpop.permute.xlu1 %2640 }
 0x44c   : > { %2652 = vst.msk [vmem:[#allocation5 + $0x60] sm:$0xff] %vm1372_vm4, %v2641_v30  ;;  %v3627_v30 = vld [vmem:[#allocation5 + $0x10] sm:$0xff] }
 0x44e   : > { %3541 = vrot.lane.b32.xlu0 %v3513_v43, %s4990_s15 }
 0x44f   : > { %v2625_v61 = vpop.permute.xlu1 %2624 }
 0x450   : > { %2636 = vst.msk [vmem:[#allocation5 + $0x40] sm:$0xff] %vm1372_vm4, %v2625_v61  ;;  %v3642_v61 = vld [vmem:[#allocation5 + $0x88] sm:$0xff] }
 0x452   : > { %3224 = vrot.lane.b32.xlu0 %v3209_v8, %s4991_s16 }
 0x453   : > { %v2643_v27 = vpop.permute.xlu1 %2642 }
 0x454   : > { %2653 = vst.msk [vmem:[#allocation5 + $0x68] sm:$0xff] %vm1372_vm4, %v2643_v27 }
 0x456   : > { %3559 = vrot.lane.b32.xlu0 %v3514_v16, %s4994_s29 }
 0x457   : > { %v2647_v44 = vpop.permute.xlu0 %2646  ;;  %v2627_v29 = vpop.permute.xlu1 %2626  ;;  %v3633_v43 = vld [vmem:[#allocation5 + $0x40] sm:$0xff] }
 0x458   : > { %2655 = vst.msk [vmem:[#allocation5 + $0x78] sm:$0xff] %vm1372_vm4, %v2647_v44  ;;  %2637 = vst.msk [vmem:[#allocation5 + $0x48] sm:$0xff] %vm1372_vm4, %v2627_v29  ;;  %v3626_v44 = vld [vmem:[#allocation5 + $0x8] sm:$0xff]  ;;  %v3641_v29 = vld [vmem:[#allocation5 + $0x80] sm:$0xff] }
 0x45a   : > { %3543 = vrot.lane.b32.xlu0 %v3514_v16, %s4990_s15 }
 0x45b   : > { %v2645_v26 = vpop.permute.xlu1 %2644  ;;  %v3638_v58 = vld [vmem:[#allocation5 + $0x68] sm:$0xff] }
 0x45c   : > { %2654 = vst.msk [vmem:[#allocation5 + $0x70] sm:$0xff] %vm1372_vm4, %v2645_v26  ;;  %v3573_v26 = vld [vmem:[%s6935_s5] sm:$0xff] }
 0x45e   : > { %3561 = vrot.lane.b32.xlu0 %v3515_v36, %s4994_s29 }
 0x45f   : > { %v2629_v0 = vpop.permute.xlu1 %2628  ;;  %v3640_v41 = vld [vmem:[#allocation5 + $0x78] sm:$0xff]  ;;  %v3634_v17 = vld [vmem:[#allocation5 + $0x48] sm:$0xff] }
 0x460   : > { %2638 = vst.msk [vmem:[#allocation5 + $0x50] sm:$0xff] %vm1372_vm4, %v2629_v0  ;;  %v3625_v0 = vld [vmem:[#allocation5] sm:$0xff] }
 0x462   : > { %3545 = vrot.lane.b32.xlu0 %v3515_v36, %s4990_s15 }
 0x463   : > { %v2613_v54 = vpop.permute.xlu1 %2612 }
 0x464   : > { %2622 = vst.msk [vmem:[#allocation5 + $0x30] sm:$0xff] %vm1372_vm4, %v2613_v54  ;;  %v3578_v54 = vld [vmem:[%s6935_s5 + $0x28] sm:$0xff] }
 0x466   : > { %3529 = vrot.lane.b32.xlu0 %v3515_v36, %s4991_s16  ;;  %v3644_v36 = vld [vmem:[#allocation5 + $0x98] sm:$0xff] }
 0x467   : > { %v2631_v49 = vpop.permute.xlu1 %2630  ;;  %v3635_v9 = vld [vmem:[#allocation5 + $0x50] sm:$0xff] }
 0x468   : > { %2639 = vst.msk [vmem:[#allocation5 + $0x58] sm:$0xff] %vm1372_vm4, %v2631_v49 }
 0x46a   : > { %3563 = vrot.lane.b32.xlu0 %v3516_v24, %s4994_s29  ;;  %s4320_s29 = sshll.u32 %s6959_s10, 4 }
 0x46b   : > { %v2615_v2 = vpop.permute.xlu1 %2614  ;;  %v3631_v35 = vld [vmem:[#allocation5 + $0x30] sm:$0xff]  ;;  %s332_s26 = scalar_lea.vmem %s6939_s9, %s4320_s29 }
 0x46c   : > { %2623 = vst.msk [vmem:[#allocation5 + $0x38] sm:$0xff] %vm1372_vm4, %v2615_v2  ;;  %v3577_v2 = vld [vmem:[%s6935_s5 + $0x20] sm:$0xff] }
 0x46e   : > { %3222 = vrot.lane.b32.xlu0 %v6555_v12, %s4991_s16 }
 0x46f   : > { %v3636_v63 = vld [vmem:[#allocation5 + $0x58] sm:$0xff] }
 0x472   : > { %3547 = vrot.lane.b32.xlu0 %v3516_v24, %s4990_s15 }
 0x473   : > { %v3632_v7 = vld [vmem:[#allocation5 + $0x38] sm:$0xff] }
 0x476   : > { %3527 = vrot.lane.b32.xlu0 %v3514_v16, %s4991_s16 }
 0x47a   : > { %3531 = vrot.lane.b32.xlu0 %v3516_v24, %s4991_s16  ;;  %v3643_v24 = vld [vmem:[#allocation5 + $0x90] sm:$0xff] }
 0x47e   : > { %3220 = vrot.lane.b32.xlu0 %v6546_v18, %s4991_s16  ;;  %v3637_v18 = vld [vmem:[#allocation5 + $0x60] sm:$0xff] }
 0x47f   : > { %v2946_v37 = vpop.permute.xlu1 %2945 }
 0x480   : > { %2957 = vst.msk [vmem:[#allocation5 + $0xe0] sm:$0xff] %vm1372_vm4, %v2946_v37  ;;  %v3582_v37 = vld [vmem:[%s6935_s5 + $0x48] sm:$0xff] }
 0x482   : > { %3218 = vrot.lane.b32.xlu0 %v6538_v42, %s4991_s16  ;;  %v3639_v42 = vld [vmem:[#allocation5 + $0x70] sm:$0xff] }
 0x483   : > { %v2930_v48 = vpop.permute.xlu1 %2929 }
 0x484   : > { %2941 = vst.msk [vmem:[#allocation5 + $0xc0] sm:$0xff] %vm1372_vm4, %v2930_v48  ;;  %v3581_v48 = vld [vmem:[%s6935_s5 + $0x40] sm:$0xff] }
 0x487   : > { %v2948_v11 = vpop.permute.xlu1 %2947  ;;  %v3653_v20 = vld [vmem:[#allocation5 + $0xe0] sm:$0xff] }
 0x488   : > { %2958 = vst.msk [vmem:[#allocation5 + $0xe8] sm:$0xff] %vm1372_vm4, %v2948_v11 }
 0x48b   : > { %v2932_v6 = vpop.permute.xlu1 %2931  ;;  %v3649_v19 = vld [vmem:[#allocation5 + $0xc0] sm:$0xff] }
 0x48c   : > { %2942 = vst.msk [vmem:[#allocation5 + $0xc8] sm:$0xff] %vm1372_vm4, %v2932_v6  ;;  %v3585_v6 = vld [vmem:[%s6935_s5 + $0x60] sm:$0xff] }
 0x48f   : > { %v2916_v45 = vpop.permute.xlu1 %2915  ;;  %v3654_v5 = vld [vmem:[#allocation5 + $0xe8] sm:$0xff] }
 0x490   : > { %2926 = vst.msk [vmem:[#allocation5 + $0xa8] sm:$0xff] %vm1372_vm4, %v2916_v45  ;;  %v3590_v45 = vld [vmem:[%s6935_s5 + $0x88] sm:$0xff] }
 0x493   : > { %v2950_v3 = vpop.permute.xlu1 %2949  ;;  %v3650_v53 = vld [vmem:[#allocation5 + $0xc8] sm:$0xff] }
 0x494   : > { %2959 = vst.msk [vmem:[#allocation5 + $0xf0] sm:$0xff] %vm1372_vm4, %v2950_v3 }
 0x497   : > { %v2934_v59 = vpop.permute.xlu1 %2933  ;;  %v3646_v16 = vld [vmem:[#allocation5 + $0xa8] sm:$0xff] }
 0x498   : > { %2943 = vst.msk [vmem:[#allocation5 + $0xd0] sm:$0xff] %vm1372_vm4, %v2934_v59  ;;  %v3589_v59 = vld [vmem:[%s6935_s5 + $0x80] sm:$0xff] }
 0x49b   : > { %v2918_v62 = vpop.permute.xlu1 %2917  ;;  %v3655_v15 = vld [vmem:[#allocation5 + $0xf0] sm:$0xff] }
 0x49c   : > { %v3251_v51 = vpop.permute.xlu0 %3250  ;;  %2927 = vst.msk [vmem:[#allocation5 + $0xb0] sm:$0xff] %vm1372_vm4, %v2918_v62  ;;  %v3594_v62 = vld [vmem:[%s6935_s5 + $0xa8] sm:$0xff] }
 0x49d   : > { %3262 = vst.msk [vmem:[#allocation5 + $0x160] sm:$0xff] %vm1372_vm4, %v3251_v51 }
 0x49f   : > { %v2952_v14 = vpop.permute.xlu1 %2951  ;;  %v3651_v52 = vld [vmem:[#allocation5 + $0xd0] sm:$0xff] }
 0x4a0   : > { %v3235_v1 = vpop.permute.xlu0 %3234  ;;  %2960 = vst.msk [vmem:[#allocation5 + $0xf8] sm:$0xff] %vm1372_vm4, %v2952_v14  ;;  %v3593_v14 = vld [vmem:[%s6935_s5 + $0xa0] sm:$0xff] }
 0x4a1   : > { %3246 = vst.msk [vmem:[#allocation5 + $0x140] sm:$0xff] %vm1372_vm4, %v3235_v1  ;;  %v3598_v1 = vld [vmem:[%s6935_s5 + $0xc8] sm:$0xff] }
 0x4a3   : > { %v2611_v47 = vpop.permute.xlu1 %2610  ;;  %v3647_v8 = vld [vmem:[#allocation5 + $0xb0] sm:$0xff] }
 0x4a4   : > { %v3253_v4 = vpop.permute.xlu0 %3252  ;;  %2621 = vst.msk [vmem:[#allocation5 + $0x28] sm:$0xff] %vm1372_vm4, %v2611_v47 }
 0x4a5   : > { %3263 = vst.msk [vmem:[#allocation5 + $0x168] sm:$0xff] %vm1372_vm4, %v3253_v4  ;;  %v3597_v4 = vld [vmem:[%s6935_s5 + $0xc0] sm:$0xff] }
 0x4a7   : > { %v2936_v39 = vpop.permute.xlu1 %2935  ;;  %v3656_v38 = vld [vmem:[#allocation5 + $0xf8] sm:$0xff] }
 0x4a8   : > { %v3237_v21 = vpop.permute.xlu0 %3236  ;;  %2944 = vst.msk [vmem:[#allocation5 + $0xd8] sm:$0xff] %vm1372_vm4, %v2936_v39  ;;  %4593 = vmatprep.subr.mxu0 %v3656_v38  ;;  %v3602_v39 = vld [vmem:[%s6935_s5 + $0xe8] sm:$0xff] }
 0x4a9   : > { %3247 = vst.msk [vmem:[#allocation5 + $0x148] sm:$0xff] %vm1372_vm4, %v3237_v21  ;;  %4594 = vmatpush3.msra.mxu0 %v3640_v41  ;;  %v3601_v21 = vld [vmem:[%s6935_s5 + $0xe0] sm:$0xff]  ;;  %v3606_v41 = vld [vmem:[%s6935_s5 + $0x108] sm:$0xff] }
 0x4aa   : > { %4595 = vmatprep.subr.mxu0 %v3655_v15 }
 0x4ab   : > { %4596 = vmatpush3.msra.mxu0 %v3639_v42  ;;  %v2920_v40 = vpop.permute.xlu1 %2919  ;;  %v3630_v60 = vld [vmem:[#allocation5 + $0x28] sm:$0xff] }
 0x4ac   : > { %v3255_v25 = vpop.permute.xlu0 %3254  ;;  %2928 = vst.msk [vmem:[#allocation5 + $0xb8] sm:$0xff] %vm1372_vm4, %v2920_v40  ;;  %4597 = vmatprep.subr.mxu0 %v3654_v5  ;;  %v3605_v5 = vld [vmem:[%s6935_s5 + $0x100] sm:$0xff] }
 0x4ad   : > { %3264 = vst.msk [vmem:[#allocation5 + $0x170] sm:$0xff] %vm1372_vm4, %v3255_v25  ;;  %4598 = vmatpush3.msra.mxu0 %v3638_v58  ;;  %v3610_v58 = vld [vmem:[%s6935_s5 + $0x128] sm:$0xff] }
 0x4ae   : > { %4599 = vmatprep.subr.mxu0 %v3653_v20 }
 0x4af   : > { %4600 = vmatpush3.msra.mxu0 %v3637_v18  ;;  %v2914_v22 = vpop.permute.xlu1 %2913  ;;  %v3652_v50 = vld [vmem:[#allocation5 + $0xd8] sm:$0xff] }
 0x4b0   : > { %v3239_v23 = vpop.permute.xlu0 %3238  ;;  %2925 = vst.msk [vmem:[#allocation5 + $0xa0] sm:$0xff] %vm1372_vm4, %v2914_v22  ;;  %4601 = vmatprep.subr.mxu0 %v3652_v50  ;;  %v3670_v50 = vld [vmem:[#allocation5 + $0x168] sm:$0xff] }
 0x4b1   : > { %3248 = vst.msk [vmem:[#allocation5 + $0x150] sm:$0xff] %vm1372_vm4, %v3239_v23  ;;  %4602 = vmatpush3.msra.mxu0 %v3636_v63  ;;  %v3609_v23 = vld [vmem:[%s6935_s5 + $0x120] sm:$0xff] }
 0x4b2   : > { %4603 = vmatprep.subr.mxu0 %v3651_v52  ;;  %v3614_v52 = vld [vmem:[%s6935_s5 + $0x148] sm:$0xff] }
 0x4b3   : > { %4604 = vmatpush3.msra.mxu0 %v3635_v9  ;;  %v2609_v10 = vpop.permute.xlu1 %2608  ;;  %v3648_v55 = vld [vmem:[#allocation5 + $0xb8] sm:$0xff]  ;;  %v3669_v9 = vld [vmem:[#allocation5 + $0x160] sm:$0xff] }
 0x4b4   : > { %v3257_v12 = vpop.permute.xlu0 %3256  ;;  %2620 = vst.msk [vmem:[#allocation5 + $0x20] sm:$0xff] %vm1372_vm4, %v2609_v10  ;;  %4605 = vmatprep.subr.mxu0 %v3650_v53  ;;  %v3671_v20 = vld [vmem:[#allocation5 + $0x170] sm:$0xff] }
 0x4b5   : > { %3265 = vst.msk [vmem:[#allocation5 + $0x178] sm:$0xff] %vm1372_vm4, %v3257_v12  ;;  %4606 = vmatpush3.msra.mxu0 %v3634_v17  ;;  %v3613_v17 = vld [vmem:[%s6935_s5 + $0x140] sm:$0xff] }
 0x4b6   : > { %4607 = vmatprep.subr.mxu0 %v3649_v19 }
 0x4b7   : > { %4608 = vmatpush3.msra.mxu0 %v3633_v43  ;;  %v3526_v34 = vpop.permute.xlu1 %3525  ;;  %v3645_v46 = vld [vmem:[#allocation5 + $0xa0] sm:$0xff]  ;;  %v3618_v43 = vld [vmem:[%s6935_s5 + $0x168] sm:$0xff] }
 0x4b8   : > { %v3558_v56 = vpop.permute.xlu0 %3557  ;;  %3537 = vst.msk [vmem:[#allocation5 + $0x1a0] sm:$0xff] %vm1372_vm4, %v3526_v34  ;;  %4609 = vmatprep.subr.mxu0 %v3648_v55  ;;  %v3667_v34 = vld [vmem:[#allocation5 + $0x150] sm:$0xff] }
 0x4b9   : > { %3569 = vst.msk [vmem:[#allocation5 + $0x1e0] sm:$0xff] %vm1372_vm4, %v3558_v56  ;;  %4610 = vmatpush3.msra.mxu0 %v3632_v7  ;;  %v3666_v7 = vld [vmem:[#allocation5 + $0x148] sm:$0xff] }
 0x4ba   : > { %4611 = vmatprep.subr.mxu0 %v3647_v8  ;;  %v3617_v8 = vld [vmem:[%s6935_s5 + $0x160] sm:$0xff] }
 0x4bb   : > { %4612 = vmatpush3.msra.mxu0 %v3631_v35  ;;  %v3629_v33 = vld [vmem:[#allocation5 + $0x20] sm:$0xff] }
 0x4bc   : > { %v3241_v31 = vpop.permute.xlu0 %3240  ;;  %4613 = vmatprep.subr.mxu0 %v3646_v16  ;;  %v3672_v40 = vld [vmem:[#allocation5 + $0x178] sm:$0xff]  ;;  %v3622_v16 = vld [vmem:[%s6935_s5 + $0x188] sm:$0xf] }
 0x4bd   : > { %3249 = vst.msk [vmem:[#allocation5 + $0x158] sm:$0xff] %vm1372_vm4, %v3241_v31  ;;  %4614 = vmatpush3.msra.mxu0 %v3630_v60  ;;  %v3665_v31 = vld [vmem:[#allocation5 + $0x140] sm:$0xff] }
 0x4be   : > { %4615 = vmatprep.subr.mxu0 %v3645_v46 }
 0x4bf   : > { %4616 = vmatpush3.msra.mxu0 %v3629_v33 }
 0x4c0   : > { %v3542_v28 = vpop.permute.xlu0 %3541  ;;  %4617 = vmatprep.subr.mxu0 %v3644_v36  ;;  %v3685_v63 = vld [vmem:[#allocation5 + $0x1e0] sm:$0xff] }
 0x4c1   : > { %3553 = vst.msk [vmem:[#allocation5 + $0x1c0] sm:$0xff] %vm1372_vm4, %v3542_v28  ;;  %4618 = vmatpush3.msra.mxu0 %v3628_v32  ;;  %v3621_v36 = vld [vmem:[%s6935_s5 + $0x180] sm:$0xf] }
 0x4c2   : > { %4619 = vmatprep.subr.mxu0 %v3643_v24 }
 0x4c3   : > { %4620 = vmatpush3.msra.mxu0 %v3627_v30 }
 0x4c4   : > { %v3225_v27 = vpop.permute.xlu0 %3224  ;;  %4621 = vmatprep.subr.mxu0 %v3642_v61  ;;  %v3668_v12 = vld [vmem:[#allocation5 + $0x158] sm:$0xff]  ;;  %v3677_v61 = vld [vmem:[#allocation5 + $0x1a0] sm:$0xff] }
 0x4c5   : > { %3233 = vst.msk [vmem:[#allocation5 + $0x138] sm:$0xff] %vm1372_vm4, %v3225_v27  ;;  %4622 = vmatpush3.msra.mxu0 %v3626_v44  ;;  %v3676_v44 = vld [vmem:[#allocation5 + $0x198] sm:$0xff] }
 0x4c6   : > { %4623 = vmatprep.subr.mxu0 %v3641_v29  ;;  %v3660_v29 = vld [vmem:[#allocation5 + $0x118] sm:$0xff] }
 0x4c7   : > { %4624 = vmatpush3.msra.mxu0 %v3625_v0  ;;  %v3659_v0 = vld [vmem:[#allocation5 + $0x110] sm:$0xff] }
 0x4c8   : > { %v3560_v49 = vpop.permute.xlu0 %3559  ;;  %3767 = vmatmul.mubr.f32.vlgmr.msra.gmra.mxu0 %v3573_v26  ;;  %v3681_v35 = vld [vmem:[#allocation5 + $0x1c0] sm:$0xff]  ;;  %v3675_v26 = vld [vmem:[#allocation5 + $0x190] sm:$0xff] }
 0x4c9   : > { %3570 = vst.msk [vmem:[#allocation5 + $0x1e8] sm:$0xff] %vm1372_vm4, %v3560_v49  ;;  %3771 = vmatprep.mubr.f32.mxu0 %v3578_v54  ;;  %v3674_v54 = vld [vmem:[#allocation5 + $0x188] sm:$0xff] }
 0x4ca   : > { %v3658_v49 = vld [vmem:[#allocation5 + $0x108] sm:$0xff] }
 0x4cc   : > { %v3544_v57 = vpop.permute.xlu0 %3543  ;;  %3772 = vmatmul.mubr.f32.gmra.mxu0 %v3577_v2  ;;  %v3664_v33 = vld [vmem:[#allocation5 + $0x138] sm:$0xff]  ;;  %v3673_v2 = vld [vmem:[#allocation5 + $0x180] sm:$0xff] }
 0x4cd   : > { %3554 = vst.msk [vmem:[#allocation5 + $0x1c8] sm:$0xff] %vm1372_vm4, %v3544_v57  ;;  %3776 = vmatprep.mubr.f32.mxu0 %v3582_v37  ;;  %v3575_v37 = vld [vmem:[%s6935_s5 + $0x10] sm:$0xff]  ;;  %v3657_v57 = vld [vmem:[#allocation5 + $0x100] sm:$0xff] }
 0x4d0   : > { %v3562_v11 = vpop.permute.xlu0 %3561  ;;  %3777 = vmatmul.mubr.f32.gmra.mxu0 %v3581_v48  ;;  %v3686_v22 = vld [vmem:[#allocation5 + $0x1e8] sm:$0xff]  ;;  %v3580_v48 = vld [vmem:[%s6935_s5 + $0x38] sm:$0xff] }
 0x4d1   : > { %3571 = vst.msk [vmem:[#allocation5 + $0x1f0] sm:$0xff] %vm1372_vm4, %v3562_v11  ;;  %3781 = vmatprep.mubr.f32.mxu0 %v3586_v13  ;;  %v3579_v13 = vld [vmem:[%s6935_s5 + $0x30] sm:$0xff]  ;;  %v3584_v11 = vld [vmem:[%s6935_s5 + $0x58] sm:$0xff] }
 0x4d4   : > { %v3546_v3 = vpop.permute.xlu0 %3545  ;;  %3782 = vmatmul.mubr.f32.gmra.mxu0 %v3585_v6  ;;  %v3682_v56 = vld [vmem:[#allocation5 + $0x1c8] sm:$0xff]  ;;  %v3583_v6 = vld [vmem:[%s6935_s5 + $0x50] sm:$0xff] }
 0x4d5   : > { %3555 = vst.msk [vmem:[#allocation5 + $0x1d0] sm:$0xff] %vm1372_vm4, %v3546_v3  ;;  %3786 = vmatprep.mubr.f32.mxu0 %v3590_v45  ;;  %v3588_v45 = vld [vmem:[%s6935_s5 + $0x78] sm:$0xff]  ;;  %v3587_v3 = vld [vmem:[%s6935_s5 + $0x70] sm:$0xff] }
 0x4d8   : > { %v3530_v51 = vpop.permute.xlu0 %3529  ;;  %3787 = vmatmul.mubr.f32.gmra.mxu0 %v3589_v59  ;;  %v3687_v25 = vld [vmem:[#allocation5 + $0x1f0] sm:$0xff]  ;;  %v3592_v59 = vld [vmem:[%s6935_s5 + $0x98] sm:$0xff] }
 0x4d9   : > { %3539 = vst.msk [vmem:[#allocation5 + $0x1b0] sm:$0xff] %vm1372_vm4, %v3530_v51  ;;  %3791 = vmatprep.mubr.f32.mxu0 %v3594_v62  ;;  %v3591_v62 = vld [vmem:[%s6935_s5 + $0x90] sm:$0xff]  ;;  %v3596_v51 = vld [vmem:[%s6935_s5 + $0xb8] sm:$0xff] }
 0x4dc   : > { %v3564_v47 = vpop.permute.xlu0 %3563  ;;  %3792 = vmatmul.mubr.f32.gmra.mxu0 %v3593_v14  ;;  %v3683_v19 = vld [vmem:[#allocation5 + $0x1d0] sm:$0xff] }
 0x4dd   : > { %3572 = vst.msk [vmem:[#allocation5 + $0x1f8] sm:$0xff] %vm1372_vm4, %v3564_v47  ;;  %3796 = vmatprep.mubr.f32.mxu0 %v3598_v1  ;;  %v3595_v14 = vld [vmem:[%s6935_s5 + $0xb0] sm:$0xff]  ;;  %v3600_v1 = vld [vmem:[%s6935_s5 + $0xd8] sm:$0xff] }
 0x4de   : > { %v3599_v47 = vld [vmem:[%s6935_s5 + $0xd0] sm:$0xff] }
 0x4e0   : > { %v3223_v38 = vpop.permute.xlu0 %3222  ;;  %3797 = vmatmul.mubr.f32.gmra.mxu0 %v3597_v4  ;;  %v3679_v28 = vld [vmem:[#allocation5 + $0x1b0] sm:$0xff]  ;;  %v3604_v4 = vld [vmem:[%s6935_s5 + $0xf8] sm:$0xff] }
 0x4e1   : > { %3232 = vst.msk [vmem:[#allocation5 + $0x130] sm:$0xff] %vm1372_vm4, %v3223_v38  ;;  %3801 = vmatprep.mubr.f32.mxu0 %v3602_v39  ;;  %v3603_v39 = vld [vmem:[%s6935_s5 + $0xf0] sm:$0xff]  ;;  %v3608_v38 = vld [vmem:[%s6935_s5 + $0x118] sm:$0xff] }
 0x4e4   : > { %v3548_v15 = vpop.permute.xlu0 %3547  ;;  %v3688_v42 = vld [vmem:[#allocation5 + $0x1f8] sm:$0xff]  ;;  %3802 = vmatmul.mubr.f32.gmra.mxu0 %v3601_v21  ;;  %v3607_v21 = vld [vmem:[%s6935_s5 + $0x110] sm:$0xff] }
 0x4e5   : > { %3556 = vst.msk [vmem:[#allocation5 + $0x1d8] sm:$0xff] %vm1372_vm4, %v3548_v15  ;;  %4664 = vmatprep.subr.mxu1 %v3688_v42  ;;  %3806 = vmatprep.mubr.f32.mxu0 %v3606_v41  ;;  %v3612_v41 = vld [vmem:[%s6935_s5 + $0x138] sm:$0xff]  ;;  %v3611_v15 = vld [vmem:[%s6935_s5 + $0x130] sm:$0xff] }
 0x4e6   : > { %4665 = vmatpush3.msra.mxu1 %v3672_v40  ;;  %v3616_v42 = vld [vmem:[%s6935_s5 + $0x158] sm:$0xff]  ;;  %v3615_v40 = vld [vmem:[%s6935_s5 + $0x150] sm:$0xff] }
 0x4e7   : > { %4666 = vmatprep.subr.mxu1 %v3687_v25  ;;  %v3619_v25 = vld [vmem:[%s6935_s5 + $0x170] sm:$0xff] }
 0x4e8   : > { %4667 = vmatpush3.msra.mxu1 %v3671_v20  ;;  %v3528_v18 = vpop.permute.xlu0 %3527  ;;  %3807 = vmatmul.mubr.f32.gmra.mxu0 %v3605_v5  ;;  %v3663_v32 = vld [vmem:[#allocation5 + $0x130] sm:$0xff]  ;;  %v3620_v5 = vld [vmem:[%s6935_s5 + $0x178] sm:$0xff] }
 0x4e9   : > { %3538 = vst.msk [vmem:[#allocation5 + $0x1a8] sm:$0xff] %vm1372_vm4, %v3528_v18  ;;  %4668 = vmatprep.subr.mxu1 %v3686_v22  ;;  %3811 = vmatprep.mubr.f32.mxu0 %v3610_v58  ;;  %v3624_v58 = vld [vmem:[%s6935_s5 + $0x198] sm:$0xf]  ;;  %v3623_v20 = vld [vmem:[%s6935_s5 + $0x190] sm:$0xf] }
 0x4ea   : > { %4669 = vmatpush3.msra.mxu1 %v3670_v50 }
 0x4eb   : > { %4670 = vmatprep.subr.mxu1 %v3685_v63 }
 0x4ec   : > { %4671 = vmatpush3.msra.mxu1 %v3669_v9  ;;  %v3532_v10 = vpop.permute.xlu0 %3531  ;;  %v3684_v53 = vld [vmem:[#allocation5 + $0x1d8] sm:$0xff]  ;;  %3812 = vmatmul.mubr.f32.gmra.mxu0 %v3609_v23  ;;  %v3975_v9 = vld [vmem:[%s6937_s7] sm:$0xff] }
 0x4ed   : > { %3540 = vst.msk [vmem:[#allocation5 + $0x1b8] sm:$0xff] %vm1372_vm4, %v3532_v10  ;;  %4672 = vmatprep.subr.mxu1 %v3684_v53  ;;  %3816 = vmatprep.mubr.f32.mxu0 %v3614_v52 }
 0x4ee   : > { %4673 = vmatpush3.msra.mxu1 %v3668_v12 }
 0x4ef   : > { %4674 = vmatprep.subr.mxu1 %v3683_v19 }
 0x4f0   : > { %4675 = vmatpush3.msra.mxu1 %v3667_v34  ;;  %v3221_v55 = vpop.permute.xlu0 %3220  ;;  %3817 = vmatmul.mubr.f32.gmra.mxu0 %v3613_v17  ;;  %v3678_v24 = vld [vmem:[#allocation5 + $0x1a8] sm:$0xff] }
 0x4f1   : > { %3231 = vst.msk [vmem:[#allocation5 + $0x128] sm:$0xff] %vm1372_vm4, %v3221_v55  ;;  %4676 = vmatprep.subr.mxu1 %v3682_v56  ;;  %3821 = vmatprep.mubr.f32.mxu0 %v3618_v43 }
 0x4f2   : > { %4677 = vmatpush3.msra.mxu1 %v3666_v7 }
 0x4f3   : > { %4678 = vmatprep.subr.mxu1 %v3681_v35 }
 0x4f4   : > { %4679 = vmatpush3.msra.mxu1 %v3665_v31  ;;  %v3219_v60 = vpop.permute.xlu0 %3218  ;;  %v3680_v46 = vld [vmem:[#allocation5 + $0x1b8] sm:$0xff]  ;;  %3822 = vmatmul.mubr.f32.gmra.mxu0 %v3617_v8  ;;  %v3689_v8 = vld [vmem:[%s6936_s6] sm:$0xff] }
 0x4f5   : > { %3230 = vst.msk [vmem:[#allocation5 + $0x120] sm:$0xff] %vm1372_vm4, %v3219_v60  ;;  %4680 = vmatprep.subr.mxu1 %v3680_v46  ;;  %3826 = vmatprep.mubr.f32.mxu0 %v3622_v16 }
 0x4f6   : > { %4681 = vmatpush3.msra.mxu1 %v3664_v33  ;;  %v3690_v33 = vld [vmem:[%s6936_s6 + $0x8] sm:$0xff] }
 0x4f7   : > { %4682 = vmatprep.subr.mxu1 %v3679_v28 }
 0x4f8   : > { %4683 = vmatpush3.msra.mxu1 %v3663_v32  ;;  %v3662_v30 = vld [vmem:[#allocation5 + $0x128] sm:$0xff]  ;;  %3827 = vmatmul.mubr.f32.gmra.mxu0 %v3621_v36 }
 0x4f9   : > { %4684 = vmatprep.subr.mxu1 %v3678_v24  ;;  %4960 = vmatprep.mubr.msk.f32.mxu0 %vm3979_vm10, %v3975_v9 }
 0x4fa   : > { %4685 = vmatpush3.msra.mxu1 %v3662_v30 }
 0x4fb   : > { %4686 = vmatprep.subr.mxu1 %v3677_v61 }
 0x4fc   : > { %v3661_v27 = vld [vmem:[#allocation5 + $0x120] sm:$0xff] }
 0x4fd   : > { %4687 = vmatpush3.msra.mxu1 %v3661_v27 }
 0x4fe   : > { %4688 = vmatprep.subr.mxu1 %v3676_v44 }
 0x4ff   : > { %4689 = vmatpush3.msra.mxu1 %v3660_v29 }
 0x500   : > { %4690 = vmatprep.subr.mxu1 %v3675_v26 }
 0x501   : > { %4691 = vmatpush3.msra.mxu1 %v3659_v0 }
 0x502   : > { %4692 = vmatprep.subr.mxu1 %v3674_v54 }
 0x503   : > { %4693 = vmatpush3.msra.mxu1 %v3658_v49 }
 0x504   : > { %4694 = vmatprep.subr.mxu1 %v3673_v2 }
 0x505   : > { %4695 = vmatpush3.msra.mxu1 %v3657_v57 }
 0x506   : > { %3897 = vmatmul.mubr.f32.vlgmr.msra.gmra.mxu1 %v3575_v37 }
 0x507   : > { %3901 = vmatprep.mubr.f32.mxu1 %v3580_v48 }
 0x50a   : > { %3902 = vmatmul.mubr.f32.gmra.mxu1 %v3579_v13 }
 0x50b   : > { %3906 = vmatprep.mubr.f32.mxu1 %v3584_v11 }
 0x50e   : > { %3907 = vmatmul.mubr.f32.gmra.mxu1 %v3583_v6 }
 0x50f   : > { %3911 = vmatprep.mubr.f32.mxu1 %v3588_v45 }
 0x512   : > { %3912 = vmatmul.mubr.f32.gmra.mxu1 %v3587_v3 }
 0x513   : > { %3916 = vmatprep.mubr.f32.mxu1 %v3592_v59 }
 0x516   : > { %3917 = vmatmul.mubr.f32.gmra.mxu1 %v3591_v62 }
 0x517   : > { %3921 = vmatprep.mubr.f32.mxu1 %v3596_v51 }
 0x51a   : > { %3922 = vmatmul.mubr.f32.gmra.mxu1 %v3595_v14 }
 0x51b   : > { %3926 = vmatprep.mubr.f32.mxu1 %v3600_v1 }
 0x51e   : > { %3927 = vmatmul.mubr.f32.gmra.mxu1 %v3599_v47 }
 0x51f   : > { %3931 = vmatprep.mubr.f32.mxu1 %v3604_v4 }
 0x522   : > { %3932 = vmatmul.mubr.f32.gmra.mxu1 %v3603_v39 }
 0x523   : > { %3936 = vmatprep.mubr.f32.mxu1 %v3608_v38 }
 0x526   : > { %3937 = vmatmul.mubr.f32.gmra.mxu1 %v3607_v21 }
 0x527   : > { %3941 = vmatprep.mubr.f32.mxu1 %v3612_v41 }
 0x52a   : > { %3942 = vmatmul.mubr.f32.gmra.mxu1 %v3611_v15 }
 0x52b   : > { %3946 = vmatprep.mubr.f32.mxu1 %v3616_v42 }
 0x52e   : > { %3947 = vmatmul.mubr.f32.gmra.mxu1 %v3615_v40 }
 0x52f   : > { %3951 = vmatprep.mubr.f32.mxu1 %v3620_v5 }
 0x532   : > { %3952 = vmatmul.mubr.f32.gmra.mxu1 %v3619_v25 }
 0x533   : > { %3956 = vmatprep.mubr.f32.mxu1 %v3624_v58 }
 0x536   : > { %3957 = vmatmul.mubr.f32.gmra.mxu1 %v3623_v20  ;;  %v3700_v20 = vld [vmem:[%s6936_s6 + $0x58] sm:$0xff] }
 0x588   : > { %v4625_v18 = vpop.f32.mrf.mxu0 }
 0x58a   : > { %v4626_v22 = vpop.f32.mrf.mxu0 }
 0x58b   : > { %v4627_v50 = vadd.f32 %v4626_v22, %v4625_v18  ;;  %v3701_v18 = vld [vmem:[%s6936_s6 + $0x60] sm:$0xf] }
 0x58c   : > { %v4628_v23 = vpop.f32.mrf.mxu0 }
 0x58d   : > { %v3769_v60 = vadd.f32 %v4627_v50, %v3689_v8 }
 0x58e   : > { %v4629_v63 = vpop.f32.mrf.mxu0 }
 0x58f   : > { %v4630_v52 = vadd.f32 %v4629_v63, %v4628_v23 }
 0x590   : > { %v6813_v10 = vpop.f32.mrf.mxu0 }
 0x591   : > { %v3774_v30 = vadd.f32 %v4630_v52, %v3690_v33  ;;  %v3699_v52 = vld [vmem:[%s6936_s6 + $0x50] sm:$0xff]  ;;  %v3698_v33 = vld [vmem:[%s6936_s6 + $0x48] sm:$0xff] }
 0x592   : > { %v6815_v53 = vpop.f32.mrf.mxu0 }
 0x594   : > { %v6817_v12 = vpop.f32.mrf.mxu0 }
 0x596   : > { %v6819_v17 = vpop.f32.mrf.mxu0 }
 0x598   : > { %v6821_v19 = vpop.f32.mrf.mxu0 }
 0x59a   : > { %v6823_v43 = vpop.f32.mrf.mxu0 }
 0x59c   : > { %v6825_v34 = vpop.f32.mrf.mxu0 }
 0x59e   : > { %v6827_v55 = vpop.f32.mrf.mxu0 }
 0x5a0   : > { %v6829_v56 = vpop.f32.mrf.mxu0 }
 0x5a2   : > { %v6831_v7 = vpop.f32.mrf.mxu0 }
 0x5a4   : > { %v4646_v16 = vpop.f32.mrf.mxu0 }
 0x5a6   : > { %v4647_v28 = vpop.f32.mrf.mxu0 }
 0x5a8   : > { %v4649_v44 = vpop.f32.mrf.mxu0 }
 0x5aa   : > { %v4650_v54 = vpop.f32.mrf.mxu0 }
 0x5ac   : > { %v4652_v37 = vpop.f32.mrf.mxu0 }
 0x5ae   : > { %v4653_v13 = vpop.f32.mrf.mxu0 }
 0x5af   : > { %v4654_v63 = vadd.f32 %v4653_v13, %v4652_v37  ;;  %v3697_v37 = vld [vmem:[%s6936_s6 + $0x40] sm:$0xff] }
 0x5b0   : > { %v4655_v45 = vpop.f32.mrf.mxu0 }
 0x5b1   : > { %v3814_v13 = vadd.f32 %v4654_v63, %v3698_v33 }
 0x5b2   : > { %v4656_v62 = vpop.f32.mrf.mxu0 }
 0x5b3   : > { %v4657_v50 = vadd.f32 %v4656_v62, %v4655_v45  ;;  %v4648_v45 = vadd.f32 %v4647_v28, %v4646_v16  ;;  %v4642_v28 = vadd.f32 %v6827_v55, %v6825_v34 }
 0x5b4   : > { %v4658_v1 = vpop.f32.mrf.mxu0 }
 0x5b6   : > { %v4659_v39 = vpop.f32.mrf.mxu0 }
 0x5b7   : > { %v4660_v25 = vadd.f32 %v4659_v39, %v4658_v1 }
 0x5b8   : > { %v4661_v41 = vpop.f32.mrf.mxu0 }
 0x5b9   : > { %v3824_v8 = vadd.f32 %v4660_v25, %v3700_v20 }
 0x5ba   : > { %v4662_v40 = vpop.f32.mrf.mxu0 }
 0x5bb   : > { %v4663_v58 = vadd.f32 %v4662_v40, %v4661_v41 }
 0x5c6   : > { %v4696_v35 = vpop.f32.mrf.mxu1 }
 0x5c8   : > { %v4697_v31 = vpop.f32.mrf.mxu1 }
 0x5c9   : > { %v4698_v46 = vadd.f32 %v4697_v31, %v4696_v35  ;;  %v3829_v31 = vadd.f32 %v4663_v58, %v3701_v18 }
 0x5ca   : > { %v4699_v36 = vpop.f32.mrf.mxu1 }
 0x5cb   : > { %v6839_v32 = vadd.f32 %v4698_v46, %v3769_v60  ;;  %v4651_v46 = vadd.f32 %v4650_v54, %v4649_v44  ;;  %v4645_v44 = vadd.f32 %v6831_v7, %v6829_v56  ;;  %v3696_v54 = vld [vmem:[%s6936_s6 + $0x38] sm:$0xff] }
 0x5cc   : > { %v4700_v24 = vpop.f32.mrf.mxu1 }
 0x5cd   : > { %v4701_v61 = vadd.f32 %v4700_v24, %v4699_v36  ;;  %v3819_v36 = vadd.f32 %v4657_v50, %v3699_v52  ;;  %v3976_v52 = vld [vmem:[%s6937_s7 + $0x8] sm:$0x3] }
 0x5ce   : > { %v6841_v27 = vpop.f32.mrf.mxu1 }
 0x5cf   : > { %v6843_v29 = vadd.f32 %v4701_v61, %v3774_v30 }
 0x5d0   : > { %v6845_v26 = vpop.f32.mrf.mxu1 }
 0x5d2   : > { %v6847_v0 = vpop.f32.mrf.mxu1 }
 0x5d4   : > { %v6849_v49 = vpop.f32.mrf.mxu1 }
 0x5d6   : > { %v6851_v2 = vpop.f32.mrf.mxu1 }
 0x5d8   : > { %v6853_v57 = vpop.f32.mrf.mxu1 }
 0x5da   : > { %v6855_v48 = vpop.f32.mrf.mxu1 }
 0x5dc   : > { %v6857_v11 = vpop.f32.mrf.mxu1 }
 0x5dd   : > { %v4713_v34 = vadd.f32 %v6857_v11, %v6855_v48  ;;  %v4633_v48 = vadd.f32 %v6815_v53, %v6813_v10  ;;  %v3692_v11 = vld [vmem:[%s6936_s6 + $0x18] sm:$0xff]  ;;  %v4704_v10 = vadd.f32 %v6845_v26, %v6841_v27  ;;  %v3963_v27 = vmax.f32 %v6843_v29, 0.0  ;;  %v3977_v29 = vld [vmem:[%s6938_s8] sm:$0xff] }
 0x5de   : > { %v4714_v6 = vpop.f32.mrf.mxu1  ;;  %v3962_v26 = vmax.f32 %v6839_v32, 0.0 }
 0x5e0   : > { %v4715_v3 = vpop.f32.mrf.mxu1 }
 0x5e1   : > { %v4716_v41 = vadd.f32 %v4715_v3, %v4714_v6  ;;  %v4636_v6 = vadd.f32 %v6819_v17, %v6817_v12  ;;  %v3693_v3 = vld [vmem:[%s6936_s6 + $0x20] sm:$0xff]  ;;  %v4707_v17 = vadd.f32 %v6849_v49, %v6847_v0 }
 0x5e2   : > { %v4717_v59 = vpop.f32.mrf.mxu1 }
 0x5e4   : > { %v4718_v51 = vpop.f32.mrf.mxu1 }
 0x5e6   : > { %v4720_v14 = vpop.f32.mrf.mxu1 }
 0x5e8   : > { %v4721_v47 = vpop.f32.mrf.mxu1 }
 0x5e9   : > { %v4722_v62 = vadd.f32 %v4721_v47, %v4720_v14  ;;  %v3695_v14 = vld [vmem:[%s6936_s6 + $0x30] sm:$0xff]  ;;  %v3804_v47 = vadd.f32 %v4648_v45, %v3696_v54 }
 0x5ea   : > { %v4723_v4 = vpop.f32.mrf.mxu1 }
 0x5ec   : > { %v4724_v38 = vpop.f32.mrf.mxu1 }
 0x5ed   : > { %v4725_v24 = vadd.f32 %v4724_v38, %v4723_v4  ;;  %v3809_v4 = vadd.f32 %v4651_v46, %v3697_v37  ;;  %v4719_v38 = vadd.f32 %v4718_v51, %v4717_v59  ;;  %v3694_v59 = vld [vmem:[%s6936_s6 + $0x28] sm:$0xff]  ;;  %v3799_v51 = vadd.f32 %v4645_v44, %v3695_v14 }
 0x5ee   : > { %v4726_v21 = vpop.f32.mrf.mxu1 }
 0x5ef   : > { %v3939_v56 = vadd.f32 %v4722_v62, %v3809_v4  ;;  %v3934_v55 = vadd.f32 %v4719_v38, %v3804_v47  ;;  %v3929_v40 = vadd.f32 %v4716_v41, %v3799_v51 }
 0x5f0   : > { %v4727_v15 = vpop.f32.mrf.mxu1 }
 0x5f1   : > { %v4728_v35 = vadd.f32 %v4727_v15, %v4726_v21  ;;  %v3944_v21 = vadd.f32 %v4725_v24, %v3814_v13  ;;  %v4639_v15 = vadd.f32 %v6823_v43, %v6821_v19  ;;  %v3794_v19 = vadd.f32 %v4642_v28, %v3694_v59 }
 0x5f2   : > { %v4729_v42 = vpop.f32.mrf.mxu1  ;;  %v4710_v43 = vadd.f32 %v6853_v57, %v6851_v2  ;;  %v3969_v58 = vmax.f32 %v3934_v55, 0.0  ;;  %v3691_v2 = vld [vmem:[%s6936_s6 + $0x10] sm:$0xff]  ;;  %v3784_v57 = vadd.f32 %v4636_v6, %v3692_v11  ;;  %v3968_v20 = vmax.f32 %v3929_v40, 0.0 }
 0x5f3   : > { %v3949_v1 = vadd.f32 %v4728_v35, %v3819_v36  ;;  %v3789_v12 = vadd.f32 %v4639_v15, %v3693_v3  ;;  %v3924_v25 = vadd.f32 %v4713_v34, %v3794_v19  ;;  %v3779_v18 = vadd.f32 %v4633_v48, %v3691_v2 }
 0x5f4   : > { %v4730_v5 = vpop.f32.mrf.mxu1 }
 0x5f5   : > { %v4731_v23 = vadd.f32 %v4730_v5, %v4729_v42  ;;  %v3972_v7 = vmax.f32 %v3949_v1, 0.0  ;;  %v3971_v42 = vmax.f32 %v3944_v21, 0.0  ;;  %v3970_v5 = vmax.f32 %v3939_v56, 0.0 }
 0x5f6   : > { %v4732_v22 = vpop.f32.mrf.mxu1  ;;  %v3919_v53 = vadd.f32 %v4710_v43, %v3789_v12  ;;  %v3967_v50 = vmax.f32 %v3924_v25, 0.0  ;;  %v3909_v0 = vadd.f32 %v4704_v10, %v3779_v18 }
 0x5f7   : > { %v3954_v30 = vadd.f32 %v4731_v23, %v3824_v8 }
 0x5f8   : > { %v4733_v9 = vpop.f32.mrf.mxu1  ;;  %v3966_v49 = vmax.f32 %v3919_v53, 0.0  ;;  %v3964_v63 = vmax.f32 %v3909_v0, 0.0 }
 0x5f9   : > { %v4734_v60 = vadd.f32 %v4733_v9, %v4732_v22  ;;  %v3973_v16 = vmax.f32 %v3954_v30, 0.0  ;;  %v3914_v22 = vadd.f32 %v4707_v17, %v3784_v57  ;;  %v3978_v9 = vld [vmem:[%s6938_s8 + $0x8] sm:$0x3] }
 0x5fb   : > { %v3959_v61 = vadd.f32 %v4734_v60, %v3829_v31  ;;  %v3965_v23 = vmax.f32 %v3914_v22, 0.0 }
 0x5fd   : > { %v3974_v39 = vmax.f32 %v3959_v61, 0.0 }
 0x5ff   : > { %4934 = vmatprep.subr.msk.mxu0 %vm3986_vm11, %v3974_v39 }
 0x600   : > { %4935 = vmatpush3.msk.msra.mxu0 %vm3986_vm11, %v3974_v39 }
 0x601   : > { %4936 = vmatprep.subr.mxu0 %v3973_v16 }
 0x602   : > { %4937 = vmatpush3.msra.mxu0 %v3973_v16 }
 0x603   : > { %4938 = vmatprep.subr.mxu0 %v3972_v7 }
 0x604   : > { %4939 = vmatpush3.msra.mxu0 %v3972_v7 }
 0x605   : > { %4940 = vmatprep.subr.mxu0 %v3971_v42 }
 0x606   : > { %4941 = vmatpush3.msra.mxu0 %v3971_v42 }
 0x607   : > { %4942 = vmatprep.subr.mxu0 %v3970_v5 }
 0x608   : > { %4943 = vmatpush3.msra.mxu0 %v3970_v5 }
 0x609   : > { %4944 = vmatprep.subr.mxu0 %v3969_v58 }
 0x60a   : > { %4945 = vmatpush3.msra.mxu0 %v3969_v58 }
 0x60b   : > { %4946 = vmatprep.subr.mxu0 %v3968_v20 }
 0x60c   : > { %4947 = vmatpush3.msra.mxu0 %v3968_v20 }
 0x60d   : > { %4948 = vmatprep.subr.mxu0 %v3967_v50 }
 0x60e   : > { %4949 = vmatpush3.msra.mxu0 %v3967_v50 }
 0x60f   : > { %4950 = vmatprep.subr.mxu0 %v3966_v49 }
 0x610   : > { %4951 = vmatpush3.msra.mxu0 %v3966_v49 }
 0x611   : > { %4952 = vmatprep.subr.mxu0 %v3965_v23 }
 0x612   : > { %4953 = vmatpush3.msra.mxu0 %v3965_v23 }
 0x613   : > { %4954 = vmatprep.subr.mxu0 %v3964_v63 }
 0x614   : > { %4955 = vmatpush3.msra.mxu0 %v3964_v63 }
 0x615   : > { %4956 = vmatprep.subr.mxu0 %v3963_v27 }
 0x616   : > { %4957 = vmatpush3.msra.mxu0 %v3963_v27 }
 0x617   : > { %4958 = vmatprep.subr.mxu0 %v3962_v26 }
 0x618   : > { %4959 = vmatpush3.msra.mxu0 %v3962_v26 }
 0x619   : > { %4961 = vmatmul.mubr.msk.f32.vlgmr.msra.gmra.mxu0 %vm3979_vm10, %v3976_v52 }
 0x6d9   : > { %v4962_v32 = vpop.f32.mrf.mxu0 }
 0x6da   : > { %v4062_v8 = vadd.f32 %v4962_v32, %v3978_v9 }
 0x6db   : > { %v4056_v35 = vpop.f32.mrf.mxu0 }
 0x6dc   : > { %4067 = vst.msk [vmem:[%s332_s26 + $0x8] sm:$0x3] %vm4066_vm12, %v4062_v8  ;;  %v4057_v31 = vadd.f32 %v4056_v35, %v3977_v29 }
 0x6de   : > { %4065 = vst.msk [vmem:[%s332_s26] sm:$0xff] %vm1372_vm4, %v4057_v31 }
 0x6df PF: > { %s19_s30 = sadd.s32 1, %s4988_s30  }
 0x6e0   : > { %p16_p4 = scmp.ge.s32.totalorder %s19_s30, 4  }
 0x6e2   :  { %18 = sbr.rel (!%p16_p4) target bundleno = 1 (0x1), region = 116 }

</bundles_post_ra>
